<compile_context>
chip_gen: v7x
topology: tpu7x:2x2x1
jax: 0.10.0
libtpu: 0.0.40
codegen_flags: <defaults>
</compile_context>

<pallas_src>
import functools

import jax
import jax.numpy as jnp
from jax import lax
from jax.experimental import pallas as pl
from jax.experimental.pallas import tpu as pltpu


LANE = 128
SUB = 8


# ----------------------------- helpers (padding) --------------------------- #

def _round_up(n, m):
    return ((n + m - 1) // m) * m


def _pad_gates_cols(w, H, Hp):
    """(in_dim, 4H) -> (in_dim, 4*Hp); real gate-k columns at [k*Hp, k*Hp+H)."""
    out = jnp.zeros((w.shape[0], 4 * Hp), w.dtype)
    for k in range(4):
        out = out.at[:, k * Hp:k * Hp + H].set(w[:, k * H:(k + 1) * H])
    return out


def _pad_rows(w, n, n_pad):
    return jnp.zeros((n_pad, w.shape[1]), w.dtype).at[:n, :].set(w)


def _pad_cols(w, n, n_pad):
    return jnp.zeros((w.shape[0], n_pad), w.dtype).at[:, :n].set(w)


def _scatter_bilstm_rows(w, H, Hp):
    """(2H, C) -> (2*Hp, C): fwd rows at [0,H), bwd rows at [Hp, Hp+H)."""
    out = jnp.zeros((2 * Hp, w.shape[1]), w.dtype)
    out = out.at[:H, :].set(w[:H, :])
    out = out.at[Hp:Hp + H, :].set(w[H:, :])
    return out


# ------------------------- fused BiLSTM + head kernel ---------------------- #

def bilstm_relcls_kernel(*refs, extra, gates_in_bf16):
    """BiLSTM recurrence (final states only) + classifier head.

    Grid = (batch_blocks, time_chunks).  h/c state is carried in scratch across
    time chunks; the backward direction reads reversed chunks (via index_map)
    and walks each chunk back-to-front.
    """
    if extra:
        (xf_ref, xb_ref, mf_ref, mb_ref,
         wxf_ref, wxb_ref, bias_ref, wh_ref,
         wlin_ref, blin_ref, wout_ref, bout_ref,
         out_ref, xproj, h_cat, c_cat) = refs
    else:
        (xf_ref, xb_ref, mf_ref, mb_ref,
         wxf_ref, wxb_ref, bias_ref, wh_ref,
         wout_ref, bout_ref,
         out_ref, xproj, h_cat, c_cat) = refs
        wlin_ref = blin_ref = None

    Tc, B_blk, _ = xf_ref.shape
    Hp = wh_ref.shape[0] // 2
    G = 4 * Hp
    wdt = wh_ref.dtype
    tc = pl.program_id(1)

    # ---- init carried state at the first time chunk (per batch block) ----
    @pl.when(tc == 0)
    def _():
        h_cat[...] = jnp.zeros_like(h_cat)
        c_cat[...] = jnp.zeros_like(c_cat)

    # ---- in-kernel input projection, hoisted off the serial path ----
    # xemb is only E lanes wide in HBM; the 8*Hp-wide gate pre-activations for
    # this chunk live in VMEM scratch only.
    b_fwd = bias_ref[:, 0:G]
    b_bwd = bias_ref[:, G:2 * G]

    def proj_step(t, carry):
        xproj[t, :, 0:G] = (
            jnp.dot(xf_ref[t], wxf_ref[...], preferred_element_type=jnp.float32)
            + b_fwd)
        xproj[t, :, G:2 * G] = (
            jnp.dot(xb_ref[t], wxb_ref[...], preferred_element_type=jnp.float32)
            + b_bwd)
        return carry

    lax.fori_loop(0, Tc, proj_step, 0, unroll=True if Tc <= 16 else 4)

    # ---- fused fwd/bwd masked recurrence: one K=2*Hp MXU matmul per step ----
    def cell(g, c_prev):
        if gates_in_bf16:          # v6e/v7x EUP bf16 path; keep f32 on v5e
            g = g.astype(jnp.bfloat16)
        i_g = jax.nn.sigmoid(g[:, 0 * Hp:1 * Hp])
        f_g = jax.nn.sigmoid(g[:, 1 * Hp:2 * Hp])
        g_g = jnp.tanh(g[:, 2 * Hp:3 * Hp])
        o_g = jax.nn.sigmoid(g[:, 3 * Hp:4 * Hp])
        c_new = f_g * c_prev + i_g * g_g
        h_new = o_g * jnp.tanh(c_new)
        return h_new, c_new

    def step(i, carry):
        tb = Tc - 1 - i                       # backward dir walks the chunk in reverse
        hh = jnp.dot(h_cat[...].astype(wdt), wh_ref[...],
                     preferred_element_type=jnp.float32)          # (B_blk, 8*Hp)
        gates_f = xproj[i, :, 0:G] + hh[:, 0:G]
        gates_b = xproj[tb, :, G:2 * G] + hh[:, G:2 * G]

        hfn, cfn = cell(gates_f, c_cat[:, 0:Hp])
        hbn, cbn = cell(gates_b, c_cat[:, Hp:2 * Hp])

        # masked (padding) positions: freeze the state
        mf = jnp.broadcast_to(mf_ref[i], (B_blk, Hp)) > 0.0
        mb = jnp.broadcast_to(mb_ref[tb], (B_blk, Hp)) > 0.0
        h_cat[:, 0:Hp] = jnp.where(mf, hfn, h_cat[:, 0:Hp])
        c_cat[:, 0:Hp] = jnp.where(mf, cfn, c_cat[:, 0:Hp])
        h_cat[:, Hp:2 * Hp] = jnp.where(mb, hbn, h_cat[:, Hp:2 * Hp])
        c_cat[:, Hp:2 * Hp] = jnp.where(mb, cbn, c_cat[:, Hp:2 * Hp])
        return carry

    lax.fori_loop(0, Tc, step, 0, unroll=True if Tc <= 16 else 8)

    # ---- classifier head fused into the finalize path of the last chunk ----
    @pl.when(tc == pl.num_programs(1) - 1)
    def _():
        a = h_cat[...]                                  # (B_blk, 2*Hp) = [h_fwd | h_bwd]
        if extra:
            z = jnp.dot(a.astype(wlin_ref.dtype), wlin_ref[...],
                        preferred_element_type=jnp.float32) + blin_ref[...]
            a = jnp.maximum(z, 0.0)                     # ReLU
        # dropout(p=0.0, eval) -> identity
        out_ref[...] = (jnp.dot(a.astype(wout_ref.dtype), wout_ref[...],
                                preferred_element_type=jnp.float32)
                        + bout_ref[...])


# --------------------------- tiling / VMEM budget --------------------------- #

def _vmem_limit_bytes():
    kind = ""
    try:
        kind = jax.devices()[0].device_kind.lower()
    except Exception:
        pass
    if ("v5" in kind) or ("v6" in kind):
        return 100 * 1024 * 1024          # 128 MiB-VMEM parts
    return 48 * 1024 * 1024               # v7x (64 MiB/TC) and anything unknown


def _choose_tiles(Bp, T, E, Hp, DLp, Rp, extra, vmem_limit):
    """Largest (batch_block, time_chunk) whose working set fits the VMEM budget."""
    budget = int(vmem_limit * 0.7)        # headroom for compiler-internal scratch
    G8 = 8 * Hp

    w_bytes = 2 * (2 * E * 4 * Hp * 2 + 2 * Hp * G8 * 2 + G8 * 4)
    if extra:
        w_bytes += 2 * (2 * Hp * DLp * 2 + DLp * 4 + DLp * Rp * 2 + Rp * 4)
    else:
        w_bytes += 2 * (2 * Hp * Rp * 2 + Rp * 4)

    def need(b_blk, tc):
        xemb = 2 * 2 * tc * b_blk * E * 2          # fwd+bwd streams, double-buffered, bf16
        msk = 2 * 2 * tc * b_blk * LANE * 4        # (.,.,1) blocks pad to 128 lanes in VMEM
        xprj = tc * b_blk * G8 * 4                 # gate pre-activation scratch (f32)
        st = 2 * b_blk * 2 * Hp * 4                # carried h/c state
        outb = 2 * b_blk * Rp * 4
        return xemb + msk + xprj + st + outb + w_bytes

    for b_blk in (256, 128, 64, 32, 16, 8):        # prefer big batch tiles (MXU rows)
        if Bp % b_blk:
            continue
        for tc in (512, 256, 128, 64, 32, 16, 8):
            tc = min(tc, T)
            if need(b_blk, tc) <= budget:
                return b_blk, tc
    return 8, min(T, 8)


# --------------------------------- Wrapper ---------------------------------- #

def relation_classifier(x, params, *, extra=True, mxu_dtype=jnp.bfloat16,
                        gates_in_bf16=False):
    """x: (B, T) int32 token ids.  Returns logits (B, numrels) float32."""
    B, T = x.shape
    emb_table = params["emb"]
    E = emb_table.shape[1]
    H = params["wh_f"].shape[0]
    D = 2 * H
    R = params["w_out"].shape[1]

    Hp = _round_up(H, LANE)                      # lane-aligned per-gate hidden
    DLp = _round_up(D, LANE)                     # padded lin-output width
    Rp = _round_up(R, LANE)                      # padded numrels (lane-dense out)
    Bp = _round_up(B, SUB)                       # sublane-padded batch

    vmem_limit = _vmem_limit_bytes()
    B_blk, Tc = _choose_tiles(Bp, T, E, Hp, DLp, Rp, extra, vmem_limit)
    n_bblk = Bp // B_blk
    n_tc = pl.cdiv(T, Tc)
    Tp = n_tc * Tc

    # --- XLA glue: pad batch, transpose the tiny id matrix (so the embedding
    #     lookup is produced time-major directly), pad time to whole chunks. ---
    x_p = jnp.zeros((Bp, T), x.dtype).at[:B, :].set(x)
    x_tm = x_p.T                                                    # (T, Bp)
    xemb_tm = jnp.take(emb_table.astype(mxu_dtype), x_tm, axis=0)   # (T, Bp, E) bf16
    mask_tm = (x_tm != 0).astype(jnp.float32)[:, :, None]           # (T, Bp, 1)
    if Tp > T:
        xemb_tm = jnp.concatenate(
            [xemb_tm, jnp.zeros((Tp - T, Bp, E), xemb_tm.dtype)], axis=0)
        mask_tm = jnp.concatenate(
            [mask_tm, jnp.zeros((Tp - T, Bp, 1), mask_tm.dtype)], axis=0)

    # --- weight prep: lane-padded gate columns; fwd/bwd Wh fused block-diagonally
    #     so the recurrence is one K=2*Hp matmul. Padded lanes stay exactly zero. ---
    wx_f = _pad_gates_cols(params["wx_f"], H, Hp).astype(mxu_dtype)   # (E, 4Hp)
    wx_b = _pad_gates_cols(params["wx_b"], H, Hp).astype(mxu_dtype)   # (E, 4Hp)
    bias = jnp.concatenate([_pad_gates_cols(params["b_f"], H, Hp),
                            _pad_gates_cols(params["b_b"], H, Hp)],
                           axis=1)                                    # (1, 8Hp) f32
    wh_f = _pad_rows(_pad_gates_cols(params["wh_f"], H, Hp), H, Hp)   # (Hp, 4Hp)
    wh_b = _pad_rows(_pad_gates_cols(params["wh_b"], H, Hp), H, Hp)
    wh = jnp.zeros((2 * Hp, 8 * Hp), jnp.float32)
    wh = wh.at[:Hp, :4 * Hp].set(wh_f).at[Hp:, 4 * Hp:].set(wh_b).astype(mxu_dtype)

    if extra:
        w_lin = _pad_cols(_scatter_bilstm_rows(params["w_lin"], H, Hp),
                          D, DLp).astype(mxu_dtype)                   # (2Hp, DLp)
        b_lin = _pad_cols(params["b_lin"], D, DLp)                    # (1, DLp) f32
        w_out = _pad_cols(_pad_rows(params["w_out"], D, DLp),
                          R, Rp).astype(mxu_dtype)                    # (DLp, Rp)
    else:
        w_out = _pad_cols(_scatter_bilstm_rows(params["w_out"], H, Hp),
                          R, Rp).astype(mxu_dtype)                    # (2Hp, Rp)
    b_out = _pad_cols(params["b_out"], R, Rp)                         # (1, Rp) f32

    # --- BlockSpecs: fwd reads chunk c, bwd reads chunk n_tc-1-c (no reversed copy) ---
    def _fwd_map(r, c):
        return (c, r, 0)

    def _bwd_map(r, c):
        return (n_tc - 1 - c, r, 0)

    def _full_spec(arr):
        nd = arr.ndim
        return pl.BlockSpec(arr.shape, lambda r, c: (0,) * nd)

    in_specs = [
        pl.BlockSpec((Tc, B_blk, E), _fwd_map),     # xemb, forward stream
        pl.BlockSpec((Tc, B_blk, E), _bwd_map),     # xemb, backward stream
        pl.BlockSpec((Tc, B_blk, 1), _fwd_map),     # mask, forward
        pl.BlockSpec((Tc, B_blk, 1), _bwd_map),     # mask, backward
        _full_spec(wx_f), _full_spec(wx_b), _full_spec(bias), _full_spec(wh),
    ]
    operands = [xemb_tm, xemb_tm, mask_tm, mask_tm, wx_f, wx_b, bias, wh]
    if extra:
        in_specs += [_full_spec(w_lin), _full_spec(b_lin)]
        operands += [w_lin, b_lin]
    in_specs += [_full_spec(w_out), _full_spec(b_out)]
    operands += [w_out, b_out]

    logits_p = pl.pallas_call(
        functools.partial(bilstm_relcls_kernel, extra=extra,
                          gates_in_bf16=gates_in_bf16),
        out_shape=jax.ShapeDtypeStruct((Bp, Rp), jnp.float32),
        grid_spec=pltpu.PrefetchScalarGridSpec(
            num_scalar_prefetch=0,
            grid=(n_bblk, n_tc),
            in_specs=in_specs,
            out_specs=pl.BlockSpec((B_blk, Rp), lambda r, c: (r, 0)),
            scratch_shapes=[
                pltpu.VMEM((Tc, B_blk, 8 * Hp), jnp.float32),  # gate pre-acts (chunk)
                pltpu.VMEM((B_blk, 2 * Hp), jnp.float32),      # h = [h_fwd | h_bwd]
                pltpu.VMEM((B_blk, 2 * Hp), jnp.float32),      # c = [c_fwd | c_bwd]
            ]),
        compiler_params=pltpu.CompilerParams(
            dimension_semantics=("parallel", "arbitrary"),
            vmem_limit_bytes=vmem_limit),
    )(*operands)

    return logits_p[:B, :R]


# ------------------------------ pure-JAX reference -------------------------- #

def relation_classifier_ref(x, params, *, extra=True):
    """f32 reference with the same (state-freeze) masking semantics."""
    B, T = x.shape
    H = params["wh_f"].shape[0]
    xemb = jnp.take(params["emb"], x, axis=0)             # (B, T, E)
    mask = (x != 0).astype(jnp.float32)[:, :, None]       # (B, T, 1)

    def run_dir(wx, wh, b, reverse):
        def step(carry, t):
            h, c = carry
            g = xemb[:, t, :] @ wx + h @ wh + b
            i = jax.nn.sigmoid(g[:, 0 * H:1 * H])
            f = jax.nn.sigmoid(g[:, 1 * H:2 * H])
            gg = jnp.tanh(g[:, 2 * H:3 * H])
            o = jax.nn.sigmoid(g[:, 3 * H:4 * H])
            c_new = f * c + i * gg
            h_new = o * jnp.tanh(c_new)
            m = mask[:, t, :]
            return (jnp.where(m > 0, h_new, h), jnp.where(m > 0, c_new, c)), None

        ts = jnp.arange(T - 1, -1, -1) if reverse else jnp.arange(T)
        (h, _), _ = lax.scan(step, (jnp.zeros((B, H), jnp.float32),
                                    jnp.zeros((B, H), jnp.float32)), ts)
        return h

    hf = run_dir(params["wx_f"], params["wh_f"], params["b_f"], False)
    hb = run_dir(params["wx_b"], params["wh_b"], params["b_b"], True)
    a = jnp.concatenate([hf, hb], axis=1)
    if extra:
        a = jnp.maximum(a @ params["w_lin"] + params["b_lin"], 0.0)
    return a @ params["w_out"] + params["b_out"]


# -------------------------------- Param init -------------------------------- #

def init_params(key, vocab, emb_dim, hidden, numrels):
    dim = 2 * hidden
    ks = jax.random.split(key, 12)
    s = 0.1
    return {
        "emb":   s * jax.random.normal(ks[0], (vocab, emb_dim), jnp.float32),
        "wx_f":  s * jax.random.normal(ks[1], (emb_dim, 4 * hidden), jnp.float32),
        "wh_f":  s * jax.random.normal(ks[2], (hidden, 4 * hidden), jnp.float32),
        "b_f":   s * jax.random.normal(ks[3], (1, 4 * hidden), jnp.float32),
        "wx_b":  s * jax.random.normal(ks[4], (emb_dim, 4 * hidden), jnp.float32),
        "wh_b":  s * jax.random.normal(ks[5], (hidden, 4 * hidden), jnp.float32),
        "b_b":   s * jax.random.normal(ks[6], (1, 4 * hidden), jnp.float32),
        "w_lin": s * jax.random.normal(ks[7], (dim, dim), jnp.float32),
        "b_lin": s * jax.random.normal(ks[8], (1, dim), jnp.float32),
        "w_out": s * jax.random.normal(ks[9], (dim, numrels), jnp.float32),
        "b_out": s * jax.random.normal(ks[10], (1, numrels), jnp.float32),
    }


# ----------------------------------- Main ----------------------------------- #

if __name__ == "__main__":
    key = jax.random.PRNGKey(0)
    B, T = 2, 8
    VOCAB, EMB, HIDDEN = 50, 32, 16          # dim = 2*HIDDEN = 32
    relD = {"rel_%d" % i: i for i in range(20)}
    NUMRELS = max(relD.values()) + 1         # 20

    k_param, k_x = jax.random.split(key)
    params = init_params(k_param, VOCAB, EMB, HIDDEN, NUMRELS)

    x = jax.random.randint(k_x, (B, T), 1, VOCAB, dtype=jnp.int32)
    x = x.at[:, 6:].set(0)                   # trailing padding tokens (id 0)

    for extra in (True, False):
        fwd = jax.jit(functools.partial(relation_classifier, extra=extra))
        logits = fwd(x, params)
        jax.block_until_ready(logits)
        assert logits.shape == (B, NUMRELS), logits.shape
        assert logits.dtype == jnp.float32
        assert bool(jnp.all(jnp.isfinite(logits)))
        ref = relation_classifier_ref(x, params, extra=extra)
        assert bool(jnp.allclose(logits, ref, atol=5e-2, rtol=5e-2)), \
            float(jnp.max(jnp.abs(logits - ref)))

    print("KERNEL_OK")
</pallas_src>

<mosaic_0001>
module attributes {stable_mosaic.version = 11 : i64} {
  func.func @bilstm_relcls_kernel(%arg0: i32, %arg1: i32, %arg2: memref<8x8x32xbf16, #tpu.memory_space<vmem>>, %arg3: memref<8x8x32xbf16, #tpu.memory_space<vmem>>, %arg4: memref<8x8x1xf32, #tpu.memory_space<vmem>>, %arg5: memref<8x8x1xf32, #tpu.memory_space<vmem>>, %arg6: memref<32x512xbf16, #tpu.memory_space<vmem>>, %arg7: memref<32x512xbf16, #tpu.memory_space<vmem>>, %arg8: memref<1x1024xf32, #tpu.memory_space<vmem>>, %arg9: memref<256x1024xbf16, #tpu.memory_space<vmem>>, %arg10: memref<256x128xbf16, #tpu.memory_space<vmem>>, %arg11: memref<1x128xf32, #tpu.memory_space<vmem>>, %arg12: memref<128x128xbf16, #tpu.memory_space<vmem>>, %arg13: memref<1x128xf32, #tpu.memory_space<vmem>>, %arg14: memref<8x128xf32, #tpu.memory_space<vmem>>, %arg15: memref<8x8x1024xf32, #tpu.memory_space<vmem>>, %arg16: memref<8x256xf32, #tpu.memory_space<vmem>>, %arg17: memref<8x256xf32, #tpu.memory_space<vmem>>) attributes {dimension_semantics = [#tpu.dimension_semantics<parallel>, #tpu.dimension_semantics<arbitrary>], iteration_bounds = array<i64: 1, 1>, scalar_prefetch = 0 : i64, scratch_operands = 3 : i64, tpu.core_type = #tpu.core_type<tc>, window_params = [{transform_indices = @transform_0, window_bounds = array<i64: 8, 8, 32>}, {transform_indices = @transform_1, window_bounds = array<i64: 8, 8, 32>}, {transform_indices = @transform_2, window_bounds = array<i64: 8, 8, 1>}, {transform_indices = @transform_3, window_bounds = array<i64: 8, 8, 1>}, {pipeline_mode = #tpu.pipeline_mode<synchronous>, transform_indices = @transform_4, window_bounds = array<i64: 32, 512>}, {pipeline_mode = #tpu.pipeline_mode<synchronous>, transform_indices = @transform_5, window_bounds = array<i64: 32, 512>}, {pipeline_mode = #tpu.pipeline_mode<synchronous>, transform_indices = @transform_6, window_bounds = array<i64: 1, 1024>}, {pipeline_mode = #tpu.pipeline_mode<synchronous>, transform_indices = @transform_7, window_bounds = array<i64: 256, 1024>}, {pipeline_mode = #tpu.pipeline_mode<synchronous>, transform_indices = @transform_8, window_bounds = array<i64: 256, 128>}, {pipeline_mode = #tpu.pipeline_mode<synchronous>, transform_indices = @transform_9, window_bounds = array<i64: 1, 128>}, {pipeline_mode = #tpu.pipeline_mode<synchronous>, transform_indices = @transform_10, window_bounds = array<i64: 128, 128>}, {pipeline_mode = #tpu.pipeline_mode<synchronous>, transform_indices = @transform_11, window_bounds = array<i64: 1, 128>}, {transform_indices = @transform_12, window_bounds = array<i64: 8, 128>}]} {
    %c0_i32 = arith.constant 0 : i32
    %0 = arith.cmpi eq, %arg1, %c0_i32 : i32
    %1 = arith.extui %0 : i1 to i32
    %c0_i32_0 = arith.constant 0 : i32
    %2 = arith.cmpi ne, %1, %c0_i32_0 : i32
    scf.if %2 {
      %cst_461 = arith.constant 0.000000e+00 : f32
      %928 = vector.broadcast %cst_461 : f32 to vector<8x256xf32>
      %c0_462 = arith.constant 0 : index
      %c0_463 = arith.constant 0 : index
      %929 = vector.load %arg16[%c0_462, %c0_463] : memref<8x256xf32, #tpu.memory_space<vmem>>, vector<8x256xf32>
      tpu.vector_store %arg16[%c0_462, %c0_463], %928 {strides = array<i32>} : memref<8x256xf32, #tpu.memory_space<vmem>>, vector<8x256xf32>,
      %cst_464 = arith.constant 0.000000e+00 : f32
      %930 = vector.broadcast %cst_464 : f32 to vector<8x256xf32>
      %c0_465 = arith.constant 0 : index
      %c0_466 = arith.constant 0 : index
      %931 = vector.load %arg17[%c0_465, %c0_466] : memref<8x256xf32, #tpu.memory_space<vmem>>, vector<8x256xf32>
      tpu.vector_store %arg17[%c0_465, %c0_466], %930 {strides = array<i32>} : memref<8x256xf32, #tpu.memory_space<vmem>>, vector<8x256xf32>,
    } else {
    }
    %c0 = arith.constant 0 : index
    %c0_1 = arith.constant 0 : index
    %3 = vector.load %arg8[%c0, %c0_1] : memref<1x1024xf32, #tpu.memory_space<vmem>>, vector<1x512xf32>
    %c0_2 = arith.constant 0 : index
    %c512 = arith.constant 512 : index
    %4 = vector.load %arg8[%c0_2, %c512] : memref<1x1024xf32, #tpu.memory_space<vmem>>, vector<1x512xf32>
    %c0_i32_3 = arith.constant 0 : i32
    %5 = arith.index_cast %c0_i32_3 : i32 to index
    %c0_4 = arith.constant 0 : index
    %c0_5 = arith.constant 0 : index
    %6 = vector.load %arg2[%5, %c0_4, %c0_5] : memref<8x8x32xbf16, #tpu.memory_space<vmem>>, vector<1x8x32xbf16>
    %7 = vector.shape_cast %6 : vector<1x8x32xbf16> to vector<8x32xbf16>
    %c0_6 = arith.constant 0 : index
    %c0_7 = arith.constant 0 : index
    %8 = vector.load %arg6[%c0_6, %c0_7] : memref<32x512xbf16, #tpu.memory_space<vmem>>, vector<32x512xbf16>
    %cst = arith.constant dense<0.000000e+00> : vector<8x512xf32>
    %9 = tpu.matmul %7, %8, %cst {dimension_numbers = #tpu.dot_dimension_numbers<[1], [0], [0], [1], [0, 0, 1, 1], [], []>} : vector<8x32xbf16>, vector<32x512xbf16>, vector<8x512xf32> -> vector<8x512xf32>
    %10 = vector.broadcast %3 : vector<1x512xf32> to vector<8x512xf32>
    %11 = arith.addf %9, %10 : vector<8x512xf32>
    %12 = arith.index_cast %c0_i32_3 : i32 to index
    %c0_8 = arith.constant 0 : index
    %c0_9 = arith.constant 0 : index
    %13 = vector.load %arg15[%12, %c0_8, %c0_9] : memref<8x8x1024xf32, #tpu.memory_space<vmem>>, vector<1x8x512xf32>
    %14 = vector.shape_cast %13 : vector<1x8x512xf32> to vector<8x512xf32>
    %15 = vector.shape_cast %11 : vector<8x512xf32> to vector<1x8x512xf32>
    tpu.vector_store %arg15[%12, %c0_8, %c0_9], %15 {strides = array<i32>} : memref<8x8x1024xf32, #tpu.memory_space<vmem>>, vector<1x8x512xf32>,
    %16 = arith.index_cast %c0_i32_3 : i32 to index
    %c0_10 = arith.constant 0 : index
    %c0_11 = arith.constant 0 : index
    %17 = vector.load %arg3[%16, %c0_10, %c0_11] : memref<8x8x32xbf16, #tpu.memory_space<vmem>>, vector<1x8x32xbf16>
    %18 = vector.shape_cast %17 : vector<1x8x32xbf16> to vector<8x32xbf16>
    %c0_12 = arith.constant 0 : index
    %c0_13 = arith.constant 0 : index
    %19 = vector.load %arg7[%c0_12, %c0_13] : memref<32x512xbf16, #tpu.memory_space<vmem>>, vector<32x512xbf16>
    %cst_14 = arith.constant dense<0.000000e+00> : vector<8x512xf32>
    %20 = tpu.matmul %18, %19, %cst_14 {dimension_numbers = #tpu.dot_dimension_numbers<[1], [0], [0], [1], [0, 0, 1, 1], [], []>} : vector<8x32xbf16>, vector<32x512xbf16>, vector<8x512xf32> -> vector<8x512xf32>
    %21 = vector.broadcast %4 : vector<1x512xf32> to vector<8x512xf32>
    %22 = arith.addf %20, %21 : vector<8x512xf32>
    %23 = arith.index_cast %c0_i32_3 : i32 to index
    %c0_15 = arith.constant 0 : index
    %c512_16 = arith.constant 512 : index
    %24 = vector.load %arg15[%23, %c0_15, %c512_16] : memref<8x8x1024xf32, #tpu.memory_space<vmem>>, vector<1x8x512xf32>
    %25 = vector.shape_cast %24 : vector<1x8x512xf32> to vector<8x512xf32>
    %26 = vector.shape_cast %22 : vector<8x512xf32> to vector<1x8x512xf32>
    tpu.vector_store %arg15[%23, %c0_15, %c512_16], %26 {strides = array<i32>} : memref<8x8x1024xf32, #tpu.memory_space<vmem>>, vector<1x8x512xf32>,
    %c1_i32 = arith.constant 1 : i32
    %27 = arith.index_cast %c1_i32 : i32 to index
    %c0_17 = arith.constant 0 : index
    %c0_18 = arith.constant 0 : index
    %28 = vector.load %arg2[%27, %c0_17, %c0_18] : memref<8x8x32xbf16, #tpu.memory_space<vmem>>, vector<1x8x32xbf16>
    %29 = vector.shape_cast %28 : vector<1x8x32xbf16> to vector<8x32xbf16>
    %c0_19 = arith.constant 0 : index
    %c0_20 = arith.constant 0 : index
    %30 = vector.load %arg6[%c0_19, %c0_20] : memref<32x512xbf16, #tpu.memory_space<vmem>>, vector<32x512xbf16>
    %cst_21 = arith.constant dense<0.000000e+00> : vector<8x512xf32>
    %31 = tpu.matmul %29, %30, %cst_21 {dimension_numbers = #tpu.dot_dimension_numbers<[1], [0], [0], [1], [0, 0, 1, 1], [], []>} : vector<8x32xbf16>, vector<32x512xbf16>, vector<8x512xf32> -> vector<8x512xf32>
    %32 = vector.broadcast %3 : vector<1x512xf32> to vector<8x512xf32>
    %33 = arith.addf %31, %32 : vector<8x512xf32>
    %34 = arith.index_cast %c1_i32 : i32 to index
    %c0_22 = arith.constant 0 : index
    %c0_23 = arith.constant 0 : index
    %35 = vector.load %arg15[%34, %c0_22, %c0_23] : memref<8x8x1024xf32, #tpu.memory_space<vmem>>, vector<1x8x512xf32>
    %36 = vector.shape_cast %35 : vector<1x8x512xf32> to vector<8x512xf32>
    %37 = vector.shape_cast %33 : vector<8x512xf32> to vector<1x8x512xf32>
    tpu.vector_store %arg15[%34, %c0_22, %c0_23], %37 {strides = array<i32>} : memref<8x8x1024xf32, #tpu.memory_space<vmem>>, vector<1x8x512xf32>,
    %38 = arith.index_cast %c1_i32 : i32 to index
    %c0_24 = arith.constant 0 : index
    %c0_25 = arith.constant 0 : index
    %39 = vector.load %arg3[%38, %c0_24, %c0_25] : memref<8x8x32xbf16, #tpu.memory_space<vmem>>, vector<1x8x32xbf16>
    %40 = vector.shape_cast %39 : vector<1x8x32xbf16> to vector<8x32xbf16>
    %c0_26 = arith.constant 0 : index
    %c0_27 = arith.constant 0 : index
    %41 = vector.load %arg7[%c0_26, %c0_27] : memref<32x512xbf16, #tpu.memory_space<vmem>>, vector<32x512xbf16>
    %cst_28 = arith.constant dense<0.000000e+00> : vector<8x512xf32>
    %42 = tpu.matmul %40, %41, %cst_28 {dimension_numbers = #tpu.dot_dimension_numbers<[1], [0], [0], [1], [0, 0, 1, 1], [], []>} : vector<8x32xbf16>, vector<32x512xbf16>, vector<8x512xf32> -> vector<8x512xf32>
    %43 = vector.broadcast %4 : vector<1x512xf32> to vector<8x512xf32>
    %44 = arith.addf %42, %43 : vector<8x512xf32>
    %45 = arith.index_cast %c1_i32 : i32 to index
    %c0_29 = arith.constant 0 : index
    %c512_30 = arith.constant 512 : index
    %46 = vector.load %arg15[%45, %c0_29, %c512_30] : memref<8x8x1024xf32, #tpu.memory_space<vmem>>, vector<1x8x512xf32>
    %47 = vector.shape_cast %46 : vector<1x8x512xf32> to vector<8x512xf32>
    %48 = vector.shape_cast %44 : vector<8x512xf32> to vector<1x8x512xf32>
    tpu.vector_store %arg15[%45, %c0_29, %c512_30], %48 {strides = array<i32>} : memref<8x8x1024xf32, #tpu.memory_space<vmem>>, vector<1x8x512xf32>,
    %c2_i32 = arith.constant 2 : i32
    %49 = arith.index_cast %c2_i32 : i32 to index
    %c0_31 = arith.constant 0 : index
    %c0_32 = arith.constant 0 : index
    %50 = vector.load %arg2[%49, %c0_31, %c0_32] : memref<8x8x32xbf16, #tpu.memory_space<vmem>>, vector<1x8x32xbf16>
    %51 = vector.shape_cast %50 : vector<1x8x32xbf16> to vector<8x32xbf16>
    %c0_33 = arith.constant 0 : index
    %c0_34 = arith.constant 0 : index
    %52 = vector.load %arg6[%c0_33, %c0_34] : memref<32x512xbf16, #tpu.memory_space<vmem>>, vector<32x512xbf16>
    %cst_35 = arith.constant dense<0.000000e+00> : vector<8x512xf32>
    %53 = tpu.matmul %51, %52, %cst_35 {dimension_numbers = #tpu.dot_dimension_numbers<[1], [0], [0], [1], [0, 0, 1, 1], [], []>} : vector<8x32xbf16>, vector<32x512xbf16>, vector<8x512xf32> -> vector<8x512xf32>
    %54 = vector.broadcast %3 : vector<1x512xf32> to vector<8x512xf32>
    %55 = arith.addf %53, %54 : vector<8x512xf32>
    %56 = arith.index_cast %c2_i32 : i32 to index
    %c0_36 = arith.constant 0 : index
    %c0_37 = arith.constant 0 : index
    %57 = vector.load %arg15[%56, %c0_36, %c0_37] : memref<8x8x1024xf32, #tpu.memory_space<vmem>>, vector<1x8x512xf32>
    %58 = vector.shape_cast %57 : vector<1x8x512xf32> to vector<8x512xf32>
    %59 = vector.shape_cast %55 : vector<8x512xf32> to vector<1x8x512xf32>
    tpu.vector_store %arg15[%56, %c0_36, %c0_37], %59 {strides = array<i32>} : memref<8x8x1024xf32, #tpu.memory_space<vmem>>, vector<1x8x512xf32>,
    %60 = arith.index_cast %c2_i32 : i32 to index
    %c0_38 = arith.constant 0 : index
    %c0_39 = arith.constant 0 : index
    %61 = vector.load %arg3[%60, %c0_38, %c0_39] : memref<8x8x32xbf16, #tpu.memory_space<vmem>>, vector<1x8x32xbf16>
    %62 = vector.shape_cast %61 : vector<1x8x32xbf16> to vector<8x32xbf16>
    %c0_40 = arith.constant 0 : index
    %c0_41 = arith.constant 0 : index
    %63 = vector.load %arg7[%c0_40, %c0_41] : memref<32x512xbf16, #tpu.memory_space<vmem>>, vector<32x512xbf16>
    %cst_42 = arith.constant dense<0.000000e+00> : vector<8x512xf32>
    %64 = tpu.matmul %62, %63, %cst_42 {dimension_numbers = #tpu.dot_dimension_numbers<[1], [0], [0], [1], [0, 0, 1, 1], [], []>} : vector<8x32xbf16>, vector<32x512xbf16>, vector<8x512xf32> -> vector<8x512xf32>
    %65 = vector.broadcast %4 : vector<1x512xf32> to vector<8x512xf32>
    %66 = arith.addf %64, %65 : vector<8x512xf32>
    %67 = arith.index_cast %c2_i32 : i32 to index
    %c0_43 = arith.constant 0 : index
    %c512_44 = arith.constant 512 : index
    %68 = vector.load %arg15[%67, %c0_43, %c512_44] : memref<8x8x1024xf32, #tpu.memory_space<vmem>>, vector<1x8x512xf32>
    %69 = vector.shape_cast %68 : vector<1x8x512xf32> to vector<8x512xf32>
    %70 = vector.shape_cast %66 : vector<8x512xf32> to vector<1x8x512xf32>
    tpu.vector_store %arg15[%67, %c0_43, %c512_44], %70 {strides = array<i32>} : memref<8x8x1024xf32, #tpu.memory_space<vmem>>, vector<1x8x512xf32>,
    %c3_i32 = arith.constant 3 : i32
    %71 = arith.index_cast %c3_i32 : i32 to index
    %c0_45 = arith.constant 0 : index
    %c0_46 = arith.constant 0 : index
    %72 = vector.load %arg2[%71, %c0_45, %c0_46] : memref<8x8x32xbf16, #tpu.memory_space<vmem>>, vector<1x8x32xbf16>
    %73 = vector.shape_cast %72 : vector<1x8x32xbf16> to vector<8x32xbf16>
    %c0_47 = arith.constant 0 : index
    %c0_48 = arith.constant 0 : index
    %74 = vector.load %arg6[%c0_47, %c0_48] : memref<32x512xbf16, #tpu.memory_space<vmem>>, vector<32x512xbf16>
    %cst_49 = arith.constant dense<0.000000e+00> : vector<8x512xf32>
    %75 = tpu.matmul %73, %74, %cst_49 {dimension_numbers = #tpu.dot_dimension_numbers<[1], [0], [0], [1], [0, 0, 1, 1], [], []>} : vector<8x32xbf16>, vector<32x512xbf16>, vector<8x512xf32> -> vector<8x512xf32>
    %76 = vector.broadcast %3 : vector<1x512xf32> to vector<8x512xf32>
    %77 = arith.addf %75, %76 : vector<8x512xf32>
    %78 = arith.index_cast %c3_i32 : i32 to index
    %c0_50 = arith.constant 0 : index
    %c0_51 = arith.constant 0 : index
    %79 = vector.load %arg15[%78, %c0_50, %c0_51] : memref<8x8x1024xf32, #tpu.memory_space<vmem>>, vector<1x8x512xf32>
    %80 = vector.shape_cast %79 : vector<1x8x512xf32> to vector<8x512xf32>
    %81 = vector.shape_cast %77 : vector<8x512xf32> to vector<1x8x512xf32>
    tpu.vector_store %arg15[%78, %c0_50, %c0_51], %81 {strides = array<i32>} : memref<8x8x1024xf32, #tpu.memory_space<vmem>>, vector<1x8x512xf32>,
    %82 = arith.index_cast %c3_i32 : i32 to index
    %c0_52 = arith.constant 0 : index
    %c0_53 = arith.constant 0 : index
    %83 = vector.load %arg3[%82, %c0_52, %c0_53] : memref<8x8x32xbf16, #tpu.memory_space<vmem>>, vector<1x8x32xbf16>
    %84 = vector.shape_cast %83 : vector<1x8x32xbf16> to vector<8x32xbf16>
    %c0_54 = arith.constant 0 : index
    %c0_55 = arith.constant 0 : index
    %85 = vector.load %arg7[%c0_54, %c0_55] : memref<32x512xbf16, #tpu.memory_space<vmem>>, vector<32x512xbf16>
    %cst_56 = arith.constant dense<0.000000e+00> : vector<8x512xf32>
    %86 = tpu.matmul %84, %85, %cst_56 {dimension_numbers = #tpu.dot_dimension_numbers<[1], [0], [0], [1], [0, 0, 1, 1], [], []>} : vector<8x32xbf16>, vector<32x512xbf16>, vector<8x512xf32> -> vector<8x512xf32>
    %87 = vector.broadcast %4 : vector<1x512xf32> to vector<8x512xf32>
    %88 = arith.addf %86, %87 : vector<8x512xf32>
    %89 = arith.index_cast %c3_i32 : i32 to index
    %c0_57 = arith.constant 0 : index
    %c512_58 = arith.constant 512 : index
    %90 = vector.load %arg15[%89, %c0_57, %c512_58] : memref<8x8x1024xf32, #tpu.memory_space<vmem>>, vector<1x8x512xf32>
    %91 = vector.shape_cast %90 : vector<1x8x512xf32> to vector<8x512xf32>
    %92 = vector.shape_cast %88 : vector<8x512xf32> to vector<1x8x512xf32>
    tpu.vector_store %arg15[%89, %c0_57, %c512_58], %92 {strides = array<i32>} : memref<8x8x1024xf32, #tpu.memory_space<vmem>>, vector<1x8x512xf32>,
    %c4_i32 = arith.constant 4 : i32
    %93 = arith.index_cast %c4_i32 : i32 to index
    %c0_59 = arith.constant 0 : index
    %c0_60 = arith.constant 0 : index
    %94 = vector.load %arg2[%93, %c0_59, %c0_60] : memref<8x8x32xbf16, #tpu.memory_space<vmem>>, vector<1x8x32xbf16>
    %95 = vector.shape_cast %94 : vector<1x8x32xbf16> to vector<8x32xbf16>
    %c0_61 = arith.constant 0 : index
    %c0_62 = arith.constant 0 : index
    %96 = vector.load %arg6[%c0_61, %c0_62] : memref<32x512xbf16, #tpu.memory_space<vmem>>, vector<32x512xbf16>
    %cst_63 = arith.constant dense<0.000000e+00> : vector<8x512xf32>
    %97 = tpu.matmul %95, %96, %cst_63 {dimension_numbers = #tpu.dot_dimension_numbers<[1], [0], [0], [1], [0, 0, 1, 1], [], []>} : vector<8x32xbf16>, vector<32x512xbf16>, vector<8x512xf32> -> vector<8x512xf32>
    %98 = vector.broadcast %3 : vector<1x512xf32> to vector<8x512xf32>
    %99 = arith.addf %97, %98 : vector<8x512xf32>
    %100 = arith.index_cast %c4_i32 : i32 to index
    %c0_64 = arith.constant 0 : index
    %c0_65 = arith.constant 0 : index
    %101 = vector.load %arg15[%100, %c0_64, %c0_65] : memref<8x8x1024xf32, #tpu.memory_space<vmem>>, vector<1x8x512xf32>
    %102 = vector.shape_cast %101 : vector<1x8x512xf32> to vector<8x512xf32>
    %103 = vector.shape_cast %99 : vector<8x512xf32> to vector<1x8x512xf32>
    tpu.vector_store %arg15[%100, %c0_64, %c0_65], %103 {strides = array<i32>} : memref<8x8x1024xf32, #tpu.memory_space<vmem>>, vector<1x8x512xf32>,
    %104 = arith.index_cast %c4_i32 : i32 to index
    %c0_66 = arith.constant 0 : index
    %c0_67 = arith.constant 0 : index
    %105 = vector.load %arg3[%104, %c0_66, %c0_67] : memref<8x8x32xbf16, #tpu.memory_space<vmem>>, vector<1x8x32xbf16>
    %106 = vector.shape_cast %105 : vector<1x8x32xbf16> to vector<8x32xbf16>
    %c0_68 = arith.constant 0 : index
    %c0_69 = arith.constant 0 : index
    %107 = vector.load %arg7[%c0_68, %c0_69] : memref<32x512xbf16, #tpu.memory_space<vmem>>, vector<32x512xbf16>
    %cst_70 = arith.constant dense<0.000000e+00> : vector<8x512xf32>
    %108 = tpu.matmul %106, %107, %cst_70 {dimension_numbers = #tpu.dot_dimension_numbers<[1], [0], [0], [1], [0, 0, 1, 1], [], []>} : vector<8x32xbf16>, vector<32x512xbf16>, vector<8x512xf32> -> vector<8x512xf32>
    %109 = vector.broadcast %4 : vector<1x512xf32> to vector<8x512xf32>
    %110 = arith.addf %108, %109 : vector<8x512xf32>
    %111 = arith.index_cast %c4_i32 : i32 to index
    %c0_71 = arith.constant 0 : index
    %c512_72 = arith.constant 512 : index
    %112 = vector.load %arg15[%111, %c0_71, %c512_72] : memref<8x8x1024xf32, #tpu.memory_space<vmem>>, vector<1x8x512xf32>
    %113 = vector.shape_cast %112 : vector<1x8x512xf32> to vector<8x512xf32>
    %114 = vector.shape_cast %110 : vector<8x512xf32> to vector<1x8x512xf32>
    tpu.vector_store %arg15[%111, %c0_71, %c512_72], %114 {strides = array<i32>} : memref<8x8x1024xf32, #tpu.memory_space<vmem>>, vector<1x8x512xf32>,
    %c5_i32 = arith.constant 5 : i32
    %115 = arith.index_cast %c5_i32 : i32 to index
    %c0_73 = arith.constant 0 : index
    %c0_74 = arith.constant 0 : index
    %116 = vector.load %arg2[%115, %c0_73, %c0_74] : memref<8x8x32xbf16, #tpu.memory_space<vmem>>, vector<1x8x32xbf16>
    %117 = vector.shape_cast %116 : vector<1x8x32xbf16> to vector<8x32xbf16>
    %c0_75 = arith.constant 0 : index
    %c0_76 = arith.constant 0 : index
    %118 = vector.load %arg6[%c0_75, %c0_76] : memref<32x512xbf16, #tpu.memory_space<vmem>>, vector<32x512xbf16>
    %cst_77 = arith.constant dense<0.000000e+00> : vector<8x512xf32>
    %119 = tpu.matmul %117, %118, %cst_77 {dimension_numbers = #tpu.dot_dimension_numbers<[1], [0], [0], [1], [0, 0, 1, 1], [], []>} : vector<8x32xbf16>, vector<32x512xbf16>, vector<8x512xf32> -> vector<8x512xf32>
    %120 = vector.broadcast %3 : vector<1x512xf32> to vector<8x512xf32>
    %121 = arith.addf %119, %120 : vector<8x512xf32>
    %122 = arith.index_cast %c5_i32 : i32 to index
    %c0_78 = arith.constant 0 : index
    %c0_79 = arith.constant 0 : index
    %123 = vector.load %arg15[%122, %c0_78, %c0_79] : memref<8x8x1024xf32, #tpu.memory_space<vmem>>, vector<1x8x512xf32>
    %124 = vector.shape_cast %123 : vector<1x8x512xf32> to vector<8x512xf32>
    %125 = vector.shape_cast %121 : vector<8x512xf32> to vector<1x8x512xf32>
    tpu.vector_store %arg15[%122, %c0_78, %c0_79], %125 {strides = array<i32>} : memref<8x8x1024xf32, #tpu.memory_space<vmem>>, vector<1x8x512xf32>,
    %126 = arith.index_cast %c5_i32 : i32 to index
    %c0_80 = arith.constant 0 : index
    %c0_81 = arith.constant 0 : index
    %127 = vector.load %arg3[%126, %c0_80, %c0_81] : memref<8x8x32xbf16, #tpu.memory_space<vmem>>, vector<1x8x32xbf16>
    %128 = vector.shape_cast %127 : vector<1x8x32xbf16> to vector<8x32xbf16>
    %c0_82 = arith.constant 0 : index
    %c0_83 = arith.constant 0 : index
    %129 = vector.load %arg7[%c0_82, %c0_83] : memref<32x512xbf16, #tpu.memory_space<vmem>>, vector<32x512xbf16>
    %cst_84 = arith.constant dense<0.000000e+00> : vector<8x512xf32>
    %130 = tpu.matmul %128, %129, %cst_84 {dimension_numbers = #tpu.dot_dimension_numbers<[1], [0], [0], [1], [0, 0, 1, 1], [], []>} : vector<8x32xbf16>, vector<32x512xbf16>, vector<8x512xf32> -> vector<8x512xf32>
    %131 = vector.broadcast %4 : vector<1x512xf32> to vector<8x512xf32>
    %132 = arith.addf %130, %131 : vector<8x512xf32>
    %133 = arith.index_cast %c5_i32 : i32 to index
    %c0_85 = arith.constant 0 : index
    %c512_86 = arith.constant 512 : index
    %134 = vector.load %arg15[%133, %c0_85, %c512_86] : memref<8x8x1024xf32, #tpu.memory_space<vmem>>, vector<1x8x512xf32>
    %135 = vector.shape_cast %134 : vector<1x8x512xf32> to vector<8x512xf32>
    %136 = vector.shape_cast %132 : vector<8x512xf32> to vector<1x8x512xf32>
    tpu.vector_store %arg15[%133, %c0_85, %c512_86], %136 {strides = array<i32>} : memref<8x8x1024xf32, #tpu.memory_space<vmem>>, vector<1x8x512xf32>,
    %c6_i32 = arith.constant 6 : i32
    %137 = arith.index_cast %c6_i32 : i32 to index
    %c0_87 = arith.constant 0 : index
    %c0_88 = arith.constant 0 : index
    %138 = vector.load %arg2[%137, %c0_87, %c0_88] : memref<8x8x32xbf16, #tpu.memory_space<vmem>>, vector<1x8x32xbf16>
    %139 = vector.shape_cast %138 : vector<1x8x32xbf16> to vector<8x32xbf16>
    %c0_89 = arith.constant 0 : index
    %c0_90 = arith.constant 0 : index
    %140 = vector.load %arg6[%c0_89, %c0_90] : memref<32x512xbf16, #tpu.memory_space<vmem>>, vector<32x512xbf16>
    %cst_91 = arith.constant dense<0.000000e+00> : vector<8x512xf32>
    %141 = tpu.matmul %139, %140, %cst_91 {dimension_numbers = #tpu.dot_dimension_numbers<[1], [0], [0], [1], [0, 0, 1, 1], [], []>} : vector<8x32xbf16>, vector<32x512xbf16>, vector<8x512xf32> -> vector<8x512xf32>
    %142 = vector.broadcast %3 : vector<1x512xf32> to vector<8x512xf32>
    %143 = arith.addf %141, %142 : vector<8x512xf32>
    %144 = arith.index_cast %c6_i32 : i32 to index
    %c0_92 = arith.constant 0 : index
    %c0_93 = arith.constant 0 : index
    %145 = vector.load %arg15[%144, %c0_92, %c0_93] : memref<8x8x1024xf32, #tpu.memory_space<vmem>>, vector<1x8x512xf32>
    %146 = vector.shape_cast %145 : vector<1x8x512xf32> to vector<8x512xf32>
    %147 = vector.shape_cast %143 : vector<8x512xf32> to vector<1x8x512xf32>
    tpu.vector_store %arg15[%144, %c0_92, %c0_93], %147 {strides = array<i32>} : memref<8x8x1024xf32, #tpu.memory_space<vmem>>, vector<1x8x512xf32>,
    %148 = arith.index_cast %c6_i32 : i32 to index
    %c0_94 = arith.constant 0 : index
    %c0_95 = arith.constant 0 : index
    %149 = vector.load %arg3[%148, %c0_94, %c0_95] : memref<8x8x32xbf16, #tpu.memory_space<vmem>>, vector<1x8x32xbf16>
    %150 = vector.shape_cast %149 : vector<1x8x32xbf16> to vector<8x32xbf16>
    %c0_96 = arith.constant 0 : index
    %c0_97 = arith.constant 0 : index
    %151 = vector.load %arg7[%c0_96, %c0_97] : memref<32x512xbf16, #tpu.memory_space<vmem>>, vector<32x512xbf16>
    %cst_98 = arith.constant dense<0.000000e+00> : vector<8x512xf32>
    %152 = tpu.matmul %150, %151, %cst_98 {dimension_numbers = #tpu.dot_dimension_numbers<[1], [0], [0], [1], [0, 0, 1, 1], [], []>} : vector<8x32xbf16>, vector<32x512xbf16>, vector<8x512xf32> -> vector<8x512xf32>
    %153 = vector.broadcast %4 : vector<1x512xf32> to vector<8x512xf32>
    %154 = arith.addf %152, %153 : vector<8x512xf32>
    %155 = arith.index_cast %c6_i32 : i32 to index
    %c0_99 = arith.constant 0 : index
    %c512_100 = arith.constant 512 : index
    %156 = vector.load %arg15[%155, %c0_99, %c512_100] : memref<8x8x1024xf32, #tpu.memory_space<vmem>>, vector<1x8x512xf32>
    %157 = vector.shape_cast %156 : vector<1x8x512xf32> to vector<8x512xf32>
    %158 = vector.shape_cast %154 : vector<8x512xf32> to vector<1x8x512xf32>
    tpu.vector_store %arg15[%155, %c0_99, %c512_100], %158 {strides = array<i32>} : memref<8x8x1024xf32, #tpu.memory_space<vmem>>, vector<1x8x512xf32>,
    %c7_i32 = arith.constant 7 : i32
    %159 = arith.index_cast %c7_i32 : i32 to index
    %c0_101 = arith.constant 0 : index
    %c0_102 = arith.constant 0 : index
    %160 = vector.load %arg2[%159, %c0_101, %c0_102] : memref<8x8x32xbf16, #tpu.memory_space<vmem>>, vector<1x8x32xbf16>
    %161 = vector.shape_cast %160 : vector<1x8x32xbf16> to vector<8x32xbf16>
    %c0_103 = arith.constant 0 : index
    %c0_104 = arith.constant 0 : index
    %162 = vector.load %arg6[%c0_103, %c0_104] : memref<32x512xbf16, #tpu.memory_space<vmem>>, vector<32x512xbf16>
    %cst_105 = arith.constant dense<0.000000e+00> : vector<8x512xf32>
    %163 = tpu.matmul %161, %162, %cst_105 {dimension_numbers = #tpu.dot_dimension_numbers<[1], [0], [0], [1], [0, 0, 1, 1], [], []>} : vector<8x32xbf16>, vector<32x512xbf16>, vector<8x512xf32> -> vector<8x512xf32>
    %164 = vector.broadcast %3 : vector<1x512xf32> to vector<8x512xf32>
    %165 = arith.addf %163, %164 : vector<8x512xf32>
    %166 = arith.index_cast %c7_i32 : i32 to index
    %c0_106 = arith.constant 0 : index
    %c0_107 = arith.constant 0 : index
    %167 = vector.load %arg15[%166, %c0_106, %c0_107] : memref<8x8x1024xf32, #tpu.memory_space<vmem>>, vector<1x8x512xf32>
    %168 = vector.shape_cast %167 : vector<1x8x512xf32> to vector<8x512xf32>
    %169 = vector.shape_cast %165 : vector<8x512xf32> to vector<1x8x512xf32>
    tpu.vector_store %arg15[%166, %c0_106, %c0_107], %169 {strides = array<i32>} : memref<8x8x1024xf32, #tpu.memory_space<vmem>>, vector<1x8x512xf32>,
    %170 = arith.index_cast %c7_i32 : i32 to index
    %c0_108 = arith.constant 0 : index
    %c0_109 = arith.constant 0 : index
    %171 = vector.load %arg3[%170, %c0_108, %c0_109] : memref<8x8x32xbf16, #tpu.memory_space<vmem>>, vector<1x8x32xbf16>
    %172 = vector.shape_cast %171 : vector<1x8x32xbf16> to vector<8x32xbf16>
    %c0_110 = arith.constant 0 : index
    %c0_111 = arith.constant 0 : index
    %173 = vector.load %arg7[%c0_110, %c0_111] : memref<32x512xbf16, #tpu.memory_space<vmem>>, vector<32x512xbf16>
    %cst_112 = arith.constant dense<0.000000e+00> : vector<8x512xf32>
    %174 = tpu.matmul %172, %173, %cst_112 {dimension_numbers = #tpu.dot_dimension_numbers<[1], [0], [0], [1], [0, 0, 1, 1], [], []>} : vector<8x32xbf16>, vector<32x512xbf16>, vector<8x512xf32> -> vector<8x512xf32>
    %175 = vector.broadcast %4 : vector<1x512xf32> to vector<8x512xf32>
    %176 = arith.addf %174, %175 : vector<8x512xf32>
    %177 = arith.index_cast %c7_i32 : i32 to index
    %c0_113 = arith.constant 0 : index
    %c512_114 = arith.constant 512 : index
    %178 = vector.load %arg15[%177, %c0_113, %c512_114] : memref<8x8x1024xf32, #tpu.memory_space<vmem>>, vector<1x8x512xf32>
    %179 = vector.shape_cast %178 : vector<1x8x512xf32> to vector<8x512xf32>
    %180 = vector.shape_cast %176 : vector<8x512xf32> to vector<1x8x512xf32>
    tpu.vector_store %arg15[%177, %c0_113, %c512_114], %180 {strides = array<i32>} : memref<8x8x1024xf32, #tpu.memory_space<vmem>>, vector<1x8x512xf32>,
    %c8_i32 = arith.constant 8 : i32
    %c0_i32_115 = arith.constant 0 : i32
    %c7_i32_116 = arith.constant 7 : i32
    %181 = arith.subi %c7_i32_116, %c0_i32_115 : i32
    %c0_117 = arith.constant 0 : index
    %c0_118 = arith.constant 0 : index
    %182 = vector.load %arg16[%c0_117, %c0_118] : memref<8x256xf32, #tpu.memory_space<vmem>>, vector<8x256xf32>
    %183 = arith.truncf %182 : vector<8x256xf32> to vector<8x256xbf16>
    %c0_119 = arith.constant 0 : index
    %c0_120 = arith.constant 0 : index
    %184 = vector.load %arg9[%c0_119, %c0_120] : memref<256x1024xbf16, #tpu.memory_space<vmem>>, vector<256x1024xbf16>
    %cst_121 = arith.constant dense<0.000000e+00> : vector<8x1024xf32>
    %185 = tpu.matmul %183, %184, %cst_121 {dimension_numbers = #tpu.dot_dimension_numbers<[1], [0], [0], [1], [0, 0, 1, 1], [], []>} : vector<8x256xbf16>, vector<256x1024xbf16>, vector<8x1024xf32> -> vector<8x1024xf32>
    %186 = arith.index_cast %c0_i32_115 : i32 to index
    %c0_122 = arith.constant 0 : index
    %c0_123 = arith.constant 0 : index
    %187 = vector.load %arg15[%186, %c0_122, %c0_123] : memref<8x8x1024xf32, #tpu.memory_space<vmem>>, vector<1x8x512xf32>
    %188 = vector.shape_cast %187 : vector<1x8x512xf32> to vector<8x512xf32>
    %189 = vector.extract_strided_slice %185 {offsets = [0, 0], sizes = [8, 512], strides = [1, 1]} : vector<8x1024xf32> to vector<8x512xf32>
    %190 = arith.addf %188, %189 : vector<8x512xf32>
    %191 = arith.index_cast %181 : i32 to index
    %c0_124 = arith.constant 0 : index
    %c512_125 = arith.constant 512 : index
    %192 = vector.load %arg15[%191, %c0_124, %c512_125] : memref<8x8x1024xf32, #tpu.memory_space<vmem>>, vector<1x8x512xf32>
    %193 = vector.shape_cast %192 : vector<1x8x512xf32> to vector<8x512xf32>
    %194 = vector.extract_strided_slice %185 {offsets = [0, 512], sizes = [8, 512], strides = [1, 1]} : vector<8x1024xf32> to vector<8x512xf32>
    %195 = arith.addf %193, %194 : vector<8x512xf32>
    %c0_126 = arith.constant 0 : index
    %c0_127 = arith.constant 0 : index
    %196 = vector.load %arg17[%c0_126, %c0_127] : memref<8x256xf32, #tpu.memory_space<vmem>>, vector<8x128xf32>
    %197 = vector.extract_strided_slice %190 {offsets = [0, 0], sizes = [8, 128], strides = [1, 1]} : vector<8x512xf32> to vector<8x128xf32>
    %198 = arith.negf %197 : vector<8x128xf32>
    %199 = math.exp %198 : vector<8x128xf32>
    %cst_128 = arith.constant 1.000000e+00 : f32
    %200 = vector.broadcast %cst_128 : f32 to vector<8x128xf32>
    %201 = arith.addf %200, %199 : vector<8x128xf32>
    %202 = arith.divf %200, %201 : vector<8x128xf32>
    %203 = vector.extract_strided_slice %190 {offsets = [0, 128], sizes = [8, 128], strides = [1, 1]} : vector<8x512xf32> to vector<8x128xf32>
    %204 = arith.negf %203 : vector<8x128xf32>
    %205 = math.exp %204 : vector<8x128xf32>
    %cst_129 = arith.constant 1.000000e+00 : f32
    %206 = vector.broadcast %cst_129 : f32 to vector<8x128xf32>
    %207 = arith.addf %206, %205 : vector<8x128xf32>
    %208 = arith.divf %206, %207 : vector<8x128xf32>
    %209 = vector.extract_strided_slice %190 {offsets = [0, 256], sizes = [8, 128], strides = [1, 1]} : vector<8x512xf32> to vector<8x128xf32>
    %210 = math.tanh %209 : vector<8x128xf32>
    %211 = vector.extract_strided_slice %190 {offsets = [0, 384], sizes = [8, 128], strides = [1, 1]} : vector<8x512xf32> to vector<8x128xf32>
    %212 = arith.negf %211 : vector<8x128xf32>
    %213 = math.exp %212 : vector<8x128xf32>
    %cst_130 = arith.constant 1.000000e+00 : f32
    %214 = vector.broadcast %cst_130 : f32 to vector<8x128xf32>
    %215 = arith.addf %214, %213 : vector<8x128xf32>
    %216 = arith.divf %214, %215 : vector<8x128xf32>
    %217 = arith.mulf %208, %196 : vector<8x128xf32>
    %218 = arith.mulf %202, %210 : vector<8x128xf32>
    %219 = arith.addf %217, %218 : vector<8x128xf32>
    %220 = math.tanh %219 : vector<8x128xf32>
    %221 = arith.mulf %216, %220 : vector<8x128xf32>
    %c0_131 = arith.constant 0 : index
    %c128 = arith.constant 128 : index
    %222 = vector.load %arg17[%c0_131, %c128] : memref<8x256xf32, #tpu.memory_space<vmem>>, vector<8x128xf32>
    %223 = vector.extract_strided_slice %195 {offsets = [0, 0], sizes = [8, 128], strides = [1, 1]} : vector<8x512xf32> to vector<8x128xf32>
    %224 = arith.negf %223 : vector<8x128xf32>
    %225 = math.exp %224 : vector<8x128xf32>
    %cst_132 = arith.constant 1.000000e+00 : f32
    %226 = vector.broadcast %cst_132 : f32 to vector<8x128xf32>
    %227 = arith.addf %226, %225 : vector<8x128xf32>
    %228 = arith.divf %226, %227 : vector<8x128xf32>
    %229 = vector.extract_strided_slice %195 {offsets = [0, 128], sizes = [8, 128], strides = [1, 1]} : vector<8x512xf32> to vector<8x128xf32>
    %230 = arith.negf %229 : vector<8x128xf32>
    %231 = math.exp %230 : vector<8x128xf32>
    %cst_133 = arith.constant 1.000000e+00 : f32
    %232 = vector.broadcast %cst_133 : f32 to vector<8x128xf32>
    %233 = arith.addf %232, %231 : vector<8x128xf32>
    %234 = arith.divf %232, %233 : vector<8x128xf32>
    %235 = vector.extract_strided_slice %195 {offsets = [0, 256], sizes = [8, 128], strides = [1, 1]} : vector<8x512xf32> to vector<8x128xf32>
    %236 = math.tanh %235 : vector<8x128xf32>
    %237 = vector.extract_strided_slice %195 {offsets = [0, 384], sizes = [8, 128], strides = [1, 1]} : vector<8x512xf32> to vector<8x128xf32>
    %238 = arith.negf %237 : vector<8x128xf32>
    %239 = math.exp %238 : vector<8x128xf32>
    %cst_134 = arith.constant 1.000000e+00 : f32
    %240 = vector.broadcast %cst_134 : f32 to vector<8x128xf32>
    %241 = arith.addf %240, %239 : vector<8x128xf32>
    %242 = arith.divf %240, %241 : vector<8x128xf32>
    %243 = arith.mulf %234, %222 : vector<8x128xf32>
    %244 = arith.mulf %228, %236 : vector<8x128xf32>
    %245 = arith.addf %243, %244 : vector<8x128xf32>
    %246 = math.tanh %245 : vector<8x128xf32>
    %247 = arith.mulf %242, %246 : vector<8x128xf32>
    %248 = arith.index_cast %c0_i32_115 : i32 to index
    %c0_135 = arith.constant 0 : index
    %c0_136 = arith.constant 0 : index
    %249 = vector.load %arg4[%248, %c0_135, %c0_136] : memref<8x8x1xf32, #tpu.memory_space<vmem>>, vector<1x8x1xf32>
    %250 = vector.shape_cast %249 : vector<1x8x1xf32> to vector<8x1xf32>
    %251 = vector.shape_cast %250 : vector<8x1xf32> to vector<8x1xf32>
    %252 = vector.broadcast %251 : vector<8x1xf32> to vector<8x128xf32>
    %cst_137 = arith.constant 0.000000e+00 : f32
    %253 = vector.broadcast %cst_137 : f32 to vector<8x128xf32>
    %254 = arith.cmpf ogt, %252, %253 : vector<8x128xf32>
    %255 = arith.index_cast %181 : i32 to index
    %c0_138 = arith.constant 0 : index
    %c0_139 = arith.constant 0 : index
    %256 = vector.load %arg5[%255, %c0_138, %c0_139] : memref<8x8x1xf32, #tpu.memory_space<vmem>>, vector<1x8x1xf32>
    %257 = vector.shape_cast %256 : vector<1x8x1xf32> to vector<8x1xf32>
    %258 = vector.shape_cast %257 : vector<8x1xf32> to vector<8x1xf32>
    %259 = vector.broadcast %258 : vector<8x1xf32> to vector<8x128xf32>
    %cst_140 = arith.constant 0.000000e+00 : f32
    %260 = vector.broadcast %cst_140 : f32 to vector<8x128xf32>
    %261 = arith.cmpf ogt, %259, %260 : vector<8x128xf32>
    %c0_141 = arith.constant 0 : index
    %c0_142 = arith.constant 0 : index
    %262 = vector.load %arg16[%c0_141, %c0_142] : memref<8x256xf32, #tpu.memory_space<vmem>>, vector<8x128xf32>
    %263 = arith.select %254, %221, %262 : vector<8x128xi1>, vector<8x128xf32>
    %c0_143 = arith.constant 0 : index
    %c0_144 = arith.constant 0 : index
    %264 = vector.load %arg16[%c0_143, %c0_144] : memref<8x256xf32, #tpu.memory_space<vmem>>, vector<8x128xf32>
    tpu.vector_store %arg16[%c0_143, %c0_144], %263 {strides = array<i32>} : memref<8x256xf32, #tpu.memory_space<vmem>>, vector<8x128xf32>,
    %c0_145 = arith.constant 0 : index
    %c0_146 = arith.constant 0 : index
    %265 = vector.load %arg17[%c0_145, %c0_146] : memref<8x256xf32, #tpu.memory_space<vmem>>, vector<8x128xf32>
    %266 = arith.select %254, %219, %265 : vector<8x128xi1>, vector<8x128xf32>
    %c0_147 = arith.constant 0 : index
    %c0_148 = arith.constant 0 : index
    %267 = vector.load %arg17[%c0_147, %c0_148] : memref<8x256xf32, #tpu.memory_space<vmem>>, vector<8x128xf32>
    tpu.vector_store %arg17[%c0_147, %c0_148], %266 {strides = array<i32>} : memref<8x256xf32, #tpu.memory_space<vmem>>, vector<8x128xf32>,
    %c0_149 = arith.constant 0 : index
    %c128_150 = arith.constant 128 : index
    %268 = vector.load %arg16[%c0_149, %c128_150] : memref<8x256xf32, #tpu.memory_space<vmem>>, vector<8x128xf32>
    %269 = arith.select %261, %247, %268 : vector<8x128xi1>, vector<8x128xf32>
    %c0_151 = arith.constant 0 : index
    %c128_152 = arith.constant 128 : index
    %270 = vector.load %arg16[%c0_151, %c128_152] : memref<8x256xf32, #tpu.memory_space<vmem>>, vector<8x128xf32>
    tpu.vector_store %arg16[%c0_151, %c128_152], %269 {strides = array<i32>} : memref<8x256xf32, #tpu.memory_space<vmem>>, vector<8x128xf32>,
    %c0_153 = arith.constant 0 : index
    %c128_154 = arith.constant 128 : index
    %271 = vector.load %arg17[%c0_153, %c128_154] : memref<8x256xf32, #tpu.memory_space<vmem>>, vector<8x128xf32>
    %272 = arith.select %261, %245, %271 : vector<8x128xi1>, vector<8x128xf32>
    %c0_155 = arith.constant 0 : index
    %c128_156 = arith.constant 128 : index
    %273 = vector.load %arg17[%c0_155, %c128_156] : memref<8x256xf32, #tpu.memory_space<vmem>>, vector<8x128xf32>
    tpu.vector_store %arg17[%c0_155, %c128_156], %272 {strides = array<i32>} : memref<8x256xf32, #tpu.memory_space<vmem>>, vector<8x128xf32>,
    %c1_i32_157 = arith.constant 1 : i32
    %c7_i32_158 = arith.constant 7 : i32
    %274 = arith.subi %c7_i32_158, %c1_i32_157 : i32
    %c0_159 = arith.constant 0 : index
    %c0_160 = arith.constant 0 : index
    %275 = vector.load %arg16[%c0_159, %c0_160] : memref<8x256xf32, #tpu.memory_space<vmem>>, vector<8x256xf32>
    %276 = arith.truncf %275 : vector<8x256xf32> to vector<8x256xbf16>
    %c0_161 = arith.constant 0 : index
    %c0_162 = arith.constant 0 : index
    %277 = vector.load %arg9[%c0_161, %c0_162] : memref<256x1024xbf16, #tpu.memory_space<vmem>>, vector<256x1024xbf16>
    %cst_163 = arith.constant dense<0.000000e+00> : vector<8x1024xf32>
    %278 = tpu.matmul %276, %277, %cst_163 {dimension_numbers = #tpu.dot_dimension_numbers<[1], [0], [0], [1], [0, 0, 1, 1], [], []>} : vector<8x256xbf16>, vector<256x1024xbf16>, vector<8x1024xf32> -> vector<8x1024xf32>
    %279 = arith.index_cast %c1_i32_157 : i32 to index
    %c0_164 = arith.constant 0 : index
    %c0_165 = arith.constant 0 : index
    %280 = vector.load %arg15[%279, %c0_164, %c0_165] : memref<8x8x1024xf32, #tpu.memory_space<vmem>>, vector<1x8x512xf32>
    %281 = vector.shape_cast %280 : vector<1x8x512xf32> to vector<8x512xf32>
    %282 = vector.extract_strided_slice %278 {offsets = [0, 0], sizes = [8, 512], strides = [1, 1]} : vector<8x1024xf32> to vector<8x512xf32>
    %283 = arith.addf %281, %282 : vector<8x512xf32>
    %284 = arith.index_cast %274 : i32 to index
    %c0_166 = arith.constant 0 : index
    %c512_167 = arith.constant 512 : index
    %285 = vector.load %arg15[%284, %c0_166, %c512_167] : memref<8x8x1024xf32, #tpu.memory_space<vmem>>, vector<1x8x512xf32>
    %286 = vector.shape_cast %285 : vector<1x8x512xf32> to vector<8x512xf32>
    %287 = vector.extract_strided_slice %278 {offsets = [0, 512], sizes = [8, 512], strides = [1, 1]} : vector<8x1024xf32> to vector<8x512xf32>
    %288 = arith.addf %286, %287 : vector<8x512xf32>
    %c0_168 = arith.constant 0 : index
    %c0_169 = arith.constant 0 : index
    %289 = vector.load %arg17[%c0_168, %c0_169] : memref<8x256xf32, #tpu.memory_space<vmem>>, vector<8x128xf32>
    %290 = vector.extract_strided_slice %283 {offsets = [0, 0], sizes = [8, 128], strides = [1, 1]} : vector<8x512xf32> to vector<8x128xf32>
    %291 = arith.negf %290 : vector<8x128xf32>
    %292 = math.exp %291 : vector<8x128xf32>
    %cst_170 = arith.constant 1.000000e+00 : f32
    %293 = vector.broadcast %cst_170 : f32 to vector<8x128xf32>
    %294 = arith.addf %293, %292 : vector<8x128xf32>
    %295 = arith.divf %293, %294 : vector<8x128xf32>
    %296 = vector.extract_strided_slice %283 {offsets = [0, 128], sizes = [8, 128], strides = [1, 1]} : vector<8x512xf32> to vector<8x128xf32>
    %297 = arith.negf %296 : vector<8x128xf32>
    %298 = math.exp %297 : vector<8x128xf32>
    %cst_171 = arith.constant 1.000000e+00 : f32
    %299 = vector.broadcast %cst_171 : f32 to vector<8x128xf32>
    %300 = arith.addf %299, %298 : vector<8x128xf32>
    %301 = arith.divf %299, %300 : vector<8x128xf32>
    %302 = vector.extract_strided_slice %283 {offsets = [0, 256], sizes = [8, 128], strides = [1, 1]} : vector<8x512xf32> to vector<8x128xf32>
    %303 = math.tanh %302 : vector<8x128xf32>
    %304 = vector.extract_strided_slice %283 {offsets = [0, 384], sizes = [8, 128], strides = [1, 1]} : vector<8x512xf32> to vector<8x128xf32>
    %305 = arith.negf %304 : vector<8x128xf32>
    %306 = math.exp %305 : vector<8x128xf32>
    %cst_172 = arith.constant 1.000000e+00 : f32
    %307 = vector.broadcast %cst_172 : f32 to vector<8x128xf32>
    %308 = arith.addf %307, %306 : vector<8x128xf32>
    %309 = arith.divf %307, %308 : vector<8x128xf32>
    %310 = arith.mulf %301, %289 : vector<8x128xf32>
    %311 = arith.mulf %295, %303 : vector<8x128xf32>
    %312 = arith.addf %310, %311 : vector<8x128xf32>
    %313 = math.tanh %312 : vector<8x128xf32>
    %314 = arith.mulf %309, %313 : vector<8x128xf32>
    %c0_173 = arith.constant 0 : index
    %c128_174 = arith.constant 128 : index
    %315 = vector.load %arg17[%c0_173, %c128_174] : memref<8x256xf32, #tpu.memory_space<vmem>>, vector<8x128xf32>
    %316 = vector.extract_strided_slice %288 {offsets = [0, 0], sizes = [8, 128], strides = [1, 1]} : vector<8x512xf32> to vector<8x128xf32>
    %317 = arith.negf %316 : vector<8x128xf32>
    %318 = math.exp %317 : vector<8x128xf32>
    %cst_175 = arith.constant 1.000000e+00 : f32
    %319 = vector.broadcast %cst_175 : f32 to vector<8x128xf32>
    %320 = arith.addf %319, %318 : vector<8x128xf32>
    %321 = arith.divf %319, %320 : vector<8x128xf32>
    %322 = vector.extract_strided_slice %288 {offsets = [0, 128], sizes = [8, 128], strides = [1, 1]} : vector<8x512xf32> to vector<8x128xf32>
    %323 = arith.negf %322 : vector<8x128xf32>
    %324 = math.exp %323 : vector<8x128xf32>
    %cst_176 = arith.constant 1.000000e+00 : f32
    %325 = vector.broadcast %cst_176 : f32 to vector<8x128xf32>
    %326 = arith.addf %325, %324 : vector<8x128xf32>
    %327 = arith.divf %325, %326 : vector<8x128xf32>
    %328 = vector.extract_strided_slice %288 {offsets = [0, 256], sizes = [8, 128], strides = [1, 1]} : vector<8x512xf32> to vector<8x128xf32>
    %329 = math.tanh %328 : vector<8x128xf32>
    %330 = vector.extract_strided_slice %288 {offsets = [0, 384], sizes = [8, 128], strides = [1, 1]} : vector<8x512xf32> to vector<8x128xf32>
    %331 = arith.negf %330 : vector<8x128xf32>
    %332 = math.exp %331 : vector<8x128xf32>
    %cst_177 = arith.constant 1.000000e+00 : f32
    %333 = vector.broadcast %cst_177 : f32 to vector<8x128xf32>
    %334 = arith.addf %333, %332 : vector<8x128xf32>
    %335 = arith.divf %333, %334 : vector<8x128xf32>
    %336 = arith.mulf %327, %315 : vector<8x128xf32>
    %337 = arith.mulf %321, %329 : vector<8x128xf32>
    %338 = arith.addf %336, %337 : vector<8x128xf32>
    %339 = math.tanh %338 : vector<8x128xf32>
    %340 = arith.mulf %335, %339 : vector<8x128xf32>
    %341 = arith.index_cast %c1_i32_157 : i32 to index
    %c0_178 = arith.constant 0 : index
    %c0_179 = arith.constant 0 : index
    %342 = vector.load %arg4[%341, %c0_178, %c0_179] : memref<8x8x1xf32, #tpu.memory_space<vmem>>, vector<1x8x1xf32>
    %343 = vector.shape_cast %342 : vector<1x8x1xf32> to vector<8x1xf32>
    %344 = vector.shape_cast %343 : vector<8x1xf32> to vector<8x1xf32>
    %345 = vector.broadcast %344 : vector<8x1xf32> to vector<8x128xf32>
    %cst_180 = arith.constant 0.000000e+00 : f32
    %346 = vector.broadcast %cst_180 : f32 to vector<8x128xf32>
    %347 = arith.cmpf ogt, %345, %346 : vector<8x128xf32>
    %348 = arith.index_cast %274 : i32 to index
    %c0_181 = arith.constant 0 : index
    %c0_182 = arith.constant 0 : index
    %349 = vector.load %arg5[%348, %c0_181, %c0_182] : memref<8x8x1xf32, #tpu.memory_space<vmem>>, vector<1x8x1xf32>
    %350 = vector.shape_cast %349 : vector<1x8x1xf32> to vector<8x1xf32>
    %351 = vector.shape_cast %350 : vector<8x1xf32> to vector<8x1xf32>
    %352 = vector.broadcast %351 : vector<8x1xf32> to vector<8x128xf32>
    %cst_183 = arith.constant 0.000000e+00 : f32
    %353 = vector.broadcast %cst_183 : f32 to vector<8x128xf32>
    %354 = arith.cmpf ogt, %352, %353 : vector<8x128xf32>
    %c0_184 = arith.constant 0 : index
    %c0_185 = arith.constant 0 : index
    %355 = vector.load %arg16[%c0_184, %c0_185] : memref<8x256xf32, #tpu.memory_space<vmem>>, vector<8x128xf32>
    %356 = arith.select %347, %314, %355 : vector<8x128xi1>, vector<8x128xf32>
    %c0_186 = arith.constant 0 : index
    %c0_187 = arith.constant 0 : index
    %357 = vector.load %arg16[%c0_186, %c0_187] : memref<8x256xf32, #tpu.memory_space<vmem>>, vector<8x128xf32>
    tpu.vector_store %arg16[%c0_186, %c0_187], %356 {strides = array<i32>} : memref<8x256xf32, #tpu.memory_space<vmem>>, vector<8x128xf32>,
    %c0_188 = arith.constant 0 : index
    %c0_189 = arith.constant 0 : index
    %358 = vector.load %arg17[%c0_188, %c0_189] : memref<8x256xf32, #tpu.memory_space<vmem>>, vector<8x128xf32>
    %359 = arith.select %347, %312, %358 : vector<8x128xi1>, vector<8x128xf32>
    %c0_190 = arith.constant 0 : index
    %c0_191 = arith.constant 0 : index
    %360 = vector.load %arg17[%c0_190, %c0_191] : memref<8x256xf32, #tpu.memory_space<vmem>>, vector<8x128xf32>
    tpu.vector_store %arg17[%c0_190, %c0_191], %359 {strides = array<i32>} : memref<8x256xf32, #tpu.memory_space<vmem>>, vector<8x128xf32>,
    %c0_192 = arith.constant 0 : index
    %c128_193 = arith.constant 128 : index
    %361 = vector.load %arg16[%c0_192, %c128_193] : memref<8x256xf32, #tpu.memory_space<vmem>>, vector<8x128xf32>
    %362 = arith.select %354, %340, %361 : vector<8x128xi1>, vector<8x128xf32>
    %c0_194 = arith.constant 0 : index
    %c128_195 = arith.constant 128 : index
    %363 = vector.load %arg16[%c0_194, %c128_195] : memref<8x256xf32, #tpu.memory_space<vmem>>, vector<8x128xf32>
    tpu.vector_store %arg16[%c0_194, %c128_195], %362 {strides = array<i32>} : memref<8x256xf32, #tpu.memory_space<vmem>>, vector<8x128xf32>,
    %c0_196 = arith.constant 0 : index
    %c128_197 = arith.constant 128 : index
    %364 = vector.load %arg17[%c0_196, %c128_197] : memref<8x256xf32, #tpu.memory_space<vmem>>, vector<8x128xf32>
    %365 = arith.select %354, %338, %364 : vector<8x128xi1>, vector<8x128xf32>
    %c0_198 = arith.constant 0 : index
    %c128_199 = arith.constant 128 : index
    %366 = vector.load %arg17[%c0_198, %c128_199] : memref<8x256xf32, #tpu.memory_space<vmem>>, vector<8x128xf32>
    tpu.vector_store %arg17[%c0_198, %c128_199], %365 {strides = array<i32>} : memref<8x256xf32, #tpu.memory_space<vmem>>, vector<8x128xf32>,
    %c2_i32_200 = arith.constant 2 : i32
    %c7_i32_201 = arith.constant 7 : i32
    %367 = arith.subi %c7_i32_201, %c2_i32_200 : i32
    %c0_202 = arith.constant 0 : index
    %c0_203 = arith.constant 0 : index
    %368 = vector.load %arg16[%c0_202, %c0_203] : memref<8x256xf32, #tpu.memory_space<vmem>>, vector<8x256xf32>
    %369 = arith.truncf %368 : vector<8x256xf32> to vector<8x256xbf16>
    %c0_204 = arith.constant 0 : index
    %c0_205 = arith.constant 0 : index
    %370 = vector.load %arg9[%c0_204, %c0_205] : memref<256x1024xbf16, #tpu.memory_space<vmem>>, vector<256x1024xbf16>
    %cst_206 = arith.constant dense<0.000000e+00> : vector<8x1024xf32>
    %371 = tpu.matmul %369, %370, %cst_206 {dimension_numbers = #tpu.dot_dimension_numbers<[1], [0], [0], [1], [0, 0, 1, 1], [], []>} : vector<8x256xbf16>, vector<256x1024xbf16>, vector<8x1024xf32> -> vector<8x1024xf32>
    %372 = arith.index_cast %c2_i32_200 : i32 to index
    %c0_207 = arith.constant 0 : index
    %c0_208 = arith.constant 0 : index
    %373 = vector.load %arg15[%372, %c0_207, %c0_208] : memref<8x8x1024xf32, #tpu.memory_space<vmem>>, vector<1x8x512xf32>
    %374 = vector.shape_cast %373 : vector<1x8x512xf32> to vector<8x512xf32>
    %375 = vector.extract_strided_slice %371 {offsets = [0, 0], sizes = [8, 512], strides = [1, 1]} : vector<8x1024xf32> to vector<8x512xf32>
    %376 = arith.addf %374, %375 : vector<8x512xf32>
    %377 = arith.index_cast %367 : i32 to index
    %c0_209 = arith.constant 0 : index
    %c512_210 = arith.constant 512 : index
    %378 = vector.load %arg15[%377, %c0_209, %c512_210] : memref<8x8x1024xf32, #tpu.memory_space<vmem>>, vector<1x8x512xf32>
    %379 = vector.shape_cast %378 : vector<1x8x512xf32> to vector<8x512xf32>
    %380 = vector.extract_strided_slice %371 {offsets = [0, 512], sizes = [8, 512], strides = [1, 1]} : vector<8x1024xf32> to vector<8x512xf32>
    %381 = arith.addf %379, %380 : vector<8x512xf32>
    %c0_211 = arith.constant 0 : index
    %c0_212 = arith.constant 0 : index
    %382 = vector.load %arg17[%c0_211, %c0_212] : memref<8x256xf32, #tpu.memory_space<vmem>>, vector<8x128xf32>
    %383 = vector.extract_strided_slice %376 {offsets = [0, 0], sizes = [8, 128], strides = [1, 1]} : vector<8x512xf32> to vector<8x128xf32>
    %384 = arith.negf %383 : vector<8x128xf32>
    %385 = math.exp %384 : vector<8x128xf32>
    %cst_213 = arith.constant 1.000000e+00 : f32
    %386 = vector.broadcast %cst_213 : f32 to vector<8x128xf32>
    %387 = arith.addf %386, %385 : vector<8x128xf32>
    %388 = arith.divf %386, %387 : vector<8x128xf32>
    %389 = vector.extract_strided_slice %376 {offsets = [0, 128], sizes = [8, 128], strides = [1, 1]} : vector<8x512xf32> to vector<8x128xf32>
    %390 = arith.negf %389 : vector<8x128xf32>
    %391 = math.exp %390 : vector<8x128xf32>
    %cst_214 = arith.constant 1.000000e+00 : f32
    %392 = vector.broadcast %cst_214 : f32 to vector<8x128xf32>
    %393 = arith.addf %392, %391 : vector<8x128xf32>
    %394 = arith.divf %392, %393 : vector<8x128xf32>
    %395 = vector.extract_strided_slice %376 {offsets = [0, 256], sizes = [8, 128], strides = [1, 1]} : vector<8x512xf32> to vector<8x128xf32>
    %396 = math.tanh %395 : vector<8x128xf32>
    %397 = vector.extract_strided_slice %376 {offsets = [0, 384], sizes = [8, 128], strides = [1, 1]} : vector<8x512xf32> to vector<8x128xf32>
    %398 = arith.negf %397 : vector<8x128xf32>
    %399 = math.exp %398 : vector<8x128xf32>
    %cst_215 = arith.constant 1.000000e+00 : f32
    %400 = vector.broadcast %cst_215 : f32 to vector<8x128xf32>
    %401 = arith.addf %400, %399 : vector<8x128xf32>
    %402 = arith.divf %400, %401 : vector<8x128xf32>
    %403 = arith.mulf %394, %382 : vector<8x128xf32>
    %404 = arith.mulf %388, %396 : vector<8x128xf32>
    %405 = arith.addf %403, %404 : vector<8x128xf32>
    %406 = math.tanh %405 : vector<8x128xf32>
    %407 = arith.mulf %402, %406 : vector<8x128xf32>
    %c0_216 = arith.constant 0 : index
    %c128_217 = arith.constant 128 : index
    %408 = vector.load %arg17[%c0_216, %c128_217] : memref<8x256xf32, #tpu.memory_space<vmem>>, vector<8x128xf32>
    %409 = vector.extract_strided_slice %381 {offsets = [0, 0], sizes = [8, 128], strides = [1, 1]} : vector<8x512xf32> to vector<8x128xf32>
    %410 = arith.negf %409 : vector<8x128xf32>
    %411 = math.exp %410 : vector<8x128xf32>
    %cst_218 = arith.constant 1.000000e+00 : f32
    %412 = vector.broadcast %cst_218 : f32 to vector<8x128xf32>
    %413 = arith.addf %412, %411 : vector<8x128xf32>
    %414 = arith.divf %412, %413 : vector<8x128xf32>
    %415 = vector.extract_strided_slice %381 {offsets = [0, 128], sizes = [8, 128], strides = [1, 1]} : vector<8x512xf32> to vector<8x128xf32>
    %416 = arith.negf %415 : vector<8x128xf32>
    %417 = math.exp %416 : vector<8x128xf32>
    %cst_219 = arith.constant 1.000000e+00 : f32
    %418 = vector.broadcast %cst_219 : f32 to vector<8x128xf32>
    %419 = arith.addf %418, %417 : vector<8x128xf32>
    %420 = arith.divf %418, %419 : vector<8x128xf32>
    %421 = vector.extract_strided_slice %381 {offsets = [0, 256], sizes = [8, 128], strides = [1, 1]} : vector<8x512xf32> to vector<8x128xf32>
    %422 = math.tanh %421 : vector<8x128xf32>
    %423 = vector.extract_strided_slice %381 {offsets = [0, 384], sizes = [8, 128], strides = [1, 1]} : vector<8x512xf32> to vector<8x128xf32>
    %424 = arith.negf %423 : vector<8x128xf32>
    %425 = math.exp %424 : vector<8x128xf32>
    %cst_220 = arith.constant 1.000000e+00 : f32
    %426 = vector.broadcast %cst_220 : f32 to vector<8x128xf32>
    %427 = arith.addf %426, %425 : vector<8x128xf32>
    %428 = arith.divf %426, %427 : vector<8x128xf32>
    %429 = arith.mulf %420, %408 : vector<8x128xf32>
    %430 = arith.mulf %414, %422 : vector<8x128xf32>
    %431 = arith.addf %429, %430 : vector<8x128xf32>
    %432 = math.tanh %431 : vector<8x128xf32>
    %433 = arith.mulf %428, %432 : vector<8x128xf32>
    %434 = arith.index_cast %c2_i32_200 : i32 to index
    %c0_221 = arith.constant 0 : index
    %c0_222 = arith.constant 0 : index
    %435 = vector.load %arg4[%434, %c0_221, %c0_222] : memref<8x8x1xf32, #tpu.memory_space<vmem>>, vector<1x8x1xf32>
    %436 = vector.shape_cast %435 : vector<1x8x1xf32> to vector<8x1xf32>
    %437 = vector.shape_cast %436 : vector<8x1xf32> to vector<8x1xf32>
    %438 = vector.broadcast %437 : vector<8x1xf32> to vector<8x128xf32>
    %cst_223 = arith.constant 0.000000e+00 : f32
    %439 = vector.broadcast %cst_223 : f32 to vector<8x128xf32>
    %440 = arith.cmpf ogt, %438, %439 : vector<8x128xf32>
    %441 = arith.index_cast %367 : i32 to index
    %c0_224 = arith.constant 0 : index
    %c0_225 = arith.constant 0 : index
    %442 = vector.load %arg5[%441, %c0_224, %c0_225] : memref<8x8x1xf32, #tpu.memory_space<vmem>>, vector<1x8x1xf32>
    %443 = vector.shape_cast %442 : vector<1x8x1xf32> to vector<8x1xf32>
    %444 = vector.shape_cast %443 : vector<8x1xf32> to vector<8x1xf32>
    %445 = vector.broadcast %444 : vector<8x1xf32> to vector<8x128xf32>
    %cst_226 = arith.constant 0.000000e+00 : f32
    %446 = vector.broadcast %cst_226 : f32 to vector<8x128xf32>
    %447 = arith.cmpf ogt, %445, %446 : vector<8x128xf32>
    %c0_227 = arith.constant 0 : index
    %c0_228 = arith.constant 0 : index
    %448 = vector.load %arg16[%c0_227, %c0_228] : memref<8x256xf32, #tpu.memory_space<vmem>>, vector<8x128xf32>
    %449 = arith.select %440, %407, %448 : vector<8x128xi1>, vector<8x128xf32>
    %c0_229 = arith.constant 0 : index
    %c0_230 = arith.constant 0 : index
    %450 = vector.load %arg16[%c0_229, %c0_230] : memref<8x256xf32, #tpu.memory_space<vmem>>, vector<8x128xf32>
    tpu.vector_store %arg16[%c0_229, %c0_230], %449 {strides = array<i32>} : memref<8x256xf32, #tpu.memory_space<vmem>>, vector<8x128xf32>,
    %c0_231 = arith.constant 0 : index
    %c0_232 = arith.constant 0 : index
    %451 = vector.load %arg17[%c0_231, %c0_232] : memref<8x256xf32, #tpu.memory_space<vmem>>, vector<8x128xf32>
    %452 = arith.select %440, %405, %451 : vector<8x128xi1>, vector<8x128xf32>
    %c0_233 = arith.constant 0 : index
    %c0_234 = arith.constant 0 : index
    %453 = vector.load %arg17[%c0_233, %c0_234] : memref<8x256xf32, #tpu.memory_space<vmem>>, vector<8x128xf32>
    tpu.vector_store %arg17[%c0_233, %c0_234], %452 {strides = array<i32>} : memref<8x256xf32, #tpu.memory_space<vmem>>, vector<8x128xf32>,
    %c0_235 = arith.constant 0 : index
    %c128_236 = arith.constant 128 : index
    %454 = vector.load %arg16[%c0_235, %c128_236] : memref<8x256xf32, #tpu.memory_space<vmem>>, vector<8x128xf32>
    %455 = arith.select %447, %433, %454 : vector<8x128xi1>, vector<8x128xf32>
    %c0_237 = arith.constant 0 : index
    %c128_238 = arith.constant 128 : index
    %456 = vector.load %arg16[%c0_237, %c128_238] : memref<8x256xf32, #tpu.memory_space<vmem>>, vector<8x128xf32>
    tpu.vector_store %arg16[%c0_237, %c128_238], %455 {strides = array<i32>} : memref<8x256xf32, #tpu.memory_space<vmem>>, vector<8x128xf32>,
    %c0_239 = arith.constant 0 : index
    %c128_240 = arith.constant 128 : index
    %457 = vector.load %arg17[%c0_239, %c128_240] : memref<8x256xf32, #tpu.memory_space<vmem>>, vector<8x128xf32>
    %458 = arith.select %447, %431, %457 : vector<8x128xi1>, vector<8x128xf32>
    %c0_241 = arith.constant 0 : index
    %c128_242 = arith.constant 128 : index
    %459 = vector.load %arg17[%c0_241, %c128_242] : memref<8x256xf32, #tpu.memory_space<vmem>>, vector<8x128xf32>
    tpu.vector_store %arg17[%c0_241, %c128_242], %458 {strides = array<i32>} : memref<8x256xf32, #tpu.memory_space<vmem>>, vector<8x128xf32>,
    %c3_i32_243 = arith.constant 3 : i32
    %c7_i32_244 = arith.constant 7 : i32
    %460 = arith.subi %c7_i32_244, %c3_i32_243 : i32
    %c0_245 = arith.constant 0 : index
    %c0_246 = arith.constant 0 : index
    %461 = vector.load %arg16[%c0_245, %c0_246] : memref<8x256xf32, #tpu.memory_space<vmem>>, vector<8x256xf32>
    %462 = arith.truncf %461 : vector<8x256xf32> to vector<8x256xbf16>
    %c0_247 = arith.constant 0 : index
    %c0_248 = arith.constant 0 : index
    %463 = vector.load %arg9[%c0_247, %c0_248] : memref<256x1024xbf16, #tpu.memory_space<vmem>>, vector<256x1024xbf16>
    %cst_249 = arith.constant dense<0.000000e+00> : vector<8x1024xf32>
    %464 = tpu.matmul %462, %463, %cst_249 {dimension_numbers = #tpu.dot_dimension_numbers<[1], [0], [0], [1], [0, 0, 1, 1], [], []>} : vector<8x256xbf16>, vector<256x1024xbf16>, vector<8x1024xf32> -> vector<8x1024xf32>
    %465 = arith.index_cast %c3_i32_243 : i32 to index
    %c0_250 = arith.constant 0 : index
    %c0_251 = arith.constant 0 : index
    %466 = vector.load %arg15[%465, %c0_250, %c0_251] : memref<8x8x1024xf32, #tpu.memory_space<vmem>>, vector<1x8x512xf32>
    %467 = vector.shape_cast %466 : vector<1x8x512xf32> to vector<8x512xf32>
    %468 = vector.extract_strided_slice %464 {offsets = [0, 0], sizes = [8, 512], strides = [1, 1]} : vector<8x1024xf32> to vector<8x512xf32>
    %469 = arith.addf %467, %468 : vector<8x512xf32>
    %470 = arith.index_cast %460 : i32 to index
    %c0_252 = arith.constant 0 : index
    %c512_253 = arith.constant 512 : index
    %471 = vector.load %arg15[%470, %c0_252, %c512_253] : memref<8x8x1024xf32, #tpu.memory_space<vmem>>, vector<1x8x512xf32>
    %472 = vector.shape_cast %471 : vector<1x8x512xf32> to vector<8x512xf32>
    %473 = vector.extract_strided_slice %464 {offsets = [0, 512], sizes = [8, 512], strides = [1, 1]} : vector<8x1024xf32> to vector<8x512xf32>
    %474 = arith.addf %472, %473 : vector<8x512xf32>
    %c0_254 = arith.constant 0 : index
    %c0_255 = arith.constant 0 : index
    %475 = vector.load %arg17[%c0_254, %c0_255] : memref<8x256xf32, #tpu.memory_space<vmem>>, vector<8x128xf32>
    %476 = vector.extract_strided_slice %469 {offsets = [0, 0], sizes = [8, 128], strides = [1, 1]} : vector<8x512xf32> to vector<8x128xf32>
    %477 = arith.negf %476 : vector<8x128xf32>
    %478 = math.exp %477 : vector<8x128xf32>
    %cst_256 = arith.constant 1.000000e+00 : f32
    %479 = vector.broadcast %cst_256 : f32 to vector<8x128xf32>
    %480 = arith.addf %479, %478 : vector<8x128xf32>
    %481 = arith.divf %479, %480 : vector<8x128xf32>
    %482 = vector.extract_strided_slice %469 {offsets = [0, 128], sizes = [8, 128], strides = [1, 1]} : vector<8x512xf32> to vector<8x128xf32>
    %483 = arith.negf %482 : vector<8x128xf32>
    %484 = math.exp %483 : vector<8x128xf32>
    %cst_257 = arith.constant 1.000000e+00 : f32
    %485 = vector.broadcast %cst_257 : f32 to vector<8x128xf32>
    %486 = arith.addf %485, %484 : vector<8x128xf32>
    %487 = arith.divf %485, %486 : vector<8x128xf32>
    %488 = vector.extract_strided_slice %469 {offsets = [0, 256], sizes = [8, 128], strides = [1, 1]} : vector<8x512xf32> to vector<8x128xf32>
    %489 = math.tanh %488 : vector<8x128xf32>
    %490 = vector.extract_strided_slice %469 {offsets = [0, 384], sizes = [8, 128], strides = [1, 1]} : vector<8x512xf32> to vector<8x128xf32>
    %491 = arith.negf %490 : vector<8x128xf32>
    %492 = math.exp %491 : vector<8x128xf32>
    %cst_258 = arith.constant 1.000000e+00 : f32
    %493 = vector.broadcast %cst_258 : f32 to vector<8x128xf32>
    %494 = arith.addf %493, %492 : vector<8x128xf32>
    %495 = arith.divf %493, %494 : vector<8x128xf32>
    %496 = arith.mulf %487, %475 : vector<8x128xf32>
    %497 = arith.mulf %481, %489 : vector<8x128xf32>
    %498 = arith.addf %496, %497 : vector<8x128xf32>
    %499 = math.tanh %498 : vector<8x128xf32>
    %500 = arith.mulf %495, %499 : vector<8x128xf32>
    %c0_259 = arith.constant 0 : index
    %c128_260 = arith.constant 128 : index
    %501 = vector.load %arg17[%c0_259, %c128_260] : memref<8x256xf32, #tpu.memory_space<vmem>>, vector<8x128xf32>
    %502 = vector.extract_strided_slice %474 {offsets = [0, 0], sizes = [8, 128], strides = [1, 1]} : vector<8x512xf32> to vector<8x128xf32>
    %503 = arith.negf %502 : vector<8x128xf32>
    %504 = math.exp %503 : vector<8x128xf32>
    %cst_261 = arith.constant 1.000000e+00 : f32
    %505 = vector.broadcast %cst_261 : f32 to vector<8x128xf32>
    %506 = arith.addf %505, %504 : vector<8x128xf32>
    %507 = arith.divf %505, %506 : vector<8x128xf32>
    %508 = vector.extract_strided_slice %474 {offsets = [0, 128], sizes = [8, 128], strides = [1, 1]} : vector<8x512xf32> to vector<8x128xf32>
    %509 = arith.negf %508 : vector<8x128xf32>
    %510 = math.exp %509 : vector<8x128xf32>
    %cst_262 = arith.constant 1.000000e+00 : f32
    %511 = vector.broadcast %cst_262 : f32 to vector<8x128xf32>
    %512 = arith.addf %511, %510 : vector<8x128xf32>
    %513 = arith.divf %511, %512 : vector<8x128xf32>
    %514 = vector.extract_strided_slice %474 {offsets = [0, 256], sizes = [8, 128], strides = [1, 1]} : vector<8x512xf32> to vector<8x128xf32>
    %515 = math.tanh %514 : vector<8x128xf32>
    %516 = vector.extract_strided_slice %474 {offsets = [0, 384], sizes = [8, 128], strides = [1, 1]} : vector<8x512xf32> to vector<8x128xf32>
    %517 = arith.negf %516 : vector<8x128xf32>
    %518 = math.exp %517 : vector<8x128xf32>
    %cst_263 = arith.constant 1.000000e+00 : f32
    %519 = vector.broadcast %cst_263 : f32 to vector<8x128xf32>
    %520 = arith.addf %519, %518 : vector<8x128xf32>
    %521 = arith.divf %519, %520 : vector<8x128xf32>
    %522 = arith.mulf %513, %501 : vector<8x128xf32>
    %523 = arith.mulf %507, %515 : vector<8x128xf32>
    %524 = arith.addf %522, %523 : vector<8x128xf32>
    %525 = math.tanh %524 : vector<8x128xf32>
    %526 = arith.mulf %521, %525 : vector<8x128xf32>
    %527 = arith.index_cast %c3_i32_243 : i32 to index
    %c0_264 = arith.constant 0 : index
    %c0_265 = arith.constant 0 : index
    %528 = vector.load %arg4[%527, %c0_264, %c0_265] : memref<8x8x1xf32, #tpu.memory_space<vmem>>, vector<1x8x1xf32>
    %529 = vector.shape_cast %528 : vector<1x8x1xf32> to vector<8x1xf32>
    %530 = vector.shape_cast %529 : vector<8x1xf32> to vector<8x1xf32>
    %531 = vector.broadcast %530 : vector<8x1xf32> to vector<8x128xf32>
    %cst_266 = arith.constant 0.000000e+00 : f32
    %532 = vector.broadcast %cst_266 : f32 to vector<8x128xf32>
    %533 = arith.cmpf ogt, %531, %532 : vector<8x128xf32>
    %534 = arith.index_cast %460 : i32 to index
    %c0_267 = arith.constant 0 : index
    %c0_268 = arith.constant 0 : index
    %535 = vector.load %arg5[%534, %c0_267, %c0_268] : memref<8x8x1xf32, #tpu.memory_space<vmem>>, vector<1x8x1xf32>
    %536 = vector.shape_cast %535 : vector<1x8x1xf32> to vector<8x1xf32>
    %537 = vector.shape_cast %536 : vector<8x1xf32> to vector<8x1xf32>
    %538 = vector.broadcast %537 : vector<8x1xf32> to vector<8x128xf32>
    %cst_269 = arith.constant 0.000000e+00 : f32
    %539 = vector.broadcast %cst_269 : f32 to vector<8x128xf32>
    %540 = arith.cmpf ogt, %538, %539 : vector<8x128xf32>
    %c0_270 = arith.constant 0 : index
    %c0_271 = arith.constant 0 : index
    %541 = vector.load %arg16[%c0_270, %c0_271] : memref<8x256xf32, #tpu.memory_space<vmem>>, vector<8x128xf32>
    %542 = arith.select %533, %500, %541 : vector<8x128xi1>, vector<8x128xf32>
    %c0_272 = arith.constant 0 : index
    %c0_273 = arith.constant 0 : index
    %543 = vector.load %arg16[%c0_272, %c0_273] : memref<8x256xf32, #tpu.memory_space<vmem>>, vector<8x128xf32>
    tpu.vector_store %arg16[%c0_272, %c0_273], %542 {strides = array<i32>} : memref<8x256xf32, #tpu.memory_space<vmem>>, vector<8x128xf32>,
    %c0_274 = arith.constant 0 : index
    %c0_275 = arith.constant 0 : index
    %544 = vector.load %arg17[%c0_274, %c0_275] : memref<8x256xf32, #tpu.memory_space<vmem>>, vector<8x128xf32>
    %545 = arith.select %533, %498, %544 : vector<8x128xi1>, vector<8x128xf32>
    %c0_276 = arith.constant 0 : index
    %c0_277 = arith.constant 0 : index
    %546 = vector.load %arg17[%c0_276, %c0_277] : memref<8x256xf32, #tpu.memory_space<vmem>>, vector<8x128xf32>
    tpu.vector_store %arg17[%c0_276, %c0_277], %545 {strides = array<i32>} : memref<8x256xf32, #tpu.memory_space<vmem>>, vector<8x128xf32>,
    %c0_278 = arith.constant 0 : index
    %c128_279 = arith.constant 128 : index
    %547 = vector.load %arg16[%c0_278, %c128_279] : memref<8x256xf32, #tpu.memory_space<vmem>>, vector<8x128xf32>
    %548 = arith.select %540, %526, %547 : vector<8x128xi1>, vector<8x128xf32>
    %c0_280 = arith.constant 0 : index
    %c128_281 = arith.constant 128 : index
    %549 = vector.load %arg16[%c0_280, %c128_281] : memref<8x256xf32, #tpu.memory_space<vmem>>, vector<8x128xf32>
    tpu.vector_store %arg16[%c0_280, %c128_281], %548 {strides = array<i32>} : memref<8x256xf32, #tpu.memory_space<vmem>>, vector<8x128xf32>,
    %c0_282 = arith.constant 0 : index
    %c128_283 = arith.constant 128 : index
    %550 = vector.load %arg17[%c0_282, %c128_283] : memref<8x256xf32, #tpu.memory_space<vmem>>, vector<8x128xf32>
    %551 = arith.select %540, %524, %550 : vector<8x128xi1>, vector<8x128xf32>
    %c0_284 = arith.constant 0 : index
    %c128_285 = arith.constant 128 : index
    %552 = vector.load %arg17[%c0_284, %c128_285] : memref<8x256xf32, #tpu.memory_space<vmem>>, vector<8x128xf32>
    tpu.vector_store %arg17[%c0_284, %c128_285], %551 {strides = array<i32>} : memref<8x256xf32, #tpu.memory_space<vmem>>, vector<8x128xf32>,
    %c4_i32_286 = arith.constant 4 : i32
    %c7_i32_287 = arith.constant 7 : i32
    %553 = arith.subi %c7_i32_287, %c4_i32_286 : i32
    %c0_288 = arith.constant 0 : index
    %c0_289 = arith.constant 0 : index
    %554 = vector.load %arg16[%c0_288, %c0_289] : memref<8x256xf32, #tpu.memory_space<vmem>>, vector<8x256xf32>
    %555 = arith.truncf %554 : vector<8x256xf32> to vector<8x256xbf16>
    %c0_290 = arith.constant 0 : index
    %c0_291 = arith.constant 0 : index
    %556 = vector.load %arg9[%c0_290, %c0_291] : memref<256x1024xbf16, #tpu.memory_space<vmem>>, vector<256x1024xbf16>
    %cst_292 = arith.constant dense<0.000000e+00> : vector<8x1024xf32>
    %557 = tpu.matmul %555, %556, %cst_292 {dimension_numbers = #tpu.dot_dimension_numbers<[1], [0], [0], [1], [0, 0, 1, 1], [], []>} : vector<8x256xbf16>, vector<256x1024xbf16>, vector<8x1024xf32> -> vector<8x1024xf32>
    %558 = arith.index_cast %c4_i32_286 : i32 to index
    %c0_293 = arith.constant 0 : index
    %c0_294 = arith.constant 0 : index
    %559 = vector.load %arg15[%558, %c0_293, %c0_294] : memref<8x8x1024xf32, #tpu.memory_space<vmem>>, vector<1x8x512xf32>
    %560 = vector.shape_cast %559 : vector<1x8x512xf32> to vector<8x512xf32>
    %561 = vector.extract_strided_slice %557 {offsets = [0, 0], sizes = [8, 512], strides = [1, 1]} : vector<8x1024xf32> to vector<8x512xf32>
    %562 = arith.addf %560, %561 : vector<8x512xf32>
    %563 = arith.index_cast %553 : i32 to index
    %c0_295 = arith.constant 0 : index
    %c512_296 = arith.constant 512 : index
    %564 = vector.load %arg15[%563, %c0_295, %c512_296] : memref<8x8x1024xf32, #tpu.memory_space<vmem>>, vector<1x8x512xf32>
    %565 = vector.shape_cast %564 : vector<1x8x512xf32> to vector<8x512xf32>
    %566 = vector.extract_strided_slice %557 {offsets = [0, 512], sizes = [8, 512], strides = [1, 1]} : vector<8x1024xf32> to vector<8x512xf32>
    %567 = arith.addf %565, %566 : vector<8x512xf32>
    %c0_297 = arith.constant 0 : index
    %c0_298 = arith.constant 0 : index
    %568 = vector.load %arg17[%c0_297, %c0_298] : memref<8x256xf32, #tpu.memory_space<vmem>>, vector<8x128xf32>
    %569 = vector.extract_strided_slice %562 {offsets = [0, 0], sizes = [8, 128], strides = [1, 1]} : vector<8x512xf32> to vector<8x128xf32>
    %570 = arith.negf %569 : vector<8x128xf32>
    %571 = math.exp %570 : vector<8x128xf32>
    %cst_299 = arith.constant 1.000000e+00 : f32
    %572 = vector.broadcast %cst_299 : f32 to vector<8x128xf32>
    %573 = arith.addf %572, %571 : vector<8x128xf32>
    %574 = arith.divf %572, %573 : vector<8x128xf32>
    %575 = vector.extract_strided_slice %562 {offsets = [0, 128], sizes = [8, 128], strides = [1, 1]} : vector<8x512xf32> to vector<8x128xf32>
    %576 = arith.negf %575 : vector<8x128xf32>
    %577 = math.exp %576 : vector<8x128xf32>
    %cst_300 = arith.constant 1.000000e+00 : f32
    %578 = vector.broadcast %cst_300 : f32 to vector<8x128xf32>
    %579 = arith.addf %578, %577 : vector<8x128xf32>
    %580 = arith.divf %578, %579 : vector<8x128xf32>
    %581 = vector.extract_strided_slice %562 {offsets = [0, 256], sizes = [8, 128], strides = [1, 1]} : vector<8x512xf32> to vector<8x128xf32>
    %582 = math.tanh %581 : vector<8x128xf32>
    %583 = vector.extract_strided_slice %562 {offsets = [0, 384], sizes = [8, 128], strides = [1, 1]} : vector<8x512xf32> to vector<8x128xf32>
    %584 = arith.negf %583 : vector<8x128xf32>
    %585 = math.exp %584 : vector<8x128xf32>
    %cst_301 = arith.constant 1.000000e+00 : f32
    %586 = vector.broadcast %cst_301 : f32 to vector<8x128xf32>
    %587 = arith.addf %586, %585 : vector<8x128xf32>
    %588 = arith.divf %586, %587 : vector<8x128xf32>
    %589 = arith.mulf %580, %568 : vector<8x128xf32>
    %590 = arith.mulf %574, %582 : vector<8x128xf32>
    %591 = arith.addf %589, %590 : vector<8x128xf32>
    %592 = math.tanh %591 : vector<8x128xf32>
    %593 = arith.mulf %588, %592 : vector<8x128xf32>
    %c0_302 = arith.constant 0 : index
    %c128_303 = arith.constant 128 : index
    %594 = vector.load %arg17[%c0_302, %c128_303] : memref<8x256xf32, #tpu.memory_space<vmem>>, vector<8x128xf32>
    %595 = vector.extract_strided_slice %567 {offsets = [0, 0], sizes = [8, 128], strides = [1, 1]} : vector<8x512xf32> to vector<8x128xf32>
    %596 = arith.negf %595 : vector<8x128xf32>
    %597 = math.exp %596 : vector<8x128xf32>
    %cst_304 = arith.constant 1.000000e+00 : f32
    %598 = vector.broadcast %cst_304 : f32 to vector<8x128xf32>
    %599 = arith.addf %598, %597 : vector<8x128xf32>
    %600 = arith.divf %598, %599 : vector<8x128xf32>
    %601 = vector.extract_strided_slice %567 {offsets = [0, 128], sizes = [8, 128], strides = [1, 1]} : vector<8x512xf32> to vector<8x128xf32>
    %602 = arith.negf %601 : vector<8x128xf32>
    %603 = math.exp %602 : vector<8x128xf32>
    %cst_305 = arith.constant 1.000000e+00 : f32
    %604 = vector.broadcast %cst_305 : f32 to vector<8x128xf32>
    %605 = arith.addf %604, %603 : vector<8x128xf32>
    %606 = arith.divf %604, %605 : vector<8x128xf32>
    %607 = vector.extract_strided_slice %567 {offsets = [0, 256], sizes = [8, 128], strides = [1, 1]} : vector<8x512xf32> to vector<8x128xf32>
    %608 = math.tanh %607 : vector<8x128xf32>
    %609 = vector.extract_strided_slice %567 {offsets = [0, 384], sizes = [8, 128], strides = [1, 1]} : vector<8x512xf32> to vector<8x128xf32>
    %610 = arith.negf %609 : vector<8x128xf32>
    %611 = math.exp %610 : vector<8x128xf32>
    %cst_306 = arith.constant 1.000000e+00 : f32
    %612 = vector.broadcast %cst_306 : f32 to vector<8x128xf32>
    %613 = arith.addf %612, %611 : vector<8x128xf32>
    %614 = arith.divf %612, %613 : vector<8x128xf32>
    %615 = arith.mulf %606, %594 : vector<8x128xf32>
    %616 = arith.mulf %600, %608 : vector<8x128xf32>
    %617 = arith.addf %615, %616 : vector<8x128xf32>
    %618 = math.tanh %617 : vector<8x128xf32>
    %619 = arith.mulf %614, %618 : vector<8x128xf32>
    %620 = arith.index_cast %c4_i32_286 : i32 to index
    %c0_307 = arith.constant 0 : index
    %c0_308 = arith.constant 0 : index
    %621 = vector.load %arg4[%620, %c0_307, %c0_308] : memref<8x8x1xf32, #tpu.memory_space<vmem>>, vector<1x8x1xf32>
    %622 = vector.shape_cast %621 : vector<1x8x1xf32> to vector<8x1xf32>
    %623 = vector.shape_cast %622 : vector<8x1xf32> to vector<8x1xf32>
    %624 = vector.broadcast %623 : vector<8x1xf32> to vector<8x128xf32>
    %cst_309 = arith.constant 0.000000e+00 : f32
    %625 = vector.broadcast %cst_309 : f32 to vector<8x128xf32>
    %626 = arith.cmpf ogt, %624, %625 : vector<8x128xf32>
    %627 = arith.index_cast %553 : i32 to index
    %c0_310 = arith.constant 0 : index
    %c0_311 = arith.constant 0 : index
    %628 = vector.load %arg5[%627, %c0_310, %c0_311] : memref<8x8x1xf32, #tpu.memory_space<vmem>>, vector<1x8x1xf32>
    %629 = vector.shape_cast %628 : vector<1x8x1xf32> to vector<8x1xf32>
    %630 = vector.shape_cast %629 : vector<8x1xf32> to vector<8x1xf32>
    %631 = vector.broadcast %630 : vector<8x1xf32> to vector<8x128xf32>
    %cst_312 = arith.constant 0.000000e+00 : f32
    %632 = vector.broadcast %cst_312 : f32 to vector<8x128xf32>
    %633 = arith.cmpf ogt, %631, %632 : vector<8x128xf32>
    %c0_313 = arith.constant 0 : index
    %c0_314 = arith.constant 0 : index
    %634 = vector.load %arg16[%c0_313, %c0_314] : memref<8x256xf32, #tpu.memory_space<vmem>>, vector<8x128xf32>
    %635 = arith.select %626, %593, %634 : vector<8x128xi1>, vector<8x128xf32>
    %c0_315 = arith.constant 0 : index
    %c0_316 = arith.constant 0 : index
    %636 = vector.load %arg16[%c0_315, %c0_316] : memref<8x256xf32, #tpu.memory_space<vmem>>, vector<8x128xf32>
    tpu.vector_store %arg16[%c0_315, %c0_316], %635 {strides = array<i32>} : memref<8x256xf32, #tpu.memory_space<vmem>>, vector<8x128xf32>,
    %c0_317 = arith.constant 0 : index
    %c0_318 = arith.constant 0 : index
    %637 = vector.load %arg17[%c0_317, %c0_318] : memref<8x256xf32, #tpu.memory_space<vmem>>, vector<8x128xf32>
    %638 = arith.select %626, %591, %637 : vector<8x128xi1>, vector<8x128xf32>
    %c0_319 = arith.constant 0 : index
    %c0_320 = arith.constant 0 : index
    %639 = vector.load %arg17[%c0_319, %c0_320] : memref<8x256xf32, #tpu.memory_space<vmem>>, vector<8x128xf32>
    tpu.vector_store %arg17[%c0_319, %c0_320], %638 {strides = array<i32>} : memref<8x256xf32, #tpu.memory_space<vmem>>, vector<8x128xf32>,
    %c0_321 = arith.constant 0 : index
    %c128_322 = arith.constant 128 : index
    %640 = vector.load %arg16[%c0_321, %c128_322] : memref<8x256xf32, #tpu.memory_space<vmem>>, vector<8x128xf32>
    %641 = arith.select %633, %619, %640 : vector<8x128xi1>, vector<8x128xf32>
    %c0_323 = arith.constant 0 : index
    %c128_324 = arith.constant 128 : index
    %642 = vector.load %arg16[%c0_323, %c128_324] : memref<8x256xf32, #tpu.memory_space<vmem>>, vector<8x128xf32>
    tpu.vector_store %arg16[%c0_323, %c128_324], %641 {strides = array<i32>} : memref<8x256xf32, #tpu.memory_space<vmem>>, vector<8x128xf32>,
    %c0_325 = arith.constant 0 : index
    %c128_326 = arith.constant 128 : index
    %643 = vector.load %arg17[%c0_325, %c128_326] : memref<8x256xf32, #tpu.memory_space<vmem>>, vector<8x128xf32>
    %644 = arith.select %633, %617, %643 : vector<8x128xi1>, vector<8x128xf32>
    %c0_327 = arith.constant 0 : index
    %c128_328 = arith.constant 128 : index
    %645 = vector.load %arg17[%c0_327, %c128_328] : memref<8x256xf32, #tpu.memory_space<vmem>>, vector<8x128xf32>
    tpu.vector_store %arg17[%c0_327, %c128_328], %644 {strides = array<i32>} : memref<8x256xf32, #tpu.memory_space<vmem>>, vector<8x128xf32>,
    %c5_i32_329 = arith.constant 5 : i32
    %c7_i32_330 = arith.constant 7 : i32
    %646 = arith.subi %c7_i32_330, %c5_i32_329 : i32
    %c0_331 = arith.constant 0 : index
    %c0_332 = arith.constant 0 : index
    %647 = vector.load %arg16[%c0_331, %c0_332] : memref<8x256xf32, #tpu.memory_space<vmem>>, vector<8x256xf32>
    %648 = arith.truncf %647 : vector<8x256xf32> to vector<8x256xbf16>
    %c0_333 = arith.constant 0 : index
    %c0_334 = arith.constant 0 : index
    %649 = vector.load %arg9[%c0_333, %c0_334] : memref<256x1024xbf16, #tpu.memory_space<vmem>>, vector<256x1024xbf16>
    %cst_335 = arith.constant dense<0.000000e+00> : vector<8x1024xf32>
    %650 = tpu.matmul %648, %649, %cst_335 {dimension_numbers = #tpu.dot_dimension_numbers<[1], [0], [0], [1], [0, 0, 1, 1], [], []>} : vector<8x256xbf16>, vector<256x1024xbf16>, vector<8x1024xf32> -> vector<8x1024xf32>
    %651 = arith.index_cast %c5_i32_329 : i32 to index
    %c0_336 = arith.constant 0 : index
    %c0_337 = arith.constant 0 : index
    %652 = vector.load %arg15[%651, %c0_336, %c0_337] : memref<8x8x1024xf32, #tpu.memory_space<vmem>>, vector<1x8x512xf32>
    %653 = vector.shape_cast %652 : vector<1x8x512xf32> to vector<8x512xf32>
    %654 = vector.extract_strided_slice %650 {offsets = [0, 0], sizes = [8, 512], strides = [1, 1]} : vector<8x1024xf32> to vector<8x512xf32>
    %655 = arith.addf %653, %654 : vector<8x512xf32>
    %656 = arith.index_cast %646 : i32 to index
    %c0_338 = arith.constant 0 : index
    %c512_339 = arith.constant 512 : index
    %657 = vector.load %arg15[%656, %c0_338, %c512_339] : memref<8x8x1024xf32, #tpu.memory_space<vmem>>, vector<1x8x512xf32>
    %658 = vector.shape_cast %657 : vector<1x8x512xf32> to vector<8x512xf32>
    %659 = vector.extract_strided_slice %650 {offsets = [0, 512], sizes = [8, 512], strides = [1, 1]} : vector<8x1024xf32> to vector<8x512xf32>
    %660 = arith.addf %658, %659 : vector<8x512xf32>
    %c0_340 = arith.constant 0 : index
    %c0_341 = arith.constant 0 : index
    %661 = vector.load %arg17[%c0_340, %c0_341] : memref<8x256xf32, #tpu.memory_space<vmem>>, vector<8x128xf32>
    %662 = vector.extract_strided_slice %655 {offsets = [0, 0], sizes = [8, 128], strides = [1, 1]} : vector<8x512xf32> to vector<8x128xf32>
    %663 = arith.negf %662 : vector<8x128xf32>
    %664 = math.exp %663 : vector<8x128xf32>
    %cst_342 = arith.constant 1.000000e+00 : f32
    %665 = vector.broadcast %cst_342 : f32 to vector<8x128xf32>
    %666 = arith.addf %665, %664 : vector<8x128xf32>
    %667 = arith.divf %665, %666 : vector<8x128xf32>
    %668 = vector.extract_strided_slice %655 {offsets = [0, 128], sizes = [8, 128], strides = [1, 1]} : vector<8x512xf32> to vector<8x128xf32>
    %669 = arith.negf %668 : vector<8x128xf32>
    %670 = math.exp %669 : vector<8x128xf32>
    %cst_343 = arith.constant 1.000000e+00 : f32
    %671 = vector.broadcast %cst_343 : f32 to vector<8x128xf32>
    %672 = arith.addf %671, %670 : vector<8x128xf32>
    %673 = arith.divf %671, %672 : vector<8x128xf32>
    %674 = vector.extract_strided_slice %655 {offsets = [0, 256], sizes = [8, 128], strides = [1, 1]} : vector<8x512xf32> to vector<8x128xf32>
    %675 = math.tanh %674 : vector<8x128xf32>
    %676 = vector.extract_strided_slice %655 {offsets = [0, 384], sizes = [8, 128], strides = [1, 1]} : vector<8x512xf32> to vector<8x128xf32>
    %677 = arith.negf %676 : vector<8x128xf32>
    %678 = math.exp %677 : vector<8x128xf32>
    %cst_344 = arith.constant 1.000000e+00 : f32
    %679 = vector.broadcast %cst_344 : f32 to vector<8x128xf32>
    %680 = arith.addf %679, %678 : vector<8x128xf32>
    %681 = arith.divf %679, %680 : vector<8x128xf32>
    %682 = arith.mulf %673, %661 : vector<8x128xf32>
    %683 = arith.mulf %667, %675 : vector<8x128xf32>
    %684 = arith.addf %682, %683 : vector<8x128xf32>
    %685 = math.tanh %684 : vector<8x128xf32>
    %686 = arith.mulf %681, %685 : vector<8x128xf32>
    %c0_345 = arith.constant 0 : index
    %c128_346 = arith.constant 128 : index
    %687 = vector.load %arg17[%c0_345, %c128_346] : memref<8x256xf32, #tpu.memory_space<vmem>>, vector<8x128xf32>
    %688 = vector.extract_strided_slice %660 {offsets = [0, 0], sizes = [8, 128], strides = [1, 1]} : vector<8x512xf32> to vector<8x128xf32>
    %689 = arith.negf %688 : vector<8x128xf32>
    %690 = math.exp %689 : vector<8x128xf32>
    %cst_347 = arith.constant 1.000000e+00 : f32
    %691 = vector.broadcast %cst_347 : f32 to vector<8x128xf32>
    %692 = arith.addf %691, %690 : vector<8x128xf32>
    %693 = arith.divf %691, %692 : vector<8x128xf32>
    %694 = vector.extract_strided_slice %660 {offsets = [0, 128], sizes = [8, 128], strides = [1, 1]} : vector<8x512xf32> to vector<8x128xf32>
    %695 = arith.negf %694 : vector<8x128xf32>
    %696 = math.exp %695 : vector<8x128xf32>
    %cst_348 = arith.constant 1.000000e+00 : f32
    %697 = vector.broadcast %cst_348 : f32 to vector<8x128xf32>
    %698 = arith.addf %697, %696 : vector<8x128xf32>
    %699 = arith.divf %697, %698 : vector<8x128xf32>
    %700 = vector.extract_strided_slice %660 {offsets = [0, 256], sizes = [8, 128], strides = [1, 1]} : vector<8x512xf32> to vector<8x128xf32>
    %701 = math.tanh %700 : vector<8x128xf32>
    %702 = vector.extract_strided_slice %660 {offsets = [0, 384], sizes = [8, 128], strides = [1, 1]} : vector<8x512xf32> to vector<8x128xf32>
    %703 = arith.negf %702 : vector<8x128xf32>
    %704 = math.exp %703 : vector<8x128xf32>
    %cst_349 = arith.constant 1.000000e+00 : f32
    %705 = vector.broadcast %cst_349 : f32 to vector<8x128xf32>
    %706 = arith.addf %705, %704 : vector<8x128xf32>
    %707 = arith.divf %705, %706 : vector<8x128xf32>
    %708 = arith.mulf %699, %687 : vector<8x128xf32>
    %709 = arith.mulf %693, %701 : vector<8x128xf32>
    %710 = arith.addf %708, %709 : vector<8x128xf32>
    %711 = math.tanh %710 : vector<8x128xf32>
    %712 = arith.mulf %707, %711 : vector<8x128xf32>
    %713 = arith.index_cast %c5_i32_329 : i32 to index
    %c0_350 = arith.constant 0 : index
    %c0_351 = arith.constant 0 : index
    %714 = vector.load %arg4[%713, %c0_350, %c0_351] : memref<8x8x1xf32, #tpu.memory_space<vmem>>, vector<1x8x1xf32>
    %715 = vector.shape_cast %714 : vector<1x8x1xf32> to vector<8x1xf32>
    %716 = vector.shape_cast %715 : vector<8x1xf32> to vector<8x1xf32>
    %717 = vector.broadcast %716 : vector<8x1xf32> to vector<8x128xf32>
    %cst_352 = arith.constant 0.000000e+00 : f32
    %718 = vector.broadcast %cst_352 : f32 to vector<8x128xf32>
    %719 = arith.cmpf ogt, %717, %718 : vector<8x128xf32>
    %720 = arith.index_cast %646 : i32 to index
    %c0_353 = arith.constant 0 : index
    %c0_354 = arith.constant 0 : index
    %721 = vector.load %arg5[%720, %c0_353, %c0_354] : memref<8x8x1xf32, #tpu.memory_space<vmem>>, vector<1x8x1xf32>
    %722 = vector.shape_cast %721 : vector<1x8x1xf32> to vector<8x1xf32>
    %723 = vector.shape_cast %722 : vector<8x1xf32> to vector<8x1xf32>
    %724 = vector.broadcast %723 : vector<8x1xf32> to vector<8x128xf32>
    %cst_355 = arith.constant 0.000000e+00 : f32
    %725 = vector.broadcast %cst_355 : f32 to vector<8x128xf32>
    %726 = arith.cmpf ogt, %724, %725 : vector<8x128xf32>
    %c0_356 = arith.constant 0 : index
    %c0_357 = arith.constant 0 : index
    %727 = vector.load %arg16[%c0_356, %c0_357] : memref<8x256xf32, #tpu.memory_space<vmem>>, vector<8x128xf32>
    %728 = arith.select %719, %686, %727 : vector<8x128xi1>, vector<8x128xf32>
    %c0_358 = arith.constant 0 : index
    %c0_359 = arith.constant 0 : index
    %729 = vector.load %arg16[%c0_358, %c0_359] : memref<8x256xf32, #tpu.memory_space<vmem>>, vector<8x128xf32>
    tpu.vector_store %arg16[%c0_358, %c0_359], %728 {strides = array<i32>} : memref<8x256xf32, #tpu.memory_space<vmem>>, vector<8x128xf32>,
    %c0_360 = arith.constant 0 : index
    %c0_361 = arith.constant 0 : index
    %730 = vector.load %arg17[%c0_360, %c0_361] : memref<8x256xf32, #tpu.memory_space<vmem>>, vector<8x128xf32>
    %731 = arith.select %719, %684, %730 : vector<8x128xi1>, vector<8x128xf32>
    %c0_362 = arith.constant 0 : index
    %c0_363 = arith.constant 0 : index
    %732 = vector.load %arg17[%c0_362, %c0_363] : memref<8x256xf32, #tpu.memory_space<vmem>>, vector<8x128xf32>
    tpu.vector_store %arg17[%c0_362, %c0_363], %731 {strides = array<i32>} : memref<8x256xf32, #tpu.memory_space<vmem>>, vector<8x128xf32>,
    %c0_364 = arith.constant 0 : index
    %c128_365 = arith.constant 128 : index
    %733 = vector.load %arg16[%c0_364, %c128_365] : memref<8x256xf32, #tpu.memory_space<vmem>>, vector<8x128xf32>
    %734 = arith.select %726, %712, %733 : vector<8x128xi1>, vector<8x128xf32>
    %c0_366 = arith.constant 0 : index
    %c128_367 = arith.constant 128 : index
    %735 = vector.load %arg16[%c0_366, %c128_367] : memref<8x256xf32, #tpu.memory_space<vmem>>, vector<8x128xf32>
    tpu.vector_store %arg16[%c0_366, %c128_367], %734 {strides = array<i32>} : memref<8x256xf32, #tpu.memory_space<vmem>>, vector<8x128xf32>,
    %c0_368 = arith.constant 0 : index
    %c128_369 = arith.constant 128 : index
    %736 = vector.load %arg17[%c0_368, %c128_369] : memref<8x256xf32, #tpu.memory_space<vmem>>, vector<8x128xf32>
    %737 = arith.select %726, %710, %736 : vector<8x128xi1>, vector<8x128xf32>
    %c0_370 = arith.constant 0 : index
    %c128_371 = arith.constant 128 : index
    %738 = vector.load %arg17[%c0_370, %c128_371] : memref<8x256xf32, #tpu.memory_space<vmem>>, vector<8x128xf32>
    tpu.vector_store %arg17[%c0_370, %c128_371], %737 {strides = array<i32>} : memref<8x256xf32, #tpu.memory_space<vmem>>, vector<8x128xf32>,
    %c6_i32_372 = arith.constant 6 : i32
    %c7_i32_373 = arith.constant 7 : i32
    %739 = arith.subi %c7_i32_373, %c6_i32_372 : i32
    %c0_374 = arith.constant 0 : index
    %c0_375 = arith.constant 0 : index
    %740 = vector.load %arg16[%c0_374, %c0_375] : memref<8x256xf32, #tpu.memory_space<vmem>>, vector<8x256xf32>
    %741 = arith.truncf %740 : vector<8x256xf32> to vector<8x256xbf16>
    %c0_376 = arith.constant 0 : index
    %c0_377 = arith.constant 0 : index
    %742 = vector.load %arg9[%c0_376, %c0_377] : memref<256x1024xbf16, #tpu.memory_space<vmem>>, vector<256x1024xbf16>
    %cst_378 = arith.constant dense<0.000000e+00> : vector<8x1024xf32>
    %743 = tpu.matmul %741, %742, %cst_378 {dimension_numbers = #tpu.dot_dimension_numbers<[1], [0], [0], [1], [0, 0, 1, 1], [], []>} : vector<8x256xbf16>, vector<256x1024xbf16>, vector<8x1024xf32> -> vector<8x1024xf32>
    %744 = arith.index_cast %c6_i32_372 : i32 to index
    %c0_379 = arith.constant 0 : index
    %c0_380 = arith.constant 0 : index
    %745 = vector.load %arg15[%744, %c0_379, %c0_380] : memref<8x8x1024xf32, #tpu.memory_space<vmem>>, vector<1x8x512xf32>
    %746 = vector.shape_cast %745 : vector<1x8x512xf32> to vector<8x512xf32>
    %747 = vector.extract_strided_slice %743 {offsets = [0, 0], sizes = [8, 512], strides = [1, 1]} : vector<8x1024xf32> to vector<8x512xf32>
    %748 = arith.addf %746, %747 : vector<8x512xf32>
    %749 = arith.index_cast %739 : i32 to index
    %c0_381 = arith.constant 0 : index
    %c512_382 = arith.constant 512 : index
    %750 = vector.load %arg15[%749, %c0_381, %c512_382] : memref<8x8x1024xf32, #tpu.memory_space<vmem>>, vector<1x8x512xf32>
    %751 = vector.shape_cast %750 : vector<1x8x512xf32> to vector<8x512xf32>
    %752 = vector.extract_strided_slice %743 {offsets = [0, 512], sizes = [8, 512], strides = [1, 1]} : vector<8x1024xf32> to vector<8x512xf32>
    %753 = arith.addf %751, %752 : vector<8x512xf32>
    %c0_383 = arith.constant 0 : index
    %c0_384 = arith.constant 0 : index
    %754 = vector.load %arg17[%c0_383, %c0_384] : memref<8x256xf32, #tpu.memory_space<vmem>>, vector<8x128xf32>
    %755 = vector.extract_strided_slice %748 {offsets = [0, 0], sizes = [8, 128], strides = [1, 1]} : vector<8x512xf32> to vector<8x128xf32>
    %756 = arith.negf %755 : vector<8x128xf32>
    %757 = math.exp %756 : vector<8x128xf32>
    %cst_385 = arith.constant 1.000000e+00 : f32
    %758 = vector.broadcast %cst_385 : f32 to vector<8x128xf32>
    %759 = arith.addf %758, %757 : vector<8x128xf32>
    %760 = arith.divf %758, %759 : vector<8x128xf32>
    %761 = vector.extract_strided_slice %748 {offsets = [0, 128], sizes = [8, 128], strides = [1, 1]} : vector<8x512xf32> to vector<8x128xf32>
    %762 = arith.negf %761 : vector<8x128xf32>
    %763 = math.exp %762 : vector<8x128xf32>
    %cst_386 = arith.constant 1.000000e+00 : f32
    %764 = vector.broadcast %cst_386 : f32 to vector<8x128xf32>
    %765 = arith.addf %764, %763 : vector<8x128xf32>
    %766 = arith.divf %764, %765 : vector<8x128xf32>
    %767 = vector.extract_strided_slice %748 {offsets = [0, 256], sizes = [8, 128], strides = [1, 1]} : vector<8x512xf32> to vector<8x128xf32>
    %768 = math.tanh %767 : vector<8x128xf32>
    %769 = vector.extract_strided_slice %748 {offsets = [0, 384], sizes = [8, 128], strides = [1, 1]} : vector<8x512xf32> to vector<8x128xf32>
    %770 = arith.negf %769 : vector<8x128xf32>
    %771 = math.exp %770 : vector<8x128xf32>
    %cst_387 = arith.constant 1.000000e+00 : f32
    %772 = vector.broadcast %cst_387 : f32 to vector<8x128xf32>
    %773 = arith.addf %772, %771 : vector<8x128xf32>
    %774 = arith.divf %772, %773 : vector<8x128xf32>
    %775 = arith.mulf %766, %754 : vector<8x128xf32>
    %776 = arith.mulf %760, %768 : vector<8x128xf32>
    %777 = arith.addf %775, %776 : vector<8x128xf32>
    %778 = math.tanh %777 : vector<8x128xf32>
    %779 = arith.mulf %774, %778 : vector<8x128xf32>
    %c0_388 = arith.constant 0 : index
    %c128_389 = arith.constant 128 : index
    %780 = vector.load %arg17[%c0_388, %c128_389] : memref<8x256xf32, #tpu.memory_space<vmem>>, vector<8x128xf32>
    %781 = vector.extract_strided_slice %753 {offsets = [0, 0], sizes = [8, 128], strides = [1, 1]} : vector<8x512xf32> to vector<8x128xf32>
    %782 = arith.negf %781 : vector<8x128xf32>
    %783 = math.exp %782 : vector<8x128xf32>
    %cst_390 = arith.constant 1.000000e+00 : f32
    %784 = vector.broadcast %cst_390 : f32 to vector<8x128xf32>
    %785 = arith.addf %784, %783 : vector<8x128xf32>
    %786 = arith.divf %784, %785 : vector<8x128xf32>
    %787 = vector.extract_strided_slice %753 {offsets = [0, 128], sizes = [8, 128], strides = [1, 1]} : vector<8x512xf32> to vector<8x128xf32>
    %788 = arith.negf %787 : vector<8x128xf32>
    %789 = math.exp %788 : vector<8x128xf32>
    %cst_391 = arith.constant 1.000000e+00 : f32
    %790 = vector.broadcast %cst_391 : f32 to vector<8x128xf32>
    %791 = arith.addf %790, %789 : vector<8x128xf32>
    %792 = arith.divf %790, %791 : vector<8x128xf32>
    %793 = vector.extract_strided_slice %753 {offsets = [0, 256], sizes = [8, 128], strides = [1, 1]} : vector<8x512xf32> to vector<8x128xf32>
    %794 = math.tanh %793 : vector<8x128xf32>
    %795 = vector.extract_strided_slice %753 {offsets = [0, 384], sizes = [8, 128], strides = [1, 1]} : vector<8x512xf32> to vector<8x128xf32>
    %796 = arith.negf %795 : vector<8x128xf32>
    %797 = math.exp %796 : vector<8x128xf32>
    %cst_392 = arith.constant 1.000000e+00 : f32
    %798 = vector.broadcast %cst_392 : f32 to vector<8x128xf32>
    %799 = arith.addf %798, %797 : vector<8x128xf32>
    %800 = arith.divf %798, %799 : vector<8x128xf32>
    %801 = arith.mulf %792, %780 : vector<8x128xf32>
    %802 = arith.mulf %786, %794 : vector<8x128xf32>
    %803 = arith.addf %801, %802 : vector<8x128xf32>
    %804 = math.tanh %803 : vector<8x128xf32>
    %805 = arith.mulf %800, %804 : vector<8x128xf32>
    %806 = arith.index_cast %c6_i32_372 : i32 to index
    %c0_393 = arith.constant 0 : index
    %c0_394 = arith.constant 0 : index
    %807 = vector.load %arg4[%806, %c0_393, %c0_394] : memref<8x8x1xf32, #tpu.memory_space<vmem>>, vector<1x8x1xf32>
    %808 = vector.shape_cast %807 : vector<1x8x1xf32> to vector<8x1xf32>
    %809 = vector.shape_cast %808 : vector<8x1xf32> to vector<8x1xf32>
    %810 = vector.broadcast %809 : vector<8x1xf32> to vector<8x128xf32>
    %cst_395 = arith.constant 0.000000e+00 : f32
    %811 = vector.broadcast %cst_395 : f32 to vector<8x128xf32>
    %812 = arith.cmpf ogt, %810, %811 : vector<8x128xf32>
    %813 = arith.index_cast %739 : i32 to index
    %c0_396 = arith.constant 0 : index
    %c0_397 = arith.constant 0 : index
    %814 = vector.load %arg5[%813, %c0_396, %c0_397] : memref<8x8x1xf32, #tpu.memory_space<vmem>>, vector<1x8x1xf32>
    %815 = vector.shape_cast %814 : vector<1x8x1xf32> to vector<8x1xf32>
    %816 = vector.shape_cast %815 : vector<8x1xf32> to vector<8x1xf32>
    %817 = vector.broadcast %816 : vector<8x1xf32> to vector<8x128xf32>
    %cst_398 = arith.constant 0.000000e+00 : f32
    %818 = vector.broadcast %cst_398 : f32 to vector<8x128xf32>
    %819 = arith.cmpf ogt, %817, %818 : vector<8x128xf32>
    %c0_399 = arith.constant 0 : index
    %c0_400 = arith.constant 0 : index
    %820 = vector.load %arg16[%c0_399, %c0_400] : memref<8x256xf32, #tpu.memory_space<vmem>>, vector<8x128xf32>
    %821 = arith.select %812, %779, %820 : vector<8x128xi1>, vector<8x128xf32>
    %c0_401 = arith.constant 0 : index
    %c0_402 = arith.constant 0 : index
    %822 = vector.load %arg16[%c0_401, %c0_402] : memref<8x256xf32, #tpu.memory_space<vmem>>, vector<8x128xf32>
    tpu.vector_store %arg16[%c0_401, %c0_402], %821 {strides = array<i32>} : memref<8x256xf32, #tpu.memory_space<vmem>>, vector<8x128xf32>,
    %c0_403 = arith.constant 0 : index
    %c0_404 = arith.constant 0 : index
    %823 = vector.load %arg17[%c0_403, %c0_404] : memref<8x256xf32, #tpu.memory_space<vmem>>, vector<8x128xf32>
    %824 = arith.select %812, %777, %823 : vector<8x128xi1>, vector<8x128xf32>
    %c0_405 = arith.constant 0 : index
    %c0_406 = arith.constant 0 : index
    %825 = vector.load %arg17[%c0_405, %c0_406] : memref<8x256xf32, #tpu.memory_space<vmem>>, vector<8x128xf32>
    tpu.vector_store %arg17[%c0_405, %c0_406], %824 {strides = array<i32>} : memref<8x256xf32, #tpu.memory_space<vmem>>, vector<8x128xf32>,
    %c0_407 = arith.constant 0 : index
    %c128_408 = arith.constant 128 : index
    %826 = vector.load %arg16[%c0_407, %c128_408] : memref<8x256xf32, #tpu.memory_space<vmem>>, vector<8x128xf32>
    %827 = arith.select %819, %805, %826 : vector<8x128xi1>, vector<8x128xf32>
    %c0_409 = arith.constant 0 : index
    %c128_410 = arith.constant 128 : index
    %828 = vector.load %arg16[%c0_409, %c128_410] : memref<8x256xf32, #tpu.memory_space<vmem>>, vector<8x128xf32>
    tpu.vector_store %arg16[%c0_409, %c128_410], %827 {strides = array<i32>} : memref<8x256xf32, #tpu.memory_space<vmem>>, vector<8x128xf32>,
    %c0_411 = arith.constant 0 : index
    %c128_412 = arith.constant 128 : index
    %829 = vector.load %arg17[%c0_411, %c128_412] : memref<8x256xf32, #tpu.memory_space<vmem>>, vector<8x128xf32>
    %830 = arith.select %819, %803, %829 : vector<8x128xi1>, vector<8x128xf32>
    %c0_413 = arith.constant 0 : index
    %c128_414 = arith.constant 128 : index
    %831 = vector.load %arg17[%c0_413, %c128_414] : memref<8x256xf32, #tpu.memory_space<vmem>>, vector<8x128xf32>
    tpu.vector_store %arg17[%c0_413, %c128_414], %830 {strides = array<i32>} : memref<8x256xf32, #tpu.memory_space<vmem>>, vector<8x128xf32>,
    %c7_i32_415 = arith.constant 7 : i32
    %c7_i32_416 = arith.constant 7 : i32
    %832 = arith.subi %c7_i32_416, %c7_i32_415 : i32
    %c0_417 = arith.constant 0 : index
    %c0_418 = arith.constant 0 : index
    %833 = vector.load %arg16[%c0_417, %c0_418] : memref<8x256xf32, #tpu.memory_space<vmem>>, vector<8x256xf32>
    %834 = arith.truncf %833 : vector<8x256xf32> to vector<8x256xbf16>
    %c0_419 = arith.constant 0 : index
    %c0_420 = arith.constant 0 : index
    %835 = vector.load %arg9[%c0_419, %c0_420] : memref<256x1024xbf16, #tpu.memory_space<vmem>>, vector<256x1024xbf16>
    %cst_421 = arith.constant dense<0.000000e+00> : vector<8x1024xf32>
    %836 = tpu.matmul %834, %835, %cst_421 {dimension_numbers = #tpu.dot_dimension_numbers<[1], [0], [0], [1], [0, 0, 1, 1], [], []>} : vector<8x256xbf16>, vector<256x1024xbf16>, vector<8x1024xf32> -> vector<8x1024xf32>
    %837 = arith.index_cast %c7_i32_415 : i32 to index
    %c0_422 = arith.constant 0 : index
    %c0_423 = arith.constant 0 : index
    %838 = vector.load %arg15[%837, %c0_422, %c0_423] : memref<8x8x1024xf32, #tpu.memory_space<vmem>>, vector<1x8x512xf32>
    %839 = vector.shape_cast %838 : vector<1x8x512xf32> to vector<8x512xf32>
    %840 = vector.extract_strided_slice %836 {offsets = [0, 0], sizes = [8, 512], strides = [1, 1]} : vector<8x1024xf32> to vector<8x512xf32>
    %841 = arith.addf %839, %840 : vector<8x512xf32>
    %842 = arith.index_cast %832 : i32 to index
    %c0_424 = arith.constant 0 : index
    %c512_425 = arith.constant 512 : index
    %843 = vector.load %arg15[%842, %c0_424, %c512_425] : memref<8x8x1024xf32, #tpu.memory_space<vmem>>, vector<1x8x512xf32>
    %844 = vector.shape_cast %843 : vector<1x8x512xf32> to vector<8x512xf32>
    %845 = vector.extract_strided_slice %836 {offsets = [0, 512], sizes = [8, 512], strides = [1, 1]} : vector<8x1024xf32> to vector<8x512xf32>
    %846 = arith.addf %844, %845 : vector<8x512xf32>
    %c0_426 = arith.constant 0 : index
    %c0_427 = arith.constant 0 : index
    %847 = vector.load %arg17[%c0_426, %c0_427] : memref<8x256xf32, #tpu.memory_space<vmem>>, vector<8x128xf32>
    %848 = vector.extract_strided_slice %841 {offsets = [0, 0], sizes = [8, 128], strides = [1, 1]} : vector<8x512xf32> to vector<8x128xf32>
    %849 = arith.negf %848 : vector<8x128xf32>
    %850 = math.exp %849 : vector<8x128xf32>
    %cst_428 = arith.constant 1.000000e+00 : f32
    %851 = vector.broadcast %cst_428 : f32 to vector<8x128xf32>
    %852 = arith.addf %851, %850 : vector<8x128xf32>
    %853 = arith.divf %851, %852 : vector<8x128xf32>
    %854 = vector.extract_strided_slice %841 {offsets = [0, 128], sizes = [8, 128], strides = [1, 1]} : vector<8x512xf32> to vector<8x128xf32>
    %855 = arith.negf %854 : vector<8x128xf32>
    %856 = math.exp %855 : vector<8x128xf32>
    %cst_429 = arith.constant 1.000000e+00 : f32
    %857 = vector.broadcast %cst_429 : f32 to vector<8x128xf32>
    %858 = arith.addf %857, %856 : vector<8x128xf32>
    %859 = arith.divf %857, %858 : vector<8x128xf32>
    %860 = vector.extract_strided_slice %841 {offsets = [0, 256], sizes = [8, 128], strides = [1, 1]} : vector<8x512xf32> to vector<8x128xf32>
    %861 = math.tanh %860 : vector<8x128xf32>
    %862 = vector.extract_strided_slice %841 {offsets = [0, 384], sizes = [8, 128], strides = [1, 1]} : vector<8x512xf32> to vector<8x128xf32>
    %863 = arith.negf %862 : vector<8x128xf32>
    %864 = math.exp %863 : vector<8x128xf32>
    %cst_430 = arith.constant 1.000000e+00 : f32
    %865 = vector.broadcast %cst_430 : f32 to vector<8x128xf32>
    %866 = arith.addf %865, %864 : vector<8x128xf32>
    %867 = arith.divf %865, %866 : vector<8x128xf32>
    %868 = arith.mulf %859, %847 : vector<8x128xf32>
    %869 = arith.mulf %853, %861 : vector<8x128xf32>
    %870 = arith.addf %868, %869 : vector<8x128xf32>
    %871 = math.tanh %870 : vector<8x128xf32>
    %872 = arith.mulf %867, %871 : vector<8x128xf32>
    %c0_431 = arith.constant 0 : index
    %c128_432 = arith.constant 128 : index
    %873 = vector.load %arg17[%c0_431, %c128_432] : memref<8x256xf32, #tpu.memory_space<vmem>>, vector<8x128xf32>
    %874 = vector.extract_strided_slice %846 {offsets = [0, 0], sizes = [8, 128], strides = [1, 1]} : vector<8x512xf32> to vector<8x128xf32>
    %875 = arith.negf %874 : vector<8x128xf32>
    %876 = math.exp %875 : vector<8x128xf32>
    %cst_433 = arith.constant 1.000000e+00 : f32
    %877 = vector.broadcast %cst_433 : f32 to vector<8x128xf32>
    %878 = arith.addf %877, %876 : vector<8x128xf32>
    %879 = arith.divf %877, %878 : vector<8x128xf32>
    %880 = vector.extract_strided_slice %846 {offsets = [0, 128], sizes = [8, 128], strides = [1, 1]} : vector<8x512xf32> to vector<8x128xf32>
    %881 = arith.negf %880 : vector<8x128xf32>
    %882 = math.exp %881 : vector<8x128xf32>
    %cst_434 = arith.constant 1.000000e+00 : f32
    %883 = vector.broadcast %cst_434 : f32 to vector<8x128xf32>
    %884 = arith.addf %883, %882 : vector<8x128xf32>
    %885 = arith.divf %883, %884 : vector<8x128xf32>
    %886 = vector.extract_strided_slice %846 {offsets = [0, 256], sizes = [8, 128], strides = [1, 1]} : vector<8x512xf32> to vector<8x128xf32>
    %887 = math.tanh %886 : vector<8x128xf32>
    %888 = vector.extract_strided_slice %846 {offsets = [0, 384], sizes = [8, 128], strides = [1, 1]} : vector<8x512xf32> to vector<8x128xf32>
    %889 = arith.negf %888 : vector<8x128xf32>
    %890 = math.exp %889 : vector<8x128xf32>
    %cst_435 = arith.constant 1.000000e+00 : f32
    %891 = vector.broadcast %cst_435 : f32 to vector<8x128xf32>
    %892 = arith.addf %891, %890 : vector<8x128xf32>
    %893 = arith.divf %891, %892 : vector<8x128xf32>
    %894 = arith.mulf %885, %873 : vector<8x128xf32>
    %895 = arith.mulf %879, %887 : vector<8x128xf32>
    %896 = arith.addf %894, %895 : vector<8x128xf32>
    %897 = math.tanh %896 : vector<8x128xf32>
    %898 = arith.mulf %893, %897 : vector<8x128xf32>
    %899 = arith.index_cast %c7_i32_415 : i32 to index
    %c0_436 = arith.constant 0 : index
    %c0_437 = arith.constant 0 : index
    %900 = vector.load %arg4[%899, %c0_436, %c0_437] : memref<8x8x1xf32, #tpu.memory_space<vmem>>, vector<1x8x1xf32>
    %901 = vector.shape_cast %900 : vector<1x8x1xf32> to vector<8x1xf32>
    %902 = vector.shape_cast %901 : vector<8x1xf32> to vector<8x1xf32>
    %903 = vector.broadcast %902 : vector<8x1xf32> to vector<8x128xf32>
    %cst_438 = arith.constant 0.000000e+00 : f32
    %904 = vector.broadcast %cst_438 : f32 to vector<8x128xf32>
    %905 = arith.cmpf ogt, %903, %904 : vector<8x128xf32>
    %906 = arith.index_cast %832 : i32 to index
    %c0_439 = arith.constant 0 : index
    %c0_440 = arith.constant 0 : index
    %907 = vector.load %arg5[%906, %c0_439, %c0_440] : memref<8x8x1xf32, #tpu.memory_space<vmem>>, vector<1x8x1xf32>
    %908 = vector.shape_cast %907 : vector<1x8x1xf32> to vector<8x1xf32>
    %909 = vector.shape_cast %908 : vector<8x1xf32> to vector<8x1xf32>
    %910 = vector.broadcast %909 : vector<8x1xf32> to vector<8x128xf32>
    %cst_441 = arith.constant 0.000000e+00 : f32
    %911 = vector.broadcast %cst_441 : f32 to vector<8x128xf32>
    %912 = arith.cmpf ogt, %910, %911 : vector<8x128xf32>
    %c0_442 = arith.constant 0 : index
    %c0_443 = arith.constant 0 : index
    %913 = vector.load %arg16[%c0_442, %c0_443] : memref<8x256xf32, #tpu.memory_space<vmem>>, vector<8x128xf32>
    %914 = arith.select %905, %872, %913 : vector<8x128xi1>, vector<8x128xf32>
    %c0_444 = arith.constant 0 : index
    %c0_445 = arith.constant 0 : index
    %915 = vector.load %arg16[%c0_444, %c0_445] : memref<8x256xf32, #tpu.memory_space<vmem>>, vector<8x128xf32>
    tpu.vector_store %arg16[%c0_444, %c0_445], %914 {strides = array<i32>} : memref<8x256xf32, #tpu.memory_space<vmem>>, vector<8x128xf32>,
    %c0_446 = arith.constant 0 : index
    %c0_447 = arith.constant 0 : index
    %916 = vector.load %arg17[%c0_446, %c0_447] : memref<8x256xf32, #tpu.memory_space<vmem>>, vector<8x128xf32>
    %917 = arith.select %905, %870, %916 : vector<8x128xi1>, vector<8x128xf32>
    %c0_448 = arith.constant 0 : index
    %c0_449 = arith.constant 0 : index
    %918 = vector.load %arg17[%c0_448, %c0_449] : memref<8x256xf32, #tpu.memory_space<vmem>>, vector<8x128xf32>
    tpu.vector_store %arg17[%c0_448, %c0_449], %917 {strides = array<i32>} : memref<8x256xf32, #tpu.memory_space<vmem>>, vector<8x128xf32>,
    %c0_450 = arith.constant 0 : index
    %c128_451 = arith.constant 128 : index
    %919 = vector.load %arg16[%c0_450, %c128_451] : memref<8x256xf32, #tpu.memory_space<vmem>>, vector<8x128xf32>
    %920 = arith.select %912, %898, %919 : vector<8x128xi1>, vector<8x128xf32>
    %c0_452 = arith.constant 0 : index
    %c128_453 = arith.constant 128 : index
    %921 = vector.load %arg16[%c0_452, %c128_453] : memref<8x256xf32, #tpu.memory_space<vmem>>, vector<8x128xf32>
    tpu.vector_store %arg16[%c0_452, %c128_453], %920 {strides = array<i32>} : memref<8x256xf32, #tpu.memory_space<vmem>>, vector<8x128xf32>,
    %c0_454 = arith.constant 0 : index
    %c128_455 = arith.constant 128 : index
    %922 = vector.load %arg17[%c0_454, %c128_455] : memref<8x256xf32, #tpu.memory_space<vmem>>, vector<8x128xf32>
    %923 = arith.select %912, %896, %922 : vector<8x128xi1>, vector<8x128xf32>
    %c0_456 = arith.constant 0 : index
    %c128_457 = arith.constant 128 : index
    %924 = vector.load %arg17[%c0_456, %c128_457] : memref<8x256xf32, #tpu.memory_space<vmem>>, vector<8x128xf32>
    tpu.vector_store %arg17[%c0_456, %c128_457], %923 {strides = array<i32>} : memref<8x256xf32, #tpu.memory_space<vmem>>, vector<8x128xf32>,
    %c8_i32_458 = arith.constant 8 : i32
    %c0_i32_459 = arith.constant 0 : i32
    %925 = arith.cmpi eq, %arg1, %c0_i32_459 : i32
    %926 = arith.extui %925 : i1 to i32
    %c0_i32_460 = arith.constant 0 : i32
    %927 = arith.cmpi ne, %926, %c0_i32_460 : i32
    scf.if %927 {
      %c0_461 = arith.constant 0 : index
      %c0_462 = arith.constant 0 : index
      %928 = vector.load %arg16[%c0_461, %c0_462] : memref<8x256xf32, #tpu.memory_space<vmem>>, vector<8x256xf32>
      %929 = arith.truncf %928 : vector<8x256xf32> to vector<8x256xbf16>
      %c0_463 = arith.constant 0 : index
      %c0_464 = arith.constant 0 : index
      %930 = vector.load %arg10[%c0_463, %c0_464] : memref<256x128xbf16, #tpu.memory_space<vmem>>, vector<256x128xbf16>
      %cst_465 = arith.constant dense<0.000000e+00> : vector<8x128xf32>
      %931 = tpu.matmul %929, %930, %cst_465 {dimension_numbers = #tpu.dot_dimension_numbers<[1], [0], [0], [1], [0, 0, 1, 1], [], []>} : vector<8x256xbf16>, vector<256x128xbf16>, vector<8x128xf32> -> vector<8x128xf32>
      %c0_466 = arith.constant 0 : index
      %c0_467 = arith.constant 0 : index
      %932 = vector.load %arg11[%c0_466, %c0_467] : memref<1x128xf32, #tpu.memory_space<vmem>>, vector<1x128xf32>
      %933 = vector.broadcast %932 : vector<1x128xf32> to vector<8x128xf32>
      %934 = arith.addf %931, %933 : vector<8x128xf32>
      %cst_468 = arith.constant 0.000000e+00 : f32
      %935 = vector.broadcast %cst_468 : f32 to vector<8x128xf32>
      %936 = arith.maximumf %934, %935 : vector<8x128xf32>
      %937 = arith.truncf %936 : vector<8x128xf32> to vector<8x128xbf16>
      %c0_469 = arith.constant 0 : index
      %c0_470 = arith.constant 0 : index
      %938 = vector.load %arg12[%c0_469, %c0_470] : memref<128x128xbf16, #tpu.memory_space<vmem>>, vector<128x128xbf16>
      %cst_471 = arith.constant dense<0.000000e+00> : vector<8x128xf32>
      %939 = tpu.matmul %937, %938, %cst_471 {dimension_numbers = #tpu.dot_dimension_numbers<[1], [0], [0], [1], [0, 0, 1, 1], [], []>} : vector<8x128xbf16>, vector<128x128xbf16>, vector<8x128xf32> -> vector<8x128xf32>
      %c0_472 = arith.constant 0 : index
      %c0_473 = arith.constant 0 : index
      %940 = vector.load %arg13[%c0_472, %c0_473] : memref<1x128xf32, #tpu.memory_space<vmem>>, vector<1x128xf32>
      %941 = vector.broadcast %940 : vector<1x128xf32> to vector<8x128xf32>
      %942 = arith.addf %939, %941 : vector<8x128xf32>
      %c0_474 = arith.constant 0 : index
      %c0_475 = arith.constant 0 : index
      %943 = vector.load %arg14[%c0_474, %c0_475] : memref<8x128xf32, #tpu.memory_space<vmem>>, vector<8x128xf32>
      tpu.vector_store %arg14[%c0_474, %c0_475], %942 {strides = array<i32>} : memref<8x128xf32, #tpu.memory_space<vmem>>, vector<8x128xf32>,
    } else {
    }
    return
  }
  func.func @transform_0(%arg0: i32, %arg1: i32) -> (i32, i32, i32) {
    %c0_i32 = arith.constant 0 : i32
    %c0_i32_0 = arith.constant 0 : i32
    return %arg1, %arg0, %c0_i32 : i32, i32, i32
  }
  func.func @transform_1(%arg0: i32, %arg1: i32) -> (i32, i32, i32) {
    %c0_i32 = arith.constant 0 : i32
    %0 = arith.subi %c0_i32, %arg1 : i32
    %c0_i32_0 = arith.constant 0 : i32
    %c0_i32_1 = arith.constant 0 : i32
    return %0, %arg0, %c0_i32_0 : i32, i32, i32
  }
  func.func @transform_2(%arg0: i32, %arg1: i32) -> (i32, i32, i32) {
    %c0_i32 = arith.constant 0 : i32
    %c0_i32_0 = arith.constant 0 : i32
    return %arg1, %arg0, %c0_i32 : i32, i32, i32
  }
  func.func @transform_3(%arg0: i32, %arg1: i32) -> (i32, i32, i32) {
    %c0_i32 = arith.constant 0 : i32
    %0 = arith.subi %c0_i32, %arg1 : i32
    %c0_i32_0 = arith.constant 0 : i32
    %c0_i32_1 = arith.constant 0 : i32
    return %0, %arg0, %c0_i32_0 : i32, i32, i32
  }
  func.func @transform_4(%arg0: i32, %arg1: i32) -> (i32, i32) {
    %c0_i32 = arith.constant 0 : i32
    %c0_i32_0 = arith.constant 0 : i32
    %c0_i32_1 = arith.constant 0 : i32
    return %c0_i32, %c0_i32_0 : i32, i32
  }
  func.func @transform_5(%arg0: i32, %arg1: i32) -> (i32, i32) {
    %c0_i32 = arith.constant 0 : i32
    %c0_i32_0 = arith.constant 0 : i32
    %c0_i32_1 = arith.constant 0 : i32
    return %c0_i32, %c0_i32_0 : i32, i32
  }
  func.func @transform_6(%arg0: i32, %arg1: i32) -> (i32, i32) {
    %c0_i32 = arith.constant 0 : i32
    %c0_i32_0 = arith.constant 0 : i32
    %c0_i32_1 = arith.constant 0 : i32
    return %c0_i32, %c0_i32_0 : i32, i32
  }
  func.func @transform_7(%arg0: i32, %arg1: i32) -> (i32, i32) {
    %c0_i32 = arith.constant 0 : i32
    %c0_i32_0 = arith.constant 0 : i32
    %c0_i32_1 = arith.constant 0 : i32
    return %c0_i32, %c0_i32_0 : i32, i32
  }
  func.func @transform_8(%arg0: i32, %arg1: i32) -> (i32, i32) {
    %c0_i32 = arith.constant 0 : i32
    %c0_i32_0 = arith.constant 0 : i32
    %c0_i32_1 = arith.constant 0 : i32
    return %c0_i32, %c0_i32_0 : i32, i32
  }
  func.func @transform_9(%arg0: i32, %arg1: i32) -> (i32, i32) {
    %c0_i32 = arith.constant 0 : i32
    %c0_i32_0 = arith.constant 0 : i32
    %c0_i32_1 = arith.constant 0 : i32
    return %c0_i32, %c0_i32_0 : i32, i32
  }
  func.func @transform_10(%arg0: i32, %arg1: i32) -> (i32, i32) {
    %c0_i32 = arith.constant 0 : i32
    %c0_i32_0 = arith.constant 0 : i32
    %c0_i32_1 = arith.constant 0 : i32
    return %c0_i32, %c0_i32_0 : i32, i32
  }
  func.func @transform_11(%arg0: i32, %arg1: i32) -> (i32, i32) {
    %c0_i32 = arith.constant 0 : i32
    %c0_i32_0 = arith.constant 0 : i32
    %c0_i32_1 = arith.constant 0 : i32
    return %c0_i32, %c0_i32_0 : i32, i32
  }
  func.func @transform_12(%arg0: i32, %arg1: i32) -> (i32, i32) {
    %c0_i32 = arith.constant 0 : i32
    %c0_i32_0 = arith.constant 0 : i32
    return %arg0, %c0_i32 : i32, i32
  }
}

</mosaic_0001>

<bundles_post_ra>
// kernel: relation_classifier.1
= control target key start
LH: loop header
LB: loop body
LE: loop exit
PB: predicated region body
PF: predicated region fallthrough
CT: control target
= control target key end

     0   :  { %v12781_v1 = vmov 0   ;;  %vm166_vm0 = vcmask 261120   ;;  %v17174_v60 = vmov 0.0|0.0   ;;  %s17161_s4 = inlined_call_operand.vmem [shape: bf16[32,512], index: 4, kind: input, shape index: {}]   ;;  %s17162_s5 = inlined_call_operand.vmem [shape: bf16[32,512], index: 5, kind: input, shape index: {}]   ;;  %s17163_s0 = inlined_call_operand.vmem [shape: bf16[8,8,32], index: 0, kind: input, shape index: {}, may-alias: {0,1}]   ;;  %s17164_s1 = inlined_call_operand.vmem [shape: bf16[8,8,32], index: 1, kind: input, shape index: {}, may-alias: {0,1}]   ;;  %s17165_s7 = inlined_call_operand.vmem [shape: bf16[256,1024], index: 7, kind: input, shape index: {}]   ;;  %s17166_s3 = inlined_call_operand.vmem [shape: f32[8,8,1], index: 3, kind: input, shape index: {}, may-alias: {2,3}]   ;;  %s17167_s2 = inlined_call_operand.vmem [shape: f32[8,8,1], index: 2, kind: input, shape index: {}, may-alias: {2,3}]   ;;  %s17168_s6 = inlined_call_operand.vmem [shape: f32[1,1024], index: 6, kind: input, shape index: {}]   ;;  %s17169_s8 = inlined_call_operand.vmem [shape: bf16[256,128], index: 8, kind: input, shape index: {}]   ;;  %s17170_s10 = inlined_call_operand.vmem [shape: bf16[128,128], index: 10, kind: input, shape index: {}]   ;;  %s17171_s9 = inlined_call_operand.vmem [shape: f32[1,128], index: 9, kind: input, shape index: {}]   ;;  %s17172_s11 = inlined_call_operand.vmem [shape: f32[1,128], index: 11, kind: input, shape index: {}]   ;;  %s17173_s12 = inlined_call_operand.vmem [shape: f32[8,128], index: 12, kind: output, shape index: {}]  }
   0x1   :  { %v12853_v0 = vld [vmem:[%s17161_s4 + $0x4] ss:$16 sps:$4 sm:$0xff]   ;;  %202 = vmatprep.mubr.bf16.mxu0 %v12781_v1  ;;  %243 = vmatprep.mubr.bf16.mxu1 %v12781_v1  ;;  %v12860_v2 = vld [vmem:[%s17161_s4 + $0xc] ss:$16 sps:$4 sm:$0xff]   ;;  %v12868_v3 = vld [vmem:[%s17161_s4] ss:$16 sps:$4 sm:$0xff]  }
   0x2   :  { %12475 = vset.pattern.permute.xlu0 %v12781_v1  ;;  %12476 = vset.pattern.permute.xlu1 %v12781_v1  ;;  %v12873_v4 = vld [vmem:[%s17161_s4 + $0x8] ss:$16 sps:$4 sm:$0xff]   ;;  %v12879_v5 = vld [vmem:[%s17161_s4 + $0x24] ss:$16 sps:$4 sm:$0xff]   ;;  %v12886_v6 = vld [vmem:[%s17161_s4 + $0x2c] ss:$16 sps:$4 sm:$0xff]  }
   0x3   :  { %170 = vmatprep.subr.bf16.mxu0 %v12853_v0  ;;  %211 = vmatprep.subr.bf16.mxu1 %v12860_v2  ;;  %v12891_v7 = vld [vmem:[%s17161_s4 + $0x20] ss:$16 sps:$4 sm:$0xff]   ;;  %v12897_v8 = vld [vmem:[%s17161_s4 + $0x28] ss:$16 sps:$4 sm:$0xff]   ;;  %v12908_v10 = vld [vmem:[%s17162_s5 + $0x4] ss:$16 sps:$4 sm:$0xff]  }
   0x4   :  { %171 = vmatpush1.bf16.msra.mxu0 %v12868_v3  ;;  %212 = vmatpush1.bf16.msra.mxu1 %v12873_v4  ;;  %v12903_v9 = vld [vmem:[%s17162_s5] ss:$16 sps:$4 sm:$0xff]   ;;  %v12913_v11 = vld [vmem:[%s17162_s5 + $0x8] ss:$16 sps:$4 sm:$0xff]   ;;  %v12918_v12 = vld [vmem:[%s17162_s5 + $0xc] ss:$16 sps:$4 sm:$0xff]  }
   0x5   :  { %172 = vmatprep.subr.bf16.mxu0 %v12879_v5  ;;  %213 = vmatprep.subr.bf16.mxu1 %v12886_v6  ;;  %v96_v13 = vld [vmem:[%s17163_s0] sm:$0xf]  ;;  %v12930_v14 = vld [vmem:[%s17162_s5 + $0x24] ss:$16 sps:$4 sm:$0xff]   ;;  %v12935_v15 = vld [vmem:[%s17162_s5 + $0x2c] ss:$16 sps:$4 sm:$0xff]  }
   0x6   :  { %v12944_v16 = vld [vmem:[%s17162_s5 + $0x20] ss:$16 sps:$4 sm:$0xff]   ;;  %v12949_v17 = vld [vmem:[%s17162_s5 + $0x28] ss:$16 sps:$4 sm:$0xff]   ;;  %v10938_v19 = vld [vmem:[%s17163_s0 + $0x4] sm:$0xf] }
   0x7   :  { %v256_v18 = vld [vmem:[%s17164_s1] sm:$0xf]  ;;  %v10949_v20 = vld [vmem:[%s17164_s1 + $0x4] sm:$0xf]  ;;  %v10960_v21 = vld [vmem:[%s17163_s0 + $0x8] sm:$0xf] }
   0x8   :  { %173 = vmatpush1.bf16.msra.mxu0 %v12891_v7  ;;  %214 = vmatpush1.bf16.msra.mxu1 %v12897_v8  ;;  %v10971_v22 = vld [vmem:[%s17164_s1 + $0x8] sm:$0xf]  ;;  %v10982_v23 = vld [vmem:[%s17163_s0 + $0xc] sm:$0xf]  ;;  %v11004_v25 = vld [vmem:[%s17163_s0 + $0x10] sm:$0xf] }
   0x9   :  { %329 = vmatprep.subr.bf16.mxu0 %v12908_v10  ;;  %370 = vmatprep.subr.bf16.mxu1 %v12918_v12  ;;  %v10993_v24 = vld [vmem:[%s17164_s1 + $0xc] sm:$0xf]  ;;  %v11015_v26 = vld [vmem:[%s17164_s1 + $0x10] sm:$0xf]  ;;  %v11026_v27 = vld [vmem:[%s17163_s0 + $0x14] sm:$0xf] }
   0xa   :  { %v11037_v28 = vld [vmem:[%s17164_s1 + $0x14] sm:$0xf]  ;;  %v11048_v29 = vld [vmem:[%s17163_s0 + $0x18] sm:$0xf]  ;;  %v11070_v31 = vld [vmem:[%s17163_s0 + $0x1c] sm:$0xf] }
   0xb   :  { %10926 = vmatmul.mubr.msk.bf16.vlgmr.msra.gmra.mrb[0].mxu0 %vm166_vm0, %v96_v13  ;;  %10927 = vmatmul.mubr.msk.bf16.vlgmr.msra.gmra.mrb[0].mxu1 %vm166_vm0, %v96_v13  ;;  %v11059_v30 = vld [vmem:[%s17164_s1 + $0x18] sm:$0xf]  ;;  %v2372_v32 = vld [vmem:[%s17165_s7] sm:$0xff]  ;;  %v2373_v34 = vld [vmem:[%s17165_s7 + $0x8] sm:$0xff] }
   0xc   :  { %330 = vmatpush1.bf16.msra.mxu0 %v12903_v9  ;;  %371 = vmatpush1.bf16.msra.mxu1 %v12913_v11  ;;  %v2376_v33 = vld [vmem:[%s17165_s7 + $0x20] sm:$0xff]  ;;  %v2377_v35 = vld [vmem:[%s17165_s7 + $0x28] sm:$0xff]  ;;  %v11081_v44 = vld [vmem:[%s17164_s1 + $0x1c] sm:$0xf] }
   0xd   :  { %331 = vmatprep.subr.bf16.mxu0 %v12930_v14  ;;  %372 = vmatprep.subr.bf16.mxu1 %v12935_v15  ;;  %v13175_v36 = vcombine.high %v2372_v32, %v2376_v33  ;;  %v13177_v37 = vcombine.high %v2373_v34, %v2377_v35  ;;  %v2380_v38 = vld [vmem:[%s17165_s7 + $0x40] sm:$0xff]  ;;  %v2381_v40 = vld [vmem:[%s17165_s7 + $0x48] sm:$0xff]  ;;  %v13195_v42 = vcombine.low %v2372_v32, %v2376_v33  ;;  %v11226_v53 = vld [vmem:[%s17166_s3 + $0x38] sm:$0xff] }
   0xe   :  { %361 = vmatprep.mubr.bf16.mxu0 %v12781_v1  ;;  %402 = vmatprep.mubr.bf16.mxu1 %v12781_v1  ;;  %v2384_v39 = vld [vmem:[%s17165_s7 + $0x60] sm:$0xff]  ;;  %v2385_v41 = vld [vmem:[%s17165_s7 + $0x68] sm:$0xff]  ;;  %v13197_v43 = vcombine.low %v2373_v34, %v2377_v35  ;;  %v11906_v35 = vld [vmem:[%s17166_s3 + $0x10] sm:$0xff] }
   0xf   :  { %v13204_v45 = vcombine.high %v2380_v38, %v2384_v39  ;;  %v13206_v46 = vcombine.high %v2381_v40, %v2385_v41  ;;  %v2388_v47 = vld [vmem:[%s17165_s7 + $0x80] sm:$0xff]  ;;  %v2389_v49 = vld [vmem:[%s17165_s7 + $0x88] sm:$0xff]  ;;  %v13224_v51 = vcombine.low %v2380_v38, %v2384_v39  ;;  %v13226_v52 = vcombine.low %v2381_v40, %v2385_v41  ;;  %3381 = vperm.xlu0 %12475, %v11226_v53  }
  0x10   :  { %332 = vmatpush1.bf16.msra.mxu0 %v12944_v16  ;;  %373 = vmatpush1.bf16.msra.mxu1 %v12949_v17  ;;  %v2392_v48 = vld [vmem:[%s17165_s7 + $0xa0] sm:$0xff]  ;;  %v2393_v50 = vld [vmem:[%s17165_s7 + $0xa8] sm:$0xff] }
  0x11   :  { %468 = vmatprep.subr.bf16.mxu0 %v12853_v0  ;;  %509 = vmatprep.subr.bf16.mxu1 %v12860_v2  ;;  %v13233_v54 = vcombine.high %v2388_v47, %v2392_v48  ;;  %v13235_v55 = vcombine.high %v2389_v49, %v2393_v50  ;;  %v2396_v56 = vld [vmem:[%s17165_s7 + $0xc0] sm:$0xff]  ;;  %v2397_v58 = vld [vmem:[%s17165_s7 + $0xc8] sm:$0xff]  ;;  %v13253_v61 = vcombine.low %v2388_v47, %v2392_v48 }
  0x12   :  { %v2400_v57 = vld [vmem:[%s17165_s7 + $0xe0] sm:$0xff]  ;;  %v2401_v59 = vld [vmem:[%s17165_s7 + $0xe8] sm:$0xff]  ;;  %v13255_v62 = vcombine.low %v2389_v49, %v2393_v50 }
  0x13   :  { %10936 = vmatmul.mubr.msk.bf16.vlgmr.msra.gmra.mrb[4].mxu0 %vm166_vm0, %v256_v18  ;;  %10937 = vmatmul.mubr.msk.bf16.vlgmr.msra.gmra.mrb[4].mxu1 %vm166_vm0, %v256_v18  ;;  %v3370_v63 = vld [vmem:[%s17167_s2] sm:$0xff]  ;;  %v2413_v13 = vld [vmem:[%s17165_s7 + $0x148] sm:$0xff] }
  0x14   :  { %469 = vmatpush1.bf16.msra.mxu0 %v12868_v3  ;;  %510 = vmatpush1.bf16.msra.mxu1 %v12873_v4  ;;  %v2433_v32 = vld [vmem:[%s17165_s7 + $0x1e8] sm:$0xff]  ;;  %v2436_v40 = vld [vmem:[%s17165_s7 + $0x200] sm:$0xff] }
  0x15   :  { %470 = vmatprep.subr.bf16.mxu0 %v12879_v5  ;;  %511 = vmatprep.subr.bf16.mxu1 %v12886_v6  ;;  %v2440_v41 = vld [vmem:[%s17165_s7 + $0x220] sm:$0xff]  ;;  %v2441_v47 = vld [vmem:[%s17165_s7 + $0x228] sm:$0xff] }
  0x16   :  { %500 = vmatprep.mubr.bf16.mxu0 %v12781_v1  ;;  %541 = vmatprep.mubr.bf16.mxu1 %v12781_v1  ;;  %v12042_v50 = vld [vmem:[%s17166_s3 + $0x8] sm:$0xff]  ;;  %v13397_v53 = vcombine.high %v2436_v40, %v2440_v41 }
  0x17   :  { %3373 = vperm.xlu0 %12475, %v3370_v63   ;;  %v2449_v63 = vld [vmem:[%s17165_s7 + $0x268] sm:$0xff] }
  0x18   :  { %471 = vmatpush1.bf16.msra.mxu0 %v12891_v7  ;;  %512 = vmatpush1.bf16.msra.mxu1 %v12897_v8 }
  0x19   :  { %608 = vmatprep.subr.bf16.mxu0 %v12908_v10  ;;  %649 = vmatprep.subr.bf16.mxu1 %v12918_v12 }
  0x1b   :  { %10947 = vmatmul.mubr.msk.bf16.vlgmr.msra.gmra.mrb[8].mxu0 %vm166_vm0, %v10938_v19  ;;  %10948 = vmatmul.mubr.msk.bf16.vlgmr.msra.gmra.mrb[8].mxu1 %vm166_vm0, %v10938_v19 }
  0x1c   :  { %609 = vmatpush1.bf16.msra.mxu0 %v12903_v9  ;;  %650 = vmatpush1.bf16.msra.mxu1 %v12913_v11 }
  0x1d   :  { %610 = vmatprep.subr.bf16.mxu0 %v12930_v14  ;;  %651 = vmatprep.subr.bf16.mxu1 %v12935_v15 }
  0x1e   :  { %640 = vmatprep.mubr.bf16.mxu0 %v12781_v1  ;;  %681 = vmatprep.mubr.bf16.mxu1 %v12781_v1 }
  0x20   :  { %611 = vmatpush1.bf16.msra.mxu0 %v12944_v16  ;;  %652 = vmatpush1.bf16.msra.mxu1 %v12949_v17 }
  0x21   :  { %747 = vmatprep.subr.bf16.mxu0 %v12853_v0  ;;  %788 = vmatprep.subr.bf16.mxu1 %v12860_v2 }
  0x23   :  { %10958 = vmatmul.mubr.msk.bf16.vlgmr.msra.gmra.mrb[12].mxu0 %vm166_vm0, %v10949_v20  ;;  %10959 = vmatmul.mubr.msk.bf16.vlgmr.msra.gmra.mrb[12].mxu1 %vm166_vm0, %v10949_v20  ;;  %v2420_v20 = vld [vmem:[%s17165_s7 + $0x180] sm:$0xff] }
  0x24   :  { %748 = vmatpush1.bf16.msra.mxu0 %v12868_v3  ;;  %789 = vmatpush1.bf16.msra.mxu1 %v12873_v4 }
  0x25   :  { %749 = vmatprep.subr.bf16.mxu0 %v12879_v5  ;;  %790 = vmatprep.subr.bf16.mxu1 %v12886_v6 }
  0x26   :  { %779 = vmatprep.mubr.bf16.mxu0 %v12781_v1  ;;  %820 = vmatprep.mubr.bf16.mxu1 %v12781_v1 }
  0x28   :  { %750 = vmatpush1.bf16.msra.mxu0 %v12891_v7  ;;  %791 = vmatpush1.bf16.msra.mxu1 %v12897_v8 }
  0x29   :  { %887 = vmatprep.subr.bf16.mxu0 %v12908_v10  ;;  %928 = vmatprep.subr.bf16.mxu1 %v12918_v12 }
  0x2b   :  { %10969 = vmatmul.mubr.msk.bf16.vlgmr.msra.gmra.mrb[16].mxu0 %vm166_vm0, %v10960_v21  ;;  %10970 = vmatmul.mubr.msk.bf16.vlgmr.msra.gmra.mrb[16].mxu1 %vm166_vm0, %v10960_v21  ;;  %v2424_v21 = vld [vmem:[%s17165_s7 + $0x1a0] sm:$0xff] }
  0x2c   :  { %888 = vmatpush1.bf16.msra.mxu0 %v12903_v9  ;;  %929 = vmatpush1.bf16.msra.mxu1 %v12913_v11  ;;  %v13361_v33 = vcombine.low %v2420_v20, %v2424_v21 }
  0x2d   :  { %889 = vmatprep.subr.bf16.mxu0 %v12930_v14  ;;  %930 = vmatprep.subr.bf16.mxu1 %v12935_v15 }
  0x2e   :  { %919 = vmatprep.mubr.bf16.mxu0 %v12781_v1  ;;  %960 = vmatprep.mubr.bf16.mxu1 %v12781_v1 }
  0x30   :  { %890 = vmatpush1.bf16.msra.mxu0 %v12944_v16  ;;  %931 = vmatpush1.bf16.msra.mxu1 %v12949_v17 }
  0x31   :  { %1026 = vmatprep.subr.bf16.mxu0 %v12853_v0  ;;  %1067 = vmatprep.subr.bf16.mxu1 %v12860_v2 }
  0x33   :  { %10980 = vmatmul.mubr.msk.bf16.vlgmr.msra.gmra.mrb[20].mxu0 %vm166_vm0, %v10971_v22  ;;  %10981 = vmatmul.mubr.msk.bf16.vlgmr.msra.gmra.mrb[20].mxu1 %vm166_vm0, %v10971_v22  ;;  %v2421_v22 = vld [vmem:[%s17165_s7 + $0x188] sm:$0xff] }
  0x34   :  { %1027 = vmatpush1.bf16.msra.mxu0 %v12868_v3  ;;  %1068 = vmatpush1.bf16.msra.mxu1 %v12873_v4 }
  0x35   :  { %1028 = vmatprep.subr.bf16.mxu0 %v12879_v5  ;;  %1069 = vmatprep.subr.bf16.mxu1 %v12886_v6 }
  0x36   :  { %1058 = vmatprep.mubr.bf16.mxu0 %v12781_v1  ;;  %1099 = vmatprep.mubr.bf16.mxu1 %v12781_v1 }
  0x38   :  { %1029 = vmatpush1.bf16.msra.mxu0 %v12891_v7  ;;  %1070 = vmatpush1.bf16.msra.mxu1 %v12897_v8 }
  0x39   :  { %1166 = vmatprep.subr.bf16.mxu0 %v12908_v10  ;;  %1207 = vmatprep.subr.bf16.mxu1 %v12918_v12 }
  0x3b   :  { %10991 = vmatmul.mubr.msk.bf16.vlgmr.msra.gmra.mrb[24].mxu0 %vm166_vm0, %v10982_v23  ;;  %10992 = vmatmul.mubr.msk.bf16.vlgmr.msra.gmra.mrb[24].mxu1 %vm166_vm0, %v10982_v23  ;;  %v2425_v23 = vld [vmem:[%s17165_s7 + $0x1a8] sm:$0xff] }
  0x3c   :  { %1167 = vmatpush1.bf16.msra.mxu0 %v12903_v9  ;;  %1208 = vmatpush1.bf16.msra.mxu1 %v12913_v11  ;;  %v13363_v34 = vcombine.low %v2421_v22, %v2425_v23 }
  0x3d   :  { %1168 = vmatprep.subr.bf16.mxu0 %v12930_v14  ;;  %1209 = vmatprep.subr.bf16.mxu1 %v12935_v15 }
  0x3e   :  { %1198 = vmatprep.mubr.bf16.mxu0 %v12781_v1  ;;  %1239 = vmatprep.mubr.bf16.mxu1 %v12781_v1 }
  0x40   :  { %1169 = vmatpush1.bf16.msra.mxu0 %v12944_v16  ;;  %1210 = vmatpush1.bf16.msra.mxu1 %v12949_v17 }
  0x41   :  { %1305 = vmatprep.subr.bf16.mxu0 %v12853_v0  ;;  %1346 = vmatprep.subr.bf16.mxu1 %v12860_v2 }
  0x43   :  { %11002 = vmatmul.mubr.msk.bf16.vlgmr.msra.gmra.mrb[28].mxu0 %vm166_vm0, %v10993_v24  ;;  %11003 = vmatmul.mubr.msk.bf16.vlgmr.msra.gmra.mrb[28].mxu1 %vm166_vm0, %v10993_v24 }
  0x44   :  { %1306 = vmatpush1.bf16.msra.mxu0 %v12868_v3  ;;  %1347 = vmatpush1.bf16.msra.mxu1 %v12873_v4 }
  0x45   :  { %1307 = vmatprep.subr.bf16.mxu0 %v12879_v5  ;;  %1348 = vmatprep.subr.bf16.mxu1 %v12886_v6 }
  0x46   :  { %1337 = vmatprep.mubr.bf16.mxu0 %v12781_v1  ;;  %1378 = vmatprep.mubr.bf16.mxu1 %v12781_v1 }
  0x48   :  { %1308 = vmatpush1.bf16.msra.mxu0 %v12891_v7  ;;  %1349 = vmatpush1.bf16.msra.mxu1 %v12897_v8 }
  0x49   :  { %1445 = vmatprep.subr.bf16.mxu0 %v12908_v10  ;;  %1486 = vmatprep.subr.bf16.mxu1 %v12918_v12 }
  0x4b   :  { %11013 = vmatmul.mubr.msk.bf16.vlgmr.msra.gmra.mrb[32].mxu0 %vm166_vm0, %v11004_v25  ;;  %11014 = vmatmul.mubr.msk.bf16.vlgmr.msra.gmra.mrb[32].mxu1 %vm166_vm0, %v11004_v25 }
  0x4c   :  { %1446 = vmatpush1.bf16.msra.mxu0 %v12903_v9  ;;  %1487 = vmatpush1.bf16.msra.mxu1 %v12913_v11 }
  0x4d   :  { %1447 = vmatprep.subr.bf16.mxu0 %v12930_v14  ;;  %1488 = vmatprep.subr.bf16.mxu1 %v12935_v15 }
  0x4e   :  { %1477 = vmatprep.mubr.bf16.mxu0 %v12781_v1  ;;  %1518 = vmatprep.mubr.bf16.mxu1 %v12781_v1 }
  0x50   :  { %1448 = vmatpush1.bf16.msra.mxu0 %v12944_v16  ;;  %1489 = vmatpush1.bf16.msra.mxu1 %v12949_v17 }
  0x51   :  { %1584 = vmatprep.subr.bf16.mxu0 %v12853_v0  ;;  %1625 = vmatprep.subr.bf16.mxu1 %v12860_v2 }
  0x53   :  { %11024 = vmatmul.mubr.msk.bf16.vlgmr.msra.gmra.mrb[36].mxu0 %vm166_vm0, %v11015_v26  ;;  %11025 = vmatmul.mubr.msk.bf16.vlgmr.msra.gmra.mrb[36].mxu1 %vm166_vm0, %v11015_v26  ;;  %v11770_v26 = vld [vmem:[%s17166_s3 + $0x18] sm:$0xff] }
  0x54   :  { %1585 = vmatpush1.bf16.msra.mxu0 %v12868_v3  ;;  %1626 = vmatpush1.bf16.msra.mxu1 %v12873_v4 }
  0x55   :  { %1586 = vmatprep.subr.bf16.mxu0 %v12879_v5  ;;  %1627 = vmatprep.subr.bf16.mxu1 %v12886_v6 }
  0x56   :  { %1616 = vmatprep.mubr.bf16.mxu0 %v12781_v1  ;;  %1657 = vmatprep.mubr.bf16.mxu1 %v12781_v1 }
  0x58   :  { %1587 = vmatpush1.bf16.msra.mxu0 %v12891_v7  ;;  %1628 = vmatpush1.bf16.msra.mxu1 %v12897_v8 }
  0x59   :  { %1724 = vmatprep.subr.bf16.mxu0 %v12908_v10  ;;  %1765 = vmatprep.subr.bf16.mxu1 %v12918_v12 }
  0x5b   :  { %11035 = vmatmul.mubr.msk.bf16.vlgmr.msra.gmra.mrb[40].mxu0 %vm166_vm0, %v11026_v27  ;;  %11036 = vmatmul.mubr.msk.bf16.vlgmr.msra.gmra.mrb[40].mxu1 %vm166_vm0, %v11026_v27  ;;  %v13343_v27 = vcombine.high %v2420_v20, %v2424_v21 }
  0x5c   :  { %1725 = vmatpush1.bf16.msra.mxu0 %v12903_v9  ;;  %1766 = vmatpush1.bf16.msra.mxu1 %v12913_v11 }
  0x5d   :  { %1726 = vmatprep.subr.bf16.mxu0 %v12930_v14  ;;  %1767 = vmatprep.subr.bf16.mxu1 %v12935_v15 }
  0x5e   :  { %1756 = vmatprep.mubr.bf16.mxu0 %v12781_v1  ;;  %1797 = vmatprep.mubr.bf16.mxu1 %v12781_v1 }
  0x60   :  { %1727 = vmatpush1.bf16.msra.mxu0 %v12944_v16  ;;  %1768 = vmatpush1.bf16.msra.mxu1 %v12949_v17 }
  0x61   :  { %1863 = vmatprep.subr.bf16.mxu0 %v12853_v0  ;;  %1904 = vmatprep.subr.bf16.mxu1 %v12860_v2 }
  0x63   :  { %11046 = vmatmul.mubr.msk.bf16.vlgmr.msra.gmra.mrb[44].mxu0 %vm166_vm0, %v11037_v28  ;;  %11047 = vmatmul.mubr.msk.bf16.vlgmr.msra.gmra.mrb[44].mxu1 %vm166_vm0, %v11037_v28  ;;  %v13345_v28 = vcombine.high %v2421_v22, %v2425_v23  ;;  %v2460_v23 = vld [vmem:[%s17165_s7 + $0x2c0] sm:$0xff] }
  0x64   :  { %1864 = vmatpush1.bf16.msra.mxu0 %v12868_v3  ;;  %1905 = vmatpush1.bf16.msra.mxu1 %v12873_v4 }
  0x65   :  { %1865 = vmatprep.subr.bf16.mxu0 %v12879_v5  ;;  %1906 = vmatprep.subr.bf16.mxu1 %v12886_v6 }
  0x66   :  { %1895 = vmatprep.mubr.bf16.mxu0 %v12781_v1  ;;  %1936 = vmatprep.mubr.bf16.mxu1 %v12781_v1 }
  0x68   :  { %1866 = vmatpush1.bf16.msra.mxu0 %v12891_v7  ;;  %1907 = vmatpush1.bf16.msra.mxu1 %v12897_v8 }
  0x69   :  { %2003 = vmatprep.subr.bf16.mxu0 %v12908_v10  ;;  %2044 = vmatprep.subr.bf16.mxu1 %v12918_v12 }
  0x6b   :  { %11057 = vmatmul.mubr.msk.bf16.vlgmr.msra.gmra.mrb[48].mxu0 %vm166_vm0, %v11048_v29  ;;  %11058 = vmatmul.mubr.msk.bf16.vlgmr.msra.gmra.mrb[48].mxu1 %vm166_vm0, %v11048_v29  ;;  %v2428_v29 = vld [vmem:[%s17165_s7 + $0x1c0] sm:$0xff] }
  0x6c   :  { %2004 = vmatpush1.bf16.msra.mxu0 %v12903_v9  ;;  %2045 = vmatpush1.bf16.msra.mxu1 %v12913_v11 }
  0x6d   :  { %2005 = vmatprep.subr.bf16.mxu0 %v12930_v14  ;;  %2046 = vmatprep.subr.bf16.mxu1 %v12935_v15 }
  0x6e   :  { %2035 = vmatprep.mubr.bf16.mxu0 %v12781_v1  ;;  %2076 = vmatprep.mubr.bf16.mxu1 %v12781_v1 }
  0x70   :  { %2006 = vmatpush1.bf16.msra.mxu0 %v12944_v16  ;;  %2047 = vmatpush1.bf16.msra.mxu1 %v12949_v17 }
  0x71   :  { %2142 = vmatprep.subr.bf16.mxu0 %v12853_v0  ;;  %2183 = vmatprep.subr.bf16.mxu1 %v12860_v2  ;;  %v13262_v0 = vcombine.high %v2396_v56, %v2400_v57  ;;  %v2404_v2 = vld [vmem:[%s17165_s7 + $0x100] sm:$0xff] }
  0x73   :  { %11068 = vmatmul.mubr.msk.bf16.vlgmr.msra.gmra.mrb[52].mxu0 %vm166_vm0, %v11059_v30  ;;  %11069 = vmatmul.mubr.msk.bf16.vlgmr.msra.gmra.mrb[52].mxu1 %vm166_vm0, %v11059_v30  ;;  %v2432_v30 = vld [vmem:[%s17165_s7 + $0x1e0] sm:$0xff] }
  0x74   :  { %2143 = vmatpush1.bf16.msra.mxu0 %v12868_v3  ;;  %2184 = vmatpush1.bf16.msra.mxu1 %v12873_v4  ;;  %v2408_v3 = vld [vmem:[%s17165_s7 + $0x120] sm:$0xff]  ;;  %v2405_v4 = vld [vmem:[%s17165_s7 + $0x108] sm:$0xff]  ;;  %v13370_v38 = vcombine.high %v2428_v29, %v2432_v30  ;;  %v13388_v48 = vcombine.low %v2428_v29, %v2432_v30 }
  0x75   :  { %2144 = vmatprep.subr.bf16.mxu0 %v12879_v5  ;;  %2185 = vmatprep.subr.bf16.mxu1 %v12886_v6  ;;  %v2409_v5 = vld [vmem:[%s17165_s7 + $0x128] sm:$0xff]  ;;  %v13280_v6 = vcombine.low %v2396_v56, %v2400_v57  ;;  %v2444_v57 = vld [vmem:[%s17165_s7 + $0x240] sm:$0xff] }
  0x76   :  { %2174 = vmatprep.mubr.bf16.mxu0 %v12781_v1  ;;  %2215 = vmatprep.mubr.bf16.mxu1 %v12781_v1  ;;  %v2461_v29 = vld [vmem:[%s17165_s7 + $0x2c8] sm:$0xff] }
  0x77   :  { %v2465_v30 = vld [vmem:[%s17165_s7 + $0x2e8] sm:$0xff] }
  0x78   :  { %2145 = vmatpush1.bf16.msra.mxu0 %v12891_v7  ;;  %2186 = vmatpush1.bf16.msra.mxu1 %v12897_v8  ;;  %v13282_v7 = vcombine.low %v2397_v58, %v2401_v59  ;;  %v11498_v8 = vld [vmem:[%s17166_s3 + $0x28] sm:$0xff] }
  0x79   :  { %2282 = vmatprep.subr.bf16.mxu0 %v12908_v10  ;;  %2323 = vmatprep.subr.bf16.mxu1 %v12918_v12  ;;  %v13291_v10 = vcombine.high %v2405_v4, %v2409_v5  ;;  %v2416_v12 = vld [vmem:[%s17165_s7 + $0x160] sm:$0xff] }
  0x7a   :  { %5441 = vperm.xlu0 %12475, %v11498_v8  }
  0x7b   :  { %11079 = vmatmul.mubr.msk.bf16.vlgmr.msra.gmra.mrb[56].mxu0 %vm166_vm0, %v11070_v31  ;;  %11080 = vmatmul.mubr.msk.bf16.vlgmr.msra.gmra.mrb[56].mxu1 %vm166_vm0, %v11070_v31  ;;  %v2429_v31 = vld [vmem:[%s17165_s7 + $0x1c8] sm:$0xff] }
  0x7c   :  { %2283 = vmatpush1.bf16.msra.mxu0 %v12903_v9  ;;  %2324 = vmatpush1.bf16.msra.mxu1 %v12913_v11  ;;  %v13289_v9 = vcombine.high %v2404_v2, %v2408_v3  ;;  %v2412_v11 = vld [vmem:[%s17165_s7 + $0x140] sm:$0xff]  ;;  %v13372_v39 = vcombine.high %v2429_v31, %v2433_v32  ;;  %v13390_v49 = vcombine.low %v2429_v31, %v2433_v32 }
  0x7d   :  { %2284 = vmatprep.subr.bf16.mxu0 %v12930_v14  ;;  %2325 = vmatprep.subr.bf16.mxu1 %v12935_v15  ;;  %v2417_v14 = vld [vmem:[%s17165_s7 + $0x168] sm:$0xff]  ;;  %v13307_v15 = vcombine.low %v2404_v2, %v2408_v3  ;;  %v13316_v18 = vcombine.high %v2412_v11, %v2416_v12  ;;  %v13334_v24 = vcombine.low %v2412_v11, %v2416_v12  ;;  %v2452_v11 = vld [vmem:[%s17165_s7 + $0x280] sm:$0xff] }
  0x7e   :  { %2314 = vmatprep.mubr.bf16.mxu0 %v12781_v1  ;;  %2355 = vmatprep.mubr.bf16.mxu1 %v12781_v1  ;;  %v13264_v1 = vcombine.high %v2397_v58, %v2401_v59  ;;  %v13318_v19 = vcombine.high %v2413_v13, %v2417_v14  ;;  %v13336_v25 = vcombine.low %v2413_v13, %v2417_v14  ;;  %v2448_v58 = vld [vmem:[%s17165_s7 + $0x260] sm:$0xff]  ;;  %v2445_v59 = vld [vmem:[%s17165_s7 + $0x248] sm:$0xff] }
  0x7f   :  { %v13415_v2 = vcombine.low %v2436_v40, %v2440_v41  ;;  %v13426_v8 = vcombine.high %v2445_v59, %v2449_v63  ;;  %v2456_v12 = vld [vmem:[%s17165_s7 + $0x2a0] sm:$0xff]  ;;  %v2453_v13 = vld [vmem:[%s17165_s7 + $0x288] sm:$0xff]  ;;  %v13444_v20 = vcombine.low %v2445_v59, %v2449_v63  ;;  %v13474_v40 = vcombine.high %v2461_v29, %v2465_v30 }
  0x80   :  { %2285 = vmatpush1.bf16.msra.mxu0 %v12944_v16  ;;  %2326 = vmatpush1.bf16.msra.mxu1 %v12949_v17  ;;  %v13309_v16 = vcombine.low %v2405_v4, %v2409_v5  ;;  %v11634_v17 = vld [vmem:[%s17166_s3 + $0x20] sm:$0xff]  ;;  %v13424_v5 = vcombine.high %v2444_v57, %v2448_v58  ;;  %v2457_v14 = vld [vmem:[%s17165_s7 + $0x2a8] sm:$0xff]  ;;  %v13448_v21 = vcombine.high %v2452_v11, %v2456_v12 }
  0x81   :  { %3140 = vmatprep.subr.bf16.mxu0 %v13175_v36  ;;  %3181 = vmatprep.subr.bf16.mxu1 %v13177_v37  ;;  %v10587_v4 = vld [vmem:[%s17166_s3] sm:$0xff]  ;;  %v13450_v22 = vcombine.high %v2453_v13, %v2457_v14  ;;  %v13466_v31 = vcombine.low %v2452_v11, %v2456_v12  ;;  %v13468_v32 = vcombine.low %v2453_v13, %v2457_v14  ;;  %v2477_v12 = vld [vmem:[%s17165_s7 + $0x348] sm:$0xff] }
  0x82   :  { %6471 = vperm.xlu0 %12475, %v11634_v17   ;;  %v13442_v17 = vcombine.low %v2444_v57, %v2448_v58  ;;  %17491 = vst [vmem:[#allocation6_spill] sm:$0xff] %v13474_v40  ;;  %v2468_v41 = vld [vmem:[%s17165_s7 + $0x300] sm:$0xff]  ;;  %v13492_v58 = vcombine.low %v2461_v29, %v2465_v30  ;;  %v2481_v13 = vld [vmem:[%s17165_s7 + $0x368] sm:$0xff] }
  0x83   :  { %11090 = vmatmul.mubr.msk.bf16.vlgmr.msra.gmra.mrb[60].mxu0 %vm166_vm0, %v11081_v44  ;;  %11091 = vmatmul.mubr.msk.bf16.vlgmr.msra.gmra.mrb[60].mxu1 %vm166_vm0, %v11081_v44  ;;  %v2437_v44 = vld [vmem:[%s17165_s7 + $0x208] sm:$0xff]  ;;  %v2480_v11 = vld [vmem:[%s17165_s7 + $0x360] sm:$0xff]  ;;  %v13522_v29 = vcombine.high %v2477_v12, %v2481_v13 }
  0x84   :  { %3141 = vmatpush1.bf16.msra.mxu0 %v13195_v42  ;;  %3182 = vmatpush1.bf16.msra.mxu1 %v13197_v43  ;;  %v13399_v56 = vcombine.high %v2437_v44, %v2441_v47  ;;  %v13417_v3 = vcombine.low %v2437_v44, %v2441_v47  ;;  %v2472_v44 = vld [vmem:[%s17165_s7 + $0x320] sm:$0xff]  ;;  %v2469_v47 = vld [vmem:[%s17165_s7 + $0x308] sm:$0xff]  ;;  %17493 = vst [vmem:[#allocation8_spill] sm:$0xff] %v13492_v58 }
  0x85   :  { %3142 = vmatprep.subr.bf16.mxu0 %v13204_v45  ;;  %3183 = vmatprep.subr.bf16.mxu1 %v13206_v46  ;;  %v13496_v59 = vcombine.high %v2468_v41, %v2472_v44  ;;  %v13514_v14 = vcombine.low %v2468_v41, %v2472_v44  ;;  %17499 = vst [vmem:[#allocation14_spill] sm:$0xff] %v13522_v29  ;;  %v2484_v30 = vld [vmem:[%s17165_s7 + $0x380] sm:$0xff]  ;;  %v2485_v41 = vld [vmem:[%s17165_s7 + $0x388] sm:$0xff] }
  0x86   :  { %3172 = vmatprep.mubr.bf16.mxu0 %v17174_v60  ;;  %3213 = vmatprep.mubr.bf16.mxu1 %v17174_v60  ;;  %v2488_v60 = vld [vmem:[%s17165_s7 + $0x3a0] sm:$0xff]  ;;  %v2489_v44 = vld [vmem:[%s17165_s7 + $0x3a8] sm:$0xff] }
  0x87   :  { %7501 = vperm.xlu0 %12475, %v11770_v26   ;;  %v2464_v26 = vld [vmem:[%s17165_s7 + $0x2e0] sm:$0xff]  ;;  %17494 = vst [vmem:[#allocation9_spill] sm:$0xff] %v13496_v59  ;;  %17496 = vst [vmem:[#allocation11_spill] sm:$0xff] %v13514_v14 }
  0x88   :  { %3143 = vmatpush1.bf16.msra.mxu0 %v13224_v51  ;;  %3184 = vmatpush1.bf16.msra.mxu1 %v13226_v52  ;;  %v13490_v57 = vcombine.low %v2460_v23, %v2464_v26 }
  0x89   :  { %3144 = vmatprep.subr.bf16.mxu0 %v13233_v54  ;;  %3185 = vmatprep.subr.bf16.mxu1 %v13235_v55 }
  0x8a   :  { %17492 = vst [vmem:[#allocation7_spill] sm:$0xff] %v13490_v57 }
  0x8b   :  { %8531 = vperm.xlu0 %12475, %v11906_v35   ;;  %v13472_v35 = vcombine.high %v2460_v23, %v2464_v26 }
  0x8c   :  { %3145 = vmatpush1.bf16.msra.mxu0 %v13253_v61  ;;  %3186 = vmatpush1.bf16.msra.mxu1 %v13255_v62 }
  0x8d   :  { %3146 = vmatprep.subr.bf16.mxu0 %v13262_v0  ;;  %3187 = vmatprep.subr.bf16.mxu1 %v13264_v1  ;;  %17490 = vst [vmem:[#allocation5_spill] sm:$0xff] %v13472_v35 }
  0x8f   :  { %9561 = vperm.xlu0 %12475, %v12042_v50   ;;  %v2473_v50 = vld [vmem:[%s17165_s7 + $0x328] sm:$0xff] }
  0x90   :  { %3147 = vmatpush1.bf16.msra.mxu0 %v13280_v6  ;;  %3188 = vmatpush1.bf16.msra.mxu1 %v13282_v7  ;;  %v13498_v63 = vcombine.high %v2469_v47, %v2473_v50  ;;  %v13516_v23 = vcombine.low %v2469_v47, %v2473_v50  ;;  %v13540_v50 = vcombine.low %v2477_v12, %v2481_v13 }
  0x91   :  { %3148 = vmatprep.subr.bf16.mxu0 %v13289_v9  ;;  %3189 = vmatprep.subr.bf16.mxu1 %v13291_v10  ;;  %v13562_v12 = vcombine.low %v2484_v30, %v2488_v60  ;;  %v13564_v13 = vcombine.low %v2485_v41, %v2489_v44 }
  0x92   :  { %17495 = vst [vmem:[#allocation10_spill] sm:$0xff] %v13498_v63  ;;  %17497 = vst [vmem:[#allocation12_spill] sm:$0xff] %v13516_v23 }
  0x93   :  { %10590 = vperm.xlu0 %12475, %v10587_v4   ;;  %v2476_v4 = vld [vmem:[%s17165_s7 + $0x340] sm:$0xff]  ;;  %17501 = vst [vmem:[#allocation16_spill] sm:$0xff] %v13540_v50  ;;  %17504 = vst [vmem:[#allocation19_spill] sm:$0xff] %v13562_v12 }
  0x94   :  { %3149 = vmatpush1.bf16.msra.mxu0 %v13307_v15  ;;  %3190 = vmatpush1.bf16.msra.mxu1 %v13309_v16  ;;  %v13520_v26 = vcombine.high %v2476_v4, %v2480_v11  ;;  %v13538_v47 = vcombine.low %v2476_v4, %v2480_v11  ;;  %v2493_v4 = vld [vmem:[%s17165_s7 + $0x3c8] sm:$0xff]  ;;  %17505 = vst [vmem:[#allocation20_spill] sm:$0xff] %v13564_v13 }
  0x95   :  { %3150 = vmatprep.subr.bf16.mxu0 %v13316_v18  ;;  %3191 = vmatprep.subr.bf16.mxu1 %v13318_v19  ;;  %v2497_v11 = vld [vmem:[%s17165_s7 + $0x3e8] sm:$0xff] }
  0x96   :  { %17498 = vst [vmem:[#allocation13_spill] sm:$0xff] %v13520_v26  ;;  %17500 = vst [vmem:[#allocation15_spill] sm:$0xff] %v13538_v47 }
  0x98   :  { %3151 = vmatpush1.bf16.msra.mxu0 %v13334_v24  ;;  %3192 = vmatpush1.bf16.msra.mxu1 %v13336_v25 }
  0x99   :  { %3152 = vmatprep.subr.bf16.mxu0 %v13343_v27  ;;  %3193 = vmatprep.subr.bf16.mxu1 %v13345_v28 }
  0x9c   :  { %3153 = vmatpush1.bf16.msra.mxu0 %v13361_v33  ;;  %3194 = vmatpush1.bf16.msra.mxu1 %v13363_v34 }
  0x9d   :  { %3154 = vmatprep.subr.bf16.mxu0 %v13370_v38  ;;  %3195 = vmatprep.subr.bf16.mxu1 %v13372_v39 }
  0xa0   :  { %3155 = vmatpush1.bf16.msra.mxu0 %v13388_v48  ;;  %3196 = vmatpush1.bf16.msra.mxu1 %v13390_v49 }
  0xa1   :  { %3156 = vmatprep.subr.bf16.mxu0 %v13397_v53  ;;  %3197 = vmatprep.subr.bf16.mxu1 %v13399_v56 }
  0xa4   :  { %3157 = vmatpush1.bf16.msra.mxu0 %v13415_v2  ;;  %3198 = vmatpush1.bf16.msra.mxu1 %v13417_v3 }
  0xa5   :  { %3158 = vmatprep.subr.bf16.mxu0 %v13424_v5  ;;  %3199 = vmatprep.subr.bf16.mxu1 %v13426_v8 }
  0xa8   :  { %3159 = vmatpush1.bf16.msra.mxu0 %v13442_v17  ;;  %3200 = vmatpush1.bf16.msra.mxu1 %v13444_v20 }
  0xa9   :  { %3160 = vmatprep.subr.bf16.mxu0 %v13448_v21  ;;  %3201 = vmatprep.subr.bf16.mxu1 %v13450_v22 }
  0xac   :  { %3161 = vmatpush1.bf16.msra.mxu0 %v13466_v31  ;;  %3202 = vmatpush1.bf16.msra.mxu1 %v13468_v32 }
  0xad   :  { %3162 = vmatprep.subr.bf16.mxu0 %v13472_v35  ;;  %3203 = vmatprep.subr.bf16.mxu1 %v13474_v40  ;;  %v2402_v40 = vld [vmem:[%s17165_s7 + $0xf0] sm:$0xff]  ;;  %v2407_v35 = vld [vmem:[%s17165_s7 + $0x118] sm:$0xff] }
  0xb0   :  { %3163 = vmatpush1.bf16.msra.mxu0 %v13490_v57  ;;  %3204 = vmatpush1.bf16.msra.mxu1 %v13492_v58  ;;  %v2492_v58 = vld [vmem:[%s17165_s7 + $0x3c0] sm:$0xff]  ;;  %v2398_v57 = vld [vmem:[%s17165_s7 + $0xd0] sm:$0xff] }
  0xb1   :  { %3164 = vmatprep.subr.bf16.mxu0 %v13496_v59  ;;  %3205 = vmatprep.subr.bf16.mxu1 %v13498_v63  ;;  %v13544_v63 = vcombine.high %v2484_v30, %v2488_v60  ;;  %v13546_v59 = vcombine.high %v2485_v41, %v2489_v44  ;;  %v2375_v60 = vld [vmem:[%s17165_s7 + $0x18] sm:$0xff]  ;;  %v13588_v44 = vcombine.low %v2493_v4, %v2497_v11 }
  0xb2   :  { %v2379_v30 = vld [vmem:[%s17165_s7 + $0x38] sm:$0xff] }
  0xb3   :  { %17502 = vst [vmem:[#allocation17_spill] sm:$0xff] %v13544_v63  ;;  %17503 = vst [vmem:[#allocation18_spill] sm:$0xff] %v13546_v59 }
  0xb4   :  { %3165 = vmatpush1.bf16.msra.mxu0 %v13514_v14  ;;  %3206 = vmatpush1.bf16.msra.mxu1 %v13516_v23  ;;  %v2496_v23 = vld [vmem:[%s17165_s7 + $0x3e0] sm:$0xff]  ;;  %v2374_v14 = vld [vmem:[%s17165_s7 + $0x10] sm:$0xff]  ;;  %17509 = vst [vmem:[#allocation24_spill] sm:$0xff] %v13588_v44 }
  0xb5   :  { %3166 = vmatprep.subr.bf16.mxu0 %v13520_v26  ;;  %3207 = vmatprep.subr.bf16.mxu1 %v13522_v29  ;;  %v13568_v29 = vcombine.high %v2492_v58, %v2496_v23  ;;  %v13570_v26 = vcombine.high %v2493_v4, %v2497_v11  ;;  %v13586_v41 = vcombine.low %v2492_v58, %v2496_v23  ;;  %v2383_v58 = vld [vmem:[%s17165_s7 + $0x58] sm:$0xff] }
  0xb6   :  { %v2387_v23 = vld [vmem:[%s17165_s7 + $0x78] sm:$0xff]  ;;  %v13612_v11 = vcombine.low %v2375_v60, %v2379_v30 }
  0xb7   :  { %17506 = vst [vmem:[#allocation21_spill] sm:$0xff] %v13568_v29  ;;  %17507 = vst [vmem:[#allocation22_spill] sm:$0xff] %v13570_v26 }
  0xb8   :  { %3167 = vmatpush1.bf16.msra.mxu0 %v13538_v47  ;;  %3208 = vmatpush1.bf16.msra.mxu1 %v13540_v50  ;;  %v2378_v50 = vld [vmem:[%s17165_s7 + $0x30] sm:$0xff]  ;;  %17508 = vst [vmem:[#allocation23_spill] sm:$0xff] %v13586_v41  ;;  %17513 = vst [vmem:[#allocation28_spill] sm:$0xff] %v13612_v11 }
  0xb9   :  { %3168 = vmatprep.subr.bf16.mxu0 %v13544_v63  ;;  %3209 = vmatprep.subr.bf16.mxu1 %v13546_v59  ;;  %v13592_v59 = vcombine.high %v2374_v14, %v2378_v50  ;;  %v13594_v63 = vcombine.high %v2375_v60, %v2379_v30  ;;  %v2382_v47 = vld [vmem:[%s17165_s7 + $0x50] sm:$0xff]  ;;  %v13610_v4 = vcombine.low %v2374_v14, %v2378_v50  ;;  %v2391_v14 = vld [vmem:[%s17165_s7 + $0x98] sm:$0xff]  ;;  %v17514_v60 = vmov 0.0|0.0  }
  0xba   :  { %v2395_v50 = vld [vmem:[%s17165_s7 + $0xb8] sm:$0xff] }
  0xbb   :  { %17510 = vst [vmem:[#allocation25_spill] sm:$0xff] %v13592_v59  ;;  %17511 = vst [vmem:[#allocation26_spill] sm:$0xff] %v13594_v63 }
  0xbc   :  { %3169 = vmatpush1.bf16.msra.mxu0 %v13562_v12  ;;  %3210 = vmatpush1.bf16.msra.mxu1 %v13564_v13  ;;  %v2386_v13 = vld [vmem:[%s17165_s7 + $0x70] sm:$0xff]  ;;  %17512 = vst [vmem:[#allocation27_spill] sm:$0xff] %v13610_v4 }
  0xbd   :  { %3170 = vmatprep.subr.bf16.mxu0 %v13568_v29  ;;  %3211 = vmatprep.subr.bf16.mxu1 %v13570_v26  ;;  %v11105_v26 = vcombine.high %v2382_v47, %v2386_v13  ;;  %v11107_v29 = vcombine.high %v2383_v58, %v2387_v23  ;;  %v2390_v12 = vld [vmem:[%s17165_s7 + $0x90] sm:$0xff]  ;;  %v11104_v30 = vcombine.low %v2382_v47, %v2386_v13  ;;  %v2403_v47 = vld [vmem:[%s17165_s7 + $0xf8] sm:$0xff] }
  0xbe   :  { %v11121_v13 = vcombine.high %v2398_v57, %v2402_v40 }
  0xc0   :  { %3171 = vmatpush1.bf16.msra.mxu0 %v13586_v41  ;;  %3212 = vmatpush1.bf16.msra.mxu1 %v13588_v44  ;;  %v2394_v41 = vld [vmem:[%s17165_s7 + $0xb0] sm:$0xff]  ;;  %v11115_v44 = vcombine.high %v2391_v14, %v2395_v50 }
  0xc1   :  { %3222 = vmatprep.subr.bf16.mxu0 %v13592_v59  ;;  %3263 = vmatprep.subr.bf16.mxu1 %v13594_v63  ;;  %v11106_v63 = vcombine.low %v2383_v58, %v2387_v23  ;;  %v11113_v59 = vcombine.high %v2390_v12, %v2394_v41  ;;  %v2406_v23 = vld [vmem:[%s17165_s7 + $0x110] sm:$0xff] }
  0xc3   :  { %3173 = vmatmul.mubr.bf16.vlgmr.msra.gmra.mrb[0].mxu0 %v17514_v60  ;;  %3214 = vmatmul.mubr.bf16.vlgmr.msra.gmra.mrb[0].mxu1 %v17514_v60 }
  0xc4   :  { %3223 = vmatpush1.bf16.msra.mxu0 %v13610_v4  ;;  %3264 = vmatpush1.bf16.msra.mxu1 %v13612_v11  ;;  %v2399_v4 = vld [vmem:[%s17165_s7 + $0xd8] sm:$0xff]  ;;  %v2410_v11 = vld [vmem:[%s17165_s7 + $0x130] sm:$0xff] }
  0xc5   :  { %3224 = vmatprep.subr.bf16.mxu0 %v11105_v26  ;;  %3265 = vmatprep.subr.bf16.mxu1 %v11107_v29  ;;  %v11112_v26 = vcombine.low %v2390_v12, %v2394_v41  ;;  %v11114_v29 = vcombine.low %v2391_v14, %v2395_v50  ;;  %v11123_v58 = vcombine.high %v2399_v4, %v2403_v47  ;;  %v2414_v14 = vld [vmem:[%s17165_s7 + $0x150] sm:$0xff] }
  0xc6   :  { %3254 = vmatprep.mubr.bf16.mxu0 %v17514_v60  ;;  %3295 = vmatprep.mubr.bf16.mxu1 %v17514_v60  ;;  %v11122_v12 = vcombine.low %v2399_v4, %v2403_v47  ;;  %v11129_v41 = vcombine.high %v2406_v23, %v2410_v11  ;;  %v2418_v50 = vld [vmem:[%s17165_s7 + $0x170] sm:$0xff] }
  0xc7   :  { %v11137_v47 = vcombine.high %v2414_v14, %v2418_v50 }
  0xc8   :  { %3225 = vmatpush1.bf16.msra.mxu0 %v11104_v30  ;;  %3266 = vmatpush1.bf16.msra.mxu1 %v11106_v63  ;;  %v2411_v63 = vld [vmem:[%s17165_s7 + $0x138] sm:$0xff] }
  0xc9   :  { %3226 = vmatprep.subr.bf16.mxu0 %v11113_v59  ;;  %3267 = vmatprep.subr.bf16.mxu1 %v11115_v44  ;;  %v11120_v59 = vcombine.low %v2398_v57, %v2402_v40  ;;  %v11131_v44 = vcombine.high %v2407_v35, %v2411_v63  ;;  %v2415_v30 = vld [vmem:[%s17165_s7 + $0x158] sm:$0xff]  ;;  %v11128_v57 = vcombine.low %v2406_v23, %v2410_v11 }
  0xca   :  { %v2419_v40 = vld [vmem:[%s17165_s7 + $0x178] sm:$0xff]  ;;  %v11130_v4 = vcombine.low %v2407_v35, %v2411_v63  ;;  %v11136_v11 = vcombine.low %v2414_v14, %v2418_v50 }
  0xcb   :  { %v2427_v35 = vld [vmem:[%s17165_s7 + $0x1b8] sm:$0xff]  ;;  %v11138_v23 = vcombine.low %v2415_v30, %v2419_v40 }
  0xcc   :  { %3227 = vmatpush1.bf16.msra.mxu0 %v11112_v26  ;;  %3268 = vmatpush1.bf16.msra.mxu1 %v11114_v29  ;;  %v11139_v26 = vcombine.high %v2415_v30, %v2419_v40  ;;  %v2422_v29 = vld [vmem:[%s17165_s7 + $0x190] sm:$0xff]  ;;  %v2435_v14 = vld [vmem:[%s17165_s7 + $0x1f8] sm:$0xff] }
  0xcd   :  { %3228 = vmatprep.subr.bf16.mxu0 %v11121_v13  ;;  %3269 = vmatprep.subr.bf16.mxu1 %v11123_v58  ;;  %v2426_v13 = vld [vmem:[%s17165_s7 + $0x1b0] sm:$0xff]  ;;  %v2423_v58 = vld [vmem:[%s17165_s7 + $0x198] sm:$0xff] }
  0xce   :  { %v11145_v63 = vcombine.high %v2422_v29, %v2426_v13  ;;  %v11144_v50 = vcombine.low %v2422_v29, %v2426_v13  ;;  %v11146_v30 = vcombine.low %v2423_v58, %v2427_v35  ;;  %v2443_v29 = vld [vmem:[%s17165_s7 + $0x238] sm:$0xff] }
  0xd0   :  { %3229 = vmatpush1.bf16.msra.mxu0 %v11120_v59  ;;  %3270 = vmatpush1.bf16.msra.mxu1 %v11122_v12  ;;  %v11147_v59 = vcombine.high %v2423_v58, %v2427_v35  ;;  %v2430_v12 = vld [vmem:[%s17165_s7 + $0x1d0] sm:$0xff] }
  0xd1   :  { %3230 = vmatprep.subr.bf16.mxu0 %v11129_v41  ;;  %3271 = vmatprep.subr.bf16.mxu1 %v11131_v44  ;;  %v2434_v41 = vld [vmem:[%s17165_s7 + $0x1f0] sm:$0xff]  ;;  %v2431_v44 = vld [vmem:[%s17165_s7 + $0x1d8] sm:$0xff] }
  0xd2   :  { %v11153_v40 = vcombine.high %v2430_v12, %v2434_v41  ;;  %v11152_v13 = vcombine.low %v2430_v12, %v2434_v41  ;;  %v11154_v58 = vcombine.low %v2431_v44, %v2435_v14  ;;  %v2451_v12 = vld [vmem:[%s17165_s7 + $0x278] sm:$0xff] }
  0xd4   :  { %3231 = vmatpush1.bf16.msra.mxu0 %v11128_v57  ;;  %3272 = vmatpush1.bf16.msra.mxu1 %v11130_v4  ;;  %v11155_v57 = vcombine.high %v2431_v44, %v2435_v14  ;;  %v2438_v4 = vld [vmem:[%s17165_s7 + $0x210] sm:$0xff] }
  0xd5   :  { %3232 = vmatprep.subr.bf16.mxu0 %v11137_v47  ;;  %3273 = vmatprep.subr.bf16.mxu1 %v11139_v26  ;;  %v2442_v47 = vld [vmem:[%s17165_s7 + $0x230] sm:$0xff]  ;;  %v2439_v26 = vld [vmem:[%s17165_s7 + $0x218] sm:$0xff] }
  0xd6   :  { %v11161_v35 = vcombine.high %v2438_v4, %v2442_v47  ;;  %v11160_v41 = vcombine.low %v2438_v4, %v2442_v47  ;;  %v11162_v44 = vcombine.low %v2439_v26, %v2443_v29  ;;  %v2459_v4 = vld [vmem:[%s17165_s7 + $0x2b8] sm:$0xff] }
  0xd8   :  { %3233 = vmatpush1.bf16.msra.mxu0 %v11136_v11  ;;  %3274 = vmatpush1.bf16.msra.mxu1 %v11138_v23  ;;  %v11163_v11 = vcombine.high %v2439_v26, %v2443_v29  ;;  %v2446_v23 = vld [vmem:[%s17165_s7 + $0x250] sm:$0xff] }
  0xd9   :  { %3234 = vmatprep.subr.bf16.mxu0 %v11145_v63  ;;  %3275 = vmatprep.subr.bf16.mxu1 %v11147_v59  ;;  %v2450_v63 = vld [vmem:[%s17165_s7 + $0x270] sm:$0xff]  ;;  %v2447_v59 = vld [vmem:[%s17165_s7 + $0x258] sm:$0xff] }
  0xda   :  { %v11169_v14 = vcombine.high %v2446_v23, %v2450_v63  ;;  %v11168_v47 = vcombine.low %v2446_v23, %v2450_v63  ;;  %v11170_v26 = vcombine.low %v2447_v59, %v2451_v12  ;;  %v2467_v23 = vld [vmem:[%s17165_s7 + $0x2f8] sm:$0xff] }
  0xdc   :  { %3235 = vmatpush1.bf16.msra.mxu0 %v11144_v50  ;;  %3276 = vmatpush1.bf16.msra.mxu1 %v11146_v30  ;;  %v11171_v50 = vcombine.high %v2447_v59, %v2451_v12  ;;  %v2454_v30 = vld [vmem:[%s17165_s7 + $0x290] sm:$0xff] }
  0xdd   :  { %3236 = vmatprep.subr.bf16.mxu0 %v11153_v40  ;;  %3277 = vmatprep.subr.bf16.mxu1 %v11155_v57  ;;  %v2458_v40 = vld [vmem:[%s17165_s7 + $0x2b0] sm:$0xff]  ;;  %v2455_v57 = vld [vmem:[%s17165_s7 + $0x298] sm:$0xff] }
  0xde   :  { %v11177_v29 = vcombine.high %v2454_v30, %v2458_v40  ;;  %v11176_v63 = vcombine.low %v2454_v30, %v2458_v40  ;;  %v11178_v59 = vcombine.low %v2455_v57, %v2459_v4  ;;  %v2475_v30 = vld [vmem:[%s17165_s7 + $0x338] sm:$0xff] }
  0xe0   :  { %3237 = vmatpush1.bf16.msra.mxu0 %v11152_v13  ;;  %3278 = vmatpush1.bf16.msra.mxu1 %v11154_v58  ;;  %v11179_v13 = vcombine.high %v2455_v57, %v2459_v4  ;;  %v2462_v58 = vld [vmem:[%s17165_s7 + $0x2d0] sm:$0xff] }
  0xe1   :  { %3238 = vmatprep.subr.bf16.mxu0 %v11161_v35  ;;  %3279 = vmatprep.subr.bf16.mxu1 %v11163_v11  ;;  %v2466_v35 = vld [vmem:[%s17165_s7 + $0x2f0] sm:$0xff]  ;;  %v2463_v11 = vld [vmem:[%s17165_s7 + $0x2d8] sm:$0xff] }
  0xe2   :  { %v11185_v12 = vcombine.high %v2462_v58, %v2466_v35  ;;  %v11184_v40 = vcombine.low %v2462_v58, %v2466_v35  ;;  %v11186_v57 = vcombine.low %v2463_v11, %v2467_v23  ;;  %v2483_v58 = vld [vmem:[%s17165_s7 + $0x378] sm:$0xff] }
  0xe4   :  { %3239 = vmatpush1.bf16.msra.mxu0 %v11160_v41  ;;  %3280 = vmatpush1.bf16.msra.mxu1 %v11162_v44  ;;  %v11187_v41 = vcombine.high %v2463_v11, %v2467_v23  ;;  %v2470_v44 = vld [vmem:[%s17165_s7 + $0x310] sm:$0xff] }
  0xe5   :  { %3240 = vmatprep.subr.bf16.mxu0 %v11169_v14  ;;  %3281 = vmatprep.subr.bf16.mxu1 %v11171_v50  ;;  %v2474_v14 = vld [vmem:[%s17165_s7 + $0x330] sm:$0xff]  ;;  %v2471_v50 = vld [vmem:[%s17165_s7 + $0x318] sm:$0xff] }
  0xe6   :  { %v11193_v4 = vcombine.high %v2470_v44, %v2474_v14  ;;  %v11192_v35 = vcombine.low %v2470_v44, %v2474_v14  ;;  %v11194_v11 = vcombine.low %v2471_v50, %v2475_v30  ;;  %v2491_v44 = vld [vmem:[%s17165_s7 + $0x3b8] sm:$0xff] }
  0xe8   :  { %3241 = vmatpush1.bf16.msra.mxu0 %v11168_v47  ;;  %3282 = vmatpush1.bf16.msra.mxu1 %v11170_v26  ;;  %v11195_v47 = vcombine.high %v2471_v50, %v2475_v30  ;;  %v2478_v26 = vld [vmem:[%s17165_s7 + $0x350] sm:$0xff] }
  0xe9   :  { %3242 = vmatprep.subr.bf16.mxu0 %v11177_v29  ;;  %3283 = vmatprep.subr.bf16.mxu1 %v11179_v13  ;;  %v2482_v29 = vld [vmem:[%s17165_s7 + $0x370] sm:$0xff]  ;;  %v2479_v13 = vld [vmem:[%s17165_s7 + $0x358] sm:$0xff] }
  0xea   :  { %v11201_v23 = vcombine.high %v2478_v26, %v2482_v29  ;;  %v11200_v14 = vcombine.low %v2478_v26, %v2482_v29  ;;  %v11202_v50 = vcombine.low %v2479_v13, %v2483_v58  ;;  %v2499_v26 = vld [vmem:[%s17165_s7 + $0x3f8] sm:$0xff] }
  0xec   :  { %3243 = vmatpush1.bf16.msra.mxu0 %v11176_v63  ;;  %3284 = vmatpush1.bf16.msra.mxu1 %v11178_v59  ;;  %v11203_v63 = vcombine.high %v2479_v13, %v2483_v58  ;;  %v2486_v59 = vld [vmem:[%s17165_s7 + $0x390] sm:$0xff] }
  0xed   :  { %3244 = vmatprep.subr.bf16.mxu0 %v11185_v12  ;;  %3285 = vmatprep.subr.bf16.mxu1 %v11187_v41  ;;  %v2490_v12 = vld [vmem:[%s17165_s7 + $0x3b0] sm:$0xff]  ;;  %v2487_v41 = vld [vmem:[%s17165_s7 + $0x398] sm:$0xff] }
  0xee   :  { %v11209_v30 = vcombine.high %v2486_v59, %v2490_v12  ;;  %v11208_v29 = vcombine.low %v2486_v59, %v2490_v12  ;;  %v11210_v13 = vcombine.low %v2487_v41, %v2491_v44 }
  0xf0   :  { %3245 = vmatpush1.bf16.msra.mxu0 %v11184_v40  ;;  %3286 = vmatpush1.bf16.msra.mxu1 %v11186_v57  ;;  %v11211_v40 = vcombine.high %v2487_v41, %v2491_v44  ;;  %v2494_v57 = vld [vmem:[%s17165_s7 + $0x3d0] sm:$0xff] }
  0xf1   :  { %3246 = vmatprep.subr.bf16.mxu0 %v11193_v4  ;;  %3287 = vmatprep.subr.bf16.mxu1 %v11195_v47  ;;  %v2498_v4 = vld [vmem:[%s17165_s7 + $0x3f0] sm:$0xff]  ;;  %v2495_v47 = vld [vmem:[%s17165_s7 + $0x3d8] sm:$0xff] }
  0xf2   :  { %v11217_v58 = vcombine.high %v2494_v57, %v2498_v4 }
  0xf4   :  { %3247 = vmatpush1.bf16.msra.mxu0 %v11192_v35  ;;  %3288 = vmatpush1.bf16.msra.mxu1 %v11194_v11  ;;  %v11219_v35 = vcombine.high %v2495_v47, %v2499_v26  ;;  %v11216_v11 = vcombine.low %v2494_v57, %v2498_v4 }
  0xf5   :  { %3248 = vmatprep.subr.bf16.mxu0 %v11201_v23  ;;  %3289 = vmatprep.subr.bf16.mxu1 %v11203_v63  ;;  %v11218_v23 = vcombine.low %v2495_v47, %v2499_v26 }
  0xf8   :  { %3249 = vmatpush1.bf16.msra.mxu0 %v11200_v14  ;;  %3290 = vmatpush1.bf16.msra.mxu1 %v11202_v50 }
  0xf9   :  { %3250 = vmatprep.subr.bf16.mxu0 %v11209_v30  ;;  %3291 = vmatprep.subr.bf16.mxu1 %v11211_v40 }
  0xfc   :  { %3251 = vmatpush1.bf16.msra.mxu0 %v11208_v29  ;;  %3292 = vmatpush1.bf16.msra.mxu1 %v11210_v13 }
  0xfd   :  { %3252 = vmatprep.subr.bf16.mxu0 %v11217_v58  ;;  %3293 = vmatprep.subr.bf16.mxu1 %v11219_v35 }
 0x100   :  { %3253 = vmatpush1.bf16.msra.mxu0 %v11216_v11  ;;  %3294 = vmatpush1.bf16.msra.mxu1 %v11218_v23  ;;  %v11362_v23 = vld [vmem:[%s17166_s3 + $0x30] sm:$0xff] }
 0x101   :  { %4169 = vmatprep.subr.bf16.mxu0 %v13175_v36  ;;  %4210 = vmatprep.subr.bf16.mxu1 %v13177_v37  ;;  %v17515_v36 = vld [vmem:[#allocation5_spill] sm:$0xff]  ;;  %v17516_v37 = vld [vmem:[#allocation6_spill] sm:$0xff] }
 0x102   :  { %4411 = vperm.xlu1 %12476, %v11362_v23   ;;  %v3424_v23 = vld [vmem:[%s17165_s7 + $0xb8] sm:$0xff] }
 0x103   :  { %3255 = vmatmul.mubr.bf16.vlgmr.msra.gmra.mrb[60].mxu0 %v17514_v60  ;;  %3296 = vmatmul.mubr.bf16.vlgmr.msra.gmra.mrb[60].mxu1 %v17514_v60 }
 0x104   :  { %4170 = vmatpush1.bf16.msra.mxu0 %v13195_v42  ;;  %4211 = vmatpush1.bf16.msra.mxu1 %v13197_v43  ;;  %v17517_v42 = vld [vmem:[#allocation7_spill] sm:$0xff]  ;;  %v17518_v43 = vld [vmem:[#allocation8_spill] sm:$0xff] }
 0x105   :  { %4171 = vmatprep.subr.bf16.mxu0 %v13204_v45  ;;  %4212 = vmatprep.subr.bf16.mxu1 %v13206_v46  ;;  %v17519_v45 = vld [vmem:[#allocation9_spill] sm:$0xff]  ;;  %v17520_v46 = vld [vmem:[#allocation10_spill] sm:$0xff] }
 0x108   :  { %4172 = vmatpush1.bf16.msra.mxu0 %v13224_v51  ;;  %4213 = vmatpush1.bf16.msra.mxu1 %v13226_v52  ;;  %v17521_v51 = vld [vmem:[#allocation11_spill] sm:$0xff]  ;;  %v17522_v52 = vld [vmem:[#allocation12_spill] sm:$0xff] }
 0x109   :  { %4173 = vmatprep.subr.bf16.mxu0 %v13233_v54  ;;  %4214 = vmatprep.subr.bf16.mxu1 %v13235_v55  ;;  %v17523_v54 = vld [vmem:[#allocation13_spill] sm:$0xff]  ;;  %v17524_v55 = vld [vmem:[#allocation14_spill] sm:$0xff] }
 0x10c   :  { %4174 = vmatpush1.bf16.msra.mxu0 %v13253_v61  ;;  %4215 = vmatpush1.bf16.msra.mxu1 %v13255_v62  ;;  %v17525_v61 = vld [vmem:[#allocation15_spill] sm:$0xff]  ;;  %v17526_v62 = vld [vmem:[#allocation16_spill] sm:$0xff] }
 0x10d   :  { %4175 = vmatprep.subr.bf16.mxu0 %v13262_v0  ;;  %4216 = vmatprep.subr.bf16.mxu1 %v13264_v1  ;;  %v17527_v0 = vld [vmem:[#allocation17_spill] sm:$0xff]  ;;  %v17528_v1 = vld [vmem:[#allocation18_spill] sm:$0xff] }
 0x110   :  { %4176 = vmatpush1.bf16.msra.mxu0 %v13280_v6  ;;  %4217 = vmatpush1.bf16.msra.mxu1 %v13282_v7  ;;  %v17529_v6 = vld [vmem:[#allocation19_spill] sm:$0xff]  ;;  %v17530_v7 = vld [vmem:[#allocation20_spill] sm:$0xff] }
 0x111   :  { %4177 = vmatprep.subr.bf16.mxu0 %v13289_v9  ;;  %4218 = vmatprep.subr.bf16.mxu1 %v13291_v10  ;;  %v17531_v9 = vld [vmem:[#allocation21_spill] sm:$0xff]  ;;  %v17532_v10 = vld [vmem:[#allocation22_spill] sm:$0xff] }
 0x114   :  { %4178 = vmatpush1.bf16.msra.mxu0 %v13307_v15  ;;  %4219 = vmatpush1.bf16.msra.mxu1 %v13309_v16  ;;  %v17533_v15 = vld [vmem:[#allocation23_spill] sm:$0xff]  ;;  %v17534_v16 = vld [vmem:[#allocation24_spill] sm:$0xff] }
 0x115   :  { %4179 = vmatprep.subr.bf16.mxu0 %v13316_v18  ;;  %4220 = vmatprep.subr.bf16.mxu1 %v13318_v19  ;;  %v17535_v18 = vld [vmem:[#allocation25_spill] sm:$0xff]  ;;  %v17536_v19 = vld [vmem:[#allocation26_spill] sm:$0xff] }
 0x118   :  { %4180 = vmatpush1.bf16.msra.mxu0 %v13334_v24  ;;  %4221 = vmatpush1.bf16.msra.mxu1 %v13336_v25  ;;  %v106_v24 = vlaneseq }
 0x119   :  { %4181 = vmatprep.subr.bf16.mxu0 %v13343_v27  ;;  %4222 = vmatprep.subr.bf16.mxu1 %v13345_v28  ;;  %v94_v28 = vld [vmem:[%s17168_s6] sm:$0xf] }
 0x11a   :  { %v13858_v25 = vshrl.u32 %v106_v24, 7  ;;  %v12041_v24 = vld [vmem:[%s17167_s2 + $0x30] sm:$0xff] }
 0x11c   :  { %4182 = vmatpush1.bf16.msra.mxu0 %v13361_v33  ;;  %4223 = vmatpush1.bf16.msra.mxu1 %v13363_v34  ;;  %v108_v27 = vsub.s32 0, %v13858_v25  ;;  %v112_v33 = vsub.s32 1, %v13858_v25 }
 0x11d   :  { %4183 = vmatprep.subr.bf16.mxu0 %v13370_v38  ;;  %4224 = vmatprep.subr.bf16.mxu1 %v13372_v39 }
 0x11e   :  { %v13865_v34 = vrot.slane %v94_v28, %v108_v27  ;;  %v13867_v38 = vrot.slane %v94_v28, %v112_v33 }
 0x120   :  { %4184 = vmatpush1.bf16.msra.mxu0 %v13388_v48  ;;  %4225 = vmatpush1.bf16.msra.mxu1 %v13390_v49  ;;  %17537 = vst [vmem:[#allocation5_spill] sm:$0xff] %v13865_v34  ;;  %v120_v49 = vsub.s32 3, %v13858_v25 }
 0x121   :  { %4185 = vmatprep.subr.bf16.mxu0 %v13397_v53  ;;  %4226 = vmatprep.subr.bf16.mxu1 %v13399_v56 }
 0x124   :  { %4186 = vmatpush1.bf16.msra.mxu0 %v13415_v2  ;;  %4227 = vmatpush1.bf16.msra.mxu1 %v13417_v3 }
 0x125   :  { %4187 = vmatprep.subr.bf16.mxu0 %v13424_v5  ;;  %4228 = vmatprep.subr.bf16.mxu1 %v13426_v8 }
 0x128   :  { %4188 = vmatpush1.bf16.msra.mxu0 %v13442_v17  ;;  %4229 = vmatpush1.bf16.msra.mxu1 %v13444_v20 }
 0x129   :  { %4189 = vmatprep.subr.bf16.mxu0 %v13448_v21  ;;  %4230 = vmatprep.subr.bf16.mxu1 %v13450_v22 }
 0x12c   :  { %4190 = vmatpush1.bf16.msra.mxu0 %v13466_v31  ;;  %4231 = vmatpush1.bf16.msra.mxu1 %v13468_v32  ;;  %v13874_v31 = vrot.slane %v94_v28, %v120_v49  ;;  %v116_v32 = vsub.s32 2, %v13858_v25  ;;  %v12177_v25 = vld [vmem:[%s17167_s2 + $0x38] sm:$0xff] }
 0x12d   :  { %4191 = vmatprep.subr.bf16.mxu0 %v17515_v36  ;;  %4232 = vmatprep.subr.bf16.mxu1 %v17516_v37  ;;  %v11361_v36 = vld [vmem:[%s17167_s2 + $0x8] sm:$0xff]  ;;  %v11497_v37 = vld [vmem:[%s17167_s2 + $0x10] sm:$0xff] }
 0x12e   :  { %v13878_v63 = vrot.slane %v94_v28, %v116_v32  ;;  %4403 = vperm.xlu1 %12476, %v11361_v36   ;;  %v17543_v36 = vld [vmem:[#allocation27_spill] sm:$0xff] }
 0x130   :  { %4192 = vmatpush1.bf16.msra.mxu0 %v17517_v42  ;;  %4233 = vmatpush1.bf16.msra.mxu1 %v17518_v43  ;;  %v95_v42 = vld [vmem:[%s17168_s6 + $0x4] sm:$0xf]  ;;  %v11633_v43 = vld [vmem:[%s17167_s2 + $0x18] sm:$0xff] }
 0x131   :  { %4193 = vmatprep.subr.bf16.mxu0 %v17519_v45  ;;  %4234 = vmatprep.subr.bf16.mxu1 %v17520_v46  ;;  %v13901_v45 = vrot.slane %v95_v42, %v108_v27  ;;  %v13903_v46 = vrot.slane %v95_v42, %v112_v33  ;;  %v13921_v27 = vrot.slane %v95_v42, %v116_v32 }
 0x132   :  { %5433 = vperm.xlu1 %12476, %v11497_v37   ;;  %v17544_v37 = vld [vmem:[#allocation28_spill] sm:$0xff] }
 0x133   :  { %17538 = vst [vmem:[#allocation6_spill] sm:$0xff] %v13901_v45 }
 0x134   :  { %4194 = vmatpush1.bf16.msra.mxu0 %v17521_v51  ;;  %4235 = vmatpush1.bf16.msra.mxu1 %v17522_v52 }
 0x135   :  { %4195 = vmatprep.subr.bf16.mxu0 %v17523_v54  ;;  %4236 = vmatprep.subr.bf16.mxu1 %v17524_v55  ;;  %v11769_v54 = vld [vmem:[%s17167_s2 + $0x20] sm:$0xff] }
 0x136   :  { %6463 = vperm.xlu1 %12476, %v11633_v43  }
 0x138   :  { %4196 = vmatpush1.bf16.msra.mxu0 %v17525_v61  ;;  %4237 = vmatpush1.bf16.msra.mxu1 %v17526_v62 }
 0x139   :  { %4197 = vmatprep.subr.bf16.mxu0 %v17527_v0  ;;  %4238 = vmatprep.subr.bf16.mxu1 %v17528_v1 }
 0x13a   :  { %7493 = vperm.xlu1 %12476, %v11769_v54   ;;  %v3427_v54 = vld [vmem:[%s17165_s7 + $0xd0] sm:$0xff] }
 0x13c   :  { %4198 = vmatpush1.bf16.msra.mxu0 %v17529_v6  ;;  %4239 = vmatpush1.bf16.msra.mxu1 %v17530_v7 }
 0x13d   :  { %4199 = vmatprep.subr.bf16.mxu0 %v17531_v9  ;;  %4240 = vmatprep.subr.bf16.mxu1 %v17532_v10 }
 0x140   :  { %4200 = vmatpush1.bf16.msra.mxu0 %v17533_v15  ;;  %4241 = vmatpush1.bf16.msra.mxu1 %v17534_v16  ;;  %v13912_v16 = vrot.slane %v95_v42, %v120_v49 }
 0x141   :  { %4251 = vmatprep.subr.bf16.mxu0 %v17535_v18  ;;  %4292 = vmatprep.subr.bf16.mxu1 %v17536_v19  ;;  %v11905_v18 = vld [vmem:[%s17167_s2 + $0x28] sm:$0xff] }
 0x142   :  { %8523 = vperm.xlu1 %12476, %v11905_v18   ;;  %v3440_v18 = vld [vmem:[%s17165_s7 + $0x138] sm:$0xff] }
 0x146   :  { %9553 = vperm.xlu1 %12476, %v12041_v24  }
 0x14a   :  { %10583 = vperm.xlu1 %12476, %v12177_v25  }
 0x196   :  { %v3174_v39 = vpop.f32.mrb[0].mxu0  ;;  %v3215_v48 = vpop.f32.mrb[0].mxu1 }
 0x197   :  { %v12279_v53 = vadd.f32 %v3174_v39, %v13865_v34  ;;  %v3176_v56 = vpop.f32.mrb[1].mxu0  ;;  %v3217_v2 = vpop.f32.mrb[1].mxu1  ;;  %v12281_v12 = vadd.f32 %v3215_v48, %v13878_v63 }
 0x198   :  { %v12280_v3 = vadd.f32 %v3176_v56, %v13867_v38  ;;  %v3178_v5 = vpop.f32.mrb[2].mxu0  ;;  %v3219_v8 = vpop.f32.mrb[2].mxu1  ;;  %v12282_v60 = vadd.f32 %v3217_v2, %v13874_v31 }
 0x199   :  { %v11220_v17 = vmul.f32 -1.442695, %v12279_v53  ;;  %v3179_v20 = vpop.f32.mrb[3].mxu0  ;;  %v3220_v21 = vpop.f32.mrb[3].mxu1 }
 0x19a   :  { %v11221_v22 = vmul.f32 -1.442695, %v12280_v3  ;;  %v11222_v59 = vmul.f32 -1.442695, %v12282_v60 }
 0x19b   :  { %12525 = vpow2.f32 %v11220_v17 }
 0x19c   :  { %12527 = vpow2.f32 %v11221_v22  ;;  %v13930_v22 = vpop.permute.xlu0 %3381 }
 0x19d   :  { %12529 = vpow2.f32 %v11222_v59  ;;  %vm3384_vm1 = vcmp.gt.f32.partialorder %v13930_v22, 0.0 }
 0x19e   :  { %12531 = vtanh.f32 %v12281_v12  ;;  %vm13952_vm2 = vmpackc.low %vm3384_vm1, %vm3384_vm1 }
 0x1a0   :  { %v13932_v59 = vpop.permute.xlu0 %3373 }
 0x1a1   :  { %vm3376_vm3 = vcmp.gt.f32.partialorder %v13932_v59, 0.0 }
 0x1a2   :  { %vm13962_vm4 = vmpackc.low %vm3376_vm3, %vm3376_vm3 }
 0x1a5   :  { %v12526_v41 = vpop.eup %12525 }
 0x1a6   :  { %v12528_v44 = vpop.eup %12527  ;;  %v3324_v14 = vadd.f32 1.0, %v12526_v41  ;;  %v3411_v41 = vld [vmem:[%s17165_s7 + $0x50] sm:$0xff] }
 0x1a7   :  { %v3330_v50 = vadd.f32 1.0, %v12528_v44  ;;  %v12530_v30 = vpop.eup %12529  ;;  %v3415_v44 = vld [vmem:[%s17165_s7 + $0x70] sm:$0xff] }
 0x1a8   :  { %12533 = vrcp.f32 %v3324_v14  ;;  %v12532_v40 = vpop.eup %12531  ;;  %v3337_v47 = vadd.f32 1.0, %v12530_v30  ;;  %v3412_v14 = vld [vmem:[%s17165_s7 + $0x58] sm:$0xff]  ;;  %v13998_v42 = vcombine.low %v3411_v41, %v3415_v44 }
 0x1a9   :  { %12535 = vrcp.f32 %v3330_v50  ;;  %v3416_v50 = vld [vmem:[%s17165_s7 + $0x78] sm:$0xff] }
 0x1aa   :  { %12537 = vrcp.f32 %v3337_v47  ;;  %v3419_v47 = vld [vmem:[%s17165_s7 + $0x90] sm:$0xff]  ;;  %v14000_v43 = vcombine.low %v3412_v14, %v3416_v50  ;;  %v3460_v30 = vld [vmem:[%s17165_s7 + $0x1d8] sm:$0xff] }
 0x1b2   :  { %v12534_v57 = vpop.eup %12533 }
 0x1b3   :  { %v12536_v4 = vpop.eup %12535  ;;  %v3341_v26 = vmul.f32 %v12534_v57, %v12532_v40  ;;  %v4436_v57 = vld [vmem:[%s17165_s7 + $0x28] sm:$0xff] }
 0x1b4   :  { %v3340_v29 = vmul.f32 0.0, %v12536_v4  ;;  %v12538_v58 = vpop.eup %12537 }
 0x1b6   :  { %v13881_v13 = vadd.f32 %v3341_v26, %v3340_v29  ;;  %v13977_v26 = vcombine.high %v3411_v41, %v3415_v44  ;;  %v13979_v29 = vcombine.high %v3412_v14, %v3416_v50  ;;  %v3459_v14 = vld [vmem:[%s17165_s7 + $0x1d0] sm:$0xff] }
 0x1b7   :  { %v3463_v50 = vld [vmem:[%s17165_s7 + $0x1f0] sm:$0xff] }
 0x1b8   :  { %12539 = vtanh.f32 %v13881_v13 }
 0x1c2   :  { %v12540_v35 = vpop.eup %12539 }
 0x1c3   :  { %v13884_v11 = vmul.f32 %v12540_v35, %v12538_v58  ;;  %v3423_v58 = vld [vmem:[%s17165_s7 + $0xb0] sm:$0xff]  ;;  %v3420_v35 = vld [vmem:[%s17165_s7 + $0x98] sm:$0xff] }
 0x1c5   :  { %v13968_v4 = vpack.c.bf16 %v13884_v11, %v13884_v11 }
 0x1d6   :  { %v3256_v51 = vpop.f32.mrb[60].mxu0  ;;  %v3297_v52 = vpop.f32.mrb[60].mxu1 }
 0x1d7   :  { %v12339_v55 = vadd.f32 %v3256_v51, %v13901_v45  ;;  %v3258_v61 = vpop.f32.mrb[61].mxu0  ;;  %v3299_v62 = vpop.f32.mrb[61].mxu1  ;;  %v12341_v33 = vadd.f32 %v3297_v52, %v13921_v27  ;;  %v14006_v51 = vcombine.high %v3419_v47, %v3423_v58  ;;  %v14008_v52 = vcombine.high %v3420_v35, %v3424_v23 }
 0x1d8   :  { %v12340_v0 = vadd.f32 %v3258_v61, %v13903_v46  ;;  %v3260_v1 = vpop.f32.mrb[62].mxu0  ;;  %v3301_v6 = vpop.f32.mrb[62].mxu1  ;;  %v12342_v19 = vadd.f32 %v3299_v62, %v13912_v16  ;;  %v3428_v61 = vld [vmem:[%s17165_s7 + $0xd8] sm:$0xff] }
 0x1d9   :  { %v11223_v7 = vmul.f32 -1.442695, %v12339_v55  ;;  %v3261_v9 = vpop.f32.mrb[63].mxu0  ;;  %v3302_v10 = vpop.f32.mrb[63].mxu1  ;;  %v3431_v55 = vld [vmem:[%s17165_s7 + $0xf0] sm:$0xff]  ;;  %v3432_v62 = vld [vmem:[%s17165_s7 + $0xf8] sm:$0xff]  ;;  %v14028_v1 = vcombine.low %v3420_v35, %v3424_v23  ;;  %v14128_v35 = vcombine.high %v3459_v14, %v3463_v50 }
 0x1da   :  { %v11224_v15 = vmul.f32 -1.442695, %v12340_v0  ;;  %v11225_v28 = vmul.f32 -1.442695, %v12342_v19  ;;  %v14026_v0 = vcombine.low %v3419_v47, %v3423_v58  ;;  %v14032_v6 = vcombine.high %v3427_v54, %v3431_v55  ;;  %v3435_v9 = vld [vmem:[%s17165_s7 + $0x110] sm:$0xff] }
 0x1db   :  { %12541 = vpow2.f32 %v11223_v7  ;;  %v14034_v7 = vcombine.high %v3428_v61, %v3432_v62  ;;  %v3439_v10 = vld [vmem:[%s17165_s7 + $0x130] sm:$0xff]  ;;  %v14050_v19 = vcombine.low %v3427_v54, %v3431_v55  ;;  %v14052_v24 = vcombine.low %v3428_v61, %v3432_v62  ;;  %v3468_v54 = vld [vmem:[%s17165_s7 + $0x218] sm:$0xff] }
 0x1dc   :  { %12543 = vpow2.f32 %v11224_v15  ;;  %v3436_v15 = vld [vmem:[%s17165_s7 + $0x118] sm:$0xff]  ;;  %v14146_v61 = vcombine.low %v3459_v14, %v3463_v50 }
 0x1dd   :  { %12545 = vpow2.f32 %v11225_v28  ;;  %v14056_v28 = vcombine.high %v3435_v9, %v3439_v10  ;;  %v14058_v25 = vcombine.high %v3436_v15, %v3440_v18  ;;  %v3472_v55 = vld [vmem:[%s17165_s7 + $0x238] sm:$0xff] }
 0x1de   :  { %12547 = vtanh.f32 %v12341_v33  ;;  %v3443_v33 = vld [vmem:[%s17165_s7 + $0x150] sm:$0xff]  ;;  %v3484_v14 = vld [vmem:[%s17165_s7 + $0x298] sm:$0xff] }
 0x1df   :  { %v3488_v50 = vld [vmem:[%s17165_s7 + $0x2b8] sm:$0xff] }
 0x1e5   :  { %v12542_v39 = vpop.eup %12541 }
 0x1e6   :  { %v12544_v48 = vpop.eup %12543  ;;  %v3349_v49 = vadd.f32 1.0, %v12542_v39  ;;  %v3447_v39 = vld [vmem:[%s17165_s7 + $0x170] sm:$0xff] }
 0x1e7   :  { %v3355_v53 = vadd.f32 1.0, %v12544_v48  ;;  %v12546_v56 = vpop.eup %12545  ;;  %v3444_v48 = vld [vmem:[%s17165_s7 + $0x158] sm:$0xff] }
 0x1e8   :  { %12549 = vrcp.f32 %v3349_v49  ;;  %v12548_v2 = vpop.eup %12547  ;;  %v3362_v17 = vadd.f32 1.0, %v12546_v56  ;;  %v3448_v49 = vld [vmem:[%s17165_s7 + $0x178] sm:$0xff]  ;;  %v14076_v56 = vcombine.low %v3436_v15, %v3440_v18  ;;  %v3475_v15 = vld [vmem:[%s17165_s7 + $0x250] sm:$0xff] }
 0x1e9   :  { %12551 = vrcp.f32 %v3355_v53  ;;  %v14074_v53 = vcombine.low %v3435_v9, %v3439_v10  ;;  %v14154_v10 = vcombine.high %v3468_v54, %v3472_v55  ;;  %v3479_v18 = vld [vmem:[%s17165_s7 + $0x270] sm:$0xff] }
 0x1ea   :  { %12553 = vrcp.f32 %v3362_v17  ;;  %v3452_v17 = vld [vmem:[%s17165_s7 + $0x198] sm:$0xff] }
 0x1f2   :  { %v12550_v3 = vpop.eup %12549 }
 0x1f3   :  { %v12552_v5 = vpop.eup %12551  ;;  %v3366_v8 = vmul.f32 %v12550_v3, %v12548_v2  ;;  %v14080_v2 = vcombine.high %v3443_v33, %v3447_v39  ;;  %v14082_v3 = vcombine.high %v3444_v48, %v3448_v49 }
 0x1f4   :  { %v3365_v20 = vmul.f32 0.0, %v12552_v5  ;;  %v12554_v32 = vpop.eup %12553  ;;  %v3451_v5 = vld [vmem:[%s17165_s7 + $0x190] sm:$0xff] }
 0x1f6   :  { %v13927_v21 = vadd.f32 %v3366_v8, %v3365_v20  ;;  %v3455_v8 = vld [vmem:[%s17165_s7 + $0x1b0] sm:$0xff]  ;;  %v3456_v20 = vld [vmem:[%s17165_s7 + $0x1b8] sm:$0xff] }
 0x1f7   :  { %v14104_v41 = vcombine.high %v3451_v5, %v3455_v8  ;;  %v14106_v44 = vcombine.high %v3452_v17, %v3456_v20  ;;  %v14122_v47 = vcombine.low %v3451_v5, %v3455_v8  ;;  %v14124_v58 = vcombine.low %v3452_v17, %v3456_v20  ;;  %v3483_v17 = vld [vmem:[%s17165_s7 + $0x290] sm:$0xff] }
 0x1f8   :  { %12555 = vtanh.f32 %v13927_v21  ;;  %v14176_v5 = vcombine.high %v3475_v15, %v3479_v18  ;;  %v3487_v20 = vld [vmem:[%s17165_s7 + $0x2b0] sm:$0xff] }
 0x1fa   :  { %17546 = vst [vmem:[#allocation8_spill] sm:$0xff] %v14176_v5 }
 0x202   :  { %v12556_v60 = vpop.eup %12555 }
 0x203   :  { %v13934_v12 = vmul.f32 %v12556_v60, %v12554_v32  ;;  %v14098_v32 = vcombine.low %v3443_v33, %v3447_v39  ;;  %v14100_v60 = vcombine.low %v3444_v48, %v3448_v49  ;;  %v3476_v33 = vld [vmem:[%s17165_s7 + $0x258] sm:$0xff]  ;;  %v14172_v49 = vcombine.low %v3468_v54, %v3472_v55  ;;  %v3491_v54 = vld [vmem:[%s17165_s7 + $0x2d0] sm:$0xff] }
 0x204   :  { %v3480_v39 = vld [vmem:[%s17165_s7 + $0x278] sm:$0xff]  ;;  %v3495_v55 = vld [vmem:[%s17165_s7 + $0x2f0] sm:$0xff] }
 0x205   :  { %v12205_v40 = vpack.c.bf16 %v13934_v12, %v13934_v12  ;;  %17545 = vst [vmem:[#allocation7_spill] sm:$0xff] %v14172_v49  ;;  %v14178_v8 = vcombine.high %v3476_v33, %v3480_v39 }
 0x207   :  { %12206 = vmatprep.mubr.msk.bf16.mxu0 %vm13952_vm2, %v12205_v40  ;;  %12212 = vmatprep.mubr.msk.bf16.mxu1 %vm13952_vm2, %v12205_v40  ;;  %17547 = vst [vmem:[#allocation9_spill] sm:$0xff] %v14178_v8 }
 0x208   :  { %12209 = vmatmul.mubr.msk.bf16.vlgmr.msra.gmra.mrb[8].mxu0 %vm13962_vm4, %v13968_v4  ;;  %12215 = vmatmul.mubr.msk.bf16.vlgmr.msra.gmra.mrb[8].mxu1 %vm13962_vm4, %v13968_v4 }
 0x209   :  { %4252 = vmatpush1.bf16.msra.mxu0 %v17543_v36  ;;  %4293 = vmatpush1.bf16.msra.mxu1 %v17544_v37  ;;  %v3467_v36 = vld [vmem:[%s17165_s7 + $0x210] sm:$0xff] }
 0x20a   :  { %12218 = vmatprep.mubr.msk.bf16.mxu0 %vm13952_vm2, %v12205_v40  ;;  %12224 = vmatprep.mubr.msk.bf16.mxu1 %vm13952_vm2, %v12205_v40  ;;  %v3464_v40 = vld [vmem:[%s17165_s7 + $0x1f8] sm:$0xff]  ;;  %v3471_v37 = vld [vmem:[%s17165_s7 + $0x230] sm:$0xff] }
 0x20b   :  { %4253 = vmatprep.subr.bf16.mxu0 %v13977_v26  ;;  %4294 = vmatprep.subr.bf16.mxu1 %v13979_v29  ;;  %v14130_v23 = vcombine.high %v3460_v30, %v3464_v40  ;;  %v14148_v62 = vcombine.low %v3460_v30, %v3464_v40  ;;  %v14152_v9 = vcombine.high %v3467_v36, %v3471_v37 }
 0x20c   :  { %v14170_v48 = vcombine.low %v3467_v36, %v3471_v37  ;;  %v14194_v30 = vcombine.low %v3475_v15, %v3479_v18  ;;  %v14196_v40 = vcombine.low %v3476_v33, %v3480_v39  ;;  %v14200_v36 = vcombine.high %v3483_v17, %v3487_v20  ;;  %v3492_v15 = vld [vmem:[%s17165_s7 + $0x2d8] sm:$0xff]  ;;  %v17640_v22 = vld [vmem:[#allocation7_spill] sm:$0xff] }
 0x20d   :  { %4254 = vmatpush1.bf16.msra.mxu0 %v13998_v42  ;;  %4295 = vmatpush1.bf16.msra.mxu1 %v14000_v43  ;;  %v14202_v37 = vcombine.high %v3484_v14, %v3488_v50  ;;  %v3496_v18 = vld [vmem:[%s17165_s7 + $0x2f8] sm:$0xff]  ;;  %v14218_v33 = vcombine.low %v3483_v17, %v3487_v20  ;;  %v14220_v39 = vcombine.low %v3484_v14, %v3488_v50 }
 0x20e   :  { %4255 = vmatprep.subr.bf16.mxu0 %v14006_v51  ;;  %4296 = vmatprep.subr.bf16.mxu1 %v14008_v52  ;;  %17548 = vst [vmem:[#allocation10_spill] sm:$0xff] %v14194_v30  ;;  %17549 = vst [vmem:[#allocation11_spill] sm:$0xff] %v14196_v40  ;;  %v3500_v17 = vld [vmem:[%s17165_s7 + $0x318] sm:$0xff]  ;;  %v14242_v14 = vcombine.low %v3491_v54, %v3495_v55  ;;  %v14244_v50 = vcombine.low %v3492_v15, %v3496_v18 }
 0x20f   :  { %17550 = vst [vmem:[#allocation12_spill] sm:$0xff] %v14200_v36  ;;  %17551 = vst [vmem:[#allocation13_spill] sm:$0xff] %v14202_v37  ;;  %v3504_v20 = vld [vmem:[%s17165_s7 + $0x338] sm:$0xff] }
 0x210   :  { %17552 = vst [vmem:[#allocation14_spill] sm:$0xff] %v14218_v33  ;;  %17553 = vst [vmem:[#allocation15_spill] sm:$0xff] %v14220_v39 }
 0x211   :  { %4256 = vmatpush1.bf16.msra.mxu0 %v14026_v0  ;;  %4297 = vmatpush1.bf16.msra.mxu1 %v14028_v1  ;;  %17556 = vst [vmem:[#allocation18_spill] sm:$0xff] %v14242_v14  ;;  %17557 = vst [vmem:[#allocation19_spill] sm:$0xff] %v14244_v50 }
 0x212   :  { %4257 = vmatprep.subr.bf16.mxu0 %v14032_v6  ;;  %4298 = vmatprep.subr.bf16.mxu1 %v14034_v7 }
 0x215   :  { %4258 = vmatpush1.bf16.msra.mxu0 %v14050_v19  ;;  %4299 = vmatpush1.bf16.msra.mxu1 %v14052_v24 }
 0x216   :  { %4259 = vmatprep.subr.bf16.mxu0 %v14056_v28  ;;  %4300 = vmatprep.subr.bf16.mxu1 %v14058_v25 }
 0x219   :  { %4260 = vmatpush1.bf16.msra.mxu0 %v14074_v53  ;;  %4301 = vmatpush1.bf16.msra.mxu1 %v14076_v56 }
 0x21a   :  { %4261 = vmatprep.subr.bf16.mxu0 %v14080_v2  ;;  %4302 = vmatprep.subr.bf16.mxu1 %v14082_v3 }
 0x21d   :  { %4262 = vmatpush1.bf16.msra.mxu0 %v14098_v32  ;;  %4303 = vmatpush1.bf16.msra.mxu1 %v14100_v60 }
 0x21e   :  { %4263 = vmatprep.subr.bf16.mxu0 %v14104_v41  ;;  %4304 = vmatprep.subr.bf16.mxu1 %v14106_v44 }
 0x221   :  { %4264 = vmatpush1.bf16.msra.mxu0 %v14122_v47  ;;  %4305 = vmatpush1.bf16.msra.mxu1 %v14124_v58 }
 0x222   :  { %4265 = vmatprep.subr.bf16.mxu0 %v14128_v35  ;;  %4306 = vmatprep.subr.bf16.mxu1 %v14130_v23 }
 0x225   :  { %4266 = vmatpush1.bf16.msra.mxu0 %v14146_v61  ;;  %4307 = vmatpush1.bf16.msra.mxu1 %v14148_v62 }
 0x226   :  { %4267 = vmatprep.subr.bf16.mxu0 %v14152_v9  ;;  %4308 = vmatprep.subr.bf16.mxu1 %v14154_v10 }
 0x229   :  { %4268 = vmatpush1.bf16.msra.mxu0 %v14170_v48  ;;  %4309 = vmatpush1.bf16.msra.mxu1 %v14172_v49  ;;  %v3499_v49 = vld [vmem:[%s17165_s7 + $0x310] sm:$0xff] }
 0x22a   :  { %4269 = vmatprep.subr.bf16.mxu0 %v14176_v5  ;;  %4310 = vmatprep.subr.bf16.mxu1 %v14178_v8  ;;  %v14224_v8 = vcombine.high %v3491_v54, %v3495_v55  ;;  %v14226_v5 = vcombine.high %v3492_v15, %v3496_v18  ;;  %v3508_v54 = vld [vmem:[%s17165_s7 + $0x358] sm:$0xff]  ;;  %v14268_v18 = vcombine.low %v3500_v17, %v3504_v20 }
 0x22b   :  { %v3512_v55 = vld [vmem:[%s17165_s7 + $0x378] sm:$0xff] }
 0x22c   :  { %17554 = vst [vmem:[#allocation16_spill] sm:$0xff] %v14224_v8  ;;  %17555 = vst [vmem:[#allocation17_spill] sm:$0xff] %v14226_v5 }
 0x22d   :  { %4270 = vmatpush1.bf16.msra.mxu0 %v14194_v30  ;;  %4311 = vmatpush1.bf16.msra.mxu1 %v14196_v40  ;;  %v3503_v40 = vld [vmem:[%s17165_s7 + $0x330] sm:$0xff]  ;;  %17561 = vst [vmem:[#allocation23_spill] sm:$0xff] %v14268_v18 }
 0x22e   :  { %4271 = vmatprep.subr.bf16.mxu0 %v14200_v36  ;;  %4312 = vmatprep.subr.bf16.mxu1 %v14202_v37  ;;  %v14248_v37 = vcombine.high %v3499_v49, %v3503_v40  ;;  %v14250_v36 = vcombine.high %v3500_v17, %v3504_v20  ;;  %v3507_v30 = vld [vmem:[%s17165_s7 + $0x350] sm:$0xff]  ;;  %v14266_v15 = vcombine.low %v3499_v49, %v3503_v40  ;;  %v3516_v49 = vld [vmem:[%s17165_s7 + $0x398] sm:$0xff] }
 0x22f   :  { %v3520_v40 = vld [vmem:[%s17165_s7 + $0x3b8] sm:$0xff]  ;;  %v14292_v20 = vcombine.low %v3508_v54, %v3512_v55 }
 0x230   :  { %17558 = vst [vmem:[#allocation20_spill] sm:$0xff] %v14248_v37  ;;  %17559 = vst [vmem:[#allocation21_spill] sm:$0xff] %v14250_v36 }
 0x231   :  { %4272 = vmatpush1.bf16.msra.mxu0 %v14218_v33  ;;  %4313 = vmatpush1.bf16.msra.mxu1 %v14220_v39  ;;  %v3511_v39 = vld [vmem:[%s17165_s7 + $0x370] sm:$0xff]  ;;  %17560 = vst [vmem:[#allocation22_spill] sm:$0xff] %v14266_v15  ;;  %17565 = vst [vmem:[#allocation27_spill] sm:$0xff] %v14292_v20 }
 0x232   :  { %4273 = vmatprep.subr.bf16.mxu0 %v14224_v8  ;;  %4314 = vmatprep.subr.bf16.mxu1 %v14226_v5  ;;  %v14272_v5 = vcombine.high %v3507_v30, %v3511_v39  ;;  %v14274_v8 = vcombine.high %v3508_v54, %v3512_v55  ;;  %v3515_v33 = vld [vmem:[%s17165_s7 + $0x390] sm:$0xff]  ;;  %v14290_v17 = vcombine.low %v3507_v30, %v3511_v39  ;;  %v3524_v30 = vld [vmem:[%s17165_s7 + $0x3d8] sm:$0xff] }
 0x233   :  { %v3528_v39 = vld [vmem:[%s17165_s7 + $0x3f8] sm:$0xff]  ;;  %v14316_v55 = vcombine.low %v3516_v49, %v3520_v40 }
 0x234   :  { %17562 = vst [vmem:[#allocation24_spill] sm:$0xff] %v14272_v5  ;;  %17563 = vst [vmem:[#allocation25_spill] sm:$0xff] %v14274_v8 }
 0x235   :  { %4274 = vmatpush1.bf16.msra.mxu0 %v14242_v14  ;;  %4315 = vmatpush1.bf16.msra.mxu1 %v14244_v50  ;;  %v3519_v50 = vld [vmem:[%s17165_s7 + $0x3b0] sm:$0xff]  ;;  %17564 = vst [vmem:[#allocation26_spill] sm:$0xff] %v14290_v17  ;;  %17569 = vst [vmem:[#allocation31_spill] sm:$0xff] %v14316_v55 }
 0x236   :  { %4275 = vmatprep.subr.bf16.mxu0 %v14248_v37  ;;  %4316 = vmatprep.subr.bf16.mxu1 %v14250_v36  ;;  %v14296_v36 = vcombine.high %v3515_v33, %v3519_v50  ;;  %v14298_v37 = vcombine.high %v3516_v49, %v3520_v40  ;;  %v3523_v14 = vld [vmem:[%s17165_s7 + $0x3d0] sm:$0xff]  ;;  %v14314_v54 = vcombine.low %v3515_v33, %v3519_v50  ;;  %v4431_v33 = vld [vmem:[%s17165_s7] sm:$0xff]  ;;  %v4432_v50 = vld [vmem:[%s17165_s7 + $0x8] sm:$0xff] }
 0x237   :  { %v4443_v40 = vld [vmem:[%s17165_s7 + $0x60] sm:$0xff] }
 0x238   :  { %17566 = vst [vmem:[#allocation28_spill] sm:$0xff] %v14296_v36  ;;  %17567 = vst [vmem:[#allocation29_spill] sm:$0xff] %v14298_v37 }
 0x239   :  { %4276 = vmatpush1.bf16.msra.mxu0 %v14266_v15  ;;  %4317 = vmatpush1.bf16.msra.mxu1 %v14268_v18  ;;  %v3527_v18 = vld [vmem:[%s17165_s7 + $0x3f0] sm:$0xff]  ;;  %17568 = vst [vmem:[#allocation30_spill] sm:$0xff] %v14314_v54 }
 0x23a   :  { %4277 = vmatprep.subr.bf16.mxu0 %v14272_v5  ;;  %4318 = vmatprep.subr.bf16.mxu1 %v14274_v8  ;;  %v14320_v8 = vcombine.high %v3523_v14, %v3527_v18  ;;  %v14322_v5 = vcombine.high %v3524_v30, %v3528_v39  ;;  %v14326_v15 = vcombine.low %v3523_v14, %v3527_v18  ;;  %v4435_v14 = vld [vmem:[%s17165_s7 + $0x20] sm:$0xff] }
 0x23b   :  { %v14349_v18 = vcombine.low %v4431_v33, %v4435_v14  ;;  %v14351_v49 = vcombine.high %v4431_v33, %v4435_v14  ;;  %v4440_v33 = vld [vmem:[%s17165_s7 + $0x48] sm:$0xff] }
 0x23c   :  { %17570 = vst [vmem:[#allocation32_spill] sm:$0xff] %v14320_v8  ;;  %17571 = vst [vmem:[#allocation33_spill] sm:$0xff] %v14322_v5  ;;  %v4444_v14 = vld [vmem:[%s17165_s7 + $0x68] sm:$0xff] }
 0x23d   :  { %4278 = vmatpush1.bf16.msra.mxu0 %v14290_v17  ;;  %4319 = vmatpush1.bf16.msra.mxu1 %v14292_v20  ;;  %17572 = vst [vmem:[#allocation34_spill] sm:$0xff] %v14326_v15  ;;  %v14328_v17 = vcombine.low %v3524_v30, %v3528_v39  ;;  %17574 = vst [vmem:[#allocation36_spill] sm:$0xff] %v14349_v18  ;;  %v14362_v30 = vcombine.low %v4432_v50, %v4436_v57 }
 0x23e   :  { %4279 = vmatprep.subr.bf16.mxu0 %v14296_v36  ;;  %4320 = vmatprep.subr.bf16.mxu1 %v14298_v37  ;;  %17575 = vst [vmem:[#allocation37_spill] sm:$0xff] %v14351_v49  ;;  %v14364_v39 = vcombine.high %v4432_v50, %v4436_v57  ;;  %v4451_v50 = vld [vmem:[%s17165_s7 + $0xa0] sm:$0xff]  ;;  %v4448_v57 = vld [vmem:[%s17165_s7 + $0x88] sm:$0xff] }
 0x23f   :  { %17573 = vst [vmem:[#allocation35_spill] sm:$0xff] %v14328_v17  ;;  %17576 = vst [vmem:[#allocation38_spill] sm:$0xff] %v14362_v30 }
 0x240   :  { %17577 = vst [vmem:[#allocation39_spill] sm:$0xff] %v14364_v39 }
 0x241   :  { %4280 = vmatpush1.bf16.msra.mxu0 %v14314_v54  ;;  %4321 = vmatpush1.bf16.msra.mxu1 %v14316_v55 }
 0x242   :  { %4281 = vmatprep.subr.bf16.mxu0 %v14320_v8  ;;  %4322 = vmatprep.subr.bf16.mxu1 %v14322_v5  ;;  %v14378_v5 = vcombine.high %v4440_v33, %v4444_v14  ;;  %v4452_v8 = vld [vmem:[%s17165_s7 + $0xa8] sm:$0xff] }
 0x243   :  { %v14400_v37 = vcombine.high %v4448_v57, %v4452_v8 }
 0x244   :  { %17579 = vst [vmem:[#allocation41_spill] sm:$0xff] %v14378_v5 }
 0x245   :  { %4282 = vmatpush1.bf16.msra.mxu0 %v14326_v15  ;;  %4323 = vmatpush1.bf16.msra.mxu1 %v14328_v17  ;;  %v4447_v15 = vld [vmem:[%s17165_s7 + $0x80] sm:$0xff]  ;;  %17583 = vst [vmem:[#allocation45_spill] sm:$0xff] %v14400_v37 }
 0x246   :  { %5199 = vmatprep.subr.bf16.mxu0 %v14351_v49  ;;  %5240 = vmatprep.subr.bf16.mxu1 %v14364_v39  ;;  %v14395_v49 = vcombine.low %v4440_v33, %v4444_v14  ;;  %v14397_v54 = vcombine.high %v4447_v15, %v4451_v50  ;;  %v4455_v39 = vld [vmem:[%s17165_s7 + $0xc0] sm:$0xff]  ;;  %v4460_v33 = vld [vmem:[%s17165_s7 + $0xe8] sm:$0xff]  ;;  %v14415_v14 = vcombine.low %v4447_v15, %v4451_v50 }
 0x247   :  { %v4464_v50 = vld [vmem:[%s17165_s7 + $0x108] sm:$0xff] }
 0x248   :  { %12221 = vmatmul.mubr.msk.bf16.vlgmr.msra.gmra.mrb[52].mxu0 %vm13962_vm4, %v13968_v4  ;;  %12227 = vmatmul.mubr.msk.bf16.vlgmr.msra.gmra.mrb[52].mxu1 %vm13962_vm4, %v13968_v4  ;;  %v4439_v4 = vld [vmem:[%s17165_s7 + $0x40] sm:$0xff]  ;;  %17581 = vst [vmem:[#allocation43_spill] sm:$0xff] %v14395_v49  ;;  %17582 = vst [vmem:[#allocation44_spill] sm:$0xff] %v14397_v54 }
 0x249   :  { %v14366_v17 = vcombine.high %v4439_v4, %v4443_v40  ;;  %5200 = vmatpush1.bf16.msra.mxu0 %v14349_v18  ;;  %v14391_v55 = vcombine.low %v4439_v4, %v4443_v40  ;;  %5241 = vmatpush1.bf16.msra.mxu1 %v14362_v30  ;;  %v4459_v4 = vld [vmem:[%s17165_s7 + $0xe0] sm:$0xff]  ;;  %v4456_v40 = vld [vmem:[%s17165_s7 + $0xc8] sm:$0xff]  ;;  %17584 = vst [vmem:[#allocation46_spill] sm:$0xff] %v14415_v14 }
 0x24a   :  { %5242 = vmatprep.subr.bf16.mxu1 %v14378_v5  ;;  %v14419_v5 = vcombine.low %v4448_v57, %v4452_v8  ;;  %v14424_v30 = vcombine.high %v4456_v40, %v4460_v33  ;;  %v14427_v18 = vcombine.low %v4455_v39, %v4459_v4  ;;  %v14431_v15 = vcombine.low %v4456_v40, %v4460_v33  ;;  %v4463_v8 = vld [vmem:[%s17165_s7 + $0x100] sm:$0xff] }
 0x24b   :  { %17578 = vst [vmem:[#allocation40_spill] sm:$0xff] %v14366_v17  ;;  %17580 = vst [vmem:[#allocation42_spill] sm:$0xff] %v14391_v55  ;;  %5201 = vmatprep.subr.bf16.mxu0 %v14366_v17  ;;  %v14421_v17 = vcombine.high %v4455_v39, %v4459_v4  ;;  %v4467_v39 = vld [vmem:[%s17165_s7 + $0x120] sm:$0xff]  ;;  %v4468_v4 = vld [vmem:[%s17165_s7 + $0x128] sm:$0xff] }
 0x24c   :  { %17585 = vst [vmem:[#allocation47_spill] sm:$0xff] %v14419_v5  ;;  %17587 = vst [vmem:[#allocation49_spill] sm:$0xff] %v14424_v30  ;;  %v14445_v57 = vcombine.high %v4463_v8, %v4467_v39  ;;  %v14450_v40 = vcombine.low %v4463_v8, %v4467_v39  ;;  %v14452_v33 = vcombine.low %v4464_v50, %v4468_v4  ;;  %v4472_v8 = vld [vmem:[%s17165_s7 + $0x148] sm:$0xff] }
 0x24d   :  { %5202 = vmatpush1.bf16.msra.mxu0 %v14391_v55  ;;  %5243 = vmatpush1.bf16.msra.mxu1 %v14395_v49  ;;  %17586 = vst [vmem:[#allocation48_spill] sm:$0xff] %v14421_v17  ;;  %17588 = vst [vmem:[#allocation50_spill] sm:$0xff] %v14427_v18 }
 0x24e   :  { %5203 = vmatprep.subr.bf16.mxu0 %v14397_v54  ;;  %5244 = vmatprep.subr.bf16.mxu1 %v14400_v37  ;;  %17589 = vst [vmem:[#allocation51_spill] sm:$0xff] %v14431_v15  ;;  %17590 = vst [vmem:[#allocation52_spill] sm:$0xff] %v14445_v57  ;;  %v4548_v37 = vld [vmem:[%s17165_s7 + $0x3a8] sm:$0xff] }
 0x24f   :  { %17591 = vst [vmem:[#allocation53_spill] sm:$0xff] %v14450_v40  ;;  %17592 = vst [vmem:[#allocation54_spill] sm:$0xff] %v14452_v33 }
 0x251   :  { %5204 = vmatpush1.bf16.msra.mxu0 %v14415_v14  ;;  %5245 = vmatpush1.bf16.msra.mxu1 %v14419_v5  ;;  %v4543_v5 = vld [vmem:[%s17165_s7 + $0x380] sm:$0xff] }
 0x252   :  { %5205 = vmatprep.subr.bf16.mxu0 %v14421_v17  ;;  %5246 = vmatprep.subr.bf16.mxu1 %v14424_v30  ;;  %v4475_v30 = vld [vmem:[%s17165_s7 + $0x160] sm:$0xff] }
 0x253   :  { %v4547_v14 = vld [vmem:[%s17165_s7 + $0x3a0] sm:$0xff] }
 0x254   :  { %v14682_v54 = vcombine.high %v4543_v5, %v4547_v14 }
 0x255   :  { %5206 = vmatpush1.bf16.msra.mxu0 %v14427_v18  ;;  %5247 = vmatpush1.bf16.msra.mxu1 %v14431_v15  ;;  %v14454_v15 = vcombine.high %v4464_v50, %v4468_v4  ;;  %v4471_v18 = vld [vmem:[%s17165_s7 + $0x140] sm:$0xff]  ;;  %v4476_v50 = vld [vmem:[%s17165_s7 + $0x168] sm:$0xff] }
 0x256   :  { %5207 = vmatprep.subr.bf16.mxu0 %v14445_v57  ;;  %v14469_v39 = vcombine.high %v4471_v18, %v4475_v30  ;;  %v14474_v4 = vcombine.low %v4471_v18, %v4475_v30  ;;  %v4483_v57 = vld [vmem:[%s17165_s7 + $0x1a0] sm:$0xff]  ;;  %v4480_v18 = vld [vmem:[%s17165_s7 + $0x188] sm:$0xff]  ;;  %17629 = vst [vmem:[#allocation91_spill] sm:$0xff] %v14682_v54 }
 0x257   :  { %17593 = vst [vmem:[#allocation55_spill] sm:$0xff] %v14454_v15  ;;  %5248 = vmatprep.subr.bf16.mxu1 %v14454_v15  ;;  %v14478_v15 = vcombine.high %v4472_v8, %v4476_v50 }
 0x258   :  { %17594 = vst [vmem:[#allocation56_spill] sm:$0xff] %v14469_v39  ;;  %17595 = vst [vmem:[#allocation57_spill] sm:$0xff] %v14474_v4 }
 0x259   :  { %5208 = vmatpush1.bf16.msra.mxu0 %v14450_v40  ;;  %5249 = vmatpush1.bf16.msra.mxu1 %v14452_v33  ;;  %v14476_v40 = vcombine.low %v4472_v8, %v4476_v50  ;;  %17597 = vst [vmem:[#allocation59_spill] sm:$0xff] %v14478_v15  ;;  %v4479_v33 = vld [vmem:[%s17165_s7 + $0x180] sm:$0xff]  ;;  %v4484_v8 = vld [vmem:[%s17165_s7 + $0x1a8] sm:$0xff] }
 0x25a   :  { %5209 = vmatprep.subr.bf16.mxu0 %v14469_v39  ;;  %5250 = vmatprep.subr.bf16.mxu1 %v14478_v15  ;;  %v14493_v30 = vcombine.high %v4479_v33, %v4483_v57  ;;  %v14498_v50 = vcombine.low %v4479_v33, %v4483_v57  ;;  %v14502_v15 = vcombine.high %v4480_v18, %v4484_v8  ;;  %v4491_v39 = vld [vmem:[%s17165_s7 + $0x1e0] sm:$0xff]  ;;  %v4488_v57 = vld [vmem:[%s17165_s7 + $0x1c8] sm:$0xff] }
 0x25b   :  { %17596 = vst [vmem:[#allocation58_spill] sm:$0xff] %v14476_v40 }
 0x25c   :  { %17598 = vst [vmem:[#allocation60_spill] sm:$0xff] %v14493_v30  ;;  %17599 = vst [vmem:[#allocation61_spill] sm:$0xff] %v14498_v50 }
 0x25d   :  { %5210 = vmatpush1.bf16.msra.mxu0 %v14474_v4  ;;  %5251 = vmatpush1.bf16.msra.mxu1 %v14476_v40  ;;  %v14500_v4 = vcombine.low %v4480_v18, %v4484_v8  ;;  %17601 = vst [vmem:[#allocation63_spill] sm:$0xff] %v14502_v15  ;;  %v4487_v40 = vld [vmem:[%s17165_s7 + $0x1c0] sm:$0xff]  ;;  %v4492_v18 = vld [vmem:[%s17165_s7 + $0x1e8] sm:$0xff] }
 0x25e   :  { %5211 = vmatprep.subr.bf16.mxu0 %v14493_v30  ;;  %5252 = vmatprep.subr.bf16.mxu1 %v14502_v15  ;;  %v14517_v33 = vcombine.high %v4487_v40, %v4491_v39  ;;  %v14522_v8 = vcombine.low %v4487_v40, %v4491_v39  ;;  %v14526_v15 = vcombine.high %v4488_v57, %v4492_v18  ;;  %v4499_v30 = vld [vmem:[%s17165_s7 + $0x220] sm:$0xff]  ;;  %v4496_v40 = vld [vmem:[%s17165_s7 + $0x208] sm:$0xff] }
 0x25f   :  { %17600 = vst [vmem:[#allocation62_spill] sm:$0xff] %v14500_v4 }
 0x260   :  { %17602 = vst [vmem:[#allocation64_spill] sm:$0xff] %v14517_v33  ;;  %17603 = vst [vmem:[#allocation65_spill] sm:$0xff] %v14522_v8 }
 0x261   :  { %5212 = vmatpush1.bf16.msra.mxu0 %v14498_v50  ;;  %5253 = vmatpush1.bf16.msra.mxu1 %v14500_v4  ;;  %v14524_v50 = vcombine.low %v4488_v57, %v4492_v18  ;;  %17605 = vst [vmem:[#allocation67_spill] sm:$0xff] %v14526_v15  ;;  %v4495_v4 = vld [vmem:[%s17165_s7 + $0x200] sm:$0xff]  ;;  %v4500_v57 = vld [vmem:[%s17165_s7 + $0x228] sm:$0xff] }
 0x262   :  { %5213 = vmatprep.subr.bf16.mxu0 %v14517_v33  ;;  %5254 = vmatprep.subr.bf16.mxu1 %v14526_v15  ;;  %v14541_v39 = vcombine.high %v4495_v4, %v4499_v30  ;;  %v14546_v18 = vcombine.low %v4495_v4, %v4499_v30  ;;  %v14550_v15 = vcombine.high %v4496_v40, %v4500_v57  ;;  %v4507_v33 = vld [vmem:[%s17165_s7 + $0x260] sm:$0xff]  ;;  %v4504_v4 = vld [vmem:[%s17165_s7 + $0x248] sm:$0xff] }
 0x263   :  { %17604 = vst [vmem:[#allocation66_spill] sm:$0xff] %v14524_v50 }
 0x264   :  { %17606 = vst [vmem:[#allocation68_spill] sm:$0xff] %v14541_v39  ;;  %17607 = vst [vmem:[#allocation69_spill] sm:$0xff] %v14546_v18 }
 0x265   :  { %5214 = vmatpush1.bf16.msra.mxu0 %v14522_v8  ;;  %5255 = vmatpush1.bf16.msra.mxu1 %v14524_v50  ;;  %v14548_v8 = vcombine.low %v4496_v40, %v4500_v57  ;;  %17609 = vst [vmem:[#allocation71_spill] sm:$0xff] %v14550_v15  ;;  %v4503_v50 = vld [vmem:[%s17165_s7 + $0x240] sm:$0xff]  ;;  %v4508_v40 = vld [vmem:[%s17165_s7 + $0x268] sm:$0xff] }
 0x266   :  { %5215 = vmatprep.subr.bf16.mxu0 %v14541_v39  ;;  %5256 = vmatprep.subr.bf16.mxu1 %v14550_v15  ;;  %v14565_v30 = vcombine.high %v4503_v50, %v4507_v33  ;;  %v14570_v57 = vcombine.low %v4503_v50, %v4507_v33  ;;  %v14574_v15 = vcombine.high %v4504_v4, %v4508_v40  ;;  %v4515_v39 = vld [vmem:[%s17165_s7 + $0x2a0] sm:$0xff]  ;;  %v4512_v50 = vld [vmem:[%s17165_s7 + $0x288] sm:$0xff] }
 0x267   :  { %17608 = vst [vmem:[#allocation70_spill] sm:$0xff] %v14548_v8 }
 0x268   :  { %17610 = vst [vmem:[#allocation72_spill] sm:$0xff] %v14565_v30  ;;  %17611 = vst [vmem:[#allocation73_spill] sm:$0xff] %v14570_v57 }
 0x269   :  { %5216 = vmatpush1.bf16.msra.mxu0 %v14546_v18  ;;  %5257 = vmatpush1.bf16.msra.mxu1 %v14548_v8  ;;  %v14572_v18 = vcombine.low %v4504_v4, %v4508_v40  ;;  %17613 = vst [vmem:[#allocation75_spill] sm:$0xff] %v14574_v15  ;;  %v4511_v8 = vld [vmem:[%s17165_s7 + $0x280] sm:$0xff]  ;;  %v4516_v4 = vld [vmem:[%s17165_s7 + $0x2a8] sm:$0xff] }
 0x26a   :  { %5217 = vmatprep.subr.bf16.mxu0 %v14565_v30  ;;  %5258 = vmatprep.subr.bf16.mxu1 %v14574_v15  ;;  %v14589_v33 = vcombine.high %v4511_v8, %v4515_v39  ;;  %v14594_v40 = vcombine.low %v4511_v8, %v4515_v39  ;;  %v14598_v15 = vcombine.high %v4512_v50, %v4516_v4  ;;  %v4523_v30 = vld [vmem:[%s17165_s7 + $0x2e0] sm:$0xff]  ;;  %v4520_v8 = vld [vmem:[%s17165_s7 + $0x2c8] sm:$0xff] }
 0x26b   :  { %17612 = vst [vmem:[#allocation74_spill] sm:$0xff] %v14572_v18 }
 0x26c   :  { %17614 = vst [vmem:[#allocation76_spill] sm:$0xff] %v14589_v33  ;;  %17615 = vst [vmem:[#allocation77_spill] sm:$0xff] %v14594_v40 }
 0x26d   :  { %5218 = vmatpush1.bf16.msra.mxu0 %v14570_v57  ;;  %5259 = vmatpush1.bf16.msra.mxu1 %v14572_v18  ;;  %v14596_v57 = vcombine.low %v4512_v50, %v4516_v4  ;;  %17617 = vst [vmem:[#allocation79_spill] sm:$0xff] %v14598_v15  ;;  %v4519_v18 = vld [vmem:[%s17165_s7 + $0x2c0] sm:$0xff]  ;;  %v4524_v50 = vld [vmem:[%s17165_s7 + $0x2e8] sm:$0xff] }
 0x26e   :  { %5219 = vmatprep.subr.bf16.mxu0 %v14589_v33  ;;  %5260 = vmatprep.subr.bf16.mxu1 %v14598_v15  ;;  %v14613_v39 = vcombine.high %v4519_v18, %v4523_v30  ;;  %v14618_v4 = vcombine.low %v4519_v18, %v4523_v30  ;;  %v14622_v15 = vcombine.high %v4520_v8, %v4524_v50  ;;  %v4531_v33 = vld [vmem:[%s17165_s7 + $0x320] sm:$0xff]  ;;  %v4528_v18 = vld [vmem:[%s17165_s7 + $0x308] sm:$0xff] }
 0x26f   :  { %17616 = vst [vmem:[#allocation78_spill] sm:$0xff] %v14596_v57 }
 0x270   :  { %17618 = vst [vmem:[#allocation80_spill] sm:$0xff] %v14613_v39  ;;  %17619 = vst [vmem:[#allocation81_spill] sm:$0xff] %v14618_v4 }
 0x271   :  { %5220 = vmatpush1.bf16.msra.mxu0 %v14594_v40  ;;  %5261 = vmatpush1.bf16.msra.mxu1 %v14596_v57  ;;  %v14620_v40 = vcombine.low %v4520_v8, %v4524_v50  ;;  %17621 = vst [vmem:[#allocation83_spill] sm:$0xff] %v14622_v15  ;;  %v4527_v57 = vld [vmem:[%s17165_s7 + $0x300] sm:$0xff]  ;;  %v4532_v8 = vld [vmem:[%s17165_s7 + $0x328] sm:$0xff] }
 0x272   :  { %5221 = vmatprep.subr.bf16.mxu0 %v14613_v39  ;;  %5262 = vmatprep.subr.bf16.mxu1 %v14622_v15  ;;  %v14637_v30 = vcombine.high %v4527_v57, %v4531_v33  ;;  %v14642_v50 = vcombine.low %v4527_v57, %v4531_v33  ;;  %v4539_v15 = vld [vmem:[%s17165_s7 + $0x360] sm:$0xff]  ;;  %v14654_v39 = vcombine.low %v4528_v18, %v4532_v8  ;;  %v4540_v33 = vld [vmem:[%s17165_s7 + $0x368] sm:$0xff] }
 0x273   :  { %17620 = vst [vmem:[#allocation82_spill] sm:$0xff] %v14620_v40  ;;  %v14656_v17 = vcombine.high %v4528_v18, %v4532_v8  ;;  %v4544_v8 = vld [vmem:[%s17165_s7 + $0x388] sm:$0xff] }
 0x274   :  { %17622 = vst [vmem:[#allocation84_spill] sm:$0xff] %v14637_v30  ;;  %17623 = vst [vmem:[#allocation85_spill] sm:$0xff] %v14642_v50  ;;  %v14694_v49 = vcombine.high %v4544_v8, %v4548_v37 }
 0x275   :  { %5222 = vmatpush1.bf16.msra.mxu0 %v14618_v4  ;;  %5263 = vmatpush1.bf16.msra.mxu1 %v14620_v40  ;;  %v4535_v4 = vld [vmem:[%s17165_s7 + $0x340] sm:$0xff]  ;;  %v4536_v40 = vld [vmem:[%s17165_s7 + $0x348] sm:$0xff]  ;;  %17624 = vst [vmem:[#allocation86_spill] sm:$0xff] %v14654_v39  ;;  %17625 = vst [vmem:[#allocation87_spill] sm:$0xff] %v14656_v17 }
 0x276   :  { %5223 = vmatprep.subr.bf16.mxu0 %v14637_v30  ;;  %v14658_v57 = vcombine.high %v4535_v4, %v4539_v15  ;;  %v14670_v30 = vcombine.low %v4535_v4, %v4539_v15  ;;  %v14672_v18 = vcombine.high %v4536_v40, %v4540_v33  ;;  %5264 = vmatprep.subr.bf16.mxu1 %v14656_v17  ;;  %v4551_v4 = vld [vmem:[%s17165_s7 + $0x3c0] sm:$0xff] }
 0x277   :  { %v14685_v15 = vcombine.low %v4536_v40, %v4540_v33  ;;  %17631 = vst [vmem:[#allocation93_spill] sm:$0xff] %v14694_v49  ;;  %v4552_v40 = vld [vmem:[%s17165_s7 + $0x3c8] sm:$0xff] }
 0x278   :  { %17626 = vst [vmem:[#allocation88_spill] sm:$0xff] %v14658_v57  ;;  %17627 = vst [vmem:[#allocation89_spill] sm:$0xff] %v14670_v30  ;;  %v4556_v33 = vld [vmem:[%s17165_s7 + $0x3e8] sm:$0xff] }
 0x279   :  { %5224 = vmatpush1.bf16.msra.mxu0 %v14642_v50  ;;  %17628 = vst [vmem:[#allocation90_spill] sm:$0xff] %v14672_v18  ;;  %5265 = vmatpush1.bf16.msra.mxu1 %v14654_v39  ;;  %17630 = vst [vmem:[#allocation92_spill] sm:$0xff] %v14685_v15  ;;  %v4555_v50 = vld [vmem:[%s17165_s7 + $0x3e0] sm:$0xff] }
 0x27a   :  { %5225 = vmatprep.subr.bf16.mxu0 %v14658_v57  ;;  %5266 = vmatprep.subr.bf16.mxu1 %v14672_v18  ;;  %v14697_v57 = vcombine.low %v4543_v5, %v4547_v14  ;;  %v14706_v39 = vcombine.high %v4551_v4, %v4555_v50  ;;  %v14709_v18 = vcombine.low %v4544_v8, %v4548_v37  ;;  %v4433_v37 = vld [vmem:[%s17165_s7 + $0x10] sm:$0xff] }
 0x27b   :  { %v14712_v5 = vcombine.high %v4552_v40, %v4556_v33  ;;  %v14715_v14 = vcombine.low %v4551_v4, %v4555_v50  ;;  %v4437_v8 = vld [vmem:[%s17165_s7 + $0x30] sm:$0xff]  ;;  %v4434_v50 = vld [vmem:[%s17165_s7 + $0x18] sm:$0xff] }
 0x27c   :  { %17632 = vst [vmem:[#allocation94_spill] sm:$0xff] %v14697_v57  ;;  %17633 = vst [vmem:[#allocation95_spill] sm:$0xff] %v14706_v39  ;;  %v14732_v4 = vcombine.high %v4433_v37, %v4437_v8 }
 0x27d   :  { %5226 = vmatpush1.bf16.msra.mxu0 %v14670_v30  ;;  %5267 = vmatpush1.bf16.msra.mxu1 %v14685_v15  ;;  %17634 = vst [vmem:[#allocation96_spill] sm:$0xff] %v14709_v18  ;;  %17635 = vst [vmem:[#allocation97_spill] sm:$0xff] %v14712_v5  ;;  %v14719_v30 = vcombine.low %v4552_v40, %v4556_v33  ;;  %v4438_v40 = vld [vmem:[%s17165_s7 + $0x38] sm:$0xff]  ;;  %v14738_v33 = vcombine.low %v4433_v37, %v4437_v8 }
 0x27e   :  { %5227 = vmatprep.subr.bf16.mxu0 %v14682_v54  ;;  %5268 = vmatprep.subr.bf16.mxu1 %v14694_v49  ;;  %17636 = vst [vmem:[#allocation98_spill] sm:$0xff] %v14715_v14  ;;  %17638 = vst [vmem:[#allocation100_spill] sm:$0xff] %v14732_v4 }
 0x27f   :  { %17637 = vst [vmem:[#allocation99_spill] sm:$0xff] %v14719_v30 }
 0x281   :  { %5228 = vmatpush1.bf16.msra.mxu0 %v14697_v57  ;;  %5269 = vmatpush1.bf16.msra.mxu1 %v14709_v18 }
 0x282   :  { %5229 = vmatprep.subr.bf16.mxu0 %v14706_v39  ;;  %5270 = vmatprep.subr.bf16.mxu1 %v14712_v5  ;;  %v14742_v5 = vcombine.high %v4434_v50, %v4438_v40 }
 0x284   :  { %17639 = vst [vmem:[#allocation101_spill] sm:$0xff] %v14742_v5 }
 0x285   :  { %5230 = vmatpush1.bf16.msra.mxu0 %v14715_v14  ;;  %5271 = vmatpush1.bf16.msra.mxu1 %v14719_v30  ;;  %v14740_v14 = vcombine.low %v4434_v50, %v4438_v40 }
 0x286   :  { %5281 = vmatprep.subr.bf16.mxu0 %v14732_v4  ;;  %5322 = vmatprep.subr.bf16.mxu1 %v14742_v5 }
 0x2db   :  { %v4203_v39 = vpop.f32.mrb[8].mxu0  ;;  %v4244_v18 = vpop.f32.mrb[8].mxu1 }
 0x2dc   :  { %v12287_v57 = vadd.f32 %v4203_v39, %v13865_v34  ;;  %v4205_v49 = vpop.f32.mrb[9].mxu0  ;;  %v4246_v54 = vpop.f32.mrb[9].mxu1  ;;  %v12289_v5 = vadd.f32 %v4244_v18, %v13878_v63 }
 0x2dd   :  { %v12288_v15 = vadd.f32 %v4205_v49, %v13867_v38  ;;  %v4207_v17 = vpop.f32.mrb[10].mxu0  ;;  %v4248_v30 = vpop.f32.mrb[10].mxu1  ;;  %v12290_v50 = vadd.f32 %v4246_v54, %v13874_v31  ;;  %v3389_v54 = vsel %vm3376_vm3, %v13881_v13, 0.0 }
 0x2de   :  { %v11355_v37 = vmul.f32 -1.442695, %v12287_v57  ;;  %v4208_v8 = vpop.f32.mrb[11].mxu0  ;;  %v4249_v55 = vpop.f32.mrb[11].mxu1 }
 0x2df   :  { %v11356_v36 = vmul.f32 -1.442695, %v12288_v15  ;;  %v11357_v40 = vmul.f32 -1.442695, %v12290_v50  ;;  %v14750_v17 = vpop.permute.xlu1 %4411  ;;  %v3386_v50 = vsel %vm3376_vm3, %v13884_v11, 0.0  ;;  %vm12784_vm3 = vmmov 0  }
 0x2e0   :  { %12557 = vpow2.f32 %v11355_v37  ;;  %vm4414_vm6 = vcmp.gt.f32.partialorder %v14750_v17, 0.0 }
 0x2e1   :  { %12559 = vpow2.f32 %v11356_v36 }
 0x2e2   :  { %12561 = vpow2.f32 %v11357_v40 }
 0x2e3   :  { %12563 = vtanh.f32 %v12289_v5  ;;  %v4404_v57 = vpop.permute.xlu1 %4403 }
 0x2e4   :  { %vm4406_vm5 = vcmp.gt.f32.partialorder %v4404_v57, 0.0 }
 0x2ea   :  { %v12558_v4 = vpop.eup %12557 }
 0x2eb   :  { %v12560_v20 = vpop.eup %12559  ;;  %v4353_v39 = vadd.f32 1.0, %v12558_v4 }
 0x2ec   :  { %v4359_v34 = vadd.f32 1.0, %v12560_v20  ;;  %v12562_v49 = vpop.eup %12561 }
 0x2ed   :  { %12565 = vrcp.f32 %v4353_v39  ;;  %v12564_v55 = vpop.eup %12563  ;;  %v4366_v18 = vadd.f32 1.0, %v12562_v49 }
 0x2ee   :  { %12567 = vrcp.f32 %v4359_v34 }
 0x2ef   :  { %12569 = vrcp.f32 %v4366_v18 }
 0x2f7   :  { %v12566_v30 = vpop.eup %12565 }
 0x2f8   :  { %v12568_v36 = vpop.eup %12567  ;;  %v4370_v15 = vmul.f32 %v12566_v30, %v12564_v55 }
 0x2f9   :  { %v4369_v37 = vmul.f32 %v12568_v36, %v3389_v54  ;;  %v12570_v34 = vpop.eup %12569 }
 0x2fb   :  { %v4371_v4 = vadd.f32 %v4370_v15, %v4369_v37 }
 0x2fd   :  { %12571 = vtanh.f32 %v4371_v4  ;;  %v14755_v20 = vsel %vm4406_vm5, %v4371_v4, %v3389_v54 }
 0x307   :  { %v12572_v5 = vpop.eup %12571 }
 0x308   :  { %v4373_v8 = vmul.f32 %v12572_v5, %v12570_v34 }
 0x30a   :  { %v14760_v40 = vsel %vm4406_vm5, %v4373_v8, %v3386_v50 }
 0x30b   :  { %v14781_v17 = vpack.c.bf16 %v14760_v40, %v14760_v40 }
 0x31b   :  { %v4285_v39 = vpop.f32.mrb[52].mxu0  ;;  %v4326_v13 = vpop.f32.mrb[52].mxu1 }
 0x31c   :  { %v12331_v49 = vadd.f32 %v4285_v39, %v13901_v45  ;;  %v4287_v55 = vpop.f32.mrb[53].mxu0  ;;  %v4328_v30 = vpop.f32.mrb[53].mxu1  ;;  %v12333_v34 = vadd.f32 %v4326_v13, %v13921_v27 }
 0x31d   :  { %v12332_v57 = vadd.f32 %v4287_v55, %v13903_v46  ;;  %v4289_v36 = vpop.f32.mrb[54].mxu0  ;;  %v4330_v54 = vpop.f32.mrb[54].mxu1  ;;  %v12334_v11 = vadd.f32 %v4328_v30, %v13912_v16 }
 0x31e   :  { %v11358_v18 = vmul.f32 -1.442695, %v12331_v49  ;;  %v4290_v15 = vpop.f32.mrb[55].mxu0  ;;  %v4331_v37 = vpop.f32.mrb[55].mxu1 }
 0x31f   :  { %v11359_v4 = vmul.f32 -1.442695, %v12332_v57  ;;  %v11360_v59 = vmul.f32 -1.442695, %v12334_v11  ;;  %v3395_v57 = vsel %vm3384_vm1, %v13927_v21, 0.0 }
 0x320   :  { %12573 = vpow2.f32 %v11358_v18 }
 0x321   :  { %12575 = vpow2.f32 %v11359_v4 }
 0x322   :  { %12577 = vpow2.f32 %v11360_v59 }
 0x323   :  { %12579 = vtanh.f32 %v12333_v34  ;;  %v3392_v34 = vsel %vm3384_vm1, %v13934_v12, 0.0  ;;  %v17641_v12 = vld [vmem:[#allocation8_spill] sm:$0xff] }
 0x32a   :  { %v12574_v5 = vpop.eup %12573 }
 0x32b   :  { %v12576_v8 = vpop.eup %12575  ;;  %v4378_v50 = vadd.f32 1.0, %v12574_v5 }
 0x32c   :  { %v4384_v39 = vadd.f32 1.0, %v12576_v8  ;;  %v12578_v55 = vpop.eup %12577  ;;  %v17673_v8 = vld [vmem:[#allocation40_spill] sm:$0xff] }
 0x32d   :  { %12581 = vrcp.f32 %v4378_v50  ;;  %v12580_v49 = vpop.eup %12579  ;;  %v4391_v18 = vadd.f32 1.0, %v12578_v55  ;;  %v17674_v50 = vld [vmem:[#allocation41_spill] sm:$0xff]  ;;  %v17676_v55 = vld [vmem:[#allocation43_spill] sm:$0xff] }
 0x32e   :  { %12583 = vrcp.f32 %v4384_v39  ;;  %v17675_v39 = vld [vmem:[#allocation42_spill] sm:$0xff] }
 0x32f   :  { %12585 = vrcp.f32 %v4391_v18  ;;  %v17682_v18 = vld [vmem:[#allocation49_spill] sm:$0xff] }
 0x337   :  { %v12582_v36 = vpop.eup %12581 }
 0x338   :  { %v12584_v54 = vpop.eup %12583  ;;  %v4395_v30 = vmul.f32 %v12582_v36, %v12580_v49  ;;  %v17677_v49 = vld [vmem:[#allocation44_spill] sm:$0xff]  ;;  %v17678_v36 = vld [vmem:[#allocation45_spill] sm:$0xff] }
 0x339   :  { %v4394_v15 = vmul.f32 %v12584_v54, %v3395_v57  ;;  %v12586_v4 = vpop.eup %12585  ;;  %v17679_v54 = vld [vmem:[#allocation46_spill] sm:$0xff] }
 0x33b   :  { %v4396_v13 = vadd.f32 %v4395_v30, %v4394_v15  ;;  %v17681_v30 = vld [vmem:[#allocation48_spill] sm:$0xff]  ;;  %v17683_v15 = vld [vmem:[#allocation50_spill] sm:$0xff] }
 0x33d   :  { %12587 = vtanh.f32 %v4396_v13  ;;  %v14770_v37 = vsel %vm4414_vm6, %v4396_v13, %v3395_v57  ;;  %v17680_v57 = vld [vmem:[#allocation47_spill] sm:$0xff] }
 0x33e   :  { %v17684_v13 = vld [vmem:[#allocation51_spill] sm:$0xff] }
 0x347   :  { %v12588_v11 = vpop.eup %12587 }
 0x348   :  { %v4398_v59 = vmul.f32 %v12588_v11, %v12586_v4  ;;  %v17685_v4 = vld [vmem:[#allocation52_spill] sm:$0xff]  ;;  %v17686_v11 = vld [vmem:[#allocation55_spill] sm:$0xff] }
 0x34a   :  { %v14775_v5 = vsel %vm4414_vm6, %v4398_v59, %v3392_v34  ;;  %v17687_v59 = vld [vmem:[#allocation53_spill] sm:$0xff]  ;;  %v17688_v34 = vld [vmem:[#allocation54_spill] sm:$0xff] }
 0x34b   :  { %v4430_v21 = vpack.c.bf16 %v14775_v5, %v14775_v5 }
 0x34d   :  { %5231 = vmatprep.mubr.bf16.mxu0 %v4430_v21  ;;  %5272 = vmatprep.mubr.bf16.mxu1 %v4430_v21 }
 0x34e   :  { %5232 = vmatmul.mubr.bf16.vlgmr.msra.gmra.mrb[16].mxu0 %v14781_v17  ;;  %5273 = vmatmul.mubr.bf16.vlgmr.msra.gmra.mrb[16].mxu1 %v14781_v17 }
 0x34f   :  { %5282 = vmatpush1.bf16.msra.mxu0 %v14738_v33  ;;  %5323 = vmatpush1.bf16.msra.mxu1 %v14740_v14 }
 0x350   :  { %5313 = vmatprep.mubr.bf16.mxu0 %v4430_v21  ;;  %5354 = vmatprep.mubr.bf16.mxu1 %v4430_v21  ;;  %v17689_v21 = vld [vmem:[#allocation56_spill] sm:$0xff] }
 0x351   :  { %5283 = vmatprep.subr.bf16.mxu0 %v13977_v26  ;;  %5324 = vmatprep.subr.bf16.mxu1 %v13979_v29  ;;  %v17642_v26 = vld [vmem:[#allocation9_spill] sm:$0xff]  ;;  %v17643_v29 = vld [vmem:[#allocation10_spill] sm:$0xff] }
 0x353   :  { %5284 = vmatpush1.bf16.msra.mxu0 %v13998_v42  ;;  %5325 = vmatpush1.bf16.msra.mxu1 %v14000_v43  ;;  %v17644_v42 = vld [vmem:[#allocation11_spill] sm:$0xff]  ;;  %v17645_v43 = vld [vmem:[#allocation12_spill] sm:$0xff] }
 0x354   :  { %5285 = vmatprep.subr.bf16.mxu0 %v14006_v51  ;;  %5326 = vmatprep.subr.bf16.mxu1 %v14008_v52  ;;  %v17646_v51 = vld [vmem:[#allocation13_spill] sm:$0xff]  ;;  %v17647_v52 = vld [vmem:[#allocation14_spill] sm:$0xff] }
 0x357   :  { %5286 = vmatpush1.bf16.msra.mxu0 %v14026_v0  ;;  %5327 = vmatpush1.bf16.msra.mxu1 %v14028_v1  ;;  %v17648_v0 = vld [vmem:[#allocation15_spill] sm:$0xff]  ;;  %v17649_v1 = vld [vmem:[#allocation16_spill] sm:$0xff] }
 0x358   :  { %5287 = vmatprep.subr.bf16.mxu0 %v14032_v6  ;;  %5328 = vmatprep.subr.bf16.mxu1 %v14034_v7  ;;  %v17650_v6 = vld [vmem:[#allocation17_spill] sm:$0xff]  ;;  %v17651_v7 = vld [vmem:[#allocation18_spill] sm:$0xff] }
 0x35b   :  { %5288 = vmatpush1.bf16.msra.mxu0 %v14050_v19  ;;  %5329 = vmatpush1.bf16.msra.mxu1 %v14052_v24  ;;  %v17652_v19 = vld [vmem:[#allocation19_spill] sm:$0xff]  ;;  %v17653_v24 = vld [vmem:[#allocation20_spill] sm:$0xff] }
 0x35c   :  { %5289 = vmatprep.subr.bf16.mxu0 %v14056_v28  ;;  %5330 = vmatprep.subr.bf16.mxu1 %v14058_v25  ;;  %v17654_v28 = vld [vmem:[#allocation21_spill] sm:$0xff]  ;;  %v17655_v25 = vld [vmem:[#allocation22_spill] sm:$0xff] }
 0x35f   :  { %5290 = vmatpush1.bf16.msra.mxu0 %v14074_v53  ;;  %5331 = vmatpush1.bf16.msra.mxu1 %v14076_v56  ;;  %v17656_v53 = vld [vmem:[#allocation23_spill] sm:$0xff]  ;;  %v17657_v56 = vld [vmem:[#allocation24_spill] sm:$0xff] }
 0x360   :  { %5291 = vmatprep.subr.bf16.mxu0 %v14080_v2  ;;  %5332 = vmatprep.subr.bf16.mxu1 %v14082_v3  ;;  %v17658_v2 = vld [vmem:[#allocation25_spill] sm:$0xff]  ;;  %v17659_v3 = vld [vmem:[#allocation26_spill] sm:$0xff] }
 0x363   :  { %5292 = vmatpush1.bf16.msra.mxu0 %v14098_v32  ;;  %5333 = vmatpush1.bf16.msra.mxu1 %v14100_v60  ;;  %v17660_v32 = vld [vmem:[#allocation27_spill] sm:$0xff]  ;;  %v17661_v60 = vld [vmem:[#allocation28_spill] sm:$0xff] }
 0x364   :  { %5293 = vmatprep.subr.bf16.mxu0 %v14104_v41  ;;  %5334 = vmatprep.subr.bf16.mxu1 %v14106_v44  ;;  %v17662_v41 = vld [vmem:[#allocation29_spill] sm:$0xff]  ;;  %v17663_v44 = vld [vmem:[#allocation30_spill] sm:$0xff] }
 0x367   :  { %5294 = vmatpush1.bf16.msra.mxu0 %v14122_v47  ;;  %5335 = vmatpush1.bf16.msra.mxu1 %v14124_v58  ;;  %v17664_v47 = vld [vmem:[#allocation31_spill] sm:$0xff]  ;;  %v17665_v58 = vld [vmem:[#allocation32_spill] sm:$0xff] }
 0x368   :  { %5295 = vmatprep.subr.bf16.mxu0 %v14128_v35  ;;  %5336 = vmatprep.subr.bf16.mxu1 %v14130_v23  ;;  %v17666_v35 = vld [vmem:[#allocation33_spill] sm:$0xff]  ;;  %v17667_v23 = vld [vmem:[#allocation34_spill] sm:$0xff] }
 0x36b   :  { %5296 = vmatpush1.bf16.msra.mxu0 %v14146_v61  ;;  %5337 = vmatpush1.bf16.msra.mxu1 %v14148_v62  ;;  %v17668_v61 = vld [vmem:[#allocation35_spill] sm:$0xff]  ;;  %v17669_v62 = vld [vmem:[#allocation37_spill] sm:$0xff] }
 0x36c   :  { %5297 = vmatprep.subr.bf16.mxu0 %v14152_v9  ;;  %5338 = vmatprep.subr.bf16.mxu1 %v14154_v10  ;;  %v17670_v9 = vld [vmem:[#allocation39_spill] sm:$0xff]  ;;  %v17671_v10 = vld [vmem:[#allocation36_spill] sm:$0xff] }
 0x36f   :  { %5298 = vmatpush1.bf16.msra.mxu0 %v14170_v48  ;;  %5339 = vmatpush1.bf16.msra.mxu1 %v17640_v22  ;;  %v17672_v48 = vld [vmem:[#allocation38_spill] sm:$0xff]  ;;  %v17691_v22 = vld [vmem:[#allocation57_spill] sm:$0xff] }
 0x370   :  { %5299 = vmatprep.subr.bf16.mxu0 %v17641_v12  ;;  %5340 = vmatprep.subr.bf16.mxu1 %v17642_v26  ;;  %v17692_v12 = vld [vmem:[#allocation58_spill] sm:$0xff]  ;;  %v17693_v26 = vld [vmem:[#allocation60_spill] sm:$0xff] }
 0x373   :  { %5300 = vmatpush1.bf16.msra.mxu0 %v17643_v29  ;;  %5341 = vmatpush1.bf16.msra.mxu1 %v17644_v42  ;;  %v17694_v29 = vld [vmem:[#allocation63_spill] sm:$0xff]  ;;  %v17695_v42 = vld [vmem:[#allocation61_spill] sm:$0xff] }
 0x374   :  { %5301 = vmatprep.subr.bf16.mxu0 %v17645_v43  ;;  %5342 = vmatprep.subr.bf16.mxu1 %v17646_v51  ;;  %v17696_v43 = vld [vmem:[#allocation62_spill] sm:$0xff]  ;;  %v17697_v51 = vld [vmem:[#allocation64_spill] sm:$0xff] }
 0x377   :  { %5302 = vmatpush1.bf16.msra.mxu0 %v17647_v52  ;;  %5343 = vmatpush1.bf16.msra.mxu1 %v17648_v0  ;;  %v17698_v52 = vld [vmem:[#allocation67_spill] sm:$0xff]  ;;  %v17699_v0 = vld [vmem:[#allocation65_spill] sm:$0xff] }
 0x378   :  { %5303 = vmatprep.subr.bf16.mxu0 %v17649_v1  ;;  %5344 = vmatprep.subr.bf16.mxu1 %v17650_v6  ;;  %v17700_v1 = vld [vmem:[#allocation66_spill] sm:$0xff]  ;;  %v17701_v6 = vld [vmem:[#allocation68_spill] sm:$0xff] }
 0x37b   :  { %5304 = vmatpush1.bf16.msra.mxu0 %v17651_v7  ;;  %5345 = vmatpush1.bf16.msra.mxu1 %v17652_v19  ;;  %v17702_v7 = vld [vmem:[#allocation71_spill] sm:$0xff]  ;;  %v17703_v19 = vld [vmem:[#allocation69_spill] sm:$0xff] }
 0x37c   :  { %5305 = vmatprep.subr.bf16.mxu0 %v17653_v24  ;;  %5346 = vmatprep.subr.bf16.mxu1 %v17654_v28  ;;  %v17704_v24 = vld [vmem:[#allocation70_spill] sm:$0xff]  ;;  %v17705_v28 = vld [vmem:[#allocation72_spill] sm:$0xff] }
 0x37f   :  { %5306 = vmatpush1.bf16.msra.mxu0 %v17655_v25  ;;  %5347 = vmatpush1.bf16.msra.mxu1 %v17656_v53  ;;  %v17706_v25 = vld [vmem:[#allocation75_spill] sm:$0xff]  ;;  %v17707_v53 = vld [vmem:[#allocation73_spill] sm:$0xff] }
 0x380   :  { %5307 = vmatprep.subr.bf16.mxu0 %v17657_v56  ;;  %5348 = vmatprep.subr.bf16.mxu1 %v17658_v2  ;;  %v17708_v56 = vld [vmem:[#allocation74_spill] sm:$0xff]  ;;  %v17709_v2 = vld [vmem:[#allocation76_spill] sm:$0xff] }
 0x383   :  { %5308 = vmatpush1.bf16.msra.mxu0 %v17659_v3  ;;  %5349 = vmatpush1.bf16.msra.mxu1 %v17660_v32  ;;  %v17710_v3 = vld [vmem:[#allocation79_spill] sm:$0xff]  ;;  %v17711_v32 = vld [vmem:[#allocation77_spill] sm:$0xff] }
 0x384   :  { %5309 = vmatprep.subr.bf16.mxu0 %v17661_v60  ;;  %5350 = vmatprep.subr.bf16.mxu1 %v17662_v41  ;;  %v17712_v60 = vld [vmem:[#allocation78_spill] sm:$0xff]  ;;  %v17713_v41 = vld [vmem:[#allocation80_spill] sm:$0xff] }
 0x387   :  { %5310 = vmatpush1.bf16.msra.mxu0 %v17663_v44  ;;  %5351 = vmatpush1.bf16.msra.mxu1 %v17664_v47  ;;  %v17714_v44 = vld [vmem:[#allocation83_spill] sm:$0xff]  ;;  %v17715_v47 = vld [vmem:[#allocation81_spill] sm:$0xff] }
 0x388   :  { %5311 = vmatprep.subr.bf16.mxu0 %v17665_v58  ;;  %5352 = vmatprep.subr.bf16.mxu1 %v17666_v35  ;;  %v17716_v58 = vld [vmem:[#allocation82_spill] sm:$0xff]  ;;  %v17717_v35 = vld [vmem:[#allocation84_spill] sm:$0xff] }
 0x38b   :  { %5312 = vmatpush1.bf16.msra.mxu0 %v17667_v23  ;;  %5353 = vmatpush1.bf16.msra.mxu1 %v17668_v61  ;;  %v17718_v23 = vld [vmem:[#allocation87_spill] sm:$0xff]  ;;  %v17719_v61 = vld [vmem:[#allocation85_spill] sm:$0xff] }
 0x38c   :  { %6229 = vmatprep.subr.bf16.mxu0 %v17669_v62  ;;  %6270 = vmatprep.subr.bf16.mxu1 %v17670_v9  ;;  %v17720_v62 = vld [vmem:[#allocation86_spill] sm:$0xff]  ;;  %v17721_v9 = vld [vmem:[#allocation88_spill] sm:$0xff] }
 0x38e   :  { %5314 = vmatmul.mubr.bf16.vlgmr.msra.gmra.mrb[44].mxu0 %v14781_v17  ;;  %5355 = vmatmul.mubr.bf16.vlgmr.msra.gmra.mrb[44].mxu1 %v14781_v17  ;;  %v17690_v17 = vld [vmem:[#allocation59_spill] sm:$0xff] }
 0x38f   :  { %6230 = vmatpush1.bf16.msra.mxu0 %v17671_v10  ;;  %6271 = vmatpush1.bf16.msra.mxu1 %v17672_v48  ;;  %v17722_v10 = vld [vmem:[#allocation90_spill] sm:$0xff]  ;;  %v17723_v48 = vld [vmem:[#allocation89_spill] sm:$0xff] }
 0x390   :  { %6231 = vmatprep.subr.bf16.mxu0 %v17673_v8  ;;  %6272 = vmatprep.subr.bf16.mxu1 %v17674_v50  ;;  %v17724_v8 = vld [vmem:[#allocation92_spill] sm:$0xff]  ;;  %v17725_v50 = vld [vmem:[#allocation91_spill] sm:$0xff] }
 0x393   :  { %6232 = vmatpush1.bf16.msra.mxu0 %v17675_v39  ;;  %6273 = vmatpush1.bf16.msra.mxu1 %v17676_v55  ;;  %v17726_v39 = vld [vmem:[#allocation93_spill] sm:$0xff]  ;;  %v17727_v55 = vld [vmem:[#allocation94_spill] sm:$0xff] }
 0x394   :  { %6233 = vmatprep.subr.bf16.mxu0 %v17677_v49  ;;  %6274 = vmatprep.subr.bf16.mxu1 %v17678_v36  ;;  %v17728_v49 = vld [vmem:[#allocation96_spill] sm:$0xff]  ;;  %v17729_v36 = vld [vmem:[#allocation95_spill] sm:$0xff] }
 0x397   :  { %6234 = vmatpush1.bf16.msra.mxu0 %v17679_v54  ;;  %6275 = vmatpush1.bf16.msra.mxu1 %v17680_v57  ;;  %v17730_v54 = vld [vmem:[#allocation97_spill] sm:$0xff]  ;;  %v17731_v57 = vld [vmem:[#allocation98_spill] sm:$0xff] }
 0x398   :  { %6235 = vmatprep.subr.bf16.mxu0 %v17681_v30  ;;  %6276 = vmatprep.subr.bf16.mxu1 %v17682_v18  ;;  %v17732_v30 = vld [vmem:[#allocation99_spill] sm:$0xff]  ;;  %v17733_v18 = vld [vmem:[#allocation100_spill] sm:$0xff] }
 0x39b   :  { %6236 = vmatpush1.bf16.msra.mxu0 %v17683_v15  ;;  %6277 = vmatpush1.bf16.msra.mxu1 %v17684_v13  ;;  %v17734_v15 = vld [vmem:[#allocation101_spill] sm:$0xff] }
 0x39c   :  { %6237 = vmatprep.subr.bf16.mxu0 %v17685_v4  ;;  %6278 = vmatprep.subr.bf16.mxu1 %v17686_v11  ;;  %v17735_v11 = vld [vmem:[#allocation5_spill] sm:$0xff] }
 0x39f   :  { %6238 = vmatpush1.bf16.msra.mxu0 %v17687_v59  ;;  %6279 = vmatpush1.bf16.msra.mxu1 %v17688_v34 }
 0x3a0   :  { %6239 = vmatprep.subr.bf16.mxu0 %v17689_v21  ;;  %6280 = vmatprep.subr.bf16.mxu1 %v17690_v17 }
 0x3a3   :  { %6240 = vmatpush1.bf16.msra.mxu0 %v17691_v22  ;;  %6281 = vmatpush1.bf16.msra.mxu1 %v17692_v12 }
 0x3a4   :  { %6241 = vmatprep.subr.bf16.mxu0 %v17693_v26  ;;  %6282 = vmatprep.subr.bf16.mxu1 %v17694_v29 }
 0x3a7   :  { %6242 = vmatpush1.bf16.msra.mxu0 %v17695_v42  ;;  %6283 = vmatpush1.bf16.msra.mxu1 %v17696_v43 }
 0x3a8   :  { %6243 = vmatprep.subr.bf16.mxu0 %v17697_v51  ;;  %6284 = vmatprep.subr.bf16.mxu1 %v17698_v52 }
 0x3ab   :  { %6244 = vmatpush1.bf16.msra.mxu0 %v17699_v0  ;;  %6285 = vmatpush1.bf16.msra.mxu1 %v17700_v1 }
 0x3ac   :  { %6245 = vmatprep.subr.bf16.mxu0 %v17701_v6  ;;  %6286 = vmatprep.subr.bf16.mxu1 %v17702_v7 }
 0x3af   :  { %6246 = vmatpush1.bf16.msra.mxu0 %v17703_v19  ;;  %6287 = vmatpush1.bf16.msra.mxu1 %v17704_v24 }
 0x3b0   :  { %6247 = vmatprep.subr.bf16.mxu0 %v17705_v28  ;;  %6288 = vmatprep.subr.bf16.mxu1 %v17706_v25 }
 0x3b3   :  { %6248 = vmatpush1.bf16.msra.mxu0 %v17707_v53  ;;  %6289 = vmatpush1.bf16.msra.mxu1 %v17708_v56 }
 0x3b4   :  { %6249 = vmatprep.subr.bf16.mxu0 %v17709_v2  ;;  %6290 = vmatprep.subr.bf16.mxu1 %v17710_v3 }
 0x3b7   :  { %6250 = vmatpush1.bf16.msra.mxu0 %v17711_v32  ;;  %6291 = vmatpush1.bf16.msra.mxu1 %v17712_v60  ;;  %v5434_v32 = vpop.permute.xlu1 %5433 }
 0x3b8   :  { %6251 = vmatprep.subr.bf16.mxu0 %v17713_v41  ;;  %6292 = vmatprep.subr.bf16.mxu1 %v17714_v44  ;;  %vm5436_vm7 = vcmp.gt.f32.partialorder %v5434_v32, 0.0 }
 0x3bb   :  { %6252 = vmatpush1.bf16.msra.mxu0 %v17715_v47  ;;  %6293 = vmatpush1.bf16.msra.mxu1 %v17716_v58 }
 0x3bc   :  { %6253 = vmatprep.subr.bf16.mxu0 %v17717_v35  ;;  %6294 = vmatprep.subr.bf16.mxu1 %v17718_v23 }
 0x3bf   :  { %6254 = vmatpush1.bf16.msra.mxu0 %v17719_v61  ;;  %6295 = vmatpush1.bf16.msra.mxu1 %v17720_v62 }
 0x3c0   :  { %6255 = vmatprep.subr.bf16.mxu0 %v17721_v9  ;;  %6296 = vmatprep.subr.bf16.mxu1 %v17722_v10 }
 0x3c3   :  { %6256 = vmatpush1.bf16.msra.mxu0 %v17723_v48  ;;  %6297 = vmatpush1.bf16.msra.mxu1 %v17724_v8 }
 0x3c4   :  { %6257 = vmatprep.subr.bf16.mxu0 %v17725_v50  ;;  %6298 = vmatprep.subr.bf16.mxu1 %v17726_v39 }
 0x3c7   :  { %6258 = vmatpush1.bf16.msra.mxu0 %v17727_v55  ;;  %6299 = vmatpush1.bf16.msra.mxu1 %v17728_v49 }
 0x3c8   :  { %6259 = vmatprep.subr.bf16.mxu0 %v17729_v36  ;;  %6300 = vmatprep.subr.bf16.mxu1 %v17730_v54 }
 0x3cb   :  { %6260 = vmatpush1.bf16.msra.mxu0 %v17731_v57  ;;  %6301 = vmatpush1.bf16.msra.mxu1 %v17732_v30 }
 0x3cc   :  { %6311 = vmatprep.subr.bf16.mxu0 %v17733_v18  ;;  %6352 = vmatprep.subr.bf16.mxu1 %v17734_v15 }
 0x421   :  { %v5233_v13 = vpop.f32.mrb[16].mxu0  ;;  %v5274_v4 = vpop.f32.mrb[16].mxu1 }
 0x422   :  { %v12295_v59 = vadd.f32 %v5233_v13, %v17735_v11  ;;  %v5235_v34 = vpop.f32.mrb[17].mxu0  ;;  %v5276_v21 = vpop.f32.mrb[17].mxu1  ;;  %v12297_v0 = vadd.f32 %v5274_v4, %v13878_v63 }
 0x423   :  { %v12296_v17 = vadd.f32 %v5235_v34, %v13867_v38  ;;  %v5237_v22 = vpop.f32.mrb[18].mxu0  ;;  %v5278_v12 = vpop.f32.mrb[18].mxu1  ;;  %v12298_v51 = vadd.f32 %v5276_v21, %v13874_v31 }
 0x424   :  { %v11491_v26 = vmul.f32 -1.442695, %v12295_v59  ;;  %v5238_v29 = vpop.f32.mrb[19].mxu0  ;;  %v5279_v42 = vpop.f32.mrb[19].mxu1 }
 0x425   :  { %v11492_v43 = vmul.f32 -1.442695, %v12296_v17  ;;  %v11493_v52 = vmul.f32 -1.442695, %v12298_v51  ;;  %v5442_v12 = vpop.permute.xlu0 %5441 }
 0x426   :  { %12589 = vpow2.f32 %v11491_v26  ;;  %vm5444_vm8 = vcmp.gt.f32.partialorder %v5442_v12, 0.0 }
 0x427   :  { %12591 = vpow2.f32 %v11492_v43 }
 0x428   :  { %12593 = vpow2.f32 %v11493_v52 }
 0x429   :  { %12595 = vtanh.f32 %v12297_v0  ;;  %v5471_v0 = vld [vmem:[%s17165_s7 + $0x50] sm:$0xff] }
 0x430   :  { %v12590_v1 = vpop.eup %12589 }
 0x431   :  { %v12592_v6 = vpop.eup %12591  ;;  %v5383_v7 = vadd.f32 1.0, %v12590_v1 }
 0x432   :  { %v5389_v19 = vadd.f32 1.0, %v12592_v6  ;;  %v12594_v24 = vpop.eup %12593  ;;  %v5475_v6 = vld [vmem:[%s17165_s7 + $0x70] sm:$0xff] }
 0x433   :  { %12597 = vrcp.f32 %v5383_v7  ;;  %v12596_v28 = vpop.eup %12595  ;;  %v5396_v2 = vadd.f32 1.0, %v12594_v24  ;;  %v14960_v24 = vcombine.high %v5471_v0, %v5475_v6 }
 0x434   :  { %12599 = vrcp.f32 %v5389_v19 }
 0x435   :  { %12601 = vrcp.f32 %v5396_v2  ;;  %v14977_v2 = vcombine.low %v5471_v0, %v5475_v6 }
 0x43d   :  { %v12598_v25 = vpop.eup %12597 }
 0x43e   :  { %v12600_v53 = vpop.eup %12599  ;;  %v5400_v56 = vmul.f32 %v12598_v25, %v12596_v28  ;;  %v5483_v25 = vld [vmem:[%s17165_s7 + $0xb0] sm:$0xff] }
 0x43f   :  { %v5399_v3 = vmul.f32 %v12600_v53, %v14755_v20  ;;  %v12602_v44 = vpop.eup %12601  ;;  %v5480_v53 = vld [vmem:[%s17165_s7 + $0x98] sm:$0xff] }
 0x441   :  { %v5401_v60 = vadd.f32 %v5400_v56, %v5399_v3  ;;  %v5484_v56 = vld [vmem:[%s17165_s7 + $0xb8] sm:$0xff] }
 0x443   :  { %12603 = vtanh.f32 %v5401_v60  ;;  %v14922_v41 = vsel %vm5436_vm7, %v5401_v60, %v14755_v20  ;;  %v14983_v60 = vcombine.high %v5480_v53, %v5484_v56 }
 0x44d   :  { %v12604_v47 = vpop.eup %12603 }
 0x44e   :  { %v5403_v58 = vmul.f32 %v12604_v47, %v12602_v44  ;;  %v5487_v44 = vld [vmem:[%s17165_s7 + $0xd0] sm:$0xff]  ;;  %v5492_v47 = vld [vmem:[%s17165_s7 + $0xf8] sm:$0xff] }
 0x450   :  { %v14934_v52 = vsel %vm5436_vm7, %v5403_v58, %v14760_v40  ;;  %v5476_v40 = vld [vmem:[%s17165_s7 + $0x78] sm:$0xff] }
 0x451   :  { %v14955_v19 = vpack.c.bf16 %v14934_v52, %v14934_v52 }
 0x461   :  { %v5315_v35 = vpop.f32.mrb[44].mxu0  ;;  %v5356_v23 = vpop.f32.mrb[44].mxu1 }
 0x462   :  { %v12323_v61 = vadd.f32 %v5315_v35, %v13901_v45  ;;  %v5317_v62 = vpop.f32.mrb[45].mxu0  ;;  %v5358_v9 = vpop.f32.mrb[45].mxu1  ;;  %v12325_v54 = vadd.f32 %v5356_v23, %v13921_v27  ;;  %v15003_v35 = vcombine.low %v5480_v53, %v5484_v56  ;;  %v5532_v53 = vld [vmem:[%s17165_s7 + $0x238] sm:$0xff] }
 0x463   :  { %v12324_v10 = vadd.f32 %v5317_v62, %v13903_v46  ;;  %v5319_v48 = vpop.f32.mrb[46].mxu0  ;;  %v5360_v8 = vpop.f32.mrb[46].mxu1  ;;  %v12326_v20 = vadd.f32 %v5358_v9, %v13912_v16  ;;  %v5495_v62 = vld [vmem:[%s17165_s7 + $0x110] sm:$0xff] }
 0x464   :  { %v11494_v50 = vmul.f32 -1.442695, %v12323_v61  ;;  %v5320_v39 = vpop.f32.mrb[47].mxu0  ;;  %v5361_v55 = vpop.f32.mrb[47].mxu1  ;;  %v5499_v9 = vld [vmem:[%s17165_s7 + $0x130] sm:$0xff]  ;;  %v5500_v48 = vld [vmem:[%s17165_s7 + $0x138] sm:$0xff] }
 0x465   :  { %v11495_v49 = vmul.f32 -1.442695, %v12324_v10  ;;  %v11496_v36 = vmul.f32 -1.442695, %v12326_v20  ;;  %v5496_v10 = vld [vmem:[%s17165_s7 + $0x118] sm:$0xff]  ;;  %v15031_v39 = vcombine.high %v5495_v62, %v5499_v9  ;;  %v5507_v20 = vld [vmem:[%s17165_s7 + $0x170] sm:$0xff] }
 0x466   :  { %12605 = vpow2.f32 %v11494_v50  ;;  %v15033_v55 = vcombine.high %v5496_v10, %v5500_v48 }
 0x467   :  { %12607 = vpow2.f32 %v11495_v49  ;;  %v5503_v49 = vld [vmem:[%s17165_s7 + $0x150] sm:$0xff] }
 0x468   :  { %12609 = vpow2.f32 %v11496_v36  ;;  %v5504_v36 = vld [vmem:[%s17165_s7 + $0x158] sm:$0xff] }
 0x469   :  { %12611 = vtanh.f32 %v12325_v54  ;;  %v5508_v54 = vld [vmem:[%s17165_s7 + $0x178] sm:$0xff] }
 0x470   :  { %v12606_v57 = vpop.eup %12605 }
 0x471   :  { %v12608_v30 = vpop.eup %12607  ;;  %v5408_v18 = vadd.f32 1.0, %v12606_v57  ;;  %v15049_v57 = vcombine.low %v5495_v62, %v5499_v9  ;;  %v5539_v62 = vld [vmem:[%s17165_s7 + $0x270] sm:$0xff]  ;;  %v5536_v9 = vld [vmem:[%s17165_s7 + $0x258] sm:$0xff] }
 0x472   :  { %v5414_v15 = vadd.f32 1.0, %v12608_v30  ;;  %v12610_v13 = vpop.eup %12609  ;;  %v15051_v30 = vcombine.low %v5496_v10, %v5500_v48  ;;  %v5540_v10 = vld [vmem:[%s17165_s7 + $0x278] sm:$0xff] }
 0x473   :  { %12613 = vrcp.f32 %v5408_v18  ;;  %v12612_v4 = vpop.eup %12611  ;;  %v5421_v17 = vadd.f32 1.0, %v12610_v13  ;;  %v15055_v18 = vcombine.high %v5503_v49, %v5507_v20  ;;  %v5511_v13 = vld [vmem:[%s17165_s7 + $0x190] sm:$0xff] }
 0x474   :  { %12615 = vrcp.f32 %v5414_v15  ;;  %v15057_v15 = vcombine.high %v5504_v36, %v5508_v54 }
 0x475   :  { %12617 = vrcp.f32 %v5421_v17  ;;  %v15075_v17 = vcombine.low %v5504_v36, %v5508_v54  ;;  %v15153_v36 = vcombine.high %v5536_v9, %v5540_v10  ;;  %v5543_v54 = vld [vmem:[%s17165_s7 + $0x290] sm:$0xff] }
 0x477   :  { %17736 = vst [vmem:[#allocation7_spill] sm:$0xff] %v15153_v36 }
 0x47d   :  { %v12614_v59 = vpop.eup %12613 }
 0x47e   :  { %v12616_v34 = vpop.eup %12615  ;;  %v5425_v21 = vmul.f32 %v12614_v59, %v12612_v4  ;;  %v5515_v4 = vld [vmem:[%s17165_s7 + $0x1b0] sm:$0xff]  ;;  %v5512_v59 = vld [vmem:[%s17165_s7 + $0x198] sm:$0xff] }
 0x47f   :  { %v5424_v22 = vmul.f32 %v12616_v34, %v14770_v37  ;;  %v12618_v42 = vpop.eup %12617  ;;  %v5516_v34 = vld [vmem:[%s17165_s7 + $0x1b8] sm:$0xff]  ;;  %v15097_v0 = vcombine.low %v5511_v13, %v5515_v4 }
 0x480   :  { %v15081_v12 = vcombine.high %v5512_v59, %v5516_v34  ;;  %v15099_v6 = vcombine.low %v5512_v59, %v5516_v34  ;;  %v5548_v59 = vld [vmem:[%s17165_s7 + $0x2b8] sm:$0xff] }
 0x481   :  { %v5426_v26 = vadd.f32 %v5425_v21, %v5424_v22  ;;  %v15073_v21 = vcombine.low %v5503_v49, %v5507_v20  ;;  %v15079_v22 = vcombine.high %v5511_v13, %v5515_v4  ;;  %v5547_v13 = vld [vmem:[%s17165_s7 + $0x2b0] sm:$0xff]  ;;  %v5544_v4 = vld [vmem:[%s17165_s7 + $0x298] sm:$0xff] }
 0x483   :  { %12619 = vtanh.f32 %v5426_v26  ;;  %v14930_v29 = vsel %vm5444_vm8, %v5426_v26, %v14770_v37  ;;  %v5472_v37 = vld [vmem:[%s17165_s7 + $0x58] sm:$0xff]  ;;  %v5519_v26 = vld [vmem:[%s17165_s7 + $0x1d0] sm:$0xff] }
 0x484   :  { %v14962_v28 = vcombine.high %v5472_v37, %v5476_v40  ;;  %v14979_v3 = vcombine.low %v5472_v37, %v5476_v40 }
 0x48d   :  { %v12620_v43 = vpop.eup %12619 }
 0x48e   :  { %v5428_v51 = vmul.f32 %v12620_v43, %v12618_v42  ;;  %v5523_v42 = vld [vmem:[%s17165_s7 + $0x1f0] sm:$0xff]  ;;  %v5520_v43 = vld [vmem:[%s17165_s7 + $0x1d8] sm:$0xff] }
 0x48f   :  { %v15103_v37 = vcombine.high %v5519_v26, %v5523_v42  ;;  %v15121_v56 = vcombine.low %v5519_v26, %v5523_v42  ;;  %v15171_v26 = vcombine.low %v5536_v9, %v5540_v10  ;;  %v15175_v42 = vcombine.high %v5543_v54, %v5547_v13  ;;  %v5559_v10 = vld [vmem:[%s17165_s7 + $0x310] sm:$0xff] }
 0x490   :  { %v14940_v1 = vsel %vm5444_vm8, %v5428_v51, %v14775_v5  ;;  %v5479_v5 = vld [vmem:[%s17165_s7 + $0x90] sm:$0xff]  ;;  %v5524_v51 = vld [vmem:[%s17165_s7 + $0x1f8] sm:$0xff] }
 0x491   :  { %v5460_v7 = vpack.c.bf16 %v14940_v1, %v14940_v1  ;;  %v14981_v32 = vcombine.high %v5479_v5, %v5483_v25  ;;  %v15001_v58 = vcombine.low %v5479_v5, %v5483_v25  ;;  %v15105_v40 = vcombine.high %v5520_v43, %v5524_v51  ;;  %v5531_v5 = vld [vmem:[%s17165_s7 + $0x230] sm:$0xff]  ;;  %v5528_v25 = vld [vmem:[%s17165_s7 + $0x218] sm:$0xff]  ;;  %17738 = vst [vmem:[#allocation9_spill] sm:$0xff] %v15171_v26 }
 0x492   :  { %v15147_v49 = vcombine.low %v5528_v25, %v5532_v53  ;;  %17739 = vst [vmem:[#allocation10_spill] sm:$0xff] %v15175_v42 }
 0x493   :  { %6261 = vmatprep.mubr.bf16.mxu0 %v5460_v7  ;;  %6302 = vmatprep.mubr.bf16.mxu1 %v5460_v7 }
 0x494   :  { %6262 = vmatmul.mubr.bf16.vlgmr.msra.gmra.mrb[24].mxu0 %v14955_v19  ;;  %6303 = vmatmul.mubr.bf16.vlgmr.msra.gmra.mrb[24].mxu1 %v14955_v19 }
 0x495   :  { %6312 = vmatpush1.bf16.msra.mxu0 %v14738_v33  ;;  %6353 = vmatpush1.bf16.msra.mxu1 %v14740_v14  ;;  %v5491_v14 = vld [vmem:[%s17165_s7 + $0xf0] sm:$0xff]  ;;  %v5488_v33 = vld [vmem:[%s17165_s7 + $0xd8] sm:$0xff] }
 0x496   :  { %6343 = vmatprep.mubr.bf16.mxu0 %v5460_v7  ;;  %6384 = vmatprep.mubr.bf16.mxu1 %v5460_v7  ;;  %v15007_v23 = vcombine.high %v5487_v44, %v5491_v14  ;;  %v15009_v61 = vcombine.high %v5488_v33, %v5492_v47  ;;  %v15025_v8 = vcombine.low %v5487_v44, %v5491_v14  ;;  %v5527_v7 = vld [vmem:[%s17165_s7 + $0x210] sm:$0xff] }
 0x497   :  { %6313 = vmatprep.subr.bf16.mxu0 %v14960_v24  ;;  %6354 = vmatprep.subr.bf16.mxu1 %v14962_v28  ;;  %v15027_v50 = vcombine.low %v5488_v33, %v5492_v47  ;;  %v15123_v44 = vcombine.low %v5520_v43, %v5524_v51  ;;  %v15127_v14 = vcombine.high %v5527_v7, %v5531_v5  ;;  %v5535_v47 = vld [vmem:[%s17165_s7 + $0x250] sm:$0xff] }
 0x498   :  { %v15129_v33 = vcombine.high %v5528_v25, %v5532_v53  ;;  %v15145_v48 = vcombine.low %v5527_v7, %v5531_v5  ;;  %v15151_v20 = vcombine.high %v5535_v47, %v5539_v62  ;;  %v15169_v34 = vcombine.low %v5535_v47, %v5539_v62  ;;  %v5551_v51 = vld [vmem:[%s17165_s7 + $0x2d0] sm:$0xff]  ;;  %v5552_v5 = vld [vmem:[%s17165_s7 + $0x2d8] sm:$0xff] }
 0x499   :  { %6314 = vmatpush1.bf16.msra.mxu0 %v14977_v2  ;;  %6355 = vmatpush1.bf16.msra.mxu1 %v14979_v3  ;;  %v15177_v43 = vcombine.high %v5544_v4, %v5548_v59  ;;  %v5555_v7 = vld [vmem:[%s17165_s7 + $0x2f0] sm:$0xff]  ;;  %v5556_v25 = vld [vmem:[%s17165_s7 + $0x2f8] sm:$0xff]  ;;  %v15193_v53 = vcombine.low %v5543_v54, %v5547_v13  ;;  %v15195_v47 = vcombine.low %v5544_v4, %v5548_v59 }
 0x49a   :  { %6315 = vmatprep.subr.bf16.mxu0 %v14981_v32  ;;  %6356 = vmatprep.subr.bf16.mxu1 %v14983_v60  ;;  %17737 = vst [vmem:[#allocation8_spill] sm:$0xff] %v15169_v34  ;;  %v15199_v62 = vcombine.high %v5551_v51, %v5555_v7  ;;  %v15201_v9 = vcombine.high %v5552_v5, %v5556_v25  ;;  %v5560_v54 = vld [vmem:[%s17165_s7 + $0x318] sm:$0xff] }
 0x49b   :  { %17740 = vst [vmem:[#allocation11_spill] sm:$0xff] %v15177_v43  ;;  %17741 = vst [vmem:[#allocation12_spill] sm:$0xff] %v15193_v53  ;;  %v5564_v13 = vld [vmem:[%s17165_s7 + $0x338] sm:$0xff]  ;;  %v15217_v4 = vcombine.low %v5551_v51, %v5555_v7  ;;  %v15219_v59 = vcombine.low %v5552_v5, %v5556_v25 }
 0x49c   :  { %17742 = vst [vmem:[#allocation13_spill] sm:$0xff] %v15195_v47  ;;  %17743 = vst [vmem:[#allocation14_spill] sm:$0xff] %v15199_v62  ;;  %v5568_v51 = vld [vmem:[%s17165_s7 + $0x358] sm:$0xff]  ;;  %v15243_v25 = vcombine.low %v5560_v54, %v5564_v13 }
 0x49d   :  { %6316 = vmatpush1.bf16.msra.mxu0 %v15001_v58  ;;  %6357 = vmatpush1.bf16.msra.mxu1 %v15003_v35  ;;  %17744 = vst [vmem:[#allocation15_spill] sm:$0xff] %v15201_v9  ;;  %17745 = vst [vmem:[#allocation16_spill] sm:$0xff] %v15217_v4  ;;  %v5572_v7 = vld [vmem:[%s17165_s7 + $0x378] sm:$0xff] }
 0x49e   :  { %6317 = vmatprep.subr.bf16.mxu0 %v15007_v23  ;;  %6358 = vmatprep.subr.bf16.mxu1 %v15009_v61  ;;  %17746 = vst [vmem:[#allocation17_spill] sm:$0xff] %v15219_v59  ;;  %17750 = vst [vmem:[#allocation21_spill] sm:$0xff] %v15243_v25 }
 0x4a1   :  { %6318 = vmatpush1.bf16.msra.mxu0 %v15025_v8  ;;  %6359 = vmatpush1.bf16.msra.mxu1 %v15027_v50 }
 0x4a2   :  { %6319 = vmatprep.subr.bf16.mxu0 %v15031_v39  ;;  %6360 = vmatprep.subr.bf16.mxu1 %v15033_v55 }
 0x4a5   :  { %6320 = vmatpush1.bf16.msra.mxu0 %v15049_v57  ;;  %6361 = vmatpush1.bf16.msra.mxu1 %v15051_v30 }
 0x4a6   :  { %6321 = vmatprep.subr.bf16.mxu0 %v15055_v18  ;;  %6362 = vmatprep.subr.bf16.mxu1 %v15057_v15 }
 0x4a9   :  { %6322 = vmatpush1.bf16.msra.mxu0 %v15073_v21  ;;  %6363 = vmatpush1.bf16.msra.mxu1 %v15075_v17 }
 0x4aa   :  { %6323 = vmatprep.subr.bf16.mxu0 %v15079_v22  ;;  %6364 = vmatprep.subr.bf16.mxu1 %v15081_v12 }
 0x4ad   :  { %6324 = vmatpush1.bf16.msra.mxu0 %v15097_v0  ;;  %6365 = vmatpush1.bf16.msra.mxu1 %v15099_v6 }
 0x4ae   :  { %6325 = vmatprep.subr.bf16.mxu0 %v15103_v37  ;;  %6366 = vmatprep.subr.bf16.mxu1 %v15105_v40 }
 0x4b1   :  { %6326 = vmatpush1.bf16.msra.mxu0 %v15121_v56  ;;  %6367 = vmatpush1.bf16.msra.mxu1 %v15123_v44 }
 0x4b2   :  { %6327 = vmatprep.subr.bf16.mxu0 %v15127_v14  ;;  %6368 = vmatprep.subr.bf16.mxu1 %v15129_v33 }
 0x4b5   :  { %6328 = vmatpush1.bf16.msra.mxu0 %v15145_v48  ;;  %6369 = vmatpush1.bf16.msra.mxu1 %v15147_v49 }
 0x4b6   :  { %6329 = vmatprep.subr.bf16.mxu0 %v15151_v20  ;;  %6370 = vmatprep.subr.bf16.mxu1 %v15153_v36 }
 0x4b9   :  { %6330 = vmatpush1.bf16.msra.mxu0 %v15169_v34  ;;  %6371 = vmatpush1.bf16.msra.mxu1 %v15171_v26  ;;  %v5563_v26 = vld [vmem:[%s17165_s7 + $0x330] sm:$0xff] }
 0x4ba   :  { %6331 = vmatprep.subr.bf16.mxu0 %v15175_v42  ;;  %6372 = vmatprep.subr.bf16.mxu1 %v15177_v43  ;;  %v15223_v43 = vcombine.high %v5559_v10, %v5563_v26  ;;  %v15225_v42 = vcombine.high %v5560_v54, %v5564_v13  ;;  %v5567_v34 = vld [vmem:[%s17165_s7 + $0x350] sm:$0xff]  ;;  %v15241_v5 = vcombine.low %v5559_v10, %v5563_v26  ;;  %v5576_v26 = vld [vmem:[%s17165_s7 + $0x398] sm:$0xff] }
 0x4bb   :  { %v5580_v10 = vld [vmem:[%s17165_s7 + $0x3b8] sm:$0xff]  ;;  %v15267_v13 = vcombine.low %v5568_v51, %v5572_v7 }
 0x4bc   :  { %17747 = vst [vmem:[#allocation18_spill] sm:$0xff] %v15223_v43  ;;  %17748 = vst [vmem:[#allocation19_spill] sm:$0xff] %v15225_v42 }
 0x4bd   :  { %6332 = vmatpush1.bf16.msra.mxu0 %v15193_v53  ;;  %6373 = vmatpush1.bf16.msra.mxu1 %v15195_v47  ;;  %v5571_v47 = vld [vmem:[%s17165_s7 + $0x370] sm:$0xff]  ;;  %17749 = vst [vmem:[#allocation20_spill] sm:$0xff] %v15241_v5  ;;  %17754 = vst [vmem:[#allocation25_spill] sm:$0xff] %v15267_v13 }
 0x4be   :  { %6333 = vmatprep.subr.bf16.mxu0 %v15199_v62  ;;  %6374 = vmatprep.subr.bf16.mxu1 %v15201_v9  ;;  %v15247_v9 = vcombine.high %v5567_v34, %v5571_v47  ;;  %v15249_v62 = vcombine.high %v5568_v51, %v5572_v7  ;;  %v5575_v53 = vld [vmem:[%s17165_s7 + $0x390] sm:$0xff]  ;;  %v15265_v54 = vcombine.low %v5567_v34, %v5571_v47  ;;  %v5584_v34 = vld [vmem:[%s17165_s7 + $0x3d8] sm:$0xff] }
 0x4bf   :  { %v5588_v47 = vld [vmem:[%s17165_s7 + $0x3f8] sm:$0xff]  ;;  %v15291_v7 = vcombine.low %v5576_v26, %v5580_v10 }
 0x4c0   :  { %17751 = vst [vmem:[#allocation22_spill] sm:$0xff] %v15247_v9  ;;  %17752 = vst [vmem:[#allocation23_spill] sm:$0xff] %v15249_v62 }
 0x4c1   :  { %6334 = vmatpush1.bf16.msra.mxu0 %v15217_v4  ;;  %6375 = vmatpush1.bf16.msra.mxu1 %v15219_v59  ;;  %v5579_v59 = vld [vmem:[%s17165_s7 + $0x3b0] sm:$0xff]  ;;  %17753 = vst [vmem:[#allocation24_spill] sm:$0xff] %v15265_v54  ;;  %17758 = vst [vmem:[#allocation29_spill] sm:$0xff] %v15291_v7 }
 0x4c2   :  { %6335 = vmatprep.subr.bf16.mxu0 %v15223_v43  ;;  %6376 = vmatprep.subr.bf16.mxu1 %v15225_v42  ;;  %v15271_v42 = vcombine.high %v5575_v53, %v5579_v59  ;;  %v15273_v43 = vcombine.high %v5576_v26, %v5580_v10  ;;  %v5583_v4 = vld [vmem:[%s17165_s7 + $0x3d0] sm:$0xff]  ;;  %v15289_v51 = vcombine.low %v5575_v53, %v5579_v59  ;;  %v6491_v53 = vld [vmem:[%s17165_s7] sm:$0xff]  ;;  %v6492_v59 = vld [vmem:[%s17165_s7 + $0x8] sm:$0xff] }
 0x4c3   :  { %v6499_v10 = vld [vmem:[%s17165_s7 + $0x40] sm:$0xff] }
 0x4c4   :  { %17755 = vst [vmem:[#allocation26_spill] sm:$0xff] %v15271_v42  ;;  %17756 = vst [vmem:[#allocation27_spill] sm:$0xff] %v15273_v43 }
 0x4c5   :  { %6336 = vmatpush1.bf16.msra.mxu0 %v15241_v5  ;;  %6377 = vmatpush1.bf16.msra.mxu1 %v15243_v25  ;;  %v5587_v25 = vld [vmem:[%s17165_s7 + $0x3f0] sm:$0xff]  ;;  %17757 = vst [vmem:[#allocation28_spill] sm:$0xff] %v15289_v51 }
 0x4c6   :  { %6337 = vmatprep.subr.bf16.mxu0 %v15247_v9  ;;  %6378 = vmatprep.subr.bf16.mxu1 %v15249_v62  ;;  %v15295_v62 = vcombine.high %v5583_v4, %v5587_v25  ;;  %v15297_v9 = vcombine.high %v5584_v34, %v5588_v47  ;;  %v15301_v5 = vcombine.low %v5583_v4, %v5587_v25  ;;  %v6495_v4 = vld [vmem:[%s17165_s7 + $0x20] sm:$0xff] }
 0x4c7   :  { %v15320_v25 = vcombine.low %v6491_v53, %v6495_v4  ;;  %v15322_v26 = vcombine.high %v6491_v53, %v6495_v4  ;;  %v6500_v53 = vld [vmem:[%s17165_s7 + $0x48] sm:$0xff] }
 0x4c8   :  { %17759 = vst [vmem:[#allocation30_spill] sm:$0xff] %v15295_v62  ;;  %17760 = vst [vmem:[#allocation31_spill] sm:$0xff] %v15297_v9  ;;  %v6504_v4 = vld [vmem:[%s17165_s7 + $0x68] sm:$0xff] }
 0x4c9   :  { %6338 = vmatpush1.bf16.msra.mxu0 %v15265_v54  ;;  %6379 = vmatpush1.bf16.msra.mxu1 %v15267_v13  ;;  %17761 = vst [vmem:[#allocation32_spill] sm:$0xff] %v15301_v5  ;;  %v15303_v54 = vcombine.low %v5584_v34, %v5588_v47  ;;  %17763 = vst [vmem:[#allocation34_spill] sm:$0xff] %v15320_v25  ;;  %v6503_v34 = vld [vmem:[%s17165_s7 + $0x60] sm:$0xff] }
 0x4ca   :  { %6339 = vmatprep.subr.bf16.mxu0 %v15271_v42  ;;  %6380 = vmatprep.subr.bf16.mxu1 %v15273_v43  ;;  %17764 = vst [vmem:[#allocation35_spill] sm:$0xff] %v15322_v26 }
 0x4cb   :  { %17762 = vst [vmem:[#allocation33_spill] sm:$0xff] %v15303_v54 }
 0x4cd   :  { %6340 = vmatpush1.bf16.msra.mxu0 %v15289_v51  ;;  %6381 = vmatpush1.bf16.msra.mxu1 %v15291_v7  ;;  %v6512_v7 = vld [vmem:[%s17165_s7 + $0xa8] sm:$0xff]  ;;  %v15362_v51 = vcombine.low %v6499_v10, %v6503_v34 }
 0x4ce   :  { %6341 = vmatprep.subr.bf16.mxu0 %v15295_v62  ;;  %6382 = vmatprep.subr.bf16.mxu1 %v15297_v9  ;;  %v6507_v9 = vld [vmem:[%s17165_s7 + $0x80] sm:$0xff]  ;;  %v15349_v62 = vcombine.high %v6500_v53, %v6504_v4 }
 0x4cf   :  { %17769 = vst [vmem:[#allocation40_spill] sm:$0xff] %v15362_v51 }
 0x4d0   :  { %17768 = vst [vmem:[#allocation38_spill] sm:$0xff] %v15349_v62 }
 0x4d1   :  { %6342 = vmatpush1.bf16.msra.mxu0 %v15301_v5  ;;  %6383 = vmatpush1.bf16.msra.mxu1 %v15303_v54  ;;  %v15337_v5 = vcombine.high %v6499_v10, %v6503_v34  ;;  %v6519_v10 = vld [vmem:[%s17165_s7 + $0xe0] sm:$0xff]  ;;  %v6516_v34 = vld [vmem:[%s17165_s7 + $0xc8] sm:$0xff] }
 0x4d2   :  { %7259 = vmatprep.subr.bf16.mxu0 %v15322_v26  ;;  %v15366_v26 = vcombine.low %v6500_v53, %v6504_v4  ;;  %v6520_v53 = vld [vmem:[%s17165_s7 + $0xe8] sm:$0xff] }
 0x4d3   :  { %17767 = vst [vmem:[#allocation36_spill] sm:$0xff] %v15337_v5 }
 0x4d4   :  { %6344 = vmatmul.mubr.bf16.vlgmr.msra.gmra.mrb[36].mxu0 %v14955_v19  ;;  %6385 = vmatmul.mubr.bf16.vlgmr.msra.gmra.mrb[36].mxu1 %v14955_v19  ;;  %v6496_v19 = vld [vmem:[%s17165_s7 + $0x28] sm:$0xff]  ;;  %17770 = vst [vmem:[#allocation41_spill] sm:$0xff] %v15366_v26 }
 0x4d5   :  { %v15333_v47 = vcombine.low %v6492_v59, %v6496_v19  ;;  %v15335_v54 = vcombine.high %v6492_v59, %v6496_v19  ;;  %v6511_v59 = vld [vmem:[%s17165_s7 + $0xa0] sm:$0xff]  ;;  %v6508_v19 = vld [vmem:[%s17165_s7 + $0x88] sm:$0xff]  ;;  %7260 = vmatpush1.bf16.msra.mxu0 %v15320_v25 }
 0x4d6   :  { %7261 = vmatprep.subr.bf16.mxu0 %v15337_v5  ;;  %v15368_v43 = vcombine.high %v6507_v9, %v6511_v59  ;;  %v15371_v42 = vcombine.high %v6508_v19, %v6512_v7  ;;  %v15386_v4 = vcombine.low %v6507_v9, %v6511_v59  ;;  %v15402_v9 = vcombine.low %v6516_v34, %v6520_v53  ;;  %v6524_v59 = vld [vmem:[%s17165_s7 + $0x108] sm:$0xff] }
 0x4d7   :  { %17765 = vst [vmem:[#allocation37_spill] sm:$0xff] %v15333_v47  ;;  %17766 = vst [vmem:[#allocation39_spill] sm:$0xff] %v15335_v54  ;;  %7300 = vmatprep.subr.bf16.mxu1 %v15335_v54  ;;  %v6515_v54 = vld [vmem:[%s17165_s7 + $0xc0] sm:$0xff] }
 0x4d8   :  { %7301 = vmatpush1.bf16.msra.mxu1 %v15333_v47  ;;  %17771 = vst [vmem:[#allocation42_spill] sm:$0xff] %v15368_v43  ;;  %17772 = vst [vmem:[#allocation43_spill] sm:$0xff] %v15371_v42  ;;  %v15392_v5 = vcombine.high %v6515_v54, %v6519_v10  ;;  %v15395_v47 = vcombine.high %v6516_v34, %v6520_v53  ;;  %v15398_v25 = vcombine.low %v6515_v54, %v6519_v10  ;;  %v6527_v54 = vld [vmem:[%s17165_s7 + $0x120] sm:$0xff]  ;;  %v6528_v10 = vld [vmem:[%s17165_s7 + $0x128] sm:$0xff] }
 0x4d9   :  { %7302 = vmatprep.subr.bf16.mxu1 %v15349_v62  ;;  %7262 = vmatpush1.bf16.msra.mxu0 %v15362_v51  ;;  %17773 = vst [vmem:[#allocation44_spill] sm:$0xff] %v15386_v4  ;;  %v15390_v62 = vcombine.low %v6508_v19, %v6512_v7  ;;  %17778 = vst [vmem:[#allocation49_spill] sm:$0xff] %v15402_v9  ;;  %v6523_v7 = vld [vmem:[%s17165_s7 + $0x100] sm:$0xff]  ;;  %v15423_v53 = vcombine.low %v6524_v59, %v6528_v10 }
 0x4da   :  { %7263 = vmatprep.subr.bf16.mxu0 %v15368_v43  ;;  %17775 = vst [vmem:[#allocation46_spill] sm:$0xff] %v15392_v5  ;;  %17776 = vst [vmem:[#allocation47_spill] sm:$0xff] %v15395_v47  ;;  %v15416_v19 = vcombine.high %v6523_v7, %v6527_v54  ;;  %v15421_v34 = vcombine.low %v6523_v7, %v6527_v54  ;;  %v6532_v7 = vld [vmem:[%s17165_s7 + $0x148] sm:$0xff] }
 0x4db   :  { %17774 = vst [vmem:[#allocation45_spill] sm:$0xff] %v15390_v62  ;;  %17777 = vst [vmem:[#allocation48_spill] sm:$0xff] %v15398_v25 }
 0x4dc   :  { %7303 = vmatpush1.bf16.msra.mxu1 %v15366_v26  ;;  %17779 = vst [vmem:[#allocation50_spill] sm:$0xff] %v15416_v19  ;;  %17780 = vst [vmem:[#allocation51_spill] sm:$0xff] %v15421_v34 }
 0x4dd   :  { %7304 = vmatprep.subr.bf16.mxu1 %v15371_v42  ;;  %7264 = vmatpush1.bf16.msra.mxu0 %v15386_v4  ;;  %17781 = vst [vmem:[#allocation52_spill] sm:$0xff] %v15423_v53  ;;  %v6604_v4 = vld [vmem:[%s17165_s7 + $0x388] sm:$0xff] }
 0x4de   :  { %7265 = vmatprep.subr.bf16.mxu0 %v15392_v5  ;;  %v6596_v5 = vld [vmem:[%s17165_s7 + $0x348] sm:$0xff] }
 0x4df   :  { %v6608_v42 = vld [vmem:[%s17165_s7 + $0x3a8] sm:$0xff] }
 0x4e0   :  { %7305 = vmatpush1.bf16.msra.mxu1 %v15390_v62 }
 0x4e1   :  { %7306 = vmatprep.subr.bf16.mxu1 %v15395_v47  ;;  %7266 = vmatpush1.bf16.msra.mxu0 %v15398_v25  ;;  %v6531_v25 = vld [vmem:[%s17165_s7 + $0x140] sm:$0xff] }
 0x4e2   :  { %7267 = vmatprep.subr.bf16.mxu0 %v15416_v19  ;;  %v6535_v47 = vld [vmem:[%s17165_s7 + $0x160] sm:$0xff] }
 0x4e3   :  { %v15440_v54 = vcombine.high %v6531_v25, %v6535_v47  ;;  %v6543_v19 = vld [vmem:[%s17165_s7 + $0x1a0] sm:$0xff] }
 0x4e4   :  { %7307 = vmatpush1.bf16.msra.mxu1 %v15402_v9  ;;  %v15425_v9 = vcombine.high %v6524_v59, %v6528_v10  ;;  %v6536_v59 = vld [vmem:[%s17165_s7 + $0x168] sm:$0xff]  ;;  %v15445_v10 = vcombine.low %v6531_v25, %v6535_v47 }
 0x4e5   :  { %7268 = vmatpush1.bf16.msra.mxu0 %v15421_v34  ;;  %17783 = vst [vmem:[#allocation53_spill] sm:$0xff] %v15440_v54  ;;  %v15447_v34 = vcombine.low %v6532_v7, %v6536_v59  ;;  %v6540_v25 = vld [vmem:[%s17165_s7 + $0x188] sm:$0xff] }
 0x4e6   :  { %17782 = vst [vmem:[#allocation55_spill] sm:$0xff] %v15425_v9  ;;  %7308 = vmatprep.subr.bf16.mxu1 %v15425_v9  ;;  %17784 = vst [vmem:[#allocation54_spill] sm:$0xff] %v15445_v10  ;;  %v15449_v9 = vcombine.high %v6532_v7, %v6536_v59  ;;  %7269 = vmatprep.subr.bf16.mxu0 %v15440_v54  ;;  %v6544_v7 = vld [vmem:[%s17165_s7 + $0x1a8] sm:$0xff]  ;;  %v6551_v54 = vld [vmem:[%s17165_s7 + $0x1e0] sm:$0xff] }
 0x4e7   :  { %17785 = vst [vmem:[#allocation56_spill] sm:$0xff] %v15447_v34 }
 0x4e8   :  { %7309 = vmatpush1.bf16.msra.mxu1 %v15423_v53  ;;  %17786 = vst [vmem:[#allocation59_spill] sm:$0xff] %v15449_v9  ;;  %v6539_v53 = vld [vmem:[%s17165_s7 + $0x180] sm:$0xff] }
 0x4e9   :  { %7310 = vmatprep.subr.bf16.mxu1 %v15449_v9  ;;  %7270 = vmatpush1.bf16.msra.mxu0 %v15445_v10  ;;  %v15464_v47 = vcombine.high %v6539_v53, %v6543_v19  ;;  %v15469_v59 = vcombine.low %v6539_v53, %v6543_v19  ;;  %v15471_v10 = vcombine.low %v6540_v25, %v6544_v7  ;;  %v6548_v19 = vld [vmem:[%s17165_s7 + $0x1c8] sm:$0xff] }
 0x4ea   :  { %v15473_v9 = vcombine.high %v6540_v25, %v6544_v7  ;;  %v6552_v25 = vld [vmem:[%s17165_s7 + $0x1e8] sm:$0xff] }
 0x4eb   :  { %17787 = vst [vmem:[#allocation57_spill] sm:$0xff] %v15464_v47  ;;  %17788 = vst [vmem:[#allocation58_spill] sm:$0xff] %v15469_v59  ;;  %7271 = vmatprep.subr.bf16.mxu0 %v15464_v47  ;;  %v6559_v47 = vld [vmem:[%s17165_s7 + $0x220] sm:$0xff] }
 0x4ec   :  { %7311 = vmatpush1.bf16.msra.mxu1 %v15447_v34  ;;  %17789 = vst [vmem:[#allocation60_spill] sm:$0xff] %v15471_v10  ;;  %17790 = vst [vmem:[#allocation63_spill] sm:$0xff] %v15473_v9  ;;  %v6547_v34 = vld [vmem:[%s17165_s7 + $0x1c0] sm:$0xff] }
 0x4ed   :  { %7312 = vmatprep.subr.bf16.mxu1 %v15473_v9  ;;  %7272 = vmatpush1.bf16.msra.mxu0 %v15469_v59  ;;  %v15488_v53 = vcombine.high %v6547_v34, %v6551_v54  ;;  %v15493_v7 = vcombine.low %v6547_v34, %v6551_v54  ;;  %v15495_v59 = vcombine.low %v6548_v19, %v6552_v25  ;;  %v6556_v34 = vld [vmem:[%s17165_s7 + $0x208] sm:$0xff] }
 0x4ee   :  { %v15497_v9 = vcombine.high %v6548_v19, %v6552_v25  ;;  %v6560_v19 = vld [vmem:[%s17165_s7 + $0x228] sm:$0xff] }
 0x4ef   :  { %17791 = vst [vmem:[#allocation61_spill] sm:$0xff] %v15488_v53  ;;  %17792 = vst [vmem:[#allocation62_spill] sm:$0xff] %v15493_v7  ;;  %7273 = vmatprep.subr.bf16.mxu0 %v15488_v53  ;;  %v6567_v53 = vld [vmem:[%s17165_s7 + $0x260] sm:$0xff] }
 0x4f0   :  { %7313 = vmatpush1.bf16.msra.mxu1 %v15471_v10  ;;  %17793 = vst [vmem:[#allocation64_spill] sm:$0xff] %v15495_v59  ;;  %17794 = vst [vmem:[#allocation67_spill] sm:$0xff] %v15497_v9  ;;  %v6555_v10 = vld [vmem:[%s17165_s7 + $0x200] sm:$0xff] }
 0x4f1   :  { %7314 = vmatprep.subr.bf16.mxu1 %v15497_v9  ;;  %7274 = vmatpush1.bf16.msra.mxu0 %v15493_v7  ;;  %v15512_v54 = vcombine.high %v6555_v10, %v6559_v47  ;;  %v15517_v25 = vcombine.low %v6555_v10, %v6559_v47  ;;  %v15519_v7 = vcombine.low %v6556_v34, %v6560_v19  ;;  %v6564_v10 = vld [vmem:[%s17165_s7 + $0x248] sm:$0xff] }
 0x4f2   :  { %v15521_v9 = vcombine.high %v6556_v34, %v6560_v19  ;;  %v6568_v34 = vld [vmem:[%s17165_s7 + $0x268] sm:$0xff] }
 0x4f3   :  { %17795 = vst [vmem:[#allocation65_spill] sm:$0xff] %v15512_v54  ;;  %17796 = vst [vmem:[#allocation66_spill] sm:$0xff] %v15517_v25  ;;  %7275 = vmatprep.subr.bf16.mxu0 %v15512_v54  ;;  %v6575_v54 = vld [vmem:[%s17165_s7 + $0x2a0] sm:$0xff] }
 0x4f4   :  { %7315 = vmatpush1.bf16.msra.mxu1 %v15495_v59  ;;  %17797 = vst [vmem:[#allocation68_spill] sm:$0xff] %v15519_v7  ;;  %17798 = vst [vmem:[#allocation71_spill] sm:$0xff] %v15521_v9  ;;  %v6563_v59 = vld [vmem:[%s17165_s7 + $0x240] sm:$0xff] }
 0x4f5   :  { %7316 = vmatprep.subr.bf16.mxu1 %v15521_v9  ;;  %7276 = vmatpush1.bf16.msra.mxu0 %v15517_v25  ;;  %v15536_v47 = vcombine.high %v6563_v59, %v6567_v53  ;;  %v15541_v19 = vcombine.low %v6563_v59, %v6567_v53  ;;  %v15543_v25 = vcombine.low %v6564_v10, %v6568_v34  ;;  %v6572_v59 = vld [vmem:[%s17165_s7 + $0x288] sm:$0xff] }
 0x4f6   :  { %v15545_v9 = vcombine.high %v6564_v10, %v6568_v34  ;;  %v6576_v10 = vld [vmem:[%s17165_s7 + $0x2a8] sm:$0xff] }
 0x4f7   :  { %17799 = vst [vmem:[#allocation69_spill] sm:$0xff] %v15536_v47  ;;  %17800 = vst [vmem:[#allocation70_spill] sm:$0xff] %v15541_v19  ;;  %7277 = vmatprep.subr.bf16.mxu0 %v15536_v47  ;;  %v6583_v47 = vld [vmem:[%s17165_s7 + $0x2e0] sm:$0xff] }
 0x4f8   :  { %7317 = vmatpush1.bf16.msra.mxu1 %v15519_v7  ;;  %17801 = vst [vmem:[#allocation72_spill] sm:$0xff] %v15543_v25  ;;  %17802 = vst [vmem:[#allocation75_spill] sm:$0xff] %v15545_v9  ;;  %v6571_v7 = vld [vmem:[%s17165_s7 + $0x280] sm:$0xff] }
 0x4f9   :  { %7318 = vmatprep.subr.bf16.mxu1 %v15545_v9  ;;  %7278 = vmatpush1.bf16.msra.mxu0 %v15541_v19  ;;  %v15560_v53 = vcombine.high %v6571_v7, %v6575_v54  ;;  %v15565_v34 = vcombine.low %v6571_v7, %v6575_v54  ;;  %v15567_v19 = vcombine.low %v6572_v59, %v6576_v10  ;;  %v6580_v7 = vld [vmem:[%s17165_s7 + $0x2c8] sm:$0xff] }
 0x4fa   :  { %v15569_v9 = vcombine.high %v6572_v59, %v6576_v10  ;;  %v6584_v59 = vld [vmem:[%s17165_s7 + $0x2e8] sm:$0xff] }
 0x4fb   :  { %17803 = vst [vmem:[#allocation73_spill] sm:$0xff] %v15560_v53  ;;  %17804 = vst [vmem:[#allocation74_spill] sm:$0xff] %v15565_v34  ;;  %7279 = vmatprep.subr.bf16.mxu0 %v15560_v53  ;;  %v6591_v53 = vld [vmem:[%s17165_s7 + $0x320] sm:$0xff] }
 0x4fc   :  { %7319 = vmatpush1.bf16.msra.mxu1 %v15543_v25  ;;  %17805 = vst [vmem:[#allocation76_spill] sm:$0xff] %v15567_v19  ;;  %17806 = vst [vmem:[#allocation79_spill] sm:$0xff] %v15569_v9  ;;  %v6579_v25 = vld [vmem:[%s17165_s7 + $0x2c0] sm:$0xff] }
 0x4fd   :  { %7320 = vmatprep.subr.bf16.mxu1 %v15569_v9  ;;  %7280 = vmatpush1.bf16.msra.mxu0 %v15565_v34  ;;  %v15584_v54 = vcombine.high %v6579_v25, %v6583_v47  ;;  %v15589_v10 = vcombine.low %v6579_v25, %v6583_v47  ;;  %v15591_v34 = vcombine.low %v6580_v7, %v6584_v59  ;;  %v6588_v25 = vld [vmem:[%s17165_s7 + $0x308] sm:$0xff] }
 0x4fe   :  { %v15593_v9 = vcombine.high %v6580_v7, %v6584_v59  ;;  %v6592_v7 = vld [vmem:[%s17165_s7 + $0x328] sm:$0xff] }
 0x4ff   :  { %17807 = vst [vmem:[#allocation77_spill] sm:$0xff] %v15584_v54  ;;  %17808 = vst [vmem:[#allocation78_spill] sm:$0xff] %v15589_v10  ;;  %7281 = vmatprep.subr.bf16.mxu0 %v15584_v54  ;;  %v6595_v54 = vld [vmem:[%s17165_s7 + $0x340] sm:$0xff] }
 0x500   :  { %7321 = vmatpush1.bf16.msra.mxu1 %v15567_v19  ;;  %17809 = vst [vmem:[#allocation80_spill] sm:$0xff] %v15591_v34  ;;  %17810 = vst [vmem:[#allocation83_spill] sm:$0xff] %v15593_v9  ;;  %v6587_v19 = vld [vmem:[%s17165_s7 + $0x300] sm:$0xff] }
 0x501   :  { %7322 = vmatprep.subr.bf16.mxu1 %v15593_v9  ;;  %7282 = vmatpush1.bf16.msra.mxu0 %v15589_v10  ;;  %v15608_v47 = vcombine.high %v6587_v19, %v6591_v53  ;;  %v15613_v59 = vcombine.low %v6587_v19, %v6591_v53  ;;  %v15615_v10 = vcombine.low %v6588_v25, %v6592_v7  ;;  %v6600_v53 = vld [vmem:[%s17165_s7 + $0x368] sm:$0xff] }
 0x502   :  { %v15617_v9 = vcombine.high %v6588_v25, %v6592_v7  ;;  %v6603_v25 = vld [vmem:[%s17165_s7 + $0x380] sm:$0xff]  ;;  %v15654_v43 = vcombine.low %v6596_v5, %v6600_v53 }
 0x503   :  { %17811 = vst [vmem:[#allocation81_spill] sm:$0xff] %v15608_v47  ;;  %17812 = vst [vmem:[#allocation82_spill] sm:$0xff] %v15613_v59  ;;  %7283 = vmatprep.subr.bf16.mxu0 %v15608_v47  ;;  %v6607_v7 = vld [vmem:[%s17165_s7 + $0x3a0] sm:$0xff]  ;;  %v15644_v47 = vcombine.high %v6596_v5, %v6600_v53  ;;  %v6616_v5 = vld [vmem:[%s17165_s7 + $0x3e8] sm:$0xff] }
 0x504   :  { %7323 = vmatpush1.bf16.msra.mxu1 %v15591_v34  ;;  %17813 = vst [vmem:[#allocation84_spill] sm:$0xff] %v15615_v10  ;;  %17814 = vst [vmem:[#allocation87_spill] sm:$0xff] %v15617_v9  ;;  %v6599_v34 = vld [vmem:[%s17165_s7 + $0x360] sm:$0xff]  ;;  %v15674_v53 = vcombine.low %v6603_v25, %v6607_v7 }
 0x505   :  { %v15629_v19 = vcombine.high %v6595_v54, %v6599_v34  ;;  %7324 = vmatprep.subr.bf16.mxu1 %v15617_v9  ;;  %7284 = vmatpush1.bf16.msra.mxu0 %v15613_v59  ;;  %v15642_v62 = vcombine.low %v6595_v54, %v6599_v34  ;;  %17817 = vst [vmem:[#allocation88_spill] sm:$0xff] %v15644_v47  ;;  %17818 = vst [vmem:[#allocation90_spill] sm:$0xff] %v15654_v43  ;;  %v6611_v54 = vld [vmem:[%s17165_s7 + $0x3c0] sm:$0xff] }
 0x506   :  { %v15656_v9 = vcombine.high %v6603_v25, %v6607_v7  ;;  %v15659_v34 = vcombine.high %v6604_v4, %v6608_v42  ;;  %v6615_v59 = vld [vmem:[%s17165_s7 + $0x3e0] sm:$0xff]  ;;  %17821 = vst [vmem:[#allocation91_spill] sm:$0xff] %v15674_v53  ;;  %v6498_v7 = vld [vmem:[%s17165_s7 + $0x38] sm:$0xff] }
 0x507   :  { %17815 = vst [vmem:[#allocation85_spill] sm:$0xff] %v15629_v19  ;;  %17816 = vst [vmem:[#allocation86_spill] sm:$0xff] %v15642_v62  ;;  %7285 = vmatprep.subr.bf16.mxu0 %v15629_v19  ;;  %v6612_v19 = vld [vmem:[%s17165_s7 + $0x3c8] sm:$0xff]  ;;  %v15686_v51 = vcombine.low %v6611_v54, %v6615_v59 }
 0x508   :  { %7325 = vmatpush1.bf16.msra.mxu1 %v15615_v10  ;;  %17819 = vst [vmem:[#allocation89_spill] sm:$0xff] %v15656_v9  ;;  %17820 = vst [vmem:[#allocation92_spill] sm:$0xff] %v15659_v34  ;;  %v15680_v10 = vcombine.high %v6611_v54, %v6615_v59  ;;  %v15683_v26 = vcombine.high %v6612_v19, %v6616_v5  ;;  %v15690_v25 = vcombine.low %v6612_v19, %v6616_v5  ;;  %v6494_v59 = vld [vmem:[%s17165_s7 + $0x18] sm:$0xff] }
 0x509   :  { %7326 = vmatprep.subr.bf16.mxu1 %v15644_v47  ;;  %7286 = vmatpush1.bf16.msra.mxu0 %v15642_v62  ;;  %v15678_v47 = vcombine.low %v6604_v4, %v6608_v42  ;;  %17825 = vst [vmem:[#allocation95_spill] sm:$0xff] %v15686_v51  ;;  %v6493_v42 = vld [vmem:[%s17165_s7 + $0x10] sm:$0xff]  ;;  %v15711_v5 = vcombine.low %v6494_v59, %v6498_v7 }
 0x50a   :  { %7287 = vmatprep.subr.bf16.mxu0 %v15656_v9  ;;  %17823 = vst [vmem:[#allocation94_spill] sm:$0xff] %v15680_v10  ;;  %17824 = vst [vmem:[#allocation96_spill] sm:$0xff] %v15683_v26  ;;  %v6497_v4 = vld [vmem:[%s17165_s7 + $0x30] sm:$0xff] }
 0x50b   :  { %17822 = vst [vmem:[#allocation93_spill] sm:$0xff] %v15678_v47  ;;  %17826 = vst [vmem:[#allocation97_spill] sm:$0xff] %v15690_v25  ;;  %v15704_v19 = vcombine.high %v6493_v42, %v6497_v4  ;;  %v15709_v54 = vcombine.low %v6493_v42, %v6497_v4 }
 0x50c   :  { %7327 = vmatpush1.bf16.msra.mxu1 %v15654_v43 }
 0x50d   :  { %7328 = vmatprep.subr.bf16.mxu1 %v15659_v34  ;;  %7288 = vmatpush1.bf16.msra.mxu0 %v15674_v53  ;;  %17827 = vst [vmem:[#allocation98_spill] sm:$0xff] %v15704_v19 }
 0x50e   :  { %7289 = vmatprep.subr.bf16.mxu0 %v15680_v10 }
 0x510   :  { %7329 = vmatpush1.bf16.msra.mxu1 %v15678_v47 }
 0x511   :  { %7330 = vmatprep.subr.bf16.mxu1 %v15683_v26  ;;  %7290 = vmatpush1.bf16.msra.mxu0 %v15686_v51  ;;  %v15713_v51 = vcombine.high %v6494_v59, %v6498_v7 }
 0x512   :  { %7341 = vmatprep.subr.bf16.mxu0 %v15704_v19 }
 0x513   :  { %17828 = vst [vmem:[#allocation99_spill] sm:$0xff] %v15713_v51 }
 0x514   :  { %7331 = vmatpush1.bf16.msra.mxu1 %v15690_v25 }
 0x515   :  { %7382 = vmatprep.subr.bf16.mxu1 %v15713_v51 }
 0x567   :  { %v6263_v26 = vpop.f32.mrb[24].mxu0  ;;  %v6304_v10 = vpop.f32.mrb[24].mxu1 }
 0x568   :  { %v12303_v25 = vadd.f32 %v6263_v26, %v17735_v11  ;;  %v6265_v47 = vpop.f32.mrb[25].mxu0  ;;  %v6306_v53 = vpop.f32.mrb[25].mxu1  ;;  %v12305_v51 = vadd.f32 %v6304_v10, %v13878_v63 }
 0x569   :  { %v12304_v34 = vadd.f32 %v6265_v47, %v13867_v38  ;;  %v6267_v9 = vpop.f32.mrb[26].mxu0  ;;  %v6308_v43 = vpop.f32.mrb[26].mxu1  ;;  %v12306_v59 = vadd.f32 %v6306_v53, %v13874_v31 }
 0x56a   :  { %v11627_v42 = vmul.f32 -1.442695, %v12303_v25  ;;  %v6268_v4 = vpop.f32.mrb[27].mxu0  ;;  %v6309_v62 = vpop.f32.mrb[27].mxu1 }
 0x56b   :  { %v11628_v13 = vmul.f32 -1.442695, %v12304_v34  ;;  %v11629_v7 = vmul.f32 -1.442695, %v12306_v59  ;;  %v6464_v53 = vpop.permute.xlu1 %6463 }
 0x56c   :  { %12621 = vpow2.f32 %v11627_v42  ;;  %vm6466_vm9 = vcmp.gt.f32.partialorder %v6464_v53, 0.0  ;;  %v17866_v53 = vld [vmem:[#allocation43_spill] sm:$0xff] }
 0x56d   :  { %12623 = vpow2.f32 %v11628_v13 }
 0x56e   :  { %12625 = vpow2.f32 %v11629_v7 }
 0x56f   :  { %12627 = vtanh.f32 %v12305_v51 }
 0x576   :  { %v12622_v19 = vpop.eup %12621 }
 0x577   :  { %v12624_v36 = vpop.eup %12623  ;;  %v6413_v26 = vadd.f32 1.0, %v12622_v19 }
 0x578   :  { %v6419_v11 = vadd.f32 1.0, %v12624_v36  ;;  %v12626_v43 = vpop.eup %12625 }
 0x579   :  { %12629 = vrcp.f32 %v6413_v26  ;;  %v12628_v9 = vpop.eup %12627  ;;  %v6426_v25 = vadd.f32 1.0, %v12626_v43 }
 0x57a   :  { %12631 = vrcp.f32 %v6419_v11 }
 0x57b   :  { %12633 = vrcp.f32 %v6426_v25 }
 0x583   :  { %v12630_v47 = vpop.eup %12629 }
 0x584   :  { %v12632_v62 = vpop.eup %12631  ;;  %v6430_v34 = vmul.f32 %v12630_v47, %v12628_v9 }
 0x585   :  { %v6429_v13 = vmul.f32 %v12632_v62, %v14922_v41  ;;  %v12634_v36 = vpop.eup %12633 }
 0x587   :  { %v6431_v42 = vadd.f32 %v6430_v34, %v6429_v13 }
 0x589   :  { %12635 = vtanh.f32 %v6431_v42  ;;  %v15724_v10 = vsel %vm6466_vm9, %v6431_v42, %v14922_v41 }
 0x58a   :  { %17829 = vst [vmem:[#allocation100_spill] sm:$0xff] %v15724_v10 }
 0x593   :  { %v12636_v51 = vpop.eup %12635 }
 0x594   :  { %v6433_v11 = vmul.f32 %v12636_v51, %v12634_v36 }
 0x5a7   :  { %v6345_v19 = vpop.f32.mrb[36].mxu0  ;;  %v6386_v4 = vpop.f32.mrb[36].mxu1 }
 0x5a8   :  { %v12315_v59 = vadd.f32 %v6345_v19, %v13901_v45  ;;  %v6347_v7 = vpop.f32.mrb[37].mxu0  ;;  %v6388_v26 = vpop.f32.mrb[37].mxu1  ;;  %v12317_v36 = vadd.f32 %v6386_v4, %v13921_v27 }
 0x5a9   :  { %v12316_v43 = vadd.f32 %v6347_v7, %v13903_v46  ;;  %v6349_v9 = vpop.f32.mrb[38].mxu0  ;;  %v6390_v47 = vpop.f32.mrb[38].mxu1  ;;  %v12318_v41 = vadd.f32 %v6388_v26, %v13912_v16 }
 0x5aa   :  { %v11630_v62 = vmul.f32 -1.442695, %v12315_v59  ;;  %v6350_v34 = vpop.f32.mrb[39].mxu0  ;;  %v6391_v25 = vpop.f32.mrb[39].mxu1 }
 0x5ab   :  { %v11631_v13 = vmul.f32 -1.442695, %v12316_v43  ;;  %v11632_v42 = vmul.f32 -1.442695, %v12318_v41  ;;  %v6472_v26 = vpop.permute.xlu0 %6471 }
 0x5ac   :  { %12637 = vpow2.f32 %v11630_v62  ;;  %vm6474_vm10 = vcmp.gt.f32.partialorder %v6472_v26, 0.0  ;;  %v17876_v26 = vld [vmem:[#allocation52_spill] sm:$0xff] }
 0x5ad   :  { %12639 = vpow2.f32 %v11631_v13 }
 0x5ae   :  { %12641 = vpow2.f32 %v11632_v42 }
 0x5af   :  { %12643 = vtanh.f32 %v12317_v36 }
 0x5b6   :  { %v12638_v51 = vpop.eup %12637 }
 0x5b7   :  { %v12640_v10 = vpop.eup %12639  ;;  %v6438_v19 = vadd.f32 1.0, %v12638_v51 }
 0x5b8   :  { %v6444_v45 = vadd.f32 1.0, %v12640_v10  ;;  %v12642_v7 = vpop.eup %12641 }
 0x5b9   :  { %12645 = vrcp.f32 %v6438_v19  ;;  %v12644_v59 = vpop.eup %12643  ;;  %v6451_v62 = vadd.f32 1.0, %v12642_v7  ;;  %v17868_v19 = vld [vmem:[#allocation45_spill] sm:$0xff]  ;;  %v17869_v7 = vld [vmem:[#allocation46_spill] sm:$0xff] }
 0x5ba   :  { %12647 = vrcp.f32 %v6444_v45  ;;  %v15736_v45 = vsel %vm6466_vm9, %v6433_v11, %v14934_v52  ;;  %v17831_v52 = vld [vmem:[#allocation8_spill] sm:$0xff] }
 0x5bb   :  { %12649 = vrcp.f32 %v6451_v62  ;;  %v15745_v51 = vpack.c.bf16 %v15736_v45, %v15736_v45  ;;  %v17867_v11 = vld [vmem:[#allocation44_spill] sm:$0xff]  ;;  %v17874_v62 = vld [vmem:[#allocation55_spill] sm:$0xff] }
 0x5c3   :  { %v12646_v9 = vpop.eup %12645 }
 0x5c4   :  { %v12648_v47 = vpop.eup %12647  ;;  %v6455_v43 = vmul.f32 %v12646_v9, %v12644_v59  ;;  %v17870_v59 = vld [vmem:[#allocation47_spill] sm:$0xff]  ;;  %v17871_v9 = vld [vmem:[#allocation48_spill] sm:$0xff] }
 0x5c5   :  { %v6454_v34 = vmul.f32 %v12648_v47, %v14930_v29  ;;  %v12650_v13 = vpop.eup %12649  ;;  %v17872_v47 = vld [vmem:[#allocation49_spill] sm:$0xff] }
 0x5c7   :  { %v6456_v25 = vadd.f32 %v6455_v43, %v6454_v34  ;;  %v17873_v43 = vld [vmem:[#allocation50_spill] sm:$0xff]  ;;  %v17875_v34 = vld [vmem:[#allocation51_spill] sm:$0xff] }
 0x5c9   :  { %12651 = vtanh.f32 %v6456_v25  ;;  %v15732_v4 = vsel %vm6474_vm10, %v6456_v25, %v14930_v29  ;;  %v17830_v29 = vld [vmem:[#allocation7_spill] sm:$0xff]  ;;  %v17877_v25 = vld [vmem:[#allocation53_spill] sm:$0xff] }
 0x5d3   :  { %v12652_v10 = vpop.eup %12651 }
 0x5d4   :  { %v6458_v41 = vmul.f32 %v12652_v10, %v12650_v13  ;;  %v17878_v13 = vld [vmem:[#allocation59_spill] sm:$0xff]  ;;  %v17879_v10 = vld [vmem:[#allocation54_spill] sm:$0xff] }
 0x5d6   :  { %v15739_v42 = vsel %vm6474_vm10, %v6458_v41, %v14940_v1  ;;  %v17832_v1 = vld [vmem:[#allocation9_spill] sm:$0xff]  ;;  %v17880_v41 = vld [vmem:[#allocation56_spill] sm:$0xff] }
 0x5d7   :  { %v6490_v36 = vpack.c.bf16 %v15739_v42, %v15739_v42 }
 0x5d9   :  { %7291 = vmatprep.mubr.bf16.mxu0 %v6490_v36  ;;  %7332 = vmatprep.mubr.bf16.mxu1 %v6490_v36 }
 0x5da   :  { %7292 = vmatmul.mubr.bf16.vlgmr.msra.gmra.mrb[32].mxu0 %v15745_v51  ;;  %7333 = vmatmul.mubr.bf16.vlgmr.msra.gmra.mrb[32].mxu1 %v15745_v51 }
 0x5db   :  { %7342 = vmatpush1.bf16.msra.mxu0 %v15709_v54  ;;  %7383 = vmatpush1.bf16.msra.mxu1 %v15711_v5 }
 0x5dc   :  { %7373 = vmatprep.mubr.bf16.mxu0 %v6490_v36  ;;  %7414 = vmatprep.mubr.bf16.mxu1 %v6490_v36  ;;  %v17881_v36 = vld [vmem:[#allocation57_spill] sm:$0xff] }
 0x5dd   :  { %7343 = vmatprep.subr.bf16.mxu0 %v14960_v24  ;;  %7384 = vmatprep.subr.bf16.mxu1 %v14962_v28  ;;  %v17833_v24 = vld [vmem:[#allocation10_spill] sm:$0xff]  ;;  %v17834_v28 = vld [vmem:[#allocation11_spill] sm:$0xff] }
 0x5df   :  { %7344 = vmatpush1.bf16.msra.mxu0 %v14977_v2  ;;  %7385 = vmatpush1.bf16.msra.mxu1 %v14979_v3  ;;  %v17835_v2 = vld [vmem:[#allocation12_spill] sm:$0xff]  ;;  %v17836_v3 = vld [vmem:[#allocation13_spill] sm:$0xff] }
 0x5e0   :  { %7345 = vmatprep.subr.bf16.mxu0 %v14981_v32  ;;  %7386 = vmatprep.subr.bf16.mxu1 %v14983_v60  ;;  %v17837_v32 = vld [vmem:[#allocation14_spill] sm:$0xff]  ;;  %v17838_v60 = vld [vmem:[#allocation15_spill] sm:$0xff] }
 0x5e3   :  { %7346 = vmatpush1.bf16.msra.mxu0 %v15001_v58  ;;  %7387 = vmatpush1.bf16.msra.mxu1 %v15003_v35  ;;  %v17839_v58 = vld [vmem:[#allocation16_spill] sm:$0xff]  ;;  %v17840_v35 = vld [vmem:[#allocation17_spill] sm:$0xff] }
 0x5e4   :  { %7347 = vmatprep.subr.bf16.mxu0 %v15007_v23  ;;  %7388 = vmatprep.subr.bf16.mxu1 %v15009_v61  ;;  %v17841_v23 = vld [vmem:[#allocation18_spill] sm:$0xff]  ;;  %v17842_v61 = vld [vmem:[#allocation19_spill] sm:$0xff] }
 0x5e7   :  { %7348 = vmatpush1.bf16.msra.mxu0 %v15025_v8  ;;  %7389 = vmatpush1.bf16.msra.mxu1 %v15027_v50  ;;  %v17843_v8 = vld [vmem:[#allocation20_spill] sm:$0xff]  ;;  %v17844_v50 = vld [vmem:[#allocation21_spill] sm:$0xff] }
 0x5e8   :  { %7349 = vmatprep.subr.bf16.mxu0 %v15031_v39  ;;  %7390 = vmatprep.subr.bf16.mxu1 %v15033_v55  ;;  %v17845_v39 = vld [vmem:[#allocation22_spill] sm:$0xff]  ;;  %v17846_v55 = vld [vmem:[#allocation23_spill] sm:$0xff] }
 0x5eb   :  { %7350 = vmatpush1.bf16.msra.mxu0 %v15049_v57  ;;  %7391 = vmatpush1.bf16.msra.mxu1 %v15051_v30  ;;  %v17847_v57 = vld [vmem:[#allocation24_spill] sm:$0xff]  ;;  %v17848_v30 = vld [vmem:[#allocation25_spill] sm:$0xff] }
 0x5ec   :  { %7351 = vmatprep.subr.bf16.mxu0 %v15055_v18  ;;  %7392 = vmatprep.subr.bf16.mxu1 %v15057_v15  ;;  %v17849_v18 = vld [vmem:[#allocation26_spill] sm:$0xff]  ;;  %v17850_v15 = vld [vmem:[#allocation27_spill] sm:$0xff] }
 0x5ef   :  { %7352 = vmatpush1.bf16.msra.mxu0 %v15073_v21  ;;  %7393 = vmatpush1.bf16.msra.mxu1 %v15075_v17  ;;  %v17851_v21 = vld [vmem:[#allocation28_spill] sm:$0xff]  ;;  %v17852_v17 = vld [vmem:[#allocation29_spill] sm:$0xff] }
 0x5f0   :  { %7353 = vmatprep.subr.bf16.mxu0 %v15079_v22  ;;  %7394 = vmatprep.subr.bf16.mxu1 %v15081_v12  ;;  %v17853_v22 = vld [vmem:[#allocation30_spill] sm:$0xff]  ;;  %v17854_v12 = vld [vmem:[#allocation31_spill] sm:$0xff] }
 0x5f3   :  { %7354 = vmatpush1.bf16.msra.mxu0 %v15097_v0  ;;  %7395 = vmatpush1.bf16.msra.mxu1 %v15099_v6  ;;  %v17855_v0 = vld [vmem:[#allocation32_spill] sm:$0xff]  ;;  %v17856_v6 = vld [vmem:[#allocation33_spill] sm:$0xff] }
 0x5f4   :  { %7355 = vmatprep.subr.bf16.mxu0 %v15103_v37  ;;  %7396 = vmatprep.subr.bf16.mxu1 %v15105_v40  ;;  %v17857_v37 = vld [vmem:[#allocation35_spill] sm:$0xff] }
 0x5f5   :  { %v17858_v40 = vld [vmem:[#allocation39_spill] sm:$0xff] }
 0x5f7   :  { %7356 = vmatpush1.bf16.msra.mxu0 %v15121_v56  ;;  %7397 = vmatpush1.bf16.msra.mxu1 %v15123_v44  ;;  %v17859_v56 = vld [vmem:[#allocation34_spill] sm:$0xff]  ;;  %v17860_v44 = vld [vmem:[#allocation37_spill] sm:$0xff] }
 0x5f8   :  { %7357 = vmatprep.subr.bf16.mxu0 %v15127_v14  ;;  %7398 = vmatprep.subr.bf16.mxu1 %v15129_v33  ;;  %v17861_v14 = vld [vmem:[#allocation36_spill] sm:$0xff]  ;;  %v17862_v33 = vld [vmem:[#allocation38_spill] sm:$0xff] }
 0x5fb   :  { %7358 = vmatpush1.bf16.msra.mxu0 %v15145_v48  ;;  %7399 = vmatpush1.bf16.msra.mxu1 %v15147_v49  ;;  %v17863_v48 = vld [vmem:[#allocation40_spill] sm:$0xff]  ;;  %v17864_v49 = vld [vmem:[#allocation41_spill] sm:$0xff] }
 0x5fc   :  { %7359 = vmatprep.subr.bf16.mxu0 %v15151_v20  ;;  %7400 = vmatprep.subr.bf16.mxu1 %v17830_v29  ;;  %v17865_v20 = vld [vmem:[#allocation42_spill] sm:$0xff] }
 0x5fd   :  { %v17883_v29 = vld [vmem:[#allocation58_spill] sm:$0xff] }
 0x5ff   :  { %7360 = vmatpush1.bf16.msra.mxu0 %v17831_v52  ;;  %7401 = vmatpush1.bf16.msra.mxu1 %v17832_v1  ;;  %v17884_v52 = vld [vmem:[#allocation60_spill] sm:$0xff]  ;;  %v17885_v1 = vld [vmem:[#allocation61_spill] sm:$0xff] }
 0x600   :  { %7361 = vmatprep.subr.bf16.mxu0 %v17833_v24  ;;  %7402 = vmatprep.subr.bf16.mxu1 %v17834_v28  ;;  %v17886_v24 = vld [vmem:[#allocation67_spill] sm:$0xff]  ;;  %v17887_v28 = vld [vmem:[#allocation62_spill] sm:$0xff] }
 0x603   :  { %7362 = vmatpush1.bf16.msra.mxu0 %v17835_v2  ;;  %7403 = vmatpush1.bf16.msra.mxu1 %v17836_v3  ;;  %v17888_v2 = vld [vmem:[#allocation64_spill] sm:$0xff]  ;;  %v17889_v3 = vld [vmem:[#allocation65_spill] sm:$0xff] }
 0x604   :  { %7363 = vmatprep.subr.bf16.mxu0 %v17837_v32  ;;  %7404 = vmatprep.subr.bf16.mxu1 %v17838_v60  ;;  %v17890_v32 = vld [vmem:[#allocation71_spill] sm:$0xff]  ;;  %v17891_v60 = vld [vmem:[#allocation66_spill] sm:$0xff] }
 0x607   :  { %7364 = vmatpush1.bf16.msra.mxu0 %v17839_v58  ;;  %7405 = vmatpush1.bf16.msra.mxu1 %v17840_v35  ;;  %v17892_v58 = vld [vmem:[#allocation68_spill] sm:$0xff]  ;;  %v17893_v35 = vld [vmem:[#allocation69_spill] sm:$0xff] }
 0x608   :  { %7365 = vmatprep.subr.bf16.mxu0 %v17841_v23  ;;  %7406 = vmatprep.subr.bf16.mxu1 %v17842_v61  ;;  %v17894_v23 = vld [vmem:[#allocation75_spill] sm:$0xff]  ;;  %v17895_v61 = vld [vmem:[#allocation70_spill] sm:$0xff] }
 0x60b   :  { %7366 = vmatpush1.bf16.msra.mxu0 %v17843_v8  ;;  %7407 = vmatpush1.bf16.msra.mxu1 %v17844_v50  ;;  %v17896_v8 = vld [vmem:[#allocation72_spill] sm:$0xff]  ;;  %v17897_v50 = vld [vmem:[#allocation73_spill] sm:$0xff] }
 0x60c   :  { %7367 = vmatprep.subr.bf16.mxu0 %v17845_v39  ;;  %7408 = vmatprep.subr.bf16.mxu1 %v17846_v55  ;;  %v17898_v39 = vld [vmem:[#allocation79_spill] sm:$0xff]  ;;  %v17899_v55 = vld [vmem:[#allocation74_spill] sm:$0xff] }
 0x60f   :  { %7368 = vmatpush1.bf16.msra.mxu0 %v17847_v57  ;;  %7409 = vmatpush1.bf16.msra.mxu1 %v17848_v30  ;;  %v17900_v57 = vld [vmem:[#allocation76_spill] sm:$0xff]  ;;  %v17901_v30 = vld [vmem:[#allocation77_spill] sm:$0xff] }
 0x610   :  { %7369 = vmatprep.subr.bf16.mxu0 %v17849_v18  ;;  %7410 = vmatprep.subr.bf16.mxu1 %v17850_v15  ;;  %v17902_v18 = vld [vmem:[#allocation83_spill] sm:$0xff]  ;;  %v17903_v15 = vld [vmem:[#allocation78_spill] sm:$0xff] }
 0x613   :  { %7370 = vmatpush1.bf16.msra.mxu0 %v17851_v21  ;;  %7411 = vmatpush1.bf16.msra.mxu1 %v17852_v17  ;;  %v17904_v21 = vld [vmem:[#allocation80_spill] sm:$0xff]  ;;  %v17905_v17 = vld [vmem:[#allocation81_spill] sm:$0xff] }
 0x614   :  { %7371 = vmatprep.subr.bf16.mxu0 %v17853_v22  ;;  %7412 = vmatprep.subr.bf16.mxu1 %v17854_v12  ;;  %v17906_v22 = vld [vmem:[#allocation87_spill] sm:$0xff]  ;;  %v17907_v12 = vld [vmem:[#allocation82_spill] sm:$0xff] }
 0x617   :  { %7372 = vmatpush1.bf16.msra.mxu0 %v17855_v0  ;;  %7413 = vmatpush1.bf16.msra.mxu1 %v17856_v6  ;;  %v17908_v0 = vld [vmem:[#allocation84_spill] sm:$0xff]  ;;  %v17909_v6 = vld [vmem:[#allocation85_spill] sm:$0xff] }
 0x618   :  { %8289 = vmatprep.subr.bf16.mxu0 %v17857_v37  ;;  %8330 = vmatprep.subr.bf16.mxu1 %v17858_v40  ;;  %v17910_v37 = vld [vmem:[#allocation88_spill] sm:$0xff]  ;;  %v17911_v40 = vld [vmem:[#allocation86_spill] sm:$0xff] }
 0x61a   :  { %7374 = vmatmul.mubr.bf16.vlgmr.msra.gmra.mrb[28].mxu0 %v15745_v51  ;;  %7415 = vmatmul.mubr.bf16.vlgmr.msra.gmra.mrb[28].mxu1 %v15745_v51  ;;  %v17882_v51 = vld [vmem:[#allocation63_spill] sm:$0xff] }
 0x61b   :  { %8290 = vmatpush1.bf16.msra.mxu0 %v17859_v56  ;;  %8331 = vmatpush1.bf16.msra.mxu1 %v17860_v44  ;;  %v17912_v56 = vld [vmem:[#allocation90_spill] sm:$0xff]  ;;  %v17913_v44 = vld [vmem:[#allocation89_spill] sm:$0xff] }
 0x61c   :  { %8291 = vmatprep.subr.bf16.mxu0 %v17861_v14  ;;  %8332 = vmatprep.subr.bf16.mxu1 %v17862_v33  ;;  %v17914_v14 = vld [vmem:[#allocation92_spill] sm:$0xff]  ;;  %v17915_v33 = vld [vmem:[#allocation91_spill] sm:$0xff] }
 0x61f   :  { %8292 = vmatpush1.bf16.msra.mxu0 %v17863_v48  ;;  %8333 = vmatpush1.bf16.msra.mxu1 %v17864_v49  ;;  %v17916_v48 = vld [vmem:[#allocation93_spill] sm:$0xff]  ;;  %v17917_v49 = vld [vmem:[#allocation94_spill] sm:$0xff] }
 0x620   :  { %8293 = vmatprep.subr.bf16.mxu0 %v17865_v20  ;;  %8334 = vmatprep.subr.bf16.mxu1 %v17866_v53  ;;  %v17918_v20 = vld [vmem:[#allocation96_spill] sm:$0xff]  ;;  %v17919_v53 = vld [vmem:[#allocation95_spill] sm:$0xff] }
 0x623   :  { %8294 = vmatpush1.bf16.msra.mxu0 %v17867_v11  ;;  %8335 = vmatpush1.bf16.msra.mxu1 %v17868_v19  ;;  %v17920_v11 = vld [vmem:[#allocation97_spill] sm:$0xff]  ;;  %v17921_v19 = vld [vmem:[#allocation98_spill] sm:$0xff] }
 0x624   :  { %8295 = vmatprep.subr.bf16.mxu0 %v17869_v7  ;;  %8336 = vmatprep.subr.bf16.mxu1 %v17870_v59  ;;  %v17922_v7 = vld [vmem:[#allocation99_spill] sm:$0xff] }
 0x627   :  { %8296 = vmatpush1.bf16.msra.mxu0 %v17871_v9  ;;  %8337 = vmatpush1.bf16.msra.mxu1 %v17872_v47  ;;  %v17923_v47 = vld [vmem:[#allocation5_spill] sm:$0xff] }
 0x628   :  { %8297 = vmatprep.subr.bf16.mxu0 %v17873_v43  ;;  %8338 = vmatprep.subr.bf16.mxu1 %v17874_v62 }
 0x62b   :  { %8298 = vmatpush1.bf16.msra.mxu0 %v17875_v34  ;;  %8339 = vmatpush1.bf16.msra.mxu1 %v17876_v26 }
 0x62c   :  { %8299 = vmatprep.subr.bf16.mxu0 %v17877_v25  ;;  %8340 = vmatprep.subr.bf16.mxu1 %v17878_v13 }
 0x62f   :  { %8300 = vmatpush1.bf16.msra.mxu0 %v17879_v10  ;;  %8341 = vmatpush1.bf16.msra.mxu1 %v17880_v41 }
 0x630   :  { %8301 = vmatprep.subr.bf16.mxu0 %v17881_v36  ;;  %8342 = vmatprep.subr.bf16.mxu1 %v17882_v51 }
 0x633   :  { %8302 = vmatpush1.bf16.msra.mxu0 %v17883_v29  ;;  %8343 = vmatpush1.bf16.msra.mxu1 %v17884_v52 }
 0x634   :  { %8303 = vmatprep.subr.bf16.mxu0 %v17885_v1  ;;  %8344 = vmatprep.subr.bf16.mxu1 %v17886_v24 }
 0x637   :  { %8304 = vmatpush1.bf16.msra.mxu0 %v17887_v28  ;;  %8345 = vmatpush1.bf16.msra.mxu1 %v17888_v2 }
 0x638   :  { %8305 = vmatprep.subr.bf16.mxu0 %v17889_v3  ;;  %8346 = vmatprep.subr.bf16.mxu1 %v17890_v32 }
 0x63b   :  { %8306 = vmatpush1.bf16.msra.mxu0 %v17891_v60  ;;  %8347 = vmatpush1.bf16.msra.mxu1 %v17892_v58 }
 0x63c   :  { %8307 = vmatprep.subr.bf16.mxu0 %v17893_v35  ;;  %8348 = vmatprep.subr.bf16.mxu1 %v17894_v23 }
 0x63f   :  { %8308 = vmatpush1.bf16.msra.mxu0 %v17895_v61  ;;  %8349 = vmatpush1.bf16.msra.mxu1 %v17896_v8  ;;  %v17924_v8 = vld [vmem:[#allocation100_spill] sm:$0xff] }
 0x640   :  { %8309 = vmatprep.subr.bf16.mxu0 %v17897_v50  ;;  %8350 = vmatprep.subr.bf16.mxu1 %v17898_v39  ;;  %v7494_v39 = vpop.permute.xlu1 %7493 }
 0x641   :  { %vm7496_vm11 = vcmp.gt.f32.partialorder %v7494_v39, 0.0 }
 0x643   :  { %8310 = vmatpush1.bf16.msra.mxu0 %v17899_v55  ;;  %8351 = vmatpush1.bf16.msra.mxu1 %v17900_v57 }
 0x644   :  { %8311 = vmatprep.subr.bf16.mxu0 %v17901_v30  ;;  %8352 = vmatprep.subr.bf16.mxu1 %v17902_v18 }
 0x647   :  { %8312 = vmatpush1.bf16.msra.mxu0 %v17903_v15  ;;  %8353 = vmatpush1.bf16.msra.mxu1 %v17904_v21 }
 0x648   :  { %8313 = vmatprep.subr.bf16.mxu0 %v17905_v17  ;;  %8354 = vmatprep.subr.bf16.mxu1 %v17906_v22  ;;  %v17925_v22 = vld [vmem:[#allocation6_spill] sm:$0xff] }
 0x64b   :  { %8314 = vmatpush1.bf16.msra.mxu0 %v17907_v12  ;;  %8355 = vmatpush1.bf16.msra.mxu1 %v17908_v0 }
 0x64c   :  { %8315 = vmatprep.subr.bf16.mxu0 %v17909_v6  ;;  %8356 = vmatprep.subr.bf16.mxu1 %v17910_v37 }
 0x64f   :  { %8316 = vmatpush1.bf16.msra.mxu0 %v17911_v40  ;;  %8357 = vmatpush1.bf16.msra.mxu1 %v17912_v56 }
 0x650   :  { %8317 = vmatprep.subr.bf16.mxu0 %v17913_v44  ;;  %8358 = vmatprep.subr.bf16.mxu1 %v17914_v14 }
 0x653   :  { %8318 = vmatpush1.bf16.msra.mxu0 %v17915_v33  ;;  %8359 = vmatpush1.bf16.msra.mxu1 %v17916_v48 }
 0x654   :  { %8319 = vmatprep.subr.bf16.mxu0 %v17917_v49  ;;  %8360 = vmatprep.subr.bf16.mxu1 %v17918_v20 }
 0x657   :  { %8320 = vmatpush1.bf16.msra.mxu0 %v17919_v53  ;;  %8361 = vmatpush1.bf16.msra.mxu1 %v17920_v11 }
 0x658   :  { %8371 = vmatprep.subr.bf16.mxu0 %v17921_v19  ;;  %8412 = vmatprep.subr.bf16.mxu1 %v17922_v7 }
 0x6ad   :  { %v7293_v59 = vpop.f32.mrb[32].mxu0  ;;  %v7334_v9 = vpop.f32.mrb[32].mxu1 }
 0x6ae   :  { %v12311_v43 = vadd.f32 %v7293_v59, %v17923_v47  ;;  %v7295_v62 = vpop.f32.mrb[33].mxu0  ;;  %v7336_v34 = vpop.f32.mrb[33].mxu1  ;;  %v12313_v1 = vadd.f32 %v7334_v9, %v13878_v63 }
 0x6af   :  { %v12312_v26 = vadd.f32 %v7295_v62, %v13867_v38  ;;  %v7297_v25 = vpop.f32.mrb[34].mxu0  ;;  %v7338_v13 = vpop.f32.mrb[34].mxu1  ;;  %v12314_v29 = vadd.f32 %v7336_v34, %v13874_v31 }
 0x6b0   :  { %v11763_v10 = vmul.f32 -1.442695, %v12311_v43  ;;  %v7298_v41 = vpop.f32.mrb[35].mxu0  ;;  %v7339_v36 = vpop.f32.mrb[35].mxu1 }
 0x6b1   :  { %v11764_v51 = vmul.f32 -1.442695, %v12312_v26  ;;  %v11765_v52 = vmul.f32 -1.442695, %v12314_v29 }
 0x6b2   :  { %12653 = vpow2.f32 %v11763_v10  ;;  %v7502_v10 = vpop.permute.xlu0 %7501 }
 0x6b3   :  { %12655 = vpow2.f32 %v11764_v51  ;;  %vm7504_vm12 = vcmp.gt.f32.partialorder %v7502_v10, 0.0 }
 0x6b4   :  { %12657 = vpow2.f32 %v11765_v52 }
 0x6b5   :  { %12659 = vtanh.f32 %v12313_v1 }
 0x6bc   :  { %v12654_v24 = vpop.eup %12653 }
 0x6bd   :  { %v12656_v28 = vpop.eup %12655  ;;  %v7443_v2 = vadd.f32 1.0, %v12654_v24  ;;  %v7531_v24 = vld [vmem:[%s17165_s7 + $0x50] sm:$0xff] }
 0x6be   :  { %v7449_v3 = vadd.f32 1.0, %v12656_v28  ;;  %v12658_v32 = vpop.eup %12657 }
 0x6bf   :  { %12661 = vrcp.f32 %v7443_v2  ;;  %v12660_v60 = vpop.eup %12659  ;;  %v7456_v61 = vadd.f32 1.0, %v12658_v32  ;;  %v7535_v2 = vld [vmem:[%s17165_s7 + $0x70] sm:$0xff] }
 0x6c0   :  { %12663 = vrcp.f32 %v7449_v3 }
 0x6c1   :  { %12665 = vrcp.f32 %v7456_v61  ;;  %v7544_v61 = vld [vmem:[%s17165_s7 + $0xb8] sm:$0xff] }
 0x6c9   :  { %v12662_v58 = vpop.eup %12661 }
 0x6ca   :  { %v12664_v35 = vpop.eup %12663  ;;  %v7460_v23 = vmul.f32 %v12662_v58, %v12660_v60  ;;  %v15924_v60 = vcombine.high %v7531_v24, %v7535_v2 }
 0x6cb   :  { %v7459_v50 = vmul.f32 %v12664_v35, %v17924_v8  ;;  %v12666_v30 = vpop.eup %12665  ;;  %v7543_v35 = vld [vmem:[%s17165_s7 + $0xb0] sm:$0xff] }
 0x6cd   :  { %v7461_v55 = vadd.f32 %v7460_v23, %v7459_v50  ;;  %v7540_v23 = vld [vmem:[%s17165_s7 + $0x98] sm:$0xff] }
 0x6cf   :  { %12667 = vtanh.f32 %v7461_v55  ;;  %v15886_v57 = vsel %vm7496_vm11, %v7461_v55, %v17924_v8  ;;  %v15941_v8 = vcombine.low %v7531_v24, %v7535_v2  ;;  %v15947_v55 = vcombine.high %v7540_v23, %v7544_v61 }
 0x6d9   :  { %v12668_v18 = vpop.eup %12667 }
 0x6da   :  { %v7463_v15 = vmul.f32 %v12668_v18, %v12666_v30  ;;  %v7547_v30 = vld [vmem:[%s17165_s7 + $0xd0] sm:$0xff]  ;;  %v7552_v18 = vld [vmem:[%s17165_s7 + $0xf8] sm:$0xff] }
 0x6dc   :  { %v15898_v1 = vsel %vm7496_vm11, %v7463_v15, %v15736_v45  ;;  %v7536_v45 = vld [vmem:[%s17165_s7 + $0x78] sm:$0xff] }
 0x6dd   :  { %v15919_v32 = vpack.c.bf16 %v15898_v1, %v15898_v1 }
 0x6ed   :  { %v7375_v21 = vpop.f32.mrb[28].mxu0  ;;  %v7416_v17 = vpop.f32.mrb[28].mxu1 }
 0x6ee   :  { %v12307_v12 = vadd.f32 %v7375_v21, %v17925_v22  ;;  %v7377_v0 = vpop.f32.mrb[29].mxu0  ;;  %v7418_v6 = vpop.f32.mrb[29].mxu1  ;;  %v12309_v53 = vadd.f32 %v7416_v17, %v13921_v27  ;;  %v15967_v21 = vcombine.low %v7540_v23, %v7544_v61  ;;  %v7592_v23 = vld [vmem:[%s17165_s7 + $0x238] sm:$0xff] }
 0x6ef   :  { %v12308_v37 = vadd.f32 %v7377_v0, %v13903_v46  ;;  %v7379_v40 = vpop.f32.mrb[30].mxu0  ;;  %v7420_v56 = vpop.f32.mrb[30].mxu1  ;;  %v12310_v49 = vadd.f32 %v7418_v6, %v13912_v16  ;;  %v7555_v0 = vld [vmem:[%s17165_s7 + $0x110] sm:$0xff] }
 0x6f0   :  { %v11766_v44 = vmul.f32 -1.442695, %v12307_v12  ;;  %v7380_v14 = vpop.f32.mrb[31].mxu0  ;;  %v7421_v33 = vpop.f32.mrb[31].mxu1  ;;  %v7559_v6 = vld [vmem:[%s17165_s7 + $0x130] sm:$0xff]  ;;  %v7560_v40 = vld [vmem:[%s17165_s7 + $0x138] sm:$0xff] }
 0x6f1   :  { %v11767_v48 = vmul.f32 -1.442695, %v12308_v37  ;;  %v11768_v20 = vmul.f32 -1.442695, %v12310_v49  ;;  %v7556_v37 = vld [vmem:[%s17165_s7 + $0x118] sm:$0xff]  ;;  %v15995_v14 = vcombine.high %v7555_v0, %v7559_v6  ;;  %v7567_v49 = vld [vmem:[%s17165_s7 + $0x170] sm:$0xff] }
 0x6f2   :  { %12669 = vpow2.f32 %v11766_v44  ;;  %v15997_v33 = vcombine.high %v7556_v37, %v7560_v40 }
 0x6f3   :  { %12671 = vpow2.f32 %v11767_v48  ;;  %v7563_v48 = vld [vmem:[%s17165_s7 + $0x150] sm:$0xff] }
 0x6f4   :  { %12673 = vpow2.f32 %v11768_v20  ;;  %v7564_v20 = vld [vmem:[%s17165_s7 + $0x158] sm:$0xff] }
 0x6f5   :  { %12675 = vtanh.f32 %v12309_v53  ;;  %v7568_v53 = vld [vmem:[%s17165_s7 + $0x178] sm:$0xff] }
 0x6fc   :  { %v12670_v11 = vpop.eup %12669 }
 0x6fd   :  { %v12672_v19 = vpop.eup %12671  ;;  %v7468_v7 = vadd.f32 1.0, %v12670_v11  ;;  %v16013_v11 = vcombine.low %v7555_v0, %v7559_v6  ;;  %v7599_v0 = vld [vmem:[%s17165_s7 + $0x270] sm:$0xff]  ;;  %v7596_v6 = vld [vmem:[%s17165_s7 + $0x258] sm:$0xff] }
 0x6fe   :  { %v7474_v59 = vadd.f32 1.0, %v12672_v19  ;;  %v12674_v9 = vpop.eup %12673  ;;  %v16015_v19 = vcombine.low %v7556_v37, %v7560_v40  ;;  %v7600_v37 = vld [vmem:[%s17165_s7 + $0x278] sm:$0xff] }
 0x6ff   :  { %12677 = vrcp.f32 %v7468_v7  ;;  %v12676_v43 = vpop.eup %12675  ;;  %v7481_v25 = vadd.f32 1.0, %v12674_v9  ;;  %v16019_v7 = vcombine.high %v7563_v48, %v7567_v49  ;;  %v7571_v9 = vld [vmem:[%s17165_s7 + $0x190] sm:$0xff] }
 0x700   :  { %12679 = vrcp.f32 %v7474_v59  ;;  %v16021_v59 = vcombine.high %v7564_v20, %v7568_v53 }
 0x701   :  { %12681 = vrcp.f32 %v7481_v25  ;;  %v16039_v25 = vcombine.low %v7564_v20, %v7568_v53  ;;  %v16117_v20 = vcombine.high %v7596_v6, %v7600_v37  ;;  %v7603_v53 = vld [vmem:[%s17165_s7 + $0x290] sm:$0xff] }
 0x703   :  { %17926 = vst [vmem:[#allocation101_spill] sm:$0xff] %v16117_v20 }
 0x709   :  { %v12678_v62 = vpop.eup %12677 }
 0x70a   :  { %v12680_v34 = vpop.eup %12679  ;;  %v7485_v26 = vmul.f32 %v12678_v62, %v12676_v43  ;;  %v7575_v43 = vld [vmem:[%s17165_s7 + $0x1b0] sm:$0xff]  ;;  %v7572_v62 = vld [vmem:[%s17165_s7 + $0x198] sm:$0xff] }
 0x70b   :  { %v7484_v13 = vmul.f32 %v12680_v34, %v15732_v4  ;;  %v12682_v51 = vpop.eup %12681  ;;  %v7576_v34 = vld [vmem:[%s17165_s7 + $0x1b8] sm:$0xff]  ;;  %v16061_v24 = vcombine.low %v7571_v9, %v7575_v43 }
 0x70c   :  { %v16045_v10 = vcombine.high %v7572_v62, %v7576_v34  ;;  %v16063_v2 = vcombine.low %v7572_v62, %v7576_v34  ;;  %v7608_v62 = vld [vmem:[%s17165_s7 + $0x2b8] sm:$0xff] }
 0x70d   :  { %v7486_v41 = vadd.f32 %v7485_v26, %v7484_v13  ;;  %v16037_v26 = vcombine.low %v7563_v48, %v7567_v49  ;;  %v16043_v13 = vcombine.high %v7571_v9, %v7575_v43  ;;  %v7607_v9 = vld [vmem:[%s17165_s7 + $0x2b0] sm:$0xff]  ;;  %v7604_v43 = vld [vmem:[%s17165_s7 + $0x298] sm:$0xff] }
 0x70f   :  { %12683 = vtanh.f32 %v7486_v41  ;;  %v15894_v36 = vsel %vm7504_vm12, %v7486_v41, %v15732_v4  ;;  %v7532_v4 = vld [vmem:[%s17165_s7 + $0x58] sm:$0xff]  ;;  %v7579_v41 = vld [vmem:[%s17165_s7 + $0x1d0] sm:$0xff] }
 0x710   :  { %v15926_v58 = vcombine.high %v7532_v4, %v7536_v45  ;;  %v15943_v50 = vcombine.low %v7532_v4, %v7536_v45 }
 0x719   :  { %v12684_v29 = vpop.eup %12683 }
 0x71a   :  { %v7488_v52 = vmul.f32 %v12684_v29, %v12682_v51  ;;  %v7583_v51 = vld [vmem:[%s17165_s7 + $0x1f0] sm:$0xff]  ;;  %v7580_v29 = vld [vmem:[%s17165_s7 + $0x1d8] sm:$0xff] }
 0x71b   :  { %v16067_v4 = vcombine.high %v7579_v41, %v7583_v51  ;;  %v16085_v61 = vcombine.low %v7579_v41, %v7583_v51  ;;  %v16135_v41 = vcombine.low %v7596_v6, %v7600_v37  ;;  %v16139_v51 = vcombine.high %v7603_v53, %v7607_v9  ;;  %v7619_v37 = vld [vmem:[%s17165_s7 + $0x310] sm:$0xff] }
 0x71c   :  { %v15904_v28 = vsel %vm7504_vm12, %v7488_v52, %v15739_v42  ;;  %v7539_v42 = vld [vmem:[%s17165_s7 + $0x90] sm:$0xff]  ;;  %v7584_v52 = vld [vmem:[%s17165_s7 + $0x1f8] sm:$0xff] }
 0x71d   :  { %v7520_v3 = vpack.c.bf16 %v15904_v28, %v15904_v28  ;;  %v15945_v39 = vcombine.high %v7539_v42, %v7543_v35  ;;  %v15965_v15 = vcombine.low %v7539_v42, %v7543_v35  ;;  %v16069_v45 = vcombine.high %v7580_v29, %v7584_v52  ;;  %v7591_v42 = vld [vmem:[%s17165_s7 + $0x230] sm:$0xff]  ;;  %v7588_v35 = vld [vmem:[%s17165_s7 + $0x218] sm:$0xff]  ;;  %17928 = vst [vmem:[#allocation8_spill] sm:$0xff] %v16135_v41 }
 0x71e   :  { %v16111_v48 = vcombine.low %v7588_v35, %v7592_v23  ;;  %17929 = vst [vmem:[#allocation9_spill] sm:$0xff] %v16139_v51 }
 0x71f   :  { %8321 = vmatprep.mubr.bf16.mxu0 %v7520_v3  ;;  %8362 = vmatprep.mubr.bf16.mxu1 %v7520_v3 }
 0x720   :  { %8322 = vmatmul.mubr.bf16.vlgmr.msra.gmra.mrb[40].mxu0 %v15919_v32  ;;  %8363 = vmatmul.mubr.bf16.vlgmr.msra.gmra.mrb[40].mxu1 %v15919_v32 }
 0x721   :  { %8372 = vmatpush1.bf16.msra.mxu0 %v15709_v54  ;;  %8413 = vmatpush1.bf16.msra.mxu1 %v15711_v5  ;;  %v7551_v54 = vld [vmem:[%s17165_s7 + $0xf0] sm:$0xff]  ;;  %v7548_v5 = vld [vmem:[%s17165_s7 + $0xd8] sm:$0xff] }
 0x722   :  { %8403 = vmatprep.mubr.bf16.mxu0 %v7520_v3  ;;  %8444 = vmatprep.mubr.bf16.mxu1 %v7520_v3  ;;  %v15971_v17 = vcombine.high %v7547_v30, %v7551_v54  ;;  %v15973_v12 = vcombine.high %v7548_v5, %v7552_v18  ;;  %v15989_v56 = vcombine.low %v7547_v30, %v7551_v54  ;;  %v7587_v3 = vld [vmem:[%s17165_s7 + $0x210] sm:$0xff] }
 0x723   :  { %8373 = vmatprep.subr.bf16.mxu0 %v15924_v60  ;;  %8414 = vmatprep.subr.bf16.mxu1 %v15926_v58  ;;  %v15991_v44 = vcombine.low %v7548_v5, %v7552_v18  ;;  %v16087_v30 = vcombine.low %v7580_v29, %v7584_v52  ;;  %v16091_v54 = vcombine.high %v7587_v3, %v7591_v42  ;;  %v7595_v18 = vld [vmem:[%s17165_s7 + $0x250] sm:$0xff] }
 0x724   :  { %v16093_v5 = vcombine.high %v7588_v35, %v7592_v23  ;;  %v16109_v40 = vcombine.low %v7587_v3, %v7591_v42  ;;  %v16115_v49 = vcombine.high %v7595_v18, %v7599_v0  ;;  %v16133_v34 = vcombine.low %v7595_v18, %v7599_v0  ;;  %v7611_v52 = vld [vmem:[%s17165_s7 + $0x2d0] sm:$0xff]  ;;  %v7612_v42 = vld [vmem:[%s17165_s7 + $0x2d8] sm:$0xff] }
 0x725   :  { %8374 = vmatpush1.bf16.msra.mxu0 %v15941_v8  ;;  %8415 = vmatpush1.bf16.msra.mxu1 %v15943_v50  ;;  %v16141_v29 = vcombine.high %v7604_v43, %v7608_v62  ;;  %v7615_v3 = vld [vmem:[%s17165_s7 + $0x2f0] sm:$0xff]  ;;  %v7616_v35 = vld [vmem:[%s17165_s7 + $0x2f8] sm:$0xff]  ;;  %v16157_v23 = vcombine.low %v7603_v53, %v7607_v9  ;;  %v16159_v18 = vcombine.low %v7604_v43, %v7608_v62 }
 0x726   :  { %8375 = vmatprep.subr.bf16.mxu0 %v15945_v39  ;;  %8416 = vmatprep.subr.bf16.mxu1 %v15947_v55  ;;  %17927 = vst [vmem:[#allocation7_spill] sm:$0xff] %v16133_v34  ;;  %v16163_v0 = vcombine.high %v7611_v52, %v7615_v3  ;;  %v16165_v6 = vcombine.high %v7612_v42, %v7616_v35  ;;  %v7620_v53 = vld [vmem:[%s17165_s7 + $0x318] sm:$0xff] }
 0x727   :  { %17930 = vst [vmem:[#allocation10_spill] sm:$0xff] %v16141_v29  ;;  %17931 = vst [vmem:[#allocation11_spill] sm:$0xff] %v16157_v23  ;;  %v7624_v9 = vld [vmem:[%s17165_s7 + $0x338] sm:$0xff]  ;;  %v16181_v43 = vcombine.low %v7611_v52, %v7615_v3  ;;  %v16183_v62 = vcombine.low %v7612_v42, %v7616_v35 }
 0x728   :  { %17932 = vst [vmem:[#allocation12_spill] sm:$0xff] %v16159_v18  ;;  %17933 = vst [vmem:[#allocation13_spill] sm:$0xff] %v16163_v0  ;;  %v7628_v52 = vld [vmem:[%s17165_s7 + $0x358] sm:$0xff]  ;;  %v16207_v35 = vcombine.low %v7620_v53, %v7624_v9 }
 0x729   :  { %8376 = vmatpush1.bf16.msra.mxu0 %v15965_v15  ;;  %8417 = vmatpush1.bf16.msra.mxu1 %v15967_v21  ;;  %17934 = vst [vmem:[#allocation14_spill] sm:$0xff] %v16165_v6  ;;  %17935 = vst [vmem:[#allocation15_spill] sm:$0xff] %v16181_v43  ;;  %v7632_v3 = vld [vmem:[%s17165_s7 + $0x378] sm:$0xff] }
 0x72a   :  { %8377 = vmatprep.subr.bf16.mxu0 %v15971_v17  ;;  %8418 = vmatprep.subr.bf16.mxu1 %v15973_v12  ;;  %17936 = vst [vmem:[#allocation16_spill] sm:$0xff] %v16183_v62  ;;  %17940 = vst [vmem:[#allocation20_spill] sm:$0xff] %v16207_v35 }
 0x72d   :  { %8378 = vmatpush1.bf16.msra.mxu0 %v15989_v56  ;;  %8419 = vmatpush1.bf16.msra.mxu1 %v15991_v44 }
 0x72e   :  { %8379 = vmatprep.subr.bf16.mxu0 %v15995_v14  ;;  %8420 = vmatprep.subr.bf16.mxu1 %v15997_v33 }
 0x731   :  { %8380 = vmatpush1.bf16.msra.mxu0 %v16013_v11  ;;  %8421 = vmatpush1.bf16.msra.mxu1 %v16015_v19 }
 0x732   :  { %8381 = vmatprep.subr.bf16.mxu0 %v16019_v7  ;;  %8422 = vmatprep.subr.bf16.mxu1 %v16021_v59 }
 0x735   :  { %8382 = vmatpush1.bf16.msra.mxu0 %v16037_v26  ;;  %8423 = vmatpush1.bf16.msra.mxu1 %v16039_v25 }
 0x736   :  { %8383 = vmatprep.subr.bf16.mxu0 %v16043_v13  ;;  %8424 = vmatprep.subr.bf16.mxu1 %v16045_v10 }
 0x739   :  { %8384 = vmatpush1.bf16.msra.mxu0 %v16061_v24  ;;  %8425 = vmatpush1.bf16.msra.mxu1 %v16063_v2 }
 0x73a   :  { %8385 = vmatprep.subr.bf16.mxu0 %v16067_v4  ;;  %8426 = vmatprep.subr.bf16.mxu1 %v16069_v45 }
 0x73d   :  { %8386 = vmatpush1.bf16.msra.mxu0 %v16085_v61  ;;  %8427 = vmatpush1.bf16.msra.mxu1 %v16087_v30 }
 0x73e   :  { %8387 = vmatprep.subr.bf16.mxu0 %v16091_v54  ;;  %8428 = vmatprep.subr.bf16.mxu1 %v16093_v5 }
 0x741   :  { %8388 = vmatpush1.bf16.msra.mxu0 %v16109_v40  ;;  %8429 = vmatpush1.bf16.msra.mxu1 %v16111_v48 }
 0x742   :  { %8389 = vmatprep.subr.bf16.mxu0 %v16115_v49  ;;  %8430 = vmatprep.subr.bf16.mxu1 %v16117_v20 }
 0x745   :  { %8390 = vmatpush1.bf16.msra.mxu0 %v16133_v34  ;;  %8431 = vmatpush1.bf16.msra.mxu1 %v16135_v41  ;;  %v7623_v41 = vld [vmem:[%s17165_s7 + $0x330] sm:$0xff] }
 0x746   :  { %8391 = vmatprep.subr.bf16.mxu0 %v16139_v51  ;;  %8432 = vmatprep.subr.bf16.mxu1 %v16141_v29  ;;  %v16187_v29 = vcombine.high %v7619_v37, %v7623_v41  ;;  %v16189_v51 = vcombine.high %v7620_v53, %v7624_v9  ;;  %v7627_v34 = vld [vmem:[%s17165_s7 + $0x350] sm:$0xff]  ;;  %v16205_v42 = vcombine.low %v7619_v37, %v7623_v41  ;;  %v7636_v41 = vld [vmem:[%s17165_s7 + $0x398] sm:$0xff] }
 0x747   :  { %v7640_v37 = vld [vmem:[%s17165_s7 + $0x3b8] sm:$0xff]  ;;  %v16231_v9 = vcombine.low %v7628_v52, %v7632_v3 }
 0x748   :  { %17937 = vst [vmem:[#allocation17_spill] sm:$0xff] %v16187_v29  ;;  %17938 = vst [vmem:[#allocation18_spill] sm:$0xff] %v16189_v51 }
 0x749   :  { %8392 = vmatpush1.bf16.msra.mxu0 %v16157_v23  ;;  %8433 = vmatpush1.bf16.msra.mxu1 %v16159_v18  ;;  %v7631_v18 = vld [vmem:[%s17165_s7 + $0x370] sm:$0xff]  ;;  %17939 = vst [vmem:[#allocation19_spill] sm:$0xff] %v16205_v42  ;;  %17944 = vst [vmem:[#allocation24_spill] sm:$0xff] %v16231_v9 }
 0x74a   :  { %8393 = vmatprep.subr.bf16.mxu0 %v16163_v0  ;;  %8434 = vmatprep.subr.bf16.mxu1 %v16165_v6  ;;  %v16211_v6 = vcombine.high %v7627_v34, %v7631_v18  ;;  %v16213_v0 = vcombine.high %v7628_v52, %v7632_v3  ;;  %v7635_v23 = vld [vmem:[%s17165_s7 + $0x390] sm:$0xff]  ;;  %v16229_v53 = vcombine.low %v7627_v34, %v7631_v18  ;;  %v7644_v34 = vld [vmem:[%s17165_s7 + $0x3d8] sm:$0xff] }
 0x74b   :  { %v7648_v18 = vld [vmem:[%s17165_s7 + $0x3f8] sm:$0xff]  ;;  %v16255_v3 = vcombine.low %v7636_v41, %v7640_v37 }
 0x74c   :  { %17941 = vst [vmem:[#allocation21_spill] sm:$0xff] %v16211_v6  ;;  %17942 = vst [vmem:[#allocation22_spill] sm:$0xff] %v16213_v0 }
 0x74d   :  { %8394 = vmatpush1.bf16.msra.mxu0 %v16181_v43  ;;  %8435 = vmatpush1.bf16.msra.mxu1 %v16183_v62  ;;  %v7639_v62 = vld [vmem:[%s17165_s7 + $0x3b0] sm:$0xff]  ;;  %17943 = vst [vmem:[#allocation23_spill] sm:$0xff] %v16229_v53  ;;  %17948 = vst [vmem:[#allocation28_spill] sm:$0xff] %v16255_v3 }
 0x74e   :  { %8395 = vmatprep.subr.bf16.mxu0 %v16187_v29  ;;  %8436 = vmatprep.subr.bf16.mxu1 %v16189_v51  ;;  %v16235_v51 = vcombine.high %v7635_v23, %v7639_v62  ;;  %v16237_v29 = vcombine.high %v7636_v41, %v7640_v37  ;;  %v7643_v43 = vld [vmem:[%s17165_s7 + $0x3d0] sm:$0xff]  ;;  %v16253_v52 = vcombine.low %v7635_v23, %v7639_v62  ;;  %v8551_v23 = vld [vmem:[%s17165_s7] sm:$0xff]  ;;  %v8552_v62 = vld [vmem:[%s17165_s7 + $0x8] sm:$0xff] }
 0x74f   :  { %v8559_v37 = vld [vmem:[%s17165_s7 + $0x40] sm:$0xff] }
 0x750   :  { %17945 = vst [vmem:[#allocation25_spill] sm:$0xff] %v16235_v51  ;;  %17946 = vst [vmem:[#allocation26_spill] sm:$0xff] %v16237_v29 }
 0x751   :  { %8396 = vmatpush1.bf16.msra.mxu0 %v16205_v42  ;;  %8437 = vmatpush1.bf16.msra.mxu1 %v16207_v35  ;;  %v7647_v35 = vld [vmem:[%s17165_s7 + $0x3f0] sm:$0xff]  ;;  %17947 = vst [vmem:[#allocation27_spill] sm:$0xff] %v16253_v52 }
 0x752   :  { %8397 = vmatprep.subr.bf16.mxu0 %v16211_v6  ;;  %8438 = vmatprep.subr.bf16.mxu1 %v16213_v0  ;;  %v16259_v0 = vcombine.high %v7643_v43, %v7647_v35  ;;  %v16261_v6 = vcombine.high %v7644_v34, %v7648_v18  ;;  %v16265_v42 = vcombine.low %v7643_v43, %v7647_v35  ;;  %v8555_v43 = vld [vmem:[%s17165_s7 + $0x20] sm:$0xff] }
 0x753   :  { %v16284_v35 = vcombine.low %v8551_v23, %v8555_v43  ;;  %v16286_v41 = vcombine.high %v8551_v23, %v8555_v43  ;;  %v8560_v23 = vld [vmem:[%s17165_s7 + $0x48] sm:$0xff] }
 0x754   :  { %17949 = vst [vmem:[#allocation29_spill] sm:$0xff] %v16259_v0  ;;  %17950 = vst [vmem:[#allocation30_spill] sm:$0xff] %v16261_v6  ;;  %v8564_v43 = vld [vmem:[%s17165_s7 + $0x68] sm:$0xff] }
 0x755   :  { %8398 = vmatpush1.bf16.msra.mxu0 %v16229_v53  ;;  %8439 = vmatpush1.bf16.msra.mxu1 %v16231_v9  ;;  %17951 = vst [vmem:[#allocation31_spill] sm:$0xff] %v16265_v42  ;;  %v16267_v53 = vcombine.low %v7644_v34, %v7648_v18  ;;  %17953 = vst [vmem:[#allocation33_spill] sm:$0xff] %v16284_v35  ;;  %v8563_v34 = vld [vmem:[%s17165_s7 + $0x60] sm:$0xff] }
 0x756   :  { %8399 = vmatprep.subr.bf16.mxu0 %v16235_v51  ;;  %8440 = vmatprep.subr.bf16.mxu1 %v16237_v29  ;;  %17954 = vst [vmem:[#allocation35_spill] sm:$0xff] %v16286_v41 }
 0x757   :  { %17952 = vst [vmem:[#allocation32_spill] sm:$0xff] %v16267_v53 }
 0x759   :  { %8400 = vmatpush1.bf16.msra.mxu0 %v16253_v52  ;;  %8441 = vmatpush1.bf16.msra.mxu1 %v16255_v3  ;;  %v8572_v3 = vld [vmem:[%s17165_s7 + $0xa8] sm:$0xff]  ;;  %v16326_v52 = vcombine.low %v8559_v37, %v8563_v34 }
 0x75a   :  { %8401 = vmatprep.subr.bf16.mxu0 %v16259_v0  ;;  %8442 = vmatprep.subr.bf16.mxu1 %v16261_v6  ;;  %v8567_v6 = vld [vmem:[%s17165_s7 + $0x80] sm:$0xff]  ;;  %v16313_v0 = vcombine.high %v8560_v23, %v8564_v43 }
 0x75b   :  { %17959 = vst [vmem:[#allocation38_spill] sm:$0xff] %v16326_v52 }
 0x75c   :  { %17958 = vst [vmem:[#allocation36_spill] sm:$0xff] %v16313_v0 }
 0x75d   :  { %8402 = vmatpush1.bf16.msra.mxu0 %v16265_v42  ;;  %8443 = vmatpush1.bf16.msra.mxu1 %v16267_v53  ;;  %v16301_v42 = vcombine.high %v8559_v37, %v8563_v34  ;;  %v8579_v37 = vld [vmem:[%s17165_s7 + $0xe0] sm:$0xff]  ;;  %v8576_v34 = vld [vmem:[%s17165_s7 + $0xc8] sm:$0xff] }
 0x75e   :  { %9319 = vmatprep.subr.bf16.mxu0 %v16286_v41  ;;  %v16330_v41 = vcombine.low %v8560_v23, %v8564_v43  ;;  %v8580_v23 = vld [vmem:[%s17165_s7 + $0xe8] sm:$0xff] }
 0x75f   :  { %17957 = vst [vmem:[#allocation37_spill] sm:$0xff] %v16301_v42 }
 0x760   :  { %8404 = vmatmul.mubr.bf16.vlgmr.msra.gmra.mrb[20].mxu0 %v15919_v32  ;;  %8445 = vmatmul.mubr.bf16.vlgmr.msra.gmra.mrb[20].mxu1 %v15919_v32  ;;  %v8556_v32 = vld [vmem:[%s17165_s7 + $0x28] sm:$0xff]  ;;  %17960 = vst [vmem:[#allocation40_spill] sm:$0xff] %v16330_v41 }
 0x761   :  { %v16297_v18 = vcombine.low %v8552_v62, %v8556_v32  ;;  %v16299_v53 = vcombine.high %v8552_v62, %v8556_v32  ;;  %v8571_v62 = vld [vmem:[%s17165_s7 + $0xa0] sm:$0xff]  ;;  %v8568_v32 = vld [vmem:[%s17165_s7 + $0x88] sm:$0xff]  ;;  %9320 = vmatpush1.bf16.msra.mxu0 %v16284_v35 }
 0x762   :  { %9321 = vmatprep.subr.bf16.mxu0 %v16301_v42  ;;  %v16332_v29 = vcombine.high %v8567_v6, %v8571_v62  ;;  %v16335_v51 = vcombine.high %v8568_v32, %v8572_v3  ;;  %v16350_v43 = vcombine.low %v8567_v6, %v8571_v62  ;;  %v16366_v6 = vcombine.low %v8576_v34, %v8580_v23  ;;  %v8584_v62 = vld [vmem:[%s17165_s7 + $0x108] sm:$0xff] }
 0x763   :  { %17955 = vst [vmem:[#allocation39_spill] sm:$0xff] %v16297_v18  ;;  %17956 = vst [vmem:[#allocation34_spill] sm:$0xff] %v16299_v53  ;;  %9360 = vmatprep.subr.bf16.mxu1 %v16299_v53  ;;  %v8575_v53 = vld [vmem:[%s17165_s7 + $0xc0] sm:$0xff] }
 0x764   :  { %9361 = vmatpush1.bf16.msra.mxu1 %v16297_v18  ;;  %17961 = vst [vmem:[#allocation41_spill] sm:$0xff] %v16332_v29  ;;  %17962 = vst [vmem:[#allocation42_spill] sm:$0xff] %v16335_v51  ;;  %v16356_v42 = vcombine.high %v8575_v53, %v8579_v37  ;;  %v16359_v18 = vcombine.high %v8576_v34, %v8580_v23  ;;  %v16362_v35 = vcombine.low %v8575_v53, %v8579_v37  ;;  %v8587_v53 = vld [vmem:[%s17165_s7 + $0x120] sm:$0xff]  ;;  %v8588_v37 = vld [vmem:[%s17165_s7 + $0x128] sm:$0xff] }
 0x765   :  { %9362 = vmatprep.subr.bf16.mxu1 %v16313_v0  ;;  %9322 = vmatpush1.bf16.msra.mxu0 %v16326_v52  ;;  %17963 = vst [vmem:[#allocation43_spill] sm:$0xff] %v16350_v43  ;;  %v16354_v0 = vcombine.low %v8568_v32, %v8572_v3  ;;  %17968 = vst [vmem:[#allocation48_spill] sm:$0xff] %v16366_v6  ;;  %v8583_v3 = vld [vmem:[%s17165_s7 + $0x100] sm:$0xff]  ;;  %v16387_v23 = vcombine.low %v8584_v62, %v8588_v37 }
 0x766   :  { %9323 = vmatprep.subr.bf16.mxu0 %v16332_v29  ;;  %17965 = vst [vmem:[#allocation45_spill] sm:$0xff] %v16356_v42  ;;  %17966 = vst [vmem:[#allocation46_spill] sm:$0xff] %v16359_v18  ;;  %v16380_v32 = vcombine.high %v8583_v3, %v8587_v53  ;;  %v16385_v34 = vcombine.low %v8583_v3, %v8587_v53  ;;  %v8592_v3 = vld [vmem:[%s17165_s7 + $0x148] sm:$0xff] }
 0x767   :  { %17964 = vst [vmem:[#allocation44_spill] sm:$0xff] %v16354_v0  ;;  %17967 = vst [vmem:[#allocation47_spill] sm:$0xff] %v16362_v35 }
 0x768   :  { %9363 = vmatpush1.bf16.msra.mxu1 %v16330_v41  ;;  %17969 = vst [vmem:[#allocation49_spill] sm:$0xff] %v16380_v32  ;;  %17970 = vst [vmem:[#allocation50_spill] sm:$0xff] %v16385_v34 }
 0x769   :  { %9364 = vmatprep.subr.bf16.mxu1 %v16335_v51  ;;  %9324 = vmatpush1.bf16.msra.mxu0 %v16350_v43  ;;  %17971 = vst [vmem:[#allocation55_spill] sm:$0xff] %v16387_v23  ;;  %v8664_v43 = vld [vmem:[%s17165_s7 + $0x388] sm:$0xff] }
 0x76a   :  { %9325 = vmatprep.subr.bf16.mxu0 %v16356_v42  ;;  %v8656_v42 = vld [vmem:[%s17165_s7 + $0x348] sm:$0xff] }
 0x76b   :  { %v8668_v51 = vld [vmem:[%s17165_s7 + $0x3a8] sm:$0xff] }
 0x76c   :  { %9365 = vmatpush1.bf16.msra.mxu1 %v16354_v0 }
 0x76d   :  { %9366 = vmatprep.subr.bf16.mxu1 %v16359_v18  ;;  %9326 = vmatpush1.bf16.msra.mxu0 %v16362_v35  ;;  %v8591_v35 = vld [vmem:[%s17165_s7 + $0x140] sm:$0xff] }
 0x76e   :  { %9327 = vmatprep.subr.bf16.mxu0 %v16380_v32  ;;  %v8595_v18 = vld [vmem:[%s17165_s7 + $0x160] sm:$0xff] }
 0x76f   :  { %v16404_v53 = vcombine.high %v8591_v35, %v8595_v18  ;;  %v8603_v32 = vld [vmem:[%s17165_s7 + $0x1a0] sm:$0xff] }
 0x770   :  { %9367 = vmatpush1.bf16.msra.mxu1 %v16366_v6  ;;  %v16389_v6 = vcombine.high %v8584_v62, %v8588_v37  ;;  %v8596_v62 = vld [vmem:[%s17165_s7 + $0x168] sm:$0xff]  ;;  %v16409_v37 = vcombine.low %v8591_v35, %v8595_v18 }
 0x771   :  { %9328 = vmatpush1.bf16.msra.mxu0 %v16385_v34  ;;  %17973 = vst [vmem:[#allocation52_spill] sm:$0xff] %v16404_v53  ;;  %v16411_v34 = vcombine.low %v8592_v3, %v8596_v62  ;;  %v8600_v35 = vld [vmem:[%s17165_s7 + $0x188] sm:$0xff] }
 0x772   :  { %17972 = vst [vmem:[#allocation51_spill] sm:$0xff] %v16389_v6  ;;  %9368 = vmatprep.subr.bf16.mxu1 %v16389_v6  ;;  %17974 = vst [vmem:[#allocation53_spill] sm:$0xff] %v16409_v37  ;;  %v16413_v6 = vcombine.high %v8592_v3, %v8596_v62  ;;  %9329 = vmatprep.subr.bf16.mxu0 %v16404_v53  ;;  %v8604_v3 = vld [vmem:[%s17165_s7 + $0x1a8] sm:$0xff]  ;;  %v8611_v53 = vld [vmem:[%s17165_s7 + $0x1e0] sm:$0xff] }
 0x773   :  { %17975 = vst [vmem:[#allocation59_spill] sm:$0xff] %v16411_v34 }
 0x774   :  { %9369 = vmatpush1.bf16.msra.mxu1 %v16387_v23  ;;  %17976 = vst [vmem:[#allocation54_spill] sm:$0xff] %v16413_v6  ;;  %v8599_v23 = vld [vmem:[%s17165_s7 + $0x180] sm:$0xff] }
 0x775   :  { %9370 = vmatprep.subr.bf16.mxu1 %v16413_v6  ;;  %9330 = vmatpush1.bf16.msra.mxu0 %v16409_v37  ;;  %v16428_v18 = vcombine.high %v8599_v23, %v8603_v32  ;;  %v16433_v62 = vcombine.low %v8599_v23, %v8603_v32  ;;  %v16435_v37 = vcombine.low %v8600_v35, %v8604_v3  ;;  %v8608_v32 = vld [vmem:[%s17165_s7 + $0x1c8] sm:$0xff] }
 0x776   :  { %v16437_v6 = vcombine.high %v8600_v35, %v8604_v3  ;;  %v8612_v35 = vld [vmem:[%s17165_s7 + $0x1e8] sm:$0xff] }
 0x777   :  { %17977 = vst [vmem:[#allocation56_spill] sm:$0xff] %v16428_v18  ;;  %17978 = vst [vmem:[#allocation57_spill] sm:$0xff] %v16433_v62  ;;  %9331 = vmatprep.subr.bf16.mxu0 %v16428_v18  ;;  %v8619_v18 = vld [vmem:[%s17165_s7 + $0x220] sm:$0xff] }
 0x778   :  { %9371 = vmatpush1.bf16.msra.mxu1 %v16411_v34  ;;  %17979 = vst [vmem:[#allocation63_spill] sm:$0xff] %v16435_v37  ;;  %17980 = vst [vmem:[#allocation58_spill] sm:$0xff] %v16437_v6  ;;  %v8607_v34 = vld [vmem:[%s17165_s7 + $0x1c0] sm:$0xff] }
 0x779   :  { %9372 = vmatprep.subr.bf16.mxu1 %v16437_v6  ;;  %9332 = vmatpush1.bf16.msra.mxu0 %v16433_v62  ;;  %v16452_v23 = vcombine.high %v8607_v34, %v8611_v53  ;;  %v16457_v3 = vcombine.low %v8607_v34, %v8611_v53  ;;  %v16459_v62 = vcombine.low %v8608_v32, %v8612_v35  ;;  %v8616_v34 = vld [vmem:[%s17165_s7 + $0x208] sm:$0xff] }
 0x77a   :  { %v16461_v6 = vcombine.high %v8608_v32, %v8612_v35  ;;  %v8620_v32 = vld [vmem:[%s17165_s7 + $0x228] sm:$0xff] }
 0x77b   :  { %17981 = vst [vmem:[#allocation60_spill] sm:$0xff] %v16452_v23  ;;  %17982 = vst [vmem:[#allocation61_spill] sm:$0xff] %v16457_v3  ;;  %9333 = vmatprep.subr.bf16.mxu0 %v16452_v23  ;;  %v8627_v23 = vld [vmem:[%s17165_s7 + $0x260] sm:$0xff] }
 0x77c   :  { %9373 = vmatpush1.bf16.msra.mxu1 %v16435_v37  ;;  %17983 = vst [vmem:[#allocation67_spill] sm:$0xff] %v16459_v62  ;;  %17984 = vst [vmem:[#allocation62_spill] sm:$0xff] %v16461_v6  ;;  %v8615_v37 = vld [vmem:[%s17165_s7 + $0x200] sm:$0xff] }
 0x77d   :  { %9374 = vmatprep.subr.bf16.mxu1 %v16461_v6  ;;  %9334 = vmatpush1.bf16.msra.mxu0 %v16457_v3  ;;  %v16476_v53 = vcombine.high %v8615_v37, %v8619_v18  ;;  %v16481_v35 = vcombine.low %v8615_v37, %v8619_v18  ;;  %v16483_v3 = vcombine.low %v8616_v34, %v8620_v32  ;;  %v8624_v37 = vld [vmem:[%s17165_s7 + $0x248] sm:$0xff] }
 0x77e   :  { %v16485_v6 = vcombine.high %v8616_v34, %v8620_v32  ;;  %v8628_v34 = vld [vmem:[%s17165_s7 + $0x268] sm:$0xff] }
 0x77f   :  { %17985 = vst [vmem:[#allocation64_spill] sm:$0xff] %v16476_v53  ;;  %17986 = vst [vmem:[#allocation65_spill] sm:$0xff] %v16481_v35  ;;  %9335 = vmatprep.subr.bf16.mxu0 %v16476_v53  ;;  %v8635_v53 = vld [vmem:[%s17165_s7 + $0x2a0] sm:$0xff] }
 0x780   :  { %9375 = vmatpush1.bf16.msra.mxu1 %v16459_v62  ;;  %17987 = vst [vmem:[#allocation71_spill] sm:$0xff] %v16483_v3  ;;  %17988 = vst [vmem:[#allocation66_spill] sm:$0xff] %v16485_v6  ;;  %v8623_v62 = vld [vmem:[%s17165_s7 + $0x240] sm:$0xff] }
 0x781   :  { %9376 = vmatprep.subr.bf16.mxu1 %v16485_v6  ;;  %9336 = vmatpush1.bf16.msra.mxu0 %v16481_v35  ;;  %v16500_v18 = vcombine.high %v8623_v62, %v8627_v23  ;;  %v16505_v32 = vcombine.low %v8623_v62, %v8627_v23  ;;  %v16507_v35 = vcombine.low %v8624_v37, %v8628_v34  ;;  %v8632_v62 = vld [vmem:[%s17165_s7 + $0x288] sm:$0xff] }
 0x782   :  { %v16509_v6 = vcombine.high %v8624_v37, %v8628_v34  ;;  %v8636_v37 = vld [vmem:[%s17165_s7 + $0x2a8] sm:$0xff] }
 0x783   :  { %17989 = vst [vmem:[#allocation68_spill] sm:$0xff] %v16500_v18  ;;  %17990 = vst [vmem:[#allocation69_spill] sm:$0xff] %v16505_v32  ;;  %9337 = vmatprep.subr.bf16.mxu0 %v16500_v18  ;;  %v8643_v18 = vld [vmem:[%s17165_s7 + $0x2e0] sm:$0xff] }
 0x784   :  { %9377 = vmatpush1.bf16.msra.mxu1 %v16483_v3  ;;  %17991 = vst [vmem:[#allocation75_spill] sm:$0xff] %v16507_v35  ;;  %17992 = vst [vmem:[#allocation70_spill] sm:$0xff] %v16509_v6  ;;  %v8631_v3 = vld [vmem:[%s17165_s7 + $0x280] sm:$0xff] }
 0x785   :  { %9378 = vmatprep.subr.bf16.mxu1 %v16509_v6  ;;  %9338 = vmatpush1.bf16.msra.mxu0 %v16505_v32  ;;  %v16524_v23 = vcombine.high %v8631_v3, %v8635_v53  ;;  %v16529_v34 = vcombine.low %v8631_v3, %v8635_v53  ;;  %v16531_v32 = vcombine.low %v8632_v62, %v8636_v37  ;;  %v8640_v3 = vld [vmem:[%s17165_s7 + $0x2c8] sm:$0xff] }
 0x786   :  { %v16533_v6 = vcombine.high %v8632_v62, %v8636_v37  ;;  %v8644_v62 = vld [vmem:[%s17165_s7 + $0x2e8] sm:$0xff] }
 0x787   :  { %17993 = vst [vmem:[#allocation72_spill] sm:$0xff] %v16524_v23  ;;  %17994 = vst [vmem:[#allocation73_spill] sm:$0xff] %v16529_v34  ;;  %9339 = vmatprep.subr.bf16.mxu0 %v16524_v23  ;;  %v8651_v23 = vld [vmem:[%s17165_s7 + $0x320] sm:$0xff] }
 0x788   :  { %9379 = vmatpush1.bf16.msra.mxu1 %v16507_v35  ;;  %17995 = vst [vmem:[#allocation79_spill] sm:$0xff] %v16531_v32  ;;  %17996 = vst [vmem:[#allocation74_spill] sm:$0xff] %v16533_v6  ;;  %v8639_v35 = vld [vmem:[%s17165_s7 + $0x2c0] sm:$0xff] }
 0x789   :  { %9380 = vmatprep.subr.bf16.mxu1 %v16533_v6  ;;  %9340 = vmatpush1.bf16.msra.mxu0 %v16529_v34  ;;  %v16548_v53 = vcombine.high %v8639_v35, %v8643_v18  ;;  %v16553_v37 = vcombine.low %v8639_v35, %v8643_v18  ;;  %v16555_v34 = vcombine.low %v8640_v3, %v8644_v62  ;;  %v8648_v35 = vld [vmem:[%s17165_s7 + $0x308] sm:$0xff] }
 0x78a   :  { %v16557_v6 = vcombine.high %v8640_v3, %v8644_v62  ;;  %v8652_v3 = vld [vmem:[%s17165_s7 + $0x328] sm:$0xff] }
 0x78b   :  { %17997 = vst [vmem:[#allocation76_spill] sm:$0xff] %v16548_v53  ;;  %17998 = vst [vmem:[#allocation77_spill] sm:$0xff] %v16553_v37  ;;  %9341 = vmatprep.subr.bf16.mxu0 %v16548_v53  ;;  %v8655_v53 = vld [vmem:[%s17165_s7 + $0x340] sm:$0xff] }
 0x78c   :  { %9381 = vmatpush1.bf16.msra.mxu1 %v16531_v32  ;;  %17999 = vst [vmem:[#allocation83_spill] sm:$0xff] %v16555_v34  ;;  %18000 = vst [vmem:[#allocation78_spill] sm:$0xff] %v16557_v6  ;;  %v8647_v32 = vld [vmem:[%s17165_s7 + $0x300] sm:$0xff] }
 0x78d   :  { %9382 = vmatprep.subr.bf16.mxu1 %v16557_v6  ;;  %9342 = vmatpush1.bf16.msra.mxu0 %v16553_v37  ;;  %v16572_v18 = vcombine.high %v8647_v32, %v8651_v23  ;;  %v16577_v62 = vcombine.low %v8647_v32, %v8651_v23  ;;  %v16579_v37 = vcombine.low %v8648_v35, %v8652_v3  ;;  %v8660_v23 = vld [vmem:[%s17165_s7 + $0x368] sm:$0xff] }
 0x78e   :  { %v16581_v6 = vcombine.high %v8648_v35, %v8652_v3  ;;  %v8663_v35 = vld [vmem:[%s17165_s7 + $0x380] sm:$0xff]  ;;  %v16618_v29 = vcombine.low %v8656_v42, %v8660_v23 }
 0x78f   :  { %18001 = vst [vmem:[#allocation80_spill] sm:$0xff] %v16572_v18  ;;  %18002 = vst [vmem:[#allocation81_spill] sm:$0xff] %v16577_v62  ;;  %9343 = vmatprep.subr.bf16.mxu0 %v16572_v18  ;;  %v8667_v3 = vld [vmem:[%s17165_s7 + $0x3a0] sm:$0xff]  ;;  %v16608_v18 = vcombine.high %v8656_v42, %v8660_v23  ;;  %v8676_v42 = vld [vmem:[%s17165_s7 + $0x3e8] sm:$0xff] }
 0x790   :  { %9383 = vmatpush1.bf16.msra.mxu1 %v16555_v34  ;;  %18003 = vst [vmem:[#allocation87_spill] sm:$0xff] %v16579_v37  ;;  %18004 = vst [vmem:[#allocation82_spill] sm:$0xff] %v16581_v6  ;;  %v8659_v34 = vld [vmem:[%s17165_s7 + $0x360] sm:$0xff]  ;;  %v16638_v23 = vcombine.low %v8663_v35, %v8667_v3 }
 0x791   :  { %v16593_v32 = vcombine.high %v8655_v53, %v8659_v34  ;;  %9384 = vmatprep.subr.bf16.mxu1 %v16581_v6  ;;  %9344 = vmatpush1.bf16.msra.mxu0 %v16577_v62  ;;  %v16606_v0 = vcombine.low %v8655_v53, %v8659_v34  ;;  %18007 = vst [vmem:[#allocation88_spill] sm:$0xff] %v16608_v18  ;;  %18008 = vst [vmem:[#allocation86_spill] sm:$0xff] %v16618_v29  ;;  %v8671_v53 = vld [vmem:[%s17165_s7 + $0x3c0] sm:$0xff] }
 0x792   :  { %v16620_v6 = vcombine.high %v8663_v35, %v8667_v3  ;;  %v16623_v34 = vcombine.high %v8664_v43, %v8668_v51  ;;  %v8675_v62 = vld [vmem:[%s17165_s7 + $0x3e0] sm:$0xff]  ;;  %18011 = vst [vmem:[#allocation92_spill] sm:$0xff] %v16638_v23  ;;  %v8558_v3 = vld [vmem:[%s17165_s7 + $0x38] sm:$0xff] }
 0x793   :  { %18005 = vst [vmem:[#allocation84_spill] sm:$0xff] %v16593_v32  ;;  %18006 = vst [vmem:[#allocation85_spill] sm:$0xff] %v16606_v0  ;;  %9345 = vmatprep.subr.bf16.mxu0 %v16593_v32  ;;  %v8672_v32 = vld [vmem:[%s17165_s7 + $0x3c8] sm:$0xff]  ;;  %v16650_v52 = vcombine.low %v8671_v53, %v8675_v62 }
 0x794   :  { %9385 = vmatpush1.bf16.msra.mxu1 %v16579_v37  ;;  %18009 = vst [vmem:[#allocation90_spill] sm:$0xff] %v16620_v6  ;;  %18010 = vst [vmem:[#allocation89_spill] sm:$0xff] %v16623_v34  ;;  %v16644_v37 = vcombine.high %v8671_v53, %v8675_v62  ;;  %v16647_v41 = vcombine.high %v8672_v32, %v8676_v42  ;;  %v16654_v35 = vcombine.low %v8672_v32, %v8676_v42  ;;  %v8554_v62 = vld [vmem:[%s17165_s7 + $0x18] sm:$0xff] }
 0x795   :  { %9386 = vmatprep.subr.bf16.mxu1 %v16608_v18  ;;  %9346 = vmatpush1.bf16.msra.mxu0 %v16606_v0  ;;  %v16642_v18 = vcombine.low %v8664_v43, %v8668_v51  ;;  %18015 = vst [vmem:[#allocation96_spill] sm:$0xff] %v16650_v52  ;;  %v8553_v51 = vld [vmem:[%s17165_s7 + $0x10] sm:$0xff]  ;;  %v16675_v42 = vcombine.low %v8554_v62, %v8558_v3 }
 0x796   :  { %9347 = vmatprep.subr.bf16.mxu0 %v16620_v6  ;;  %18013 = vst [vmem:[#allocation93_spill] sm:$0xff] %v16644_v37  ;;  %18014 = vst [vmem:[#allocation94_spill] sm:$0xff] %v16647_v41  ;;  %v8557_v43 = vld [vmem:[%s17165_s7 + $0x30] sm:$0xff] }
 0x797   :  { %18012 = vst [vmem:[#allocation91_spill] sm:$0xff] %v16642_v18  ;;  %18016 = vst [vmem:[#allocation95_spill] sm:$0xff] %v16654_v35  ;;  %v16668_v32 = vcombine.high %v8553_v51, %v8557_v43  ;;  %v16673_v53 = vcombine.low %v8553_v51, %v8557_v43 }
 0x798   :  { %9387 = vmatpush1.bf16.msra.mxu1 %v16618_v29 }
 0x799   :  { %9388 = vmatprep.subr.bf16.mxu1 %v16623_v34  ;;  %9348 = vmatpush1.bf16.msra.mxu0 %v16638_v23  ;;  %18017 = vst [vmem:[#allocation97_spill] sm:$0xff] %v16668_v32 }
 0x79a   :  { %9349 = vmatprep.subr.bf16.mxu0 %v16644_v37 }
 0x79c   :  { %9389 = vmatpush1.bf16.msra.mxu1 %v16642_v18 }
 0x79d   :  { %9390 = vmatprep.subr.bf16.mxu1 %v16647_v41  ;;  %9350 = vmatpush1.bf16.msra.mxu0 %v16650_v52  ;;  %v16677_v52 = vcombine.high %v8554_v62, %v8558_v3 }
 0x79e   :  { %9401 = vmatprep.subr.bf16.mxu0 %v16668_v32 }
 0x79f   :  { %18018 = vst [vmem:[#allocation98_spill] sm:$0xff] %v16677_v52 }
 0x7a0   :  { %9391 = vmatpush1.bf16.msra.mxu1 %v16654_v35 }
 0x7a1   :  { %9442 = vmatprep.subr.bf16.mxu1 %v16677_v52 }
 0x7f3   :  { %v8323_v41 = vpop.f32.mrb[40].mxu0  ;;  %v8364_v37 = vpop.f32.mrb[40].mxu1 }
 0x7f4   :  { %v12319_v35 = vadd.f32 %v8323_v41, %v17923_v47  ;;  %v8325_v18 = vpop.f32.mrb[41].mxu0  ;;  %v8366_v23 = vpop.f32.mrb[41].mxu1  ;;  %v12321_v52 = vadd.f32 %v8364_v37, %v13878_v63 }
 0x7f5   :  { %v12320_v34 = vadd.f32 %v8325_v18, %v13867_v38  ;;  %v8327_v6 = vpop.f32.mrb[42].mxu0  ;;  %v8368_v29 = vpop.f32.mrb[42].mxu1  ;;  %v12322_v62 = vadd.f32 %v8366_v23, %v13874_v31 }
 0x7f6   :  { %v11899_v51 = vmul.f32 -1.442695, %v12319_v35  ;;  %v8328_v43 = vpop.f32.mrb[43].mxu0  ;;  %v8369_v0 = vpop.f32.mrb[43].mxu1 }
 0x7f7   :  { %v11900_v9 = vmul.f32 -1.442695, %v12320_v34  ;;  %v11901_v3 = vmul.f32 -1.442695, %v12322_v62  ;;  %v8524_v23 = vpop.permute.xlu1 %8523 }
 0x7f8   :  { %12685 = vpow2.f32 %v11899_v51  ;;  %vm8526_vm13 = vcmp.gt.f32.partialorder %v8524_v23, 0.0  ;;  %v18056_v23 = vld [vmem:[#allocation42_spill] sm:$0xff] }
 0x7f9   :  { %12687 = vpow2.f32 %v11900_v9 }
 0x7fa   :  { %12689 = vpow2.f32 %v11901_v3 }
 0x7fb   :  { %12691 = vtanh.f32 %v12321_v52 }
 0x802   :  { %v12686_v32 = vpop.eup %12685 }
 0x803   :  { %v12688_v20 = vpop.eup %12687  ;;  %v8473_v41 = vadd.f32 1.0, %v12686_v32 }
 0x804   :  { %v8479_v47 = vadd.f32 1.0, %v12688_v20  ;;  %v12690_v29 = vpop.eup %12689 }
 0x805   :  { %12693 = vrcp.f32 %v8473_v41  ;;  %v12692_v6 = vpop.eup %12691  ;;  %v8486_v35 = vadd.f32 1.0, %v12690_v29 }
 0x806   :  { %12695 = vrcp.f32 %v8479_v47 }
 0x807   :  { %12697 = vrcp.f32 %v8486_v35 }
 0x80f   :  { %v12694_v18 = vpop.eup %12693 }
 0x810   :  { %v12696_v0 = vpop.eup %12695  ;;  %v8490_v34 = vmul.f32 %v12694_v18, %v12692_v6 }
 0x811   :  { %v8489_v9 = vmul.f32 %v12696_v0, %v15886_v57  ;;  %v12698_v20 = vpop.eup %12697 }
 0x813   :  { %v8491_v51 = vadd.f32 %v8490_v34, %v8489_v9 }
 0x815   :  { %12699 = vtanh.f32 %v8491_v51  ;;  %v16688_v37 = vsel %vm8526_vm13, %v8491_v51, %v15886_v57 }
 0x816   :  { %18019 = vst [vmem:[#allocation99_spill] sm:$0xff] %v16688_v37 }
 0x81f   :  { %v12700_v52 = vpop.eup %12699 }
 0x820   :  { %v8493_v47 = vmul.f32 %v12700_v52, %v12698_v20 }
 0x833   :  { %v8405_v32 = vpop.f32.mrb[20].mxu0  ;;  %v8446_v43 = vpop.f32.mrb[20].mxu1 }
 0x834   :  { %v12299_v62 = vadd.f32 %v8405_v32, %v17925_v22  ;;  %v8407_v3 = vpop.f32.mrb[21].mxu0  ;;  %v8448_v41 = vpop.f32.mrb[21].mxu1  ;;  %v12301_v20 = vadd.f32 %v8446_v43, %v13921_v27 }
 0x835   :  { %v12300_v29 = vadd.f32 %v8407_v3, %v13903_v46  ;;  %v8409_v6 = vpop.f32.mrb[22].mxu0  ;;  %v8450_v18 = vpop.f32.mrb[22].mxu1  ;;  %v12302_v57 = vadd.f32 %v8448_v41, %v13912_v16 }
 0x836   :  { %v11902_v0 = vmul.f32 -1.442695, %v12299_v62  ;;  %v8410_v34 = vpop.f32.mrb[23].mxu0  ;;  %v8451_v35 = vpop.f32.mrb[23].mxu1 }
 0x837   :  { %v11903_v9 = vmul.f32 -1.442695, %v12300_v29  ;;  %v11904_v51 = vmul.f32 -1.442695, %v12302_v57  ;;  %v8532_v41 = vpop.permute.xlu0 %8531 }
 0x838   :  { %12701 = vpow2.f32 %v11902_v0  ;;  %vm8534_vm14 = vcmp.gt.f32.partialorder %v8532_v41, 0.0  ;;  %v18066_v41 = vld [vmem:[#allocation55_spill] sm:$0xff] }
 0x839   :  { %12703 = vpow2.f32 %v11903_v9 }
 0x83a   :  { %12705 = vpow2.f32 %v11904_v51 }
 0x83b   :  { %12707 = vtanh.f32 %v12301_v20 }
 0x842   :  { %v12702_v52 = vpop.eup %12701 }
 0x843   :  { %v12704_v37 = vpop.eup %12703  ;;  %v8498_v32 = vadd.f32 1.0, %v12702_v52 }
 0x844   :  { %v8504_v22 = vadd.f32 1.0, %v12704_v37  ;;  %v12706_v3 = vpop.eup %12705 }
 0x845   :  { %12709 = vrcp.f32 %v8498_v32  ;;  %v12708_v62 = vpop.eup %12707  ;;  %v8511_v0 = vadd.f32 1.0, %v12706_v3  ;;  %v18058_v32 = vld [vmem:[#allocation44_spill] sm:$0xff]  ;;  %v18059_v3 = vld [vmem:[#allocation45_spill] sm:$0xff] }
 0x846   :  { %12711 = vrcp.f32 %v8504_v22  ;;  %v16700_v22 = vsel %vm8526_vm13, %v8493_v47, %v15898_v1  ;;  %v18021_v1 = vld [vmem:[#allocation7_spill] sm:$0xff] }
 0x847   :  { %12713 = vrcp.f32 %v8511_v0  ;;  %v16709_v52 = vpack.c.bf16 %v16700_v22, %v16700_v22  ;;  %v18057_v47 = vld [vmem:[#allocation43_spill] sm:$0xff] }
 0x848   :  { %v18064_v0 = vld [vmem:[#allocation51_spill] sm:$0xff] }
 0x84f   :  { %v12710_v6 = vpop.eup %12709 }
 0x850   :  { %v12712_v18 = vpop.eup %12711  ;;  %v8515_v29 = vmul.f32 %v12710_v6, %v12708_v62  ;;  %v18060_v62 = vld [vmem:[#allocation46_spill] sm:$0xff]  ;;  %v18061_v6 = vld [vmem:[#allocation47_spill] sm:$0xff] }
 0x851   :  { %v8514_v34 = vmul.f32 %v12712_v18, %v15894_v36  ;;  %v12714_v9 = vpop.eup %12713  ;;  %v18062_v18 = vld [vmem:[#allocation48_spill] sm:$0xff] }
 0x853   :  { %v8516_v35 = vadd.f32 %v8515_v29, %v8514_v34  ;;  %v18063_v29 = vld [vmem:[#allocation49_spill] sm:$0xff]  ;;  %v18065_v34 = vld [vmem:[#allocation50_spill] sm:$0xff] }
 0x855   :  { %12715 = vtanh.f32 %v8516_v35  ;;  %v16696_v43 = vsel %vm8534_vm14, %v8516_v35, %v15894_v36  ;;  %v18020_v36 = vld [vmem:[#allocation101_spill] sm:$0xff]  ;;  %v18067_v35 = vld [vmem:[#allocation52_spill] sm:$0xff] }
 0x85f   :  { %v12716_v37 = vpop.eup %12715 }
 0x860   :  { %v8518_v57 = vmul.f32 %v12716_v37, %v12714_v9  ;;  %v18068_v9 = vld [vmem:[#allocation54_spill] sm:$0xff]  ;;  %v18069_v37 = vld [vmem:[#allocation53_spill] sm:$0xff] }
 0x862   :  { %v16703_v51 = vsel %vm8534_vm14, %v8518_v57, %v15904_v28  ;;  %v18022_v28 = vld [vmem:[#allocation8_spill] sm:$0xff]  ;;  %v18070_v57 = vld [vmem:[#allocation59_spill] sm:$0xff] }
 0x863   :  { %v8550_v20 = vpack.c.bf16 %v16703_v51, %v16703_v51 }
 0x865   :  { %9351 = vmatprep.mubr.bf16.mxu0 %v8550_v20  ;;  %9392 = vmatprep.mubr.bf16.mxu1 %v8550_v20 }
 0x866   :  { %9352 = vmatmul.mubr.bf16.vlgmr.msra.gmra.mrb[48].mxu0 %v16709_v52  ;;  %9393 = vmatmul.mubr.bf16.vlgmr.msra.gmra.mrb[48].mxu1 %v16709_v52 }
 0x867   :  { %9402 = vmatpush1.bf16.msra.mxu0 %v16673_v53  ;;  %9443 = vmatpush1.bf16.msra.mxu1 %v16675_v42 }
 0x868   :  { %9433 = vmatprep.mubr.bf16.mxu0 %v8550_v20  ;;  %9474 = vmatprep.mubr.bf16.mxu1 %v8550_v20  ;;  %v18071_v20 = vld [vmem:[#allocation56_spill] sm:$0xff] }
 0x869   :  { %9403 = vmatprep.subr.bf16.mxu0 %v15924_v60  ;;  %9444 = vmatprep.subr.bf16.mxu1 %v15926_v58  ;;  %v18023_v60 = vld [vmem:[#allocation9_spill] sm:$0xff]  ;;  %v18024_v58 = vld [vmem:[#allocation10_spill] sm:$0xff] }
 0x86b   :  { %9404 = vmatpush1.bf16.msra.mxu0 %v15941_v8  ;;  %9445 = vmatpush1.bf16.msra.mxu1 %v15943_v50  ;;  %v18025_v8 = vld [vmem:[#allocation11_spill] sm:$0xff]  ;;  %v18026_v50 = vld [vmem:[#allocation12_spill] sm:$0xff] }
 0x86c   :  { %9405 = vmatprep.subr.bf16.mxu0 %v15945_v39  ;;  %9446 = vmatprep.subr.bf16.mxu1 %v15947_v55  ;;  %v18027_v39 = vld [vmem:[#allocation13_spill] sm:$0xff]  ;;  %v18028_v55 = vld [vmem:[#allocation14_spill] sm:$0xff] }
 0x86f   :  { %9406 = vmatpush1.bf16.msra.mxu0 %v15965_v15  ;;  %9447 = vmatpush1.bf16.msra.mxu1 %v15967_v21  ;;  %v18029_v15 = vld [vmem:[#allocation15_spill] sm:$0xff]  ;;  %v18030_v21 = vld [vmem:[#allocation16_spill] sm:$0xff] }
 0x870   :  { %9407 = vmatprep.subr.bf16.mxu0 %v15971_v17  ;;  %9448 = vmatprep.subr.bf16.mxu1 %v15973_v12  ;;  %v18031_v17 = vld [vmem:[#allocation17_spill] sm:$0xff]  ;;  %v18032_v12 = vld [vmem:[#allocation18_spill] sm:$0xff] }
 0x873   :  { %9408 = vmatpush1.bf16.msra.mxu0 %v15989_v56  ;;  %9449 = vmatpush1.bf16.msra.mxu1 %v15991_v44  ;;  %v18033_v56 = vld [vmem:[#allocation19_spill] sm:$0xff]  ;;  %v18034_v44 = vld [vmem:[#allocation20_spill] sm:$0xff] }
 0x874   :  { %9409 = vmatprep.subr.bf16.mxu0 %v15995_v14  ;;  %9450 = vmatprep.subr.bf16.mxu1 %v15997_v33  ;;  %v18035_v14 = vld [vmem:[#allocation21_spill] sm:$0xff]  ;;  %v18036_v33 = vld [vmem:[#allocation22_spill] sm:$0xff] }
 0x877   :  { %9410 = vmatpush1.bf16.msra.mxu0 %v16013_v11  ;;  %9451 = vmatpush1.bf16.msra.mxu1 %v16015_v19  ;;  %v18037_v11 = vld [vmem:[#allocation23_spill] sm:$0xff]  ;;  %v18038_v19 = vld [vmem:[#allocation24_spill] sm:$0xff] }
 0x878   :  { %9411 = vmatprep.subr.bf16.mxu0 %v16019_v7  ;;  %9452 = vmatprep.subr.bf16.mxu1 %v16021_v59  ;;  %v18039_v7 = vld [vmem:[#allocation25_spill] sm:$0xff]  ;;  %v18040_v59 = vld [vmem:[#allocation26_spill] sm:$0xff] }
 0x87b   :  { %9412 = vmatpush1.bf16.msra.mxu0 %v16037_v26  ;;  %9453 = vmatpush1.bf16.msra.mxu1 %v16039_v25  ;;  %v18041_v26 = vld [vmem:[#allocation27_spill] sm:$0xff]  ;;  %v18042_v25 = vld [vmem:[#allocation28_spill] sm:$0xff] }
 0x87c   :  { %9413 = vmatprep.subr.bf16.mxu0 %v16043_v13  ;;  %9454 = vmatprep.subr.bf16.mxu1 %v16045_v10  ;;  %v18043_v13 = vld [vmem:[#allocation29_spill] sm:$0xff]  ;;  %v18044_v10 = vld [vmem:[#allocation30_spill] sm:$0xff] }
 0x87f   :  { %9414 = vmatpush1.bf16.msra.mxu0 %v16061_v24  ;;  %9455 = vmatpush1.bf16.msra.mxu1 %v16063_v2  ;;  %v18045_v24 = vld [vmem:[#allocation31_spill] sm:$0xff]  ;;  %v18046_v2 = vld [vmem:[#allocation32_spill] sm:$0xff] }
 0x880   :  { %9415 = vmatprep.subr.bf16.mxu0 %v16067_v4  ;;  %9456 = vmatprep.subr.bf16.mxu1 %v16069_v45  ;;  %v18047_v4 = vld [vmem:[#allocation35_spill] sm:$0xff]  ;;  %v18048_v45 = vld [vmem:[#allocation34_spill] sm:$0xff] }
 0x883   :  { %9416 = vmatpush1.bf16.msra.mxu0 %v16085_v61  ;;  %9457 = vmatpush1.bf16.msra.mxu1 %v16087_v30  ;;  %v18049_v61 = vld [vmem:[#allocation33_spill] sm:$0xff]  ;;  %v18050_v30 = vld [vmem:[#allocation39_spill] sm:$0xff] }
 0x884   :  { %9417 = vmatprep.subr.bf16.mxu0 %v16091_v54  ;;  %9458 = vmatprep.subr.bf16.mxu1 %v16093_v5  ;;  %v18051_v54 = vld [vmem:[#allocation37_spill] sm:$0xff]  ;;  %v18052_v5 = vld [vmem:[#allocation36_spill] sm:$0xff] }
 0x887   :  { %9418 = vmatpush1.bf16.msra.mxu0 %v16109_v40  ;;  %9459 = vmatpush1.bf16.msra.mxu1 %v16111_v48  ;;  %v18053_v40 = vld [vmem:[#allocation38_spill] sm:$0xff]  ;;  %v18054_v48 = vld [vmem:[#allocation40_spill] sm:$0xff] }
 0x888   :  { %9419 = vmatprep.subr.bf16.mxu0 %v16115_v49  ;;  %9460 = vmatprep.subr.bf16.mxu1 %v18020_v36  ;;  %v18055_v49 = vld [vmem:[#allocation41_spill] sm:$0xff] }
 0x889   :  { %v18073_v36 = vld [vmem:[#allocation57_spill] sm:$0xff] }
 0x88b   :  { %9420 = vmatpush1.bf16.msra.mxu0 %v18021_v1  ;;  %9461 = vmatpush1.bf16.msra.mxu1 %v18022_v28  ;;  %v18074_v1 = vld [vmem:[#allocation63_spill] sm:$0xff]  ;;  %v18075_v28 = vld [vmem:[#allocation60_spill] sm:$0xff] }
 0x88c   :  { %9421 = vmatprep.subr.bf16.mxu0 %v18023_v60  ;;  %9462 = vmatprep.subr.bf16.mxu1 %v18024_v58  ;;  %v18076_v60 = vld [vmem:[#allocation62_spill] sm:$0xff]  ;;  %v18077_v58 = vld [vmem:[#allocation61_spill] sm:$0xff] }
 0x88f   :  { %9422 = vmatpush1.bf16.msra.mxu0 %v18025_v8  ;;  %9463 = vmatpush1.bf16.msra.mxu1 %v18026_v50  ;;  %v18078_v8 = vld [vmem:[#allocation67_spill] sm:$0xff]  ;;  %v18079_v50 = vld [vmem:[#allocation64_spill] sm:$0xff] }
 0x890   :  { %9423 = vmatprep.subr.bf16.mxu0 %v18027_v39  ;;  %9464 = vmatprep.subr.bf16.mxu1 %v18028_v55  ;;  %v18080_v39 = vld [vmem:[#allocation66_spill] sm:$0xff]  ;;  %v18081_v55 = vld [vmem:[#allocation65_spill] sm:$0xff] }
 0x893   :  { %9424 = vmatpush1.bf16.msra.mxu0 %v18029_v15  ;;  %9465 = vmatpush1.bf16.msra.mxu1 %v18030_v21  ;;  %v18082_v15 = vld [vmem:[#allocation71_spill] sm:$0xff]  ;;  %v18083_v21 = vld [vmem:[#allocation68_spill] sm:$0xff] }
 0x894   :  { %9425 = vmatprep.subr.bf16.mxu0 %v18031_v17  ;;  %9466 = vmatprep.subr.bf16.mxu1 %v18032_v12  ;;  %v18084_v17 = vld [vmem:[#allocation70_spill] sm:$0xff]  ;;  %v18085_v12 = vld [vmem:[#allocation69_spill] sm:$0xff] }
 0x897   :  { %9426 = vmatpush1.bf16.msra.mxu0 %v18033_v56  ;;  %9467 = vmatpush1.bf16.msra.mxu1 %v18034_v44  ;;  %v18086_v56 = vld [vmem:[#allocation75_spill] sm:$0xff]  ;;  %v18087_v44 = vld [vmem:[#allocation72_spill] sm:$0xff] }
 0x898   :  { %9427 = vmatprep.subr.bf16.mxu0 %v18035_v14  ;;  %9468 = vmatprep.subr.bf16.mxu1 %v18036_v33  ;;  %v18088_v14 = vld [vmem:[#allocation74_spill] sm:$0xff]  ;;  %v18089_v33 = vld [vmem:[#allocation73_spill] sm:$0xff] }
 0x89b   :  { %9428 = vmatpush1.bf16.msra.mxu0 %v18037_v11  ;;  %9469 = vmatpush1.bf16.msra.mxu1 %v18038_v19  ;;  %v18090_v11 = vld [vmem:[#allocation79_spill] sm:$0xff]  ;;  %v18091_v19 = vld [vmem:[#allocation76_spill] sm:$0xff] }
 0x89c   :  { %9429 = vmatprep.subr.bf16.mxu0 %v18039_v7  ;;  %9470 = vmatprep.subr.bf16.mxu1 %v18040_v59  ;;  %v18092_v7 = vld [vmem:[#allocation78_spill] sm:$0xff]  ;;  %v18093_v59 = vld [vmem:[#allocation77_spill] sm:$0xff] }
 0x89f   :  { %9430 = vmatpush1.bf16.msra.mxu0 %v18041_v26  ;;  %9471 = vmatpush1.bf16.msra.mxu1 %v18042_v25  ;;  %v18094_v26 = vld [vmem:[#allocation83_spill] sm:$0xff]  ;;  %v18095_v25 = vld [vmem:[#allocation80_spill] sm:$0xff] }
 0x8a0   :  { %9431 = vmatprep.subr.bf16.mxu0 %v18043_v13  ;;  %9472 = vmatprep.subr.bf16.mxu1 %v18044_v10  ;;  %v18096_v13 = vld [vmem:[#allocation82_spill] sm:$0xff]  ;;  %v18097_v10 = vld [vmem:[#allocation81_spill] sm:$0xff] }
 0x8a3   :  { %9432 = vmatpush1.bf16.msra.mxu0 %v18045_v24  ;;  %9473 = vmatpush1.bf16.msra.mxu1 %v18046_v2  ;;  %v18098_v24 = vld [vmem:[#allocation87_spill] sm:$0xff]  ;;  %v18099_v2 = vld [vmem:[#allocation84_spill] sm:$0xff] }
 0x8a4   :  { %10349 = vmatprep.subr.bf16.mxu0 %v18047_v4  ;;  %10390 = vmatprep.subr.bf16.mxu1 %v18048_v45  ;;  %v18100_v4 = vld [vmem:[#allocation88_spill] sm:$0xff]  ;;  %v18101_v45 = vld [vmem:[#allocation85_spill] sm:$0xff] }
 0x8a6   :  { %9434 = vmatmul.mubr.bf16.vlgmr.msra.gmra.mrb[12].mxu0 %v16709_v52  ;;  %9475 = vmatmul.mubr.bf16.vlgmr.msra.gmra.mrb[12].mxu1 %v16709_v52  ;;  %v18072_v52 = vld [vmem:[#allocation58_spill] sm:$0xff] }
 0x8a7   :  { %10350 = vmatpush1.bf16.msra.mxu0 %v18049_v61  ;;  %10391 = vmatpush1.bf16.msra.mxu1 %v18050_v30  ;;  %v18102_v61 = vld [vmem:[#allocation86_spill] sm:$0xff] }
 0x8a8   :  { %10351 = vmatprep.subr.bf16.mxu0 %v18051_v54  ;;  %10392 = vmatprep.subr.bf16.mxu1 %v18052_v5  ;;  %v18103_v30 = vld [vmem:[#allocation90_spill] sm:$0xff]  ;;  %v18104_v54 = vld [vmem:[#allocation89_spill] sm:$0xff]  ;;  %v18105_v5 = vld [vmem:[#allocation92_spill] sm:$0xff] }
 0x8ab   :  { %10352 = vmatpush1.bf16.msra.mxu0 %v18053_v40  ;;  %10393 = vmatpush1.bf16.msra.mxu1 %v18054_v48  ;;  %v18106_v40 = vld [vmem:[#allocation91_spill] sm:$0xff]  ;;  %v18107_v48 = vld [vmem:[#allocation93_spill] sm:$0xff] }
 0x8ac   :  { %10353 = vmatprep.subr.bf16.mxu0 %v18055_v49  ;;  %10394 = vmatprep.subr.bf16.mxu1 %v18056_v23  ;;  %v18108_v49 = vld [vmem:[#allocation94_spill] sm:$0xff]  ;;  %v18109_v23 = vld [vmem:[#allocation96_spill] sm:$0xff] }
 0x8af   :  { %10354 = vmatpush1.bf16.msra.mxu0 %v18057_v47  ;;  %10395 = vmatpush1.bf16.msra.mxu1 %v18058_v32  ;;  %v18110_v47 = vld [vmem:[#allocation95_spill] sm:$0xff]  ;;  %v18111_v32 = vld [vmem:[#allocation97_spill] sm:$0xff] }
 0x8b0   :  { %10355 = vmatprep.subr.bf16.mxu0 %v18059_v3  ;;  %10396 = vmatprep.subr.bf16.mxu1 %v18060_v62  ;;  %v18112_v3 = vld [vmem:[#allocation98_spill] sm:$0xff] }
 0x8b3   :  { %10356 = vmatpush1.bf16.msra.mxu0 %v18061_v6  ;;  %10397 = vmatpush1.bf16.msra.mxu1 %v18062_v18  ;;  %v18113_v18 = vld [vmem:[#allocation5_spill] sm:$0xff] }
 0x8b4   :  { %10357 = vmatprep.subr.bf16.mxu0 %v18063_v29  ;;  %10398 = vmatprep.subr.bf16.mxu1 %v18064_v0 }
 0x8b7   :  { %10358 = vmatpush1.bf16.msra.mxu0 %v18065_v34  ;;  %10399 = vmatpush1.bf16.msra.mxu1 %v18066_v41 }
 0x8b8   :  { %10359 = vmatprep.subr.bf16.mxu0 %v18067_v35  ;;  %10400 = vmatprep.subr.bf16.mxu1 %v18068_v9 }
 0x8bb   :  { %10360 = vmatpush1.bf16.msra.mxu0 %v18069_v37  ;;  %10401 = vmatpush1.bf16.msra.mxu1 %v18070_v57 }
 0x8bc   :  { %10361 = vmatprep.subr.bf16.mxu0 %v18071_v20  ;;  %10402 = vmatprep.subr.bf16.mxu1 %v18072_v52 }
 0x8bf   :  { %10362 = vmatpush1.bf16.msra.mxu0 %v18073_v36  ;;  %10403 = vmatpush1.bf16.msra.mxu1 %v18074_v1 }
 0x8c0   :  { %10363 = vmatprep.subr.bf16.mxu0 %v18075_v28  ;;  %10404 = vmatprep.subr.bf16.mxu1 %v18076_v60 }
 0x8c3   :  { %10364 = vmatpush1.bf16.msra.mxu0 %v18077_v58  ;;  %10405 = vmatpush1.bf16.msra.mxu1 %v18078_v8 }
 0x8c4   :  { %10365 = vmatprep.subr.bf16.mxu0 %v18079_v50  ;;  %10406 = vmatprep.subr.bf16.mxu1 %v18080_v39 }
 0x8c7   :  { %10366 = vmatpush1.bf16.msra.mxu0 %v18081_v55  ;;  %10407 = vmatpush1.bf16.msra.mxu1 %v18082_v15 }
 0x8c8   :  { %10367 = vmatprep.subr.bf16.mxu0 %v18083_v21  ;;  %10408 = vmatprep.subr.bf16.mxu1 %v18084_v17 }
 0x8cb   :  { %10368 = vmatpush1.bf16.msra.mxu0 %v18085_v12  ;;  %10409 = vmatpush1.bf16.msra.mxu1 %v18086_v56  ;;  %v18114_v56 = vld [vmem:[#allocation99_spill] sm:$0xff] }
 0x8cc   :  { %10369 = vmatprep.subr.bf16.mxu0 %v18087_v44  ;;  %10410 = vmatprep.subr.bf16.mxu1 %v18088_v14  ;;  %v9554_v14 = vpop.permute.xlu1 %9553 }
 0x8cd   :  { %vm9556_vm15 = vcmp.gt.f32.partialorder %v9554_v14, 0.0 }
 0x8cf   :  { %10370 = vmatpush1.bf16.msra.mxu0 %v18089_v33  ;;  %10411 = vmatpush1.bf16.msra.mxu1 %v18090_v11 }
 0x8d0   :  { %10371 = vmatprep.subr.bf16.mxu0 %v18091_v19  ;;  %10412 = vmatprep.subr.bf16.mxu1 %v18092_v7 }
 0x8d3   :  { %10372 = vmatpush1.bf16.msra.mxu0 %v18093_v59  ;;  %10413 = vmatpush1.bf16.msra.mxu1 %v18094_v26 }
 0x8d4   :  { %10373 = vmatprep.subr.bf16.mxu0 %v18095_v25  ;;  %10414 = vmatprep.subr.bf16.mxu1 %v18096_v13  ;;  %v18115_v13 = vld [vmem:[#allocation6_spill] sm:$0xff] }
 0x8d7   :  { %10374 = vmatpush1.bf16.msra.mxu0 %v18097_v10  ;;  %10415 = vmatpush1.bf16.msra.mxu1 %v18098_v24 }
 0x8d8   :  { %10375 = vmatprep.subr.bf16.mxu0 %v18099_v2  ;;  %10416 = vmatprep.subr.bf16.mxu1 %v18100_v4 }
 0x8db   :  { %10376 = vmatpush1.bf16.msra.mxu0 %v18101_v45  ;;  %10417 = vmatpush1.bf16.msra.mxu1 %v18102_v61 }
 0x8dc   :  { %10377 = vmatprep.subr.bf16.mxu0 %v18103_v30  ;;  %10418 = vmatprep.subr.bf16.mxu1 %v18104_v54 }
 0x8df   :  { %10378 = vmatpush1.bf16.msra.mxu0 %v18105_v5  ;;  %10419 = vmatpush1.bf16.msra.mxu1 %v18106_v40 }
 0x8e0   :  { %10379 = vmatprep.subr.bf16.mxu0 %v18107_v48  ;;  %10420 = vmatprep.subr.bf16.mxu1 %v18108_v49 }
 0x8e3   :  { %10380 = vmatpush1.bf16.msra.mxu0 %v18109_v23  ;;  %10421 = vmatpush1.bf16.msra.mxu1 %v18110_v47 }
 0x8e4   :  { %10431 = vmatprep.subr.bf16.mxu0 %v18111_v32  ;;  %10472 = vmatprep.subr.bf16.mxu1 %v18112_v3 }
 0x939   :  { %v9353_v62 = vpop.f32.mrb[48].mxu0  ;;  %v9394_v6 = vpop.f32.mrb[48].mxu1 }
 0x93a   :  { %v12327_v29 = vadd.f32 %v9353_v62, %v18113_v18  ;;  %v9355_v0 = vpop.f32.mrb[49].mxu0  ;;  %v9396_v34 = vpop.f32.mrb[49].mxu1  ;;  %v12329_v28 = vadd.f32 %v9394_v6, %v13878_v63 }
 0x93b   :  { %v12328_v41 = vadd.f32 %v9355_v0, %v13867_v38  ;;  %v9357_v35 = vpop.f32.mrb[50].mxu0  ;;  %v9398_v9 = vpop.f32.mrb[50].mxu1  ;;  %v12330_v36 = vadd.f32 %v9396_v34, %v13874_v31 }
 0x93c   :  { %v12035_v37 = vmul.f32 -1.442695, %v12327_v29  ;;  %v9358_v57 = vpop.f32.mrb[51].mxu0  ;;  %v9399_v20 = vpop.f32.mrb[51].mxu1 }
 0x93d   :  { %v12036_v52 = vmul.f32 -1.442695, %v12328_v41  ;;  %v12037_v1 = vmul.f32 -1.442695, %v12330_v36 }
 0x93e   :  { %12717 = vpow2.f32 %v12035_v37  ;;  %v9562_v37 = vpop.permute.xlu0 %9561 }
 0x93f   :  { %12719 = vpow2.f32 %v12036_v52  ;;  %vm9564_vm0 = vcmp.gt.f32.partialorder %v9562_v37, 0.0 }
 0x940   :  { %12721 = vpow2.f32 %v12037_v1 }
 0x941   :  { %12723 = vtanh.f32 %v12329_v28 }
 0x948   :  { %v12718_v60 = vpop.eup %12717 }
 0x949   :  { %v12720_v58 = vpop.eup %12719  ;;  %v9503_v8 = vadd.f32 1.0, %v12718_v60  ;;  %v9591_v60 = vld [vmem:[%s17165_s7 + $0x50] sm:$0xff] }
 0x94a   :  { %v9509_v50 = vadd.f32 1.0, %v12720_v58  ;;  %v12722_v39 = vpop.eup %12721 }
 0x94b   :  { %12725 = vrcp.f32 %v9503_v8  ;;  %v12724_v55 = vpop.eup %12723  ;;  %v9516_v12 = vadd.f32 1.0, %v12722_v39  ;;  %v9595_v8 = vld [vmem:[%s17165_s7 + $0x70] sm:$0xff] }
 0x94c   :  { %12727 = vrcp.f32 %v9509_v50 }
 0x94d   :  { %12729 = vrcp.f32 %v9516_v12  ;;  %v9604_v12 = vld [vmem:[%s17165_s7 + $0xb8] sm:$0xff] }
 0x955   :  { %v12726_v15 = vpop.eup %12725 }
 0x956   :  { %v12728_v21 = vpop.eup %12727  ;;  %v9520_v17 = vmul.f32 %v12726_v15, %v12724_v55  ;;  %v12056_v55 = vcombine.high %v9591_v60, %v9595_v8 }
 0x957   :  { %v9519_v44 = vmul.f32 %v12728_v21, %v18114_v56  ;;  %v12730_v19 = vpop.eup %12729  ;;  %v9603_v21 = vld [vmem:[%s17165_s7 + $0xb0] sm:$0xff] }
 0x959   :  { %v9521_v33 = vadd.f32 %v9520_v17, %v9519_v44  ;;  %v9600_v17 = vld [vmem:[%s17165_s7 + $0x98] sm:$0xff] }
 0x95b   :  { %12731 = vtanh.f32 %v9521_v33  ;;  %v16850_v11 = vsel %vm9556_vm15, %v9521_v33, %v18114_v56  ;;  %v12055_v56 = vcombine.low %v9591_v60, %v9595_v8  ;;  %v12066_v33 = vcombine.high %v9600_v17, %v9604_v12 }
 0x965   :  { %v12732_v7 = vpop.eup %12731 }
 0x966   :  { %v9523_v59 = vmul.f32 %v12732_v7, %v12730_v19  ;;  %v9607_v19 = vld [vmem:[%s17165_s7 + $0xd0] sm:$0xff] }
 0x967   :  { %v9611_v7 = vld [vmem:[%s17165_s7 + $0xf0] sm:$0xff] }
 0x968   :  { %v16862_v28 = vsel %vm9556_vm15, %v9523_v59, %v16700_v22  ;;  %v9596_v22 = vld [vmem:[%s17165_s7 + $0x78] sm:$0xff] }
 0x969   :  { %v16883_v39 = vpack.c.bf16 %v16862_v28, %v16862_v28 }
 0x979   :  { %v9435_v26 = vpop.f32.mrb[12].mxu0  ;;  %v9476_v25 = vpop.f32.mrb[12].mxu1 }
 0x97a   :  { %v12291_v10 = vadd.f32 %v9435_v26, %v18115_v13  ;;  %v9437_v24 = vpop.f32.mrb[13].mxu0  ;;  %v9478_v2 = vpop.f32.mrb[13].mxu1  ;;  %v12293_v23 = vadd.f32 %v9476_v25, %v13921_v27  ;;  %v12065_v26 = vcombine.low %v9600_v17, %v9604_v12  ;;  %v12072_v25 = vcombine.high %v9607_v19, %v9611_v7 }
 0x97b   :  { %v12292_v4 = vadd.f32 %v9437_v24, %v13903_v46  ;;  %v9439_v45 = vpop.f32.mrb[14].mxu0  ;;  %v9480_v61 = vpop.f32.mrb[14].mxu1  ;;  %v12294_v48 = vadd.f32 %v9478_v2, %v13912_v16  ;;  %v9615_v24 = vld [vmem:[%s17165_s7 + $0x110] sm:$0xff] }
 0x97c   :  { %v12038_v30 = vmul.f32 -1.442695, %v12291_v10  ;;  %v9440_v54 = vpop.f32.mrb[15].mxu0  ;;  %v9481_v5 = vpop.f32.mrb[15].mxu1  ;;  %v9619_v2 = vld [vmem:[%s17165_s7 + $0x130] sm:$0xff]  ;;  %v9620_v45 = vld [vmem:[%s17165_s7 + $0x138] sm:$0xff]  ;;  %v12071_v61 = vcombine.low %v9607_v19, %v9611_v7 }
 0x97d   :  { %v12039_v40 = vmul.f32 -1.442695, %v12292_v4  ;;  %v12040_v49 = vmul.f32 -1.442695, %v12294_v48  ;;  %v9616_v4 = vld [vmem:[%s17165_s7 + $0x118] sm:$0xff]  ;;  %v12080_v54 = vcombine.high %v9615_v24, %v9619_v2  ;;  %v9627_v48 = vld [vmem:[%s17165_s7 + $0x170] sm:$0xff] }
 0x97e   :  { %12733 = vpow2.f32 %v12038_v30  ;;  %v12082_v5 = vcombine.high %v9616_v4, %v9620_v45  ;;  %v9660_v19 = vld [vmem:[%s17165_s7 + $0x278] sm:$0xff] }
 0x97f   :  { %12735 = vpow2.f32 %v12039_v40  ;;  %v9623_v40 = vld [vmem:[%s17165_s7 + $0x150] sm:$0xff] }
 0x980   :  { %12737 = vpow2.f32 %v12040_v49  ;;  %v9624_v49 = vld [vmem:[%s17165_s7 + $0x158] sm:$0xff] }
 0x981   :  { %12739 = vtanh.f32 %v12293_v23  ;;  %v9628_v23 = vld [vmem:[%s17165_s7 + $0x178] sm:$0xff] }
 0x988   :  { %v12734_v47 = vpop.eup %12733 }
 0x989   :  { %v12736_v32 = vpop.eup %12735  ;;  %v9528_v3 = vadd.f32 1.0, %v12734_v47  ;;  %v12079_v47 = vcombine.low %v9615_v24, %v9619_v2  ;;  %v9668_v24 = vld [vmem:[%s17165_s7 + $0x2b8] sm:$0xff] }
 0x98a   :  { %v9534_v62 = vadd.f32 1.0, %v12736_v32  ;;  %v12738_v6 = vpop.eup %12737  ;;  %v12081_v32 = vcombine.low %v9616_v4, %v9620_v45 }
 0x98b   :  { %12741 = vrcp.f32 %v9528_v3  ;;  %v12740_v29 = vpop.eup %12739  ;;  %v9541_v35 = vadd.f32 1.0, %v12738_v6  ;;  %v12088_v3 = vcombine.high %v9623_v40, %v9627_v48  ;;  %v9631_v6 = vld [vmem:[%s17165_s7 + $0x190] sm:$0xff] }
 0x98c   :  { %12743 = vrcp.f32 %v9534_v62  ;;  %v12090_v62 = vcombine.high %v9624_v49, %v9628_v23 }
 0x98d   :  { %12745 = vrcp.f32 %v9541_v35  ;;  %v12089_v35 = vcombine.low %v9624_v49, %v9628_v23 }
 0x995   :  { %v12742_v0 = vpop.eup %12741 }
 0x996   :  { %v12744_v34 = vpop.eup %12743  ;;  %v9545_v41 = vmul.f32 %v12742_v0, %v12740_v29  ;;  %v9635_v29 = vld [vmem:[%s17165_s7 + $0x1b0] sm:$0xff]  ;;  %v9632_v0 = vld [vmem:[%s17165_s7 + $0x198] sm:$0xff] }
 0x997   :  { %v9544_v9 = vmul.f32 %v12744_v34, %v16696_v43  ;;  %v12746_v52 = vpop.eup %12745  ;;  %v9636_v34 = vld [vmem:[%s17165_s7 + $0x1b8] sm:$0xff]  ;;  %v12095_v60 = vcombine.low %v9631_v6, %v9635_v29 }
 0x998   :  { %v12098_v37 = vcombine.high %v9632_v0, %v9636_v34  ;;  %v12097_v8 = vcombine.low %v9632_v0, %v9636_v34 }
 0x999   :  { %v9546_v57 = vadd.f32 %v9545_v41, %v9544_v9  ;;  %v12087_v41 = vcombine.low %v9623_v40, %v9627_v48  ;;  %v12096_v9 = vcombine.high %v9631_v6, %v9635_v29  ;;  %v9676_v40 = vld [vmem:[%s17165_s7 + $0x2f8] sm:$0xff] }
 0x99a   :  { %v9684_v6 = vld [vmem:[%s17165_s7 + $0x338] sm:$0xff] }
 0x99b   :  { %12747 = vtanh.f32 %v9546_v57  ;;  %v16858_v20 = vsel %vm9564_vm0, %v9546_v57, %v16696_v43  ;;  %v9592_v43 = vld [vmem:[%s17165_s7 + $0x58] sm:$0xff]  ;;  %v9639_v57 = vld [vmem:[%s17165_s7 + $0x1d0] sm:$0xff] }
 0x99c   :  { %v12058_v15 = vcombine.high %v9592_v43, %v9596_v22  ;;  %v12057_v44 = vcombine.low %v9592_v43, %v9596_v22 }
 0x9a5   :  { %v12748_v36 = vpop.eup %12747 }
 0x9a6   :  { %v9548_v1 = vmul.f32 %v12748_v36, %v12746_v52  ;;  %v9643_v52 = vld [vmem:[%s17165_s7 + $0x1f0] sm:$0xff]  ;;  %v9640_v36 = vld [vmem:[%s17165_s7 + $0x1d8] sm:$0xff] }
 0x9a7   :  { %v12104_v43 = vcombine.high %v9639_v57, %v9643_v52 }
 0x9a8   :  { %v16868_v58 = vsel %vm9564_vm0, %v9548_v1, %v16703_v51  ;;  %v9599_v51 = vld [vmem:[%s17165_s7 + $0x90] sm:$0xff]  ;;  %v9644_v1 = vld [vmem:[%s17165_s7 + $0x1f8] sm:$0xff] }
 0x9a9   :  { %v9580_v50 = vpack.c.bf16 %v16868_v58, %v16868_v58  ;;  %v12064_v14 = vcombine.high %v9599_v51, %v9603_v21  ;;  %v12063_v59 = vcombine.low %v9599_v51, %v9603_v21  ;;  %v12106_v22 = vcombine.high %v9640_v36, %v9644_v1  ;;  %v9651_v51 = vld [vmem:[%s17165_s7 + $0x230] sm:$0xff] }
 0x9aa   :  { %v12103_v21 = vcombine.low %v9639_v57, %v9643_v52  ;;  %v12105_v17 = vcombine.low %v9640_v36, %v9644_v1  ;;  %v9692_v57 = vld [vmem:[%s17165_s7 + $0x378] sm:$0xff] }
 0x9ab   :  { %10381 = vmatprep.mubr.bf16.mxu0 %v9580_v50  ;;  %10422 = vmatprep.mubr.bf16.mxu1 %v9580_v50 }
 0x9ac   :  { %10382 = vmatmul.mubr.bf16.vlgmr.msra.gmra.mrb[56].mxu0 %v16883_v39  ;;  %10423 = vmatmul.mubr.bf16.vlgmr.msra.gmra.mrb[56].mxu1 %v16883_v39 }
 0x9ad   :  { %10432 = vmatpush1.bf16.msra.mxu0 %v16673_v53  ;;  %10473 = vmatpush1.bf16.msra.mxu1 %v16675_v42  ;;  %v9608_v53 = vld [vmem:[%s17165_s7 + $0xd8] sm:$0xff] }
 0x9ae   :  { %10463 = vmatprep.mubr.bf16.mxu0 %v9580_v50  ;;  %10504 = vmatprep.mubr.bf16.mxu1 %v9580_v50  ;;  %v9612_v42 = vld [vmem:[%s17165_s7 + $0xf8] sm:$0xff]  ;;  %v9647_v50 = vld [vmem:[%s17165_s7 + $0x210] sm:$0xff] }
 0x9af   :  { %10433 = vmatprep.subr.bf16.mxu0 %v12056_v55  ;;  %10474 = vmatprep.subr.bf16.mxu1 %v12058_v15  ;;  %v12074_v10 = vcombine.high %v9608_v53, %v9612_v42  ;;  %v12073_v30 = vcombine.low %v9608_v53, %v9612_v42  ;;  %v9648_v55 = vld [vmem:[%s17165_s7 + $0x218] sm:$0xff]  ;;  %v12112_v12 = vcombine.high %v9647_v50, %v9651_v51 }
 0x9b0   :  { %v9652_v15 = vld [vmem:[%s17165_s7 + $0x238] sm:$0xff]  ;;  %v12111_v7 = vcombine.low %v9647_v50, %v9651_v51 }
 0x9b1   :  { %10434 = vmatpush1.bf16.msra.mxu0 %v12055_v56  ;;  %10475 = vmatpush1.bf16.msra.mxu1 %v12057_v44  ;;  %v12114_v56 = vcombine.high %v9648_v55, %v9652_v15  ;;  %v9655_v44 = vld [vmem:[%s17165_s7 + $0x250] sm:$0xff]  ;;  %v12113_v53 = vcombine.low %v9648_v55, %v9652_v15  ;;  %v9700_v50 = vld [vmem:[%s17165_s7 + $0x3b8] sm:$0xff] }
 0x9b2   :  { %10435 = vmatprep.subr.bf16.mxu0 %v12064_v14  ;;  %10476 = vmatprep.subr.bf16.mxu1 %v12066_v33  ;;  %v9659_v14 = vld [vmem:[%s17165_s7 + $0x270] sm:$0xff]  ;;  %v9656_v33 = vld [vmem:[%s17165_s7 + $0x258] sm:$0xff] }
 0x9b3   :  { %v12120_v42 = vcombine.high %v9655_v44, %v9659_v14  ;;  %v12119_v2 = vcombine.low %v9655_v44, %v9659_v14  ;;  %v12121_v4 = vcombine.low %v9656_v33, %v9660_v19  ;;  %v9708_v44 = vld [vmem:[%s17165_s7 + $0x3f8] sm:$0xff] }
 0x9b5   :  { %10436 = vmatpush1.bf16.msra.mxu0 %v12063_v59  ;;  %10477 = vmatpush1.bf16.msra.mxu1 %v12065_v26  ;;  %v12122_v59 = vcombine.high %v9656_v33, %v9660_v19  ;;  %v9663_v26 = vld [vmem:[%s17165_s7 + $0x290] sm:$0xff] }
 0x9b6   :  { %10437 = vmatprep.subr.bf16.mxu0 %v12072_v25  ;;  %10478 = vmatprep.subr.bf16.mxu1 %v12074_v10  ;;  %v9667_v25 = vld [vmem:[%s17165_s7 + $0x2b0] sm:$0xff]  ;;  %v9664_v10 = vld [vmem:[%s17165_s7 + $0x298] sm:$0xff] }
 0x9b7   :  { %v12128_v45 = vcombine.high %v9663_v26, %v9667_v25  ;;  %v12127_v48 = vcombine.low %v9663_v26, %v9667_v25  ;;  %v12129_v49 = vcombine.low %v9664_v10, %v9668_v24  ;;  %v12502_v26 = vld [vmem:[%s17169_s8] sm:$0xff]   ;;  %v12503_v25 = vld [vmem:[%s17169_s8 + $0x48] sm:$0xff]  }
 0x9b9   :  { %10438 = vmatpush1.bf16.msra.mxu0 %v12071_v61  ;;  %10479 = vmatpush1.bf16.msra.mxu1 %v12073_v30  ;;  %v12130_v61 = vcombine.high %v9664_v10, %v9668_v24  ;;  %v9671_v30 = vld [vmem:[%s17165_s7 + $0x2d0] sm:$0xff]  ;;  %v12504_v10 = vld [vmem:[%s17169_s8 + $0x8] sm:$0xff]  }
 0x9ba   :  { %10439 = vmatprep.subr.bf16.mxu0 %v12080_v54  ;;  %10480 = vmatprep.subr.bf16.mxu1 %v12082_v5  ;;  %v9675_v54 = vld [vmem:[%s17165_s7 + $0x2f0] sm:$0xff]  ;;  %v9672_v5 = vld [vmem:[%s17165_s7 + $0x2d8] sm:$0xff] }
 0x9bb   :  { %v12136_v23 = vcombine.high %v9671_v30, %v9675_v54  ;;  %v12135_v29 = vcombine.low %v9671_v30, %v9675_v54  ;;  %v12137_v0 = vcombine.low %v9672_v5, %v9676_v40  ;;  %v12506_v24 = vld [vmem:[%s17169_s8 + $0x10] sm:$0xff]   ;;  %v12511_v30 = vld [vmem:[%s17169_s8 + $0x68] sm:$0xff]  }
 0x9bc   :  { %v12512_v54 = vld [vmem:[%s17169_s8 + $0x28] sm:$0xff]  }
 0x9bd   :  { %10440 = vmatpush1.bf16.msra.mxu0 %v12079_v47  ;;  %10481 = vmatpush1.bf16.msra.mxu1 %v12081_v32  ;;  %v12138_v47 = vcombine.high %v9672_v5, %v9676_v40  ;;  %v9679_v32 = vld [vmem:[%s17165_s7 + $0x310] sm:$0xff] }
 0x9be   :  { %10441 = vmatprep.subr.bf16.mxu0 %v12088_v3  ;;  %10482 = vmatprep.subr.bf16.mxu1 %v12090_v62  ;;  %v9683_v3 = vld [vmem:[%s17165_s7 + $0x330] sm:$0xff]  ;;  %v9680_v62 = vld [vmem:[%s17165_s7 + $0x318] sm:$0xff] }
 0x9bf   :  { %v12144_v34 = vcombine.high %v9679_v32, %v9683_v3  ;;  %v12143_v52 = vcombine.low %v9679_v32, %v9683_v3  ;;  %v12145_v36 = vcombine.low %v9680_v62, %v9684_v6  ;;  %v12513_v5 = vld [vmem:[%s17169_s8 + $0x70] sm:$0xff]   ;;  %v12518_v32 = vld [vmem:[%s17170_s10 + $0x8] sm:$0xff]  }
 0x9c0   :  { %v12514_v40 = vld [vmem:[%s17169_s8 + $0x30] sm:$0xff]  }
 0x9c1   :  { %10442 = vmatpush1.bf16.msra.mxu0 %v12087_v41  ;;  %10483 = vmatpush1.bf16.msra.mxu1 %v12089_v35  ;;  %v12146_v41 = vcombine.high %v9680_v62, %v9684_v6  ;;  %v9687_v35 = vld [vmem:[%s17165_s7 + $0x350] sm:$0xff]  ;;  %v12520_v62 = vld [vmem:[%s17170_s10 + $0x18] sm:$0xff]  }
 0x9c2   :  { %10443 = vmatprep.subr.bf16.mxu0 %v12096_v9  ;;  %10484 = vmatprep.subr.bf16.mxu1 %v12098_v37  ;;  %v9691_v9 = vld [vmem:[%s17165_s7 + $0x370] sm:$0xff]  ;;  %v9688_v37 = vld [vmem:[%s17165_s7 + $0x358] sm:$0xff] }
 0x9c3   :  { %v12152_v1 = vcombine.high %v9687_v35, %v9691_v9  ;;  %v12151_v51 = vcombine.low %v9687_v35, %v9691_v9  ;;  %v12153_v55 = vcombine.low %v9688_v37, %v9692_v57  ;;  %v12519_v3 = vld [vmem:[%s17170_s10 + $0x10] sm:$0xff]  }
 0x9c5   :  { %10444 = vmatpush1.bf16.msra.mxu0 %v12095_v60  ;;  %10485 = vmatpush1.bf16.msra.mxu1 %v12097_v8  ;;  %v12154_v60 = vcombine.high %v9688_v37, %v9692_v57  ;;  %v9695_v8 = vld [vmem:[%s17165_s7 + $0x390] sm:$0xff]  ;;  %v12521_v57 = vld [vmem:[%s17170_s10 + $0x20] sm:$0xff]  }
 0x9c6   :  { %10445 = vmatprep.subr.bf16.mxu0 %v12104_v43  ;;  %10486 = vmatprep.subr.bf16.mxu1 %v12106_v22  ;;  %v9699_v43 = vld [vmem:[%s17165_s7 + $0x3b0] sm:$0xff]  ;;  %v9696_v22 = vld [vmem:[%s17165_s7 + $0x398] sm:$0xff] }
 0x9c7   :  { %v12160_v15 = vcombine.high %v9695_v8, %v9699_v43  ;;  %v12159_v14 = vcombine.low %v9695_v8, %v9699_v43  ;;  %v12161_v33 = vcombine.low %v9696_v22, %v9700_v50 }
 0x9c9   :  { %10446 = vmatpush1.bf16.msra.mxu0 %v12103_v21  ;;  %10487 = vmatpush1.bf16.msra.mxu1 %v12105_v17  ;;  %v12162_v21 = vcombine.high %v9696_v22, %v9700_v50  ;;  %v9703_v17 = vld [vmem:[%s17165_s7 + $0x3d0] sm:$0xff] }
 0x9ca   :  { %10447 = vmatprep.subr.bf16.mxu0 %v12112_v12  ;;  %10488 = vmatprep.subr.bf16.mxu1 %v12114_v56  ;;  %v9707_v12 = vld [vmem:[%s17165_s7 + $0x3f0] sm:$0xff]  ;;  %v9704_v56 = vld [vmem:[%s17165_s7 + $0x3d8] sm:$0xff] }
 0x9cb   :  { %v12168_v19 = vcombine.high %v9703_v17, %v9707_v12 }
 0x9cd   :  { %10448 = vmatpush1.bf16.msra.mxu0 %v12111_v7  ;;  %10489 = vmatpush1.bf16.msra.mxu1 %v12113_v53  ;;  %v12170_v7 = vcombine.high %v9704_v56, %v9708_v44  ;;  %v12167_v53 = vcombine.low %v9703_v17, %v9707_v12 }
 0x9ce   :  { %10449 = vmatprep.subr.bf16.mxu0 %v12120_v42  ;;  %10490 = vmatprep.subr.bf16.mxu1 %v12122_v59  ;;  %v12169_v42 = vcombine.low %v9704_v56, %v9708_v44  ;;  %v12501_v59 = vld [vmem:[%s17169_s8 + $0x40] sm:$0xff]  }
 0x9d1   :  { %10450 = vmatpush1.bf16.msra.mxu0 %v12119_v2  ;;  %10491 = vmatpush1.bf16.msra.mxu1 %v12121_v4  ;;  %v12507_v2 = vld [vmem:[%s17169_s8 + $0x58] sm:$0xff]  }
 0x9d2   :  { %10451 = vmatprep.subr.bf16.mxu0 %v12128_v45  ;;  %10492 = vmatprep.subr.bf16.mxu1 %v12130_v61  ;;  %v12508_v4 = vld [vmem:[%s17169_s8 + $0x18] sm:$0xff]   ;;  %v12509_v45 = vld [vmem:[%s17169_s8 + $0x60] sm:$0xff]  }
 0x9d3   :  { %v12510_v61 = vld [vmem:[%s17169_s8 + $0x20] sm:$0xff]  }
 0x9d5   :  { %10452 = vmatpush1.bf16.msra.mxu0 %v12127_v48  ;;  %10493 = vmatpush1.bf16.msra.mxu1 %v12129_v49  ;;  %v12515_v48 = vld [vmem:[%s17169_s8 + $0x78] sm:$0xff]  }
 0x9d6   :  { %10453 = vmatprep.subr.bf16.mxu0 %v12136_v23  ;;  %10494 = vmatprep.subr.bf16.mxu1 %v12138_v47  ;;  %v12516_v49 = vld [vmem:[%s17169_s8 + $0x38] sm:$0xff]   ;;  %v12783_v23 = vmov 0.0   ;;  %v12517_v47 = vld [vmem:[%s17170_s10] sm:$0xff]  }
 0x9d9   :  { %10454 = vmatpush1.bf16.msra.mxu0 %v12135_v29  ;;  %10495 = vmatpush1.bf16.msra.mxu1 %v12137_v0 }
 0x9da   :  { %10455 = vmatprep.subr.bf16.mxu0 %v12144_v34  ;;  %10496 = vmatprep.subr.bf16.mxu1 %v12146_v41 }
 0x9dd   :  { %10456 = vmatpush1.bf16.msra.mxu0 %v12143_v52  ;;  %10497 = vmatpush1.bf16.msra.mxu1 %v12145_v36 }
 0x9de   :  { %10457 = vmatprep.subr.bf16.mxu0 %v12152_v1  ;;  %10498 = vmatprep.subr.bf16.mxu1 %v12154_v60 }
 0x9e1   :  { %10458 = vmatpush1.bf16.msra.mxu0 %v12151_v51  ;;  %10499 = vmatpush1.bf16.msra.mxu1 %v12153_v55 }
 0x9e2   :  { %10459 = vmatprep.subr.bf16.mxu0 %v12160_v15  ;;  %10500 = vmatprep.subr.bf16.mxu1 %v12162_v21 }
 0x9e5   :  { %10460 = vmatpush1.bf16.msra.mxu0 %v12159_v14  ;;  %10501 = vmatpush1.bf16.msra.mxu1 %v12161_v33 }
 0x9e6   :  { %10461 = vmatprep.subr.bf16.mxu0 %v12168_v19  ;;  %10502 = vmatprep.subr.bf16.mxu1 %v12170_v7 }
 0x9e9   :  { %10462 = vmatpush1.bf16.msra.mxu0 %v12167_v53  ;;  %10503 = vmatpush1.bf16.msra.mxu1 %v12169_v42 }
 0x9ea   :  { %12228 = vmatprep.subr.bf16.mxu0 %v12501_v59  ;;  %12259 = vmatprep.subr.bf16.mxu1 %v12783_v23 }
 0x9ec   :  { %10464 = vmatmul.mubr.bf16.vlgmr.msra.gmra.mrb[4].mxu0 %v16883_v39  ;;  %10505 = vmatmul.mubr.bf16.vlgmr.msra.gmra.mrb[4].mxu1 %v16883_v39  ;;  %v12505_v39 = vld [vmem:[%s17169_s8 + $0x50] sm:$0xff]  }
 0x9ed   :  { %12229 = vmatpush3.bf16.msra.mxu0 %v12502_v26  ;;  %12260 = vmatpush3.bf16.msra.mxu1 %v12517_v47 }
 0x9ee   :  { %12230 = vmatprep.subr.bf16.mxu0 %v12503_v25  ;;  %12261 = vmatprep.subr.bf16.mxu1 %v12783_v23 }
 0x9ef   :  { %12275 = vmatprep.mubr.msk.bf16.mxu1 %vm12784_vm3, %v12783_v23 }
 0x9f1   :  { %12231 = vmatpush3.bf16.msra.mxu0 %v12504_v10  ;;  %12262 = vmatpush3.bf16.msra.mxu1 %v12518_v32 }
 0x9f2   :  { %12232 = vmatprep.subr.bf16.mxu0 %v12505_v39  ;;  %12263 = vmatprep.subr.bf16.mxu1 %v12783_v23 }
 0x9f5   :  { %12233 = vmatpush3.bf16.msra.mxu0 %v12506_v24  ;;  %12264 = vmatpush3.bf16.msra.mxu1 %v12519_v3 }
 0x9f6   :  { %12234 = vmatprep.subr.bf16.mxu0 %v12507_v2  ;;  %12265 = vmatprep.subr.bf16.mxu1 %v12783_v23 }
 0x9f9   :  { %12235 = vmatpush3.bf16.msra.mxu0 %v12508_v4  ;;  %12266 = vmatpush3.bf16.msra.mxu1 %v12520_v62 }
 0x9fa   :  { %12236 = vmatprep.subr.bf16.mxu0 %v12509_v45  ;;  %12267 = vmatprep.subr.bf16.mxu1 %v12783_v23 }
 0x9fd   :  { %12237 = vmatpush3.bf16.msra.mxu0 %v12510_v61  ;;  %12268 = vmatpush3.bf16.msra.mxu1 %v12521_v57  ;;  %v12524_v57 = vld [vmem:[%s17170_s10 + $0x38] sm:$0xff]  }
 0x9fe   :  { %12238 = vmatprep.subr.bf16.mxu0 %v12511_v30  ;;  %12269 = vmatprep.subr.bf16.mxu1 %v12783_v23 }
 0xa01   :  { %12239 = vmatpush3.bf16.msra.mxu0 %v12512_v54 }
 0xa02   :  { %12240 = vmatprep.subr.bf16.mxu0 %v12513_v5 }
 0xa05   :  { %12241 = vmatpush3.bf16.msra.mxu0 %v12514_v40 }
 0xa06   :  { %12242 = vmatprep.subr.bf16.mxu0 %v12515_v48 }
 0xa09   :  { %12243 = vmatpush3.bf16.msra.mxu0 %v12516_v49 }
 0xa7f   :  { %v10383_v6 = vpop.f32.mrb[56].mxu0  ;;  %v10424_v29 = vpop.f32.mrb[56].mxu1 }
 0xa80   :  { %v12335_v0 = vadd.f32 %v10383_v6, %v18113_v18  ;;  %v10385_v34 = vpop.f32.mrb[57].mxu0  ;;  %v10426_v41 = vpop.f32.mrb[57].mxu1  ;;  %v12337_v43 = vadd.f32 %v10424_v29, %v13878_v63 }
 0xa81   :  { %v12336_v35 = vadd.f32 %v10385_v34, %v13867_v38  ;;  %v10387_v9 = vpop.f32.mrb[58].mxu0  ;;  %v10428_v37 = vpop.f32.mrb[58].mxu1  ;;  %v12522_v38 = vld [vmem:[%s17170_s10 + $0x28] sm:$0xff]   ;;  %v12338_v18 = vadd.f32 %v10426_v41, %v13874_v31 }
 0xa82   :  { %v12171_v52 = vmul.f32 -1.442695, %v12335_v0  ;;  %v10388_v36 = vpop.f32.mrb[59].mxu0  ;;  %v10429_v1 = vpop.f32.mrb[59].mxu1  ;;  %12270 = vmatpush3.bf16.msra.mxu1 %v12522_v38 }
 0xa83   :  { %v12172_v60 = vmul.f32 -1.442695, %v12336_v35  ;;  %12271 = vmatprep.subr.bf16.mxu1 %v12783_v23  ;;  %v12173_v8 = vmul.f32 -1.442695, %v12338_v18  ;;  %v10591_v29 = vpop.permute.xlu0 %10590 }
 0xa84   :  { %12749 = vpow2.f32 %v12171_v52  ;;  %vm10593_vm2 = vcmp.gt.f32.partialorder %v10591_v29, 0.0 }
 0xa85   :  { %12751 = vpow2.f32 %v12172_v60 }
 0xa86   :  { %12753 = vpow2.f32 %v12173_v8 }
 0xa87   :  { %12755 = vtanh.f32 %v12337_v43  ;;  %v12195_v43 = vld [vmem:[%s17172_s11] ss:$0 sm:$0xff] }
 0xa8e   :  { %v12750_v22 = vpop.eup %12749 }
 0xa8f   :  { %v12752_v50 = vpop.eup %12751  ;;  %v10533_v51 = vadd.f32 1.0, %v12750_v22 }
 0xa90   :  { %v10539_v55 = vadd.f32 1.0, %v12752_v50  ;;  %v12754_v15 = vpop.eup %12753 }
 0xa91   :  { %12757 = vrcp.f32 %v10533_v51  ;;  %v12756_v21 = vpop.eup %12755  ;;  %v10546_v31 = vadd.f32 1.0, %v12754_v15 }
 0xa92   :  { %12759 = vrcp.f32 %v10539_v55 }
 0xa93   :  { %12761 = vrcp.f32 %v10546_v31 }
 0xa9b   :  { %v12758_v17 = vpop.eup %12757 }
 0xa9c   :  { %v12760_v12 = vpop.eup %12759  ;;  %v10550_v56 = vmul.f32 %v12758_v17, %v12756_v21 }
 0xa9d   :  { %v10549_v44 = vmul.f32 %v12760_v12, %v16850_v11  ;;  %v12762_v63 = vpop.eup %12761 }
 0xa9f   :  { %v10551_v14 = vadd.f32 %v10550_v56, %v10549_v44 }
 0xaa1   :  { %12763 = vtanh.f32 %v10551_v14 }
 0xaab   :  { %v12764_v33 = vpop.eup %12763 }
 0xaac   :  { %v10553_v19 = vmul.f32 %v12764_v33, %v12762_v63 }
 0xabf   :  { %v10465_v7 = vpop.f32.mrb[4].mxu0  ;;  %v10506_v53 = vpop.f32.mrb[4].mxu1 }
 0xac0   :  { %v12283_v42 = vadd.f32 %v10465_v7, %v18115_v13  ;;  %v10467_v59 = vpop.f32.mrb[5].mxu0  ;;  %v10508_v26 = vpop.f32.mrb[5].mxu1  ;;  %v12285_v30 = vadd.f32 %v10506_v53, %v13921_v27 }
 0xac1   :  { %v12284_v25 = vadd.f32 %v10467_v59, %v13903_v46  ;;  %v10469_v10 = vpop.f32.mrb[6].mxu0  ;;  %v10510_v39 = vpop.f32.mrb[6].mxu1  ;;  %v12286_v45 = vadd.f32 %v10508_v26, %v13912_v16 }
 0xac2   :  { %v12174_v24 = vmul.f32 -1.442695, %v12283_v42  ;;  %v10470_v2 = vpop.f32.mrb[7].mxu0  ;;  %v10511_v4 = vpop.f32.mrb[7].mxu1 }
 0xac3   :  { %v12175_v11 = vmul.f32 -1.442695, %v12284_v25  ;;  %v12176_v61 = vmul.f32 -1.442695, %v12286_v45  ;;  %v10584_v27 = vpop.permute.xlu1 %10583 }
 0xac4   :  { %12765 = vpow2.f32 %v12174_v24  ;;  %vm10586_vm1 = vcmp.gt.f32.partialorder %v10584_v27, 0.0 }
 0xac5   :  { %12767 = vpow2.f32 %v12175_v11  ;;  %v10595_v41 = vsel %vm10586_vm1, %v10553_v19, %v16862_v28 }
 0xac6   :  { %12769 = vpow2.f32 %v12176_v61  ;;  %v10611_v37 = vpack.c.bf16 %v10595_v41, %v10595_v41 }
 0xac7   :  { %12771 = vtanh.f32 %v12285_v30 }
 0xace   :  { %v12766_v54 = vpop.eup %12765 }
 0xacf   :  { %v12768_v5 = vpop.eup %12767  ;;  %v10558_v13 = vadd.f32 1.0, %v12766_v54 }
 0xad0   :  { %v10564_v40 = vadd.f32 1.0, %v12768_v5  ;;  %v12770_v46 = vpop.eup %12769 }
 0xad1   :  { %12773 = vrcp.f32 %v10558_v13  ;;  %v12772_v48 = vpop.eup %12771  ;;  %v10571_v3 = vadd.f32 1.0, %v12770_v46 }
 0xad2   :  { %12775 = vrcp.f32 %v10564_v40 }
 0xad3   :  { %12777 = vrcp.f32 %v10571_v3 }
 0xadb   :  { %v12774_v49 = vpop.eup %12773 }
 0xadc   :  { %v12776_v47 = vpop.eup %12775  ;;  %v10575_v32 = vmul.f32 %v12774_v49, %v12772_v48 }
 0xadd   :  { %v10574_v62 = vmul.f32 %v12776_v47, %v16858_v20  ;;  %v12778_v6 = vpop.eup %12777  ;;  %v12523_v20 = vld [vmem:[%s17170_s10 + $0x30] sm:$0xff]  }
 0xade   :  { %12272 = vmatpush3.bf16.msra.mxu1 %v12523_v20 }
 0xadf   :  { %v10576_v16 = vadd.f32 %v10575_v32, %v10574_v62  ;;  %12273 = vmatprep.subr.bf16.mxu1 %v12783_v23 }
 0xae1   :  { %12779 = vtanh.f32 %v10576_v16 }
 0xae2   :  { %12274 = vmatpush3.bf16.msra.mxu1 %v12524_v57 }
 0xaeb   :  { %v12780_v0 = vpop.eup %12779 }
 0xaec   :  { %v10578_v34 = vmul.f32 %v12780_v0, %v12778_v6 }
 0xaee   :  { %v10601_v35 = vsel %vm10593_vm2, %v10578_v34, %v16868_v58  ;;  %v12178_v58 = vld [vmem:[%s17171_s9] ss:$0 sm:$0xff] }
 0xaef   :  { %v10612_v9 = vpack.c.bf16 %v10601_v35, %v10601_v35 }
 0xaf1   :  { %10780 = vmatprep.mubr.bf16.mxu0 %v10612_v9 }
 0xaf2   :  { %10781 = vmatmul.mubr.bf16.vlgmr.msra.gmra.mrb[64].mxu0 %v10611_v37 }
 0xbc5   :  { %v12244_v28 = vpop.f32.mrb[64].mxu0 }
 0xbc6   :  { %v12245_v52 = vpop.f32.mrb[65].mxu0 }
 0xbc7   :  { %v12246_v36 = vadd.f32 %v12245_v52, %v12244_v28  ;;  %v12247_v1 = vpop.f32.mrb[66].mxu0 }
 0xbc8   :  { %v12248_v60 = vpop.f32.mrb[67].mxu0 }
 0xbc9   :  { %v10783_v38 = vadd.f32 %v12246_v36, %v12178_v58 }
 0xbcb   :  { %v10788_v18 = vmax.f32 %v10783_v38, 0.0 }
 0xbcd   :  { %v10789_v8 = vpack.c.bf16 %v10788_v18, %v10788_v18 }
 0xbcf   :  { %12276 = vmatmul.mubr.bf16.vlgmr.msra.gmra.mrb[64].mxu1 %v10789_v8 }
 0xca2   :  { %v10895_v22 = vpop.f32.mrb[64].mxu1 }
 0xca3   :  { %v10896_v50 = vadd.f32 %v12195_v43, %v10895_v22  ;;  %v12277_v23 = vpop.f32.mrb[65].mxu1 }
 0xca4   :  { %v10898_v51 = vpop.f32.mrb[66].mxu1 }
 0xca5   :  { %10901 = vst [vmem:[%s17173_s12] sm:$0xff] %v10896_v50  ;;  %v12278_v55 = vpop.f32.mrb[67].mxu1 }

</bundles_post_ra>
